<compile_context>
chip_gen: v5e
topology: v5e:2x2
jax: 0.10.0
libtpu: 0.0.40
codegen_flags: <defaults>
</compile_context>

<pallas_src>
import functools

import jax
import jax.numpy as jnp
from jax.experimental import pallas as pl
from jax.experimental.pallas import tpu as pltpu


# --------------------------------------------------------------------------- kernel
def _factor_att_kernel(prompts_ref, x_ref, qkv_w_ref, proj_w_ref, proj_b_ref,
                       y_ref, fw_ref, *, num_heads, scale):
    """One batch element per grid step.

    prompts_ref: (P, C)   task prompts
    x_ref:       (N, C)   tokens
    y_ref:       (Np, C)  projected output, [prompts; tokens] order
    fw_ref:      (h, Np, Np) pre-scale q @ k^T (returned by the module)
    """
    prompts = prompts_ref[...]                                  # (P, C) f32
    toks = x_ref[...]                                           # (N, C) f32
    # In-kernel concat in module order [prompts; tokens]; only ~8 KiB of vreg
    # data gets shifted, far cheaper than an HBM round trip in the wrapper.
    xa = jnp.concatenate([prompts, toks], axis=0)               # (Np, C)
    Np, C = xa.shape
    Ch = C // num_heads

    # Single qkv matmul for all heads: (Np, C) @ (C, 3C) -> (Np, 3C)
    qkv = jnp.dot(xa, qkv_w_ref[...], preferred_element_type=jnp.float32)

    def split_heads(m):                                         # (Np, C) -> (h, Np, Ch)
        return jnp.transpose(m.reshape(Np, num_heads, Ch), (1, 0, 2))

    q = split_heads(qkv[:, :C])
    k = split_heads(qkv[:, C:2 * C])
    v = split_heads(qkv[:, 2 * C:])

    # factor_weight = q @ k^T for ALL heads in one batched dot_general, written
    # as one contiguous slab.
    fw = jnp.einsum("hqc,hkc->hqk", q, k,
                    preferred_element_type=jnp.float32)         # (h, Np, Np)
    fw_ref[...] = fw.astype(fw_ref.dtype)

    # softmax(fw * scale) over the whole (h, Np, Np) slab; normalisation is
    # deferred to after the PV matmul (16x fewer elements, EUP reciprocal).
    s = fw * scale
    s = s - jnp.max(s, axis=-1, keepdims=True)
    e = jnp.exp(s)                                              # (h, Np, Np)
    denom = jnp.sum(e, axis=-1, keepdims=True)                  # (h, Np, 1)

    pv = jnp.einsum("hqk,hkc->hqc", e, v,
                    preferred_element_type=jnp.float32)         # (h, Np, Ch)
    o = pv * pl.reciprocal(denom, approx=True)                  # (h, Np, Ch)

    # Concatenate heads -> (Np, C) and run the output projection as ONE matmul.
    o_cat = jnp.transpose(o, (1, 0, 2)).reshape(Np, C)
    y = jnp.dot(o_cat, proj_w_ref[...],
                preferred_element_type=jnp.float32) + proj_b_ref[...]
    y_ref[...] = y.astype(y_ref.dtype)


# --------------------------------------------------------------------------- wrapper
def task_factor_att_forward(x, spa_prompts, params, num_heads=8):
    """Matches taskFactorAtt_ConvRelPosEnc.forward(x, size, spa_prompts).

    x:           (B, N, C) tokens
    spa_prompts: (B, P, C) task prompts (P = prompts_len = 2)
    returns (x_out, factor_weight, spa_prompts_out)
    """
    x = x.astype(jnp.float32)
    spa_prompts = spa_prompts.astype(jnp.float32)
    B, N, C = x.shape
    P = spa_prompts.shape[1]
    Np = N + P
    Ch = C // num_heads
    scale = float(Ch) ** -0.5

    # VMEM guard (perf review, v7x has 64 MiB): the fw block is
    # num_heads*Np^2*4 bytes and double-buffered; it grows quadratically with
    # Np.  ~0.14 MiB at Np=66.  If Np ever grows past ~1k, add a head / query-
    # tile grid axis for fw instead of bumping vmem_limit_bytes.
    assert num_heads * Np * Np * 4 * 2 < 16 * 1024 * 1024, (
        "factor_weight block too large for VMEM; tile the head/query axis")

    kernel = functools.partial(_factor_att_kernel, num_heads=num_heads, scale=scale)

    flops = B * (2 * Np * C * 3 * C          # qkv projection
                 + 4 * Np * Np * C           # q@k^T and attn@v (all heads)
                 + 2 * Np * C * C)           # output projection
    transcendentals = B * num_heads * Np * (Np + 1)   # exp + reciprocal
    bytes_accessed = 4 * (B * P * C + B * N * C                # inputs
                          + C * 3 * C + C * C + C              # weights
                          + B * Np * C                         # y output
                          + B * num_heads * Np * Np)           # factor_weight

    y, factor_weight = pl.pallas_call(
        kernel,
        grid=(B,),
        out_shape=(
            jax.ShapeDtypeStruct((B, Np, C), jnp.float32),
            jax.ShapeDtypeStruct((B, num_heads, Np, Np), jnp.float32),
        ),
        in_specs=[
            pl.BlockSpec((None, P, C), lambda b: (b, 0, 0)),            # spa_prompts
            pl.BlockSpec((None, N, C), lambda b: (b, 0, 0)),            # x
            pl.BlockSpec((C, 3 * C), lambda b: (0, 0)),                 # qkv_w
            pl.BlockSpec((C, C), lambda b: (0, 0)),                     # proj_w
            pl.BlockSpec((1, C), lambda b: (0, 0)),                     # proj_b
        ],
        out_specs=(
            pl.BlockSpec((None, Np, C), lambda b: (b, 0, 0)),           # y
            pl.BlockSpec((None, num_heads, Np, Np), lambda b: (b, 0, 0, 0)),
        ),
        compiler_params=pltpu.CompilerParams(
            dimension_semantics=("parallel",)),                         # 2 TCs on v7x
        cost_estimate=pl.CostEstimate(flops=flops,
                                      transcendentals=transcendentals,
                                      bytes_accessed=bytes_accessed),
    )(spa_prompts, x, params["qkv_w"], params["proj_w"],
      params["proj_b"].reshape(1, C))

    # Aligned stores inside the kernel; the (unaligned row-2) prompt/token split
    # is a tiny wrapper-side slice of the 17 KiB y tensor.
    prompts_out = y[:, :P, :]
    x_out = y[:, P:, :]
    return x_out, factor_weight, prompts_out


# --------------------------------------------------------------------------- reference
def _reference(x, spa_prompts, params, num_heads=8):
    """Plain-JAX reference of the PyTorch forward (highest matmul precision)."""
    hi = jax.lax.Precision.HIGHEST
    B, N, C = x.shape
    P = spa_prompts.shape[1]
    Np = N + P
    Ch = C // num_heads
    scale = float(Ch) ** -0.5

    xa = jnp.concatenate([spa_prompts, x], axis=1)                      # (B, Np, C)
    qkv = jnp.einsum("bnc,cd->bnd", xa, params["qkv_w"], precision=hi,
                     preferred_element_type=jnp.float32)
    qkv = qkv.reshape(B, Np, 3, num_heads, Ch).transpose(2, 0, 3, 1, 4)
    q, k, v = qkv[0], qkv[1], qkv[2]                                    # (B, h, Np, Ch)
    fw = jnp.einsum("bhqc,bhkc->bhqk", q, k, precision=hi,
                    preferred_element_type=jnp.float32)
    attn = jax.nn.softmax(fw * scale, axis=-1)
    out = jnp.einsum("bhqk,bhkc->bhqc", attn, v, precision=hi,
                     preferred_element_type=jnp.float32)
    out = out.transpose(0, 2, 1, 3).reshape(B, Np, C)
    y = jnp.einsum("bnc,cd->bnd", out, params["proj_w"], precision=hi,
                   preferred_element_type=jnp.float32) + params["proj_b"]
    return y[:, P:, :], fw, y[:, :P, :]


# --------------------------------------------------------------------------- main
if __name__ == "__main__":
    B, N, C = 2, 64, 32          # tokens from an 8x8 feature map, dim=32
    num_heads = 8
    P = 2                        # prompts_len

    key = jax.random.PRNGKey(0)
    k1, k2, k3, k4, k5 = jax.random.split(key, 5)
    params = {
        "qkv_w": 0.05 * jax.random.normal(k1, (C, 3 * C), jnp.float32),
        "proj_w": 0.05 * jax.random.normal(k2, (C, C), jnp.float32),
        "proj_b": 0.05 * jax.random.normal(k3, (C,), jnp.float32),
    }
    x = jax.random.normal(k4, (B, N, C), jnp.float32)
    spa_prompts = 1.0 + jax.random.normal(k5, (B, P, C), jnp.float32)

    fwd = jax.jit(functools.partial(task_factor_att_forward, num_heads=num_heads))
    x_out, factor_weight, prompts_out = fwd(x, spa_prompts, params)
    jax.block_until_ready((x_out, factor_weight, prompts_out))

    assert x_out.shape == (B, N, C)
    assert factor_weight.shape == (B, num_heads, N + P, N + P)
    assert prompts_out.shape == (B, P, C)
    assert bool(jnp.all(jnp.isfinite(x_out)))
    assert bool(jnp.all(jnp.isfinite(factor_weight)))
    assert bool(jnp.all(jnp.isfinite(prompts_out)))

    rx, rfw, rp = jax.jit(functools.partial(_reference, num_heads=num_heads))(
        x, spa_prompts, params)
    jax.block_until_ready((rx, rfw, rp))

    def _close(a, b):
        return bool(jnp.allclose(a, b, atol=5e-3, rtol=1e-2))

    assert _close(x_out, rx), "x output mismatch vs reference"
    assert _close(factor_weight, rfw), "factor_weight mismatch vs reference"
    assert _close(prompts_out, rp), "spa_prompts output mismatch vs reference"

    print("KERNEL_OK")
</pallas_src>

<mosaic_0001>
module attributes {stable_mosaic.version = 11 : i64} {
  func.func @_factor_att_kernel(%arg0: i32, %arg1: memref<1x2x32xf32, #tpu.memory_space<vmem>>, %arg2: memref<1x64x32xf32, #tpu.memory_space<vmem>>, %arg3: memref<32x96xf32, #tpu.memory_space<vmem>>, %arg4: memref<32x32xf32, #tpu.memory_space<vmem>>, %arg5: memref<1x32xf32, #tpu.memory_space<vmem>>, %arg6: memref<1x66x32xf32, #tpu.memory_space<vmem>>, %arg7: memref<1x8x66x66xf32, #tpu.memory_space<vmem>>) attributes {dimension_semantics = [#tpu.dimension_semantics<parallel>], iteration_bounds = array<i64: 2>, scalar_prefetch = 0 : i64, scratch_operands = 0 : i64, tpu.core_type = #tpu.core_type<tc>, window_params = [{transform_indices = @transform_0, window_bounds = array<i64: 1, 2, 32>}, {transform_indices = @transform_1, window_bounds = array<i64: 1, 64, 32>}, {pipeline_mode = #tpu.pipeline_mode<synchronous>, transform_indices = @transform_2, window_bounds = array<i64: 32, 96>}, {pipeline_mode = #tpu.pipeline_mode<synchronous>, transform_indices = @transform_3, window_bounds = array<i64: 32, 32>}, {pipeline_mode = #tpu.pipeline_mode<synchronous>, transform_indices = @transform_4, window_bounds = array<i64: 1, 32>}, {transform_indices = @transform_5, window_bounds = array<i64: 1, 66, 32>}, {transform_indices = @transform_6, window_bounds = array<i64: 1, 8, 66, 66>}]} {
    %c0 = arith.constant 0 : index
    %c0_0 = arith.constant 0 : index
    %c0_1 = arith.constant 0 : index
    %0 = vector.load %arg1[%c0, %c0_0, %c0_1] : memref<1x2x32xf32, #tpu.memory_space<vmem>>, vector<1x2x32xf32>
    %1 = vector.shape_cast %0 : vector<1x2x32xf32> to vector<2x32xf32>
    %c0_2 = arith.constant 0 : index
    %c0_3 = arith.constant 0 : index
    %c0_4 = arith.constant 0 : index
    %2 = vector.load %arg2[%c0_2, %c0_3, %c0_4] : memref<1x64x32xf32, #tpu.memory_space<vmem>>, vector<1x64x32xf32>
    %3 = vector.shape_cast %2 : vector<1x64x32xf32> to vector<64x32xf32>
    %4 = tpu.concatenate %1, %3 in 0 : vector<2x32xf32>, vector<64x32xf32> -> vector<66x32xf32>
    %c0_5 = arith.constant 0 : index
    %c0_6 = arith.constant 0 : index
    %5 = vector.load %arg3[%c0_5, %c0_6] : memref<32x96xf32, #tpu.memory_space<vmem>>, vector<32x96xf32>
    %cst = arith.constant dense<0.000000e+00> : vector<66x96xf32>
    %6 = tpu.matmul %4, %5, %cst {dimension_numbers = #tpu.dot_dimension_numbers<[1], [0], [0], [1], [0, 0, 1, 1], [], []>} : vector<66x32xf32>, vector<32x96xf32>, vector<66x96xf32> -> vector<66x96xf32>
    %7 = vector.extract_strided_slice %6 {offsets = [0, 0], sizes = [66, 32], strides = [1, 1]} : vector<66x96xf32> to vector<66x32xf32>
    %8 = vector.shape_cast %7 : vector<66x32xf32> to vector<66x8x4xf32>
    %9 = tpu.transpose %8, [1, 0, 2] : vector<66x8x4xf32> -> vector<8x66x4xf32>
    %10 = vector.extract_strided_slice %6 {offsets = [0, 32], sizes = [66, 32], strides = [1, 1]} : vector<66x96xf32> to vector<66x32xf32>
    %11 = vector.shape_cast %10 : vector<66x32xf32> to vector<66x8x4xf32>
    %12 = tpu.transpose %11, [1, 0, 2] : vector<66x8x4xf32> -> vector<8x66x4xf32>
    %13 = vector.extract_strided_slice %6 {offsets = [0, 64], sizes = [66, 32], strides = [1, 1]} : vector<66x96xf32> to vector<66x32xf32>
    %14 = vector.shape_cast %13 : vector<66x32xf32> to vector<66x8x4xf32>
    %15 = tpu.transpose %14, [1, 0, 2] : vector<66x8x4xf32> -> vector<8x66x4xf32>
    "tpu.trace_start"() <{level = 10 : i32, message = "hqc,hkc->hqk"}> : () -> ()
    %cst_7 = arith.constant dense<0.000000e+00> : vector<8x66x66xf32>
    %16 = tpu.matmul %9, %12, %cst_7 {dimension_numbers = #tpu.dot_dimension_numbers<[2], [2], [1], [1], [0, 0, 0, 1, 1, 1], [0], [0]>} : vector<8x66x4xf32>, vector<8x66x4xf32>, vector<8x66x66xf32> -> vector<8x66x66xf32>
    "tpu.trace_stop"() : () -> ()
    %c0_8 = arith.constant 0 : index
    %c0_9 = arith.constant 0 : index
    %c0_10 = arith.constant 0 : index
    %c0_11 = arith.constant 0 : index
    %17 = vector.load %arg7[%c0_8, %c0_9, %c0_10, %c0_11] : memref<1x8x66x66xf32, #tpu.memory_space<vmem>>, vector<1x8x66x66xf32>
    %18 = vector.shape_cast %17 : vector<1x8x66x66xf32> to vector<8x66x66xf32>
    %19 = vector.shape_cast %16 : vector<8x66x66xf32> to vector<1x8x66x66xf32>
    tpu.vector_store %arg7[%c0_8, %c0_9, %c0_10, %c0_11], %19 {strides = array<i32>} : memref<1x8x66x66xf32, #tpu.memory_space<vmem>>, vector<1x8x66x66xf32>,
    %cst_12 = arith.constant 5.000000e-01 : f32
    %20 = vector.broadcast %cst_12 : f32 to vector<8x66x66xf32>
    %21 = arith.mulf %16, %20 : vector<8x66x66xf32>
    %cst_13 = arith.constant dense<0xFF800000> : vector<8x66xf32>
    %22 = vector.multi_reduction <maximumf>, %21, %cst_13 [2] : vector<8x66x66xf32> to vector<8x66xf32>
    %23 = vector.shape_cast %22 : vector<8x66xf32> to vector<8x66x1xf32>
    %24 = vector.broadcast %23 : vector<8x66x1xf32> to vector<8x66x66xf32>
    %25 = arith.subf %21, %24 : vector<8x66x66xf32>
    %26 = math.exp %25 : vector<8x66x66xf32>
    %cst_14 = arith.constant dense<0.000000e+00> : vector<8x66xf32>
    %27 = vector.multi_reduction <add>, %26, %cst_14 [2] : vector<8x66x66xf32> to vector<8x66xf32>
    %28 = vector.shape_cast %27 : vector<8x66xf32> to vector<8x66x1xf32>
    "tpu.trace_start"() <{level = 10 : i32, message = "hqk,hkc->hqc"}> : () -> ()
    %cst_15 = arith.constant dense<0.000000e+00> : vector<8x66x4xf32>
    %29 = tpu.matmul %26, %15, %cst_15 {dimension_numbers = #tpu.dot_dimension_numbers<[2], [1], [1], [2], [0, 0, 0, 1, 1, 2], [0], [0]>} : vector<8x66x66xf32>, vector<8x66x4xf32>, vector<8x66x4xf32> -> vector<8x66x4xf32>
    "tpu.trace_stop"() : () -> ()
    %30 = tpu.reciprocal %28 {approx = true} : vector<8x66x1xf32> -> vector<8x66x1xf32>
    %31 = vector.broadcast %30 : vector<8x66x1xf32> to vector<8x66x4xf32>
    %32 = arith.mulf %29, %31 : vector<8x66x4xf32>
    %33 = tpu.transpose %32, [1, 0, 2] : vector<8x66x4xf32> -> vector<66x8x4xf32>
    %34 = vector.shape_cast %33 : vector<66x8x4xf32> to vector<66x32xf32>
    %c0_16 = arith.constant 0 : index
    %c0_17 = arith.constant 0 : index
    %35 = vector.load %arg4[%c0_16, %c0_17] : memref<32x32xf32, #tpu.memory_space<vmem>>, vector<32x32xf32>
    %cst_18 = arith.constant dense<0.000000e+00> : vector<66x32xf32>
    %36 = tpu.matmul %34, %35, %cst_18 {dimension_numbers = #tpu.dot_dimension_numbers<[1], [0], [0], [1], [0, 0, 1, 1], [], []>} : vector<66x32xf32>, vector<32x32xf32>, vector<66x32xf32> -> vector<66x32xf32>
    %c0_19 = arith.constant 0 : index
    %c0_20 = arith.constant 0 : index
    %37 = vector.load %arg5[%c0_19, %c0_20] : memref<1x32xf32, #tpu.memory_space<vmem>>, vector<1x32xf32>
    %38 = vector.broadcast %37 : vector<1x32xf32> to vector<66x32xf32>
    %39 = arith.addf %36, %38 : vector<66x32xf32>
    %c0_21 = arith.constant 0 : index
    %c0_22 = arith.constant 0 : index
    %c0_23 = arith.constant 0 : index
    %40 = vector.load %arg6[%c0_21, %c0_22, %c0_23] : memref<1x66x32xf32, #tpu.memory_space<vmem>>, vector<1x66x32xf32>
    %41 = vector.shape_cast %40 : vector<1x66x32xf32> to vector<66x32xf32>
    %42 = vector.shape_cast %39 : vector<66x32xf32> to vector<1x66x32xf32>
    tpu.vector_store %arg6[%c0_21, %c0_22, %c0_23], %42 {strides = array<i32>} : memref<1x66x32xf32, #tpu.memory_space<vmem>>, vector<1x66x32xf32>,
    return
  }
  func.func @transform_0(%arg0: i32) -> (i32, i32, i32) {
    %c0_i32 = arith.constant 0 : i32
    %c0_i32_0 = arith.constant 0 : i32
    %c0_i32_1 = arith.constant 0 : i32
    return %arg0, %c0_i32, %c0_i32_0 : i32, i32, i32
  }
  func.func @transform_1(%arg0: i32) -> (i32, i32, i32) {
    %c0_i32 = arith.constant 0 : i32
    %c0_i32_0 = arith.constant 0 : i32
    %c0_i32_1 = arith.constant 0 : i32
    return %arg0, %c0_i32, %c0_i32_0 : i32, i32, i32
  }
  func.func @transform_2(%arg0: i32) -> (i32, i32) {
    %c0_i32 = arith.constant 0 : i32
    %c0_i32_0 = arith.constant 0 : i32
    %c0_i32_1 = arith.constant 0 : i32
    return %c0_i32, %c0_i32_0 : i32, i32
  }
  func.func @transform_3(%arg0: i32) -> (i32, i32) {
    %c0_i32 = arith.constant 0 : i32
    %c0_i32_0 = arith.constant 0 : i32
    %c0_i32_1 = arith.constant 0 : i32
    return %c0_i32, %c0_i32_0 : i32, i32
  }
  func.func @transform_4(%arg0: i32) -> (i32, i32) {
    %c0_i32 = arith.constant 0 : i32
    %c0_i32_0 = arith.constant 0 : i32
    %c0_i32_1 = arith.constant 0 : i32
    return %c0_i32, %c0_i32_0 : i32, i32
  }
  func.func @transform_5(%arg0: i32) -> (i32, i32, i32) {
    %c0_i32 = arith.constant 0 : i32
    %c0_i32_0 = arith.constant 0 : i32
    %c0_i32_1 = arith.constant 0 : i32
    return %arg0, %c0_i32, %c0_i32_0 : i32, i32, i32
  }
  func.func @transform_6(%arg0: i32) -> (i32, i32, i32, i32) {
    %c0_i32 = arith.constant 0 : i32
    %c0_i32_0 = arith.constant 0 : i32
    %c0_i32_1 = arith.constant 0 : i32
    %c0_i32_2 = arith.constant 0 : i32
    return %arg0, %c0_i32, %c0_i32_0, %c0_i32_1 : i32, i32, i32, i32
  }
}

</mosaic_0001>

<bundles_post_ra>
// kernel: task_factor_att_forward.1
= control target key start
LH: loop header
LB: loop body
LE: loop exit
PB: predicated region body
PF: predicated region fallthrough
CT: control target
= control target key end

     0   :  { %s12187_s21 = smov 0   ;;  %s21965_s0 = inlined_call_operand.vmem [shape: f32[2,2,32], index: 0, kind: input, shape index: {}]   ;;  %s21966_s1 = inlined_call_operand.vmem [shape: f32[2,64,32], index: 1, kind: input, shape index: {}]   ;;  %s21967_s2 = inlined_call_operand.vmem [shape: f32[32,96], index: 2, kind: input, shape index: {}]   ;;  %s21968_s3 = inlined_call_operand.vmem [shape: f32[32,32], index: 3, kind: input, shape index: {}]   ;;  %s21969_s4 = inlined_call_operand.vmem [shape: f32[1,32], index: 4, kind: input, shape index: {}]   ;;  %s21970_s5 = inlined_call_operand.vmem [shape: f32[2,66,32], index: 5, kind: output, shape index: {0}]   ;;  %s21971_s6 = inlined_call_operand.vmem [shape: f32[2,8,66,66], index: 6, kind: output, shape index: {1}]  }
   0x1 LB: > { %s11377_s22 = sadd.s32 4294967295, %s12132_s21   ;;  %p11381_p0 = scmp.ge.s32.totalorder %s12132_s21, 1  ;;  %s12132_s21 = sphi %s12187_s21, %s17_s21  }
   0x2   : > { %p224_p1 = scmp.lt.s32.totalorder %s12132_s21, 3 }
   0x4   : > { %p225_p2 = pnand %p11381_p0, %p224_p1 }
   0x6   : > { %228 = sbr.rel (%p225_p2) target bundleno = 2149 (0x865), region = 40 }
   0xb   : > { %v320_v0 = vld [vmem:[%s21967_s2 + $0x18] sm:$0xff]  ;;  %v319_v1 = vld [vmem:[%s21967_s2 + $0x10] sm:$0xff]  ;;  %p263_p3 = scmp.lt.s32.totalorder %s11377_s22, 1  ;;  %v318_v2 = vld [vmem:[%s21967_s2 + $0x8] sm:$0xff]  ;;  %vm299_vm0 = vcmask 1041408   ;;  %vm321_vm1 = vcmask 261120  }
   0xc   : > { %353 = vmatpush.msra.mxu0 %v320_v0  ;;  %11632 = vmatpush.msra.mxu3 %v320_v0  ;;  %v317_v3 = vld [vmem:[%s21967_s2] sm:$0xff]  ;;  %s12134_s15 = smov 124   ;;  %s12135_s16 = smov 120   ;;  %vm584_vm2 = vcmask 1047556   ;;  %vm6668_vm3 = vcmask 31744   ;;  %vm7453_vm4 = vcmask 539648  }
   0xd   : > { %s24183_s22 = smov (!%p263_p3, %s11377_s22), 1  ;;  %s12136_s17 = smov 116   ;;  %vm7462_vm5 = vcmask 533504   ;;  %vm11128_vm6 = vcmask 64512   ;;  %vm11138_vm7 = vcmask 97280   ;;  %vm11148_vm8 = vcmask 130048  }
   0xe   : > { %354 = vmatpush.msra.mxu0 %v319_v1  ;;  %11633 = vmatpush.msra.mxu3 %v319_v1  ;;  %s11382_s7 = sshll.u32 %s24183_s22, 1  ;;  %s11631_s8 = sshll.u32 %s24183_s22, 6  ;;  %vm11158_vm9 = vcmask 162816   ;;  %vm11168_vm10 = vcmask 195584   ;;  %vm11178_vm11 = vcmask 228352   ;;  %vm11275_vm12 = vcmask 254976  }
   0xf   : > { %s266_s11 = scalar_lea.vmem %s21965_s0, %s11382_s7  ;;  %s271_s14 = scalar_lea.vmem %s21966_s1, %s11631_s8 }
  0x10   : > { %355 = vmatpush.msra.mxu0 %v318_v2  ;;  %11634 = vmatpush.msra.mxu3 %v318_v2  ;;  %v282_v4 = vld [vmem:[%s266_s11] sm:$0x3]  ;;  %v288_v8 = vld [vmem:[%s271_s14 + $0x28] sm:$0xff]  ;;  %v289_v14 = vld [vmem:[%s271_s14 + $0x30] sm:$0xff]  ;;  %s12137_s18 = smov 112   ;;  %s12138_s19 = smov 108  }
  0x11   : > { %v283_v5 = vld [vmem:[%s271_s14] sm:$0xff]  ;;  %v309_v10 = vrot.slane %v288_v8, 6  ;;  %v284_v11 = vld [vmem:[%s271_s14 + $0x8] sm:$0xff]  ;;  %v311_v16 = vrot.slane %v289_v14, 6  ;;  %v285_v18 = vld [vmem:[%s271_s14 + $0x10] sm:$0xff]  ;;  %s12139_s20 = smov 104  }
  0x12   : > { %v287_v6 = vld [vmem:[%s271_s14 + $0x20] sm:$0xff]  ;;  %356 = vmatpush.msra.mxu0 %v317_v3  ;;  %11635 = vmatpush.msra.mxu3 %v317_v3  ;;  %v300_v7 = vrot.slane %v283_v5, 6  ;;  %v301_v15 = vrot.slane %v284_v11, 6  ;;  %v290_v20 = vld [vmem:[%s271_s14 + $0x38] sm:$0xff]  ;;  %v303_v21 = vrot.slane %v285_v18, 6  ;;  %s12140_s23 = smov 100  }
  0x13   : > { %v307_v9 = vrot.slane %v287_v6, 6  ;;  %v312_v19 = vsel %vm299_vm0, %v309_v10, %v311_v16  ;;  %v313_v22 = vrot.slane %v290_v20, 6  ;;  %v286_v24 = vld [vmem:[%s271_s14 + $0x18] sm:$0xff]  ;;  %s12141_s24 = smov 96   ;;  %v12142_v2 = vmov 1983009808  }
  0x14   : > { %v316_v12 = vsel %vm299_vm0, %v282_v4, %v300_v7  ;;  %v302_v17 = vsel %vm299_vm0, %v300_v7, %v301_v15  ;;  %v304_v23 = vsel %vm299_vm0, %v301_v15, %v303_v21  ;;  %v305_v26 = vrot.slane %v286_v24, 6  ;;  %s12144_s25 = smov 64   ;;  %s11650_s26 = smul.u32 576, %s24183_s22 }
  0x15   : > { %11387 = vmatmul.msk.f32.vlgmr.msra.gmra.mxu0 %vm321_vm1, %v316_v12  ;;  %v310_v13 = vsel %vm299_vm0, %v307_v9, %v309_v10  ;;  %v314_v25 = vsel %vm299_vm0, %v311_v16, %v313_v22  ;;  %v589_v3 = vunpack.c.l.s4 %v12142_v2  ;;  %s12145_s30 = smov 4   ;;  %s12146_s7 = smov 20  }
  0x16   : > { %11392 = vmatmul.msk.f32.vlgmr.msra.gmra.mxu3 %vm321_vm1, %v310_v13  ;;  %v306_v27 = vsel %vm299_vm0, %v303_v21, %v305_v26  ;;  %v308_v28 = vsel %vm299_vm0, %v305_v26, %v307_v9  ;;  %s18828_s29 = scalar_lea.vmem %s21971_s6, %s11650_s26  ;;  %s12147_s8 = smov 12  }
  0x17   : > { %v12457_v10 = vunpack.c.0.s8 %v589_v3  ;;  %s12148_s9 = smov 16   ;;  %s12149_s10 = smov 28  }
  0x18   : > { %s12150_s11 = smov 8   ;;  %s12151_s12 = smov 24  }
  0x19   : > { %22667 = vst [vmem:[#allocation40_spill] sm:$0xff] %v12457_v10 }
  0x1d   : > { %11388 = vmatmul.msk.f32.gmra.mxu0 %vm321_vm1, %v302_v17 }
  0x1e   : > { %11393 = vmatmul.msk.f32.gmra.mxu3 %vm321_vm1, %v312_v19 }
  0x25   : > { %11389 = vmatmul.msk.f32.gmra.mxu0 %vm321_vm1, %v304_v23 }
  0x26   : > { %11394 = vmatmul.msk.f32.gmra.mxu3 %vm321_vm1, %v314_v25 }
  0x2d   : > { %11390 = vmatmul.msk.f32.gmra.mxu0 %vm321_vm1, %v306_v27 }
  0x2e   : > { %11395 = vmatmul.msk.f32.gmra.mxu3 %vm321_vm1, %v313_v22  ;;  %v12143_v22 = vmov 1934713408  }
  0x2f   : > { %v637_v23 = vunpack.c.l.s4 %v12143_v22 }
  0x31   : > { %v12509_v3 = vunpack.c.0.s8 %v637_v23 }
  0x33   : > { %22672 = vst [vmem:[#allocation45_spill] sm:$0xff] %v12509_v3 }
  0x35   : > { %11391 = vmatmul.msk.f32.gmra.mxu0 %vm321_vm1, %v308_v28 }
  0x92   : > { %v12234_v29 = vpop.f32.mrf.mxu0 }
  0x93   : > { %22629 = vst [vmem:[#allocation2_spill] sm:$0xff] %v12234_v29  ;;  %394 = vrot.lane.b32.xlu0 %v12234_v29, %s12134_s15  ;;  %v586_v20 = vrot.slane %v12234_v29, 4 }
  0x99   : > { %v12238_v30 = vpop.f32.mrf.mxu3 }
  0x9a   : > { %22630 = vst [vmem:[#allocation3_spill] sm:$0xff] %v12238_v30  ;;  %404 = vrot.lane.b32.xlu2 %v12238_v30, %s12134_s15  ;;  %v12242_v31 = vpop.f32.mrf.mxu0  ;;  %v1146_v7 = vrot.slane %v12238_v30, 4 }
  0x9b   : > { %22631 = vst [vmem:[#allocation4_spill] sm:$0xff] %v12242_v31  ;;  %421 = vrot.lane.b32.xlu0 %v12234_v29, %s12135_s16  ;;  %423 = vrot.lane.b32.xlu1 %v12242_v31, %s12135_s16  ;;  %v698_v27 = vrot.slane %v12242_v31, 4 }
  0xa1   : > { %v12278_v32 = vpop.f32.mrf.mxu3 }
  0xa2   : > { %431 = vrot.lane.b32.xlu2 %v12238_v30, %s12135_s16  ;;  %22632 = vst [vmem:[#allocation5_spill] sm:$0xff] %v12278_v32  ;;  %v12280_v33 = vpop.f32.mrf.mxu0 }
  0xa3   : > { %448 = vrot.lane.b32.xlu0 %v12234_v29, %s12136_s17  ;;  %450 = vrot.lane.b32.xlu1 %v12242_v31, %s12136_s17  ;;  %22633 = vst [vmem:[#allocation6_spill] sm:$0xff] %v12280_v33 }
  0xa9   : > { %v12288_v34 = vpop.f32.mrf.mxu3 }
  0xaa   : > { %458 = vrot.lane.b32.xlu2 %v12238_v30, %s12136_s17  ;;  %22634 = vst [vmem:[#allocation7_spill] sm:$0xff] %v12288_v34  ;;  %v12342_v40 = vpop.f32.mrf.mxu0 }
  0xab   : > { %475 = vrot.lane.b32.xlu0 %v12234_v29, %s12137_s18  ;;  %477 = vrot.lane.b32.xlu1 %v12242_v31, %s12137_s18 }
  0xb1   : > { %v12330_v37 = vpop.f32.mrf.mxu3 }
  0xb2   : > { %485 = vrot.lane.b32.xlu2 %v12238_v30, %s12137_s18  ;;  %22637 = vst [vmem:[#allocation10_spill] sm:$0xff] %v12330_v37  ;;  %v12368_v47 = vpop.f32.mrf.mxu0 }
  0xb3   : > { %502 = vrot.lane.b32.xlu0 %v12234_v29, %s12138_s19  ;;  %504 = vrot.lane.b32.xlu1 %v12242_v31, %s12138_s19  ;;  %22646 = vst [vmem:[#allocation19_spill] sm:$0xff] %v12368_v47 }
  0xba   : > { %512 = vrot.lane.b32.xlu2 %v12238_v30, %s12138_s19 }
  0xbb   : > { %529 = vrot.lane.b32.xlu0 %v12234_v29, %s12139_s20  ;;  %531 = vrot.lane.b32.xlu1 %v12242_v31, %s12139_s20 }
  0xc2   : > { %539 = vrot.lane.b32.xlu2 %v12238_v30, %s12139_s20 }
  0xc3   : > { %556 = vrot.lane.b32.xlu0 %v12234_v29, %s12140_s23  ;;  %558 = vrot.lane.b32.xlu1 %v12242_v31, %s12140_s23 }
  0xca   : > { %566 = vrot.lane.b32.xlu2 %v12238_v30, %s12140_s23 }
  0xcb   : > { %396 = vrot.lane.b32.xlu0 %v12242_v31, %s12134_s15  ;;  %398 = vrot.lane.b32.xlu1 %v12280_v33, %s12134_s15 }
  0xd2   : > { %425 = vrot.lane.b32.xlu2 %v12280_v33, %s12135_s16 }
  0xd3   : > { %406 = vrot.lane.b32.xlu0 %v12278_v32, %s12134_s15  ;;  %408 = vrot.lane.b32.xlu1 %v12288_v34, %s12134_s15 }
  0xda   : > { %452 = vrot.lane.b32.xlu2 %v12280_v33, %s12136_s17 }
  0xdb   : > { %433 = vrot.lane.b32.xlu0 %v12278_v32, %s12135_s16  ;;  %435 = vrot.lane.b32.xlu1 %v12288_v34, %s12135_s16 }
  0xe2   : > { %479 = vrot.lane.b32.xlu2 %v12280_v33, %s12137_s18 }
  0xe3   : > { %460 = vrot.lane.b32.xlu0 %v12278_v32, %s12136_s17  ;;  %462 = vrot.lane.b32.xlu1 %v12288_v34, %s12136_s17 }
  0xea   : > { %506 = vrot.lane.b32.xlu2 %v12280_v33, %s12138_s19 }
  0xeb   : > { %487 = vrot.lane.b32.xlu0 %v12278_v32, %s12137_s18  ;;  %489 = vrot.lane.b32.xlu1 %v12288_v34, %s12137_s18 }
  0xf2   : > { %533 = vrot.lane.b32.xlu2 %v12280_v33, %s12139_s20 }
  0xf3   : > { %514 = vrot.lane.b32.xlu0 %v12278_v32, %s12138_s19  ;;  %516 = vrot.lane.b32.xlu1 %v12288_v34, %s12138_s19 }
  0xf4   : > { %v12320_v35 = vpop.permute.xlu2 %404 }
  0xf5   : > { %22635 = vst [vmem:[#allocation8_spill] sm:$0xff] %v12320_v35  ;;  %v1158_v4 = vrot.slane %v12320_v35, 4 }
  0xfa   : > { %560 = vrot.lane.b32.xlu2 %v12280_v33, %s12140_s23 }
  0xfb   : > { %541 = vrot.lane.b32.xlu0 %v12278_v32, %s12139_s20  ;;  %543 = vrot.lane.b32.xlu1 %v12288_v34, %s12139_s20 }
  0xfc   : > { %v12328_v36 = vpop.permute.xlu2 %431 }
  0xfd   : > { %22636 = vst [vmem:[#allocation9_spill] sm:$0xff] %v12328_v36  ;;  %v1144_v5 = vrot.slane %v12328_v36, 4  ;;  %v1147_v13 = vsel %vm584_vm2, %v12328_v36, %v1146_v7 }
  0xfe   : > { %v1155_v18 = vperm.slane %v1147_v13, %v12457_v10 }
  0xff   : > { %v1145_v14 = vsel %vm584_vm2, %v1144_v5, %v12238_v30 }
 0x100   : > { %v12476_v21 = vperm.slane %v1145_v14, %v12457_v10  ;;  %v1206_v14 = vrot.slane %v1155_v18, 4 }
 0x102   : > { %410 = vrot.lane.b32.xlu2 %v12330_v37, %s12134_s15  ;;  %22668 = vst [vmem:[#allocation41_spill] sm:$0xff] %v12476_v21  ;;  %v1194_v22 = vrot.slane %v12476_v21, 4 }
 0x103   : > { %568 = vrot.lane.b32.xlu0 %v12278_v32, %s12140_s23  ;;  %570 = vrot.lane.b32.xlu1 %v12288_v34, %s12140_s23 }
 0x104   : > { %v12338_v38 = vpop.permute.xlu2 %458 }
 0x105   : > { %22638 = vst [vmem:[#allocation11_spill] sm:$0xff] %v12338_v38  ;;  %v12340_v39 = vpop.permute.xlu0 %394  ;;  %v1156_v11 = vrot.slane %v12338_v38, 4  ;;  %v1159_v12 = vsel %vm584_vm2, %v12338_v38, %v1158_v4 }
 0x106   : > { %22639 = vst [vmem:[#allocation12_spill] sm:$0xff] %v12340_v39  ;;  %v1167_v15 = vperm.slane %v1159_v12, %v12457_v10  ;;  %v598_v16 = vrot.slane %v12340_v39, 4 }
 0x107   : > { %v1157_v19 = vsel %vm584_vm2, %v1156_v11, %v12320_v35 }
 0x108   : > { %v12494_v4 = vperm.slane %v1157_v19, %v12457_v10  ;;  %v1204_v5 = vrot.slane %v1167_v15, 4  ;;  %v1207_v28 = vsel %vm584_vm2, %v1167_v15, %v1206_v14 }
 0x10a   : > { %437 = vrot.lane.b32.xlu2 %v12330_v37, %s12135_s16  ;;  %22669 = vst [vmem:[#allocation42_spill] sm:$0xff] %v12494_v4  ;;  %v1195_v19 = vsel %vm584_vm2, %v12494_v4, %v1194_v22  ;;  %v1205_v23 = vsel %vm584_vm2, %v1204_v5, %v1155_v18  ;;  %v12535_v22 = vperm.slane %v1207_v28, %v12509_v3 }
 0x10b   : > { %427 = vrot.lane.b32.xlu0 %v12342_v40, %s12135_s16  ;;  %400 = vrot.lane.b32.xlu1 %v12342_v40, %s12134_s15 }
 0x10c   : > { %v12350_v41 = vpop.permute.xlu2 %485  ;;  %22675 = vst [vmem:[#allocation48_spill] sm:$0xff] %v12535_v22 }
 0x10d   : > { %22640 = vst [vmem:[#allocation13_spill] sm:$0xff] %v12350_v41  ;;  %v12352_v42 = vpop.permute.xlu0 %421  ;;  %v12354_v43 = vpop.permute.xlu1 %423 }
 0x10e   : > { %22641 = vst [vmem:[#allocation14_spill] sm:$0xff] %v12352_v42  ;;  %v583_v17 = vrot.slane %v12352_v42, 4  ;;  %v587_v26 = vsel %vm584_vm2, %v12352_v42, %v586_v20  ;;  %v696_v20 = vrot.slane %v12354_v43, 4  ;;  %v699_v5 = vsel %vm584_vm2, %v12354_v43, %v698_v27 }
 0x10f   : > { %22642 = vst [vmem:[#allocation15_spill] sm:$0xff] %v12354_v43  ;;  %v12553_v27 = vperm.slane %v1195_v19, %v12509_v3 }
 0x110   : > { %v585_v7 = vsel %vm584_vm2, %v583_v17, %v12234_v29  ;;  %v595_v17 = vperm.slane %v587_v26, %v12457_v10  ;;  %v12556_v26 = vperm.slane %v1205_v23, %v12509_v3 }
 0x111   : > { %22677 = vst [vmem:[#allocation50_spill] sm:$0xff] %v12553_v27 }
 0x112   : > { %464 = vrot.lane.b32.xlu2 %v12330_v37, %s12136_s17  ;;  %v646_v18 = vrot.slane %v595_v17, 4  ;;  %22678 = vst [vmem:[#allocation51_spill] sm:$0xff] %v12556_v26 }
 0x113   : > { %454 = vrot.lane.b32.xlu0 %v12342_v40, %s12136_s17  ;;  %2470 = vrot.lane.b32.xlu1 %v12242_v31, %s12141_s24 }
 0x114   : > { %v12362_v44 = vpop.permute.xlu2 %512 }
 0x115   : > { %22643 = vst [vmem:[#allocation16_spill] sm:$0xff] %v12362_v44  ;;  %v12364_v45 = vpop.permute.xlu0 %448  ;;  %v12366_v46 = vpop.permute.xlu1 %450 }
 0x116   : > { %22644 = vst [vmem:[#allocation17_spill] sm:$0xff] %v12364_v45  ;;  %v596_v24 = vrot.slane %v12364_v45, 4  ;;  %v599_v25 = vsel %vm584_vm2, %v12364_v45, %v598_v16 }
 0x117   : > { %22645 = vst [vmem:[#allocation18_spill] sm:$0xff] %v12366_v46  ;;  %v607_v16 = vperm.slane %v599_v25, %v12457_v10  ;;  %v12517_v25 = vperm.slane %v585_v7, %v12457_v10 }
 0x118   : > { %v597_v11 = vsel %vm584_vm2, %v596_v24, %v12340_v39 }
 0x119   : > { %22673 = vst [vmem:[#allocation46_spill] sm:$0xff] %v12517_v25  ;;  %v12527_v24 = vperm.slane %v597_v11, %v12457_v10  ;;  %v644_v15 = vrot.slane %v607_v16, 4  ;;  %v697_v11 = vsel %vm584_vm2, %v696_v20, %v12242_v31  ;;  %v647_v21 = vsel %vm584_vm2, %v607_v16, %v646_v18 }
 0x11a   : > { %491 = vrot.lane.b32.xlu2 %v12330_v37, %s12137_s18  ;;  %v12565_v31 = vperm.slane %v699_v5, %v12457_v10 }
 0x11b   : > { %481 = vrot.lane.b32.xlu0 %v12342_v40, %s12137_s18  ;;  %429 = vrot.lane.b32.xlu1 %v12368_v47, %s12135_s16  ;;  %22674 = vst [vmem:[#allocation47_spill] sm:$0xff] %v12527_v24  ;;  %v645_v19 = vsel %vm584_vm2, %v644_v15, %v595_v17 }
 0x11c   : > { %v12376_v48 = vpop.permute.xlu2 %539 }
 0x11d   : > { %22647 = vst [vmem:[#allocation20_spill] sm:$0xff] %v12376_v48  ;;  %v12378_v49 = vpop.permute.xlu0 %475  ;;  %v12380_v50 = vpop.permute.xlu1 %477  ;;  %v1168_v14 = vrot.slane %v12376_v48, 4 }
 0x11e   : > { %22648 = vst [vmem:[#allocation21_spill] sm:$0xff] %v12378_v49  ;;  %v722_v5 = vrot.slane %v12380_v50, 4 }
 0x11f   : > { %22649 = vst [vmem:[#allocation22_spill] sm:$0xff] %v12380_v50  ;;  %v1169_v23 = vsel %vm584_vm2, %v1168_v14, %v12350_v41  ;;  %v12589_v14 = vperm.slane %v645_v19, %v12509_v3 }
 0x121   : > { %22683 = vst [vmem:[#allocation56_spill] sm:$0xff] %v12589_v14 }
 0x122   : > { %518 = vrot.lane.b32.xlu2 %v12330_v37, %s12138_s19 }
 0x123   : > { %508 = vrot.lane.b32.xlu0 %v12342_v40, %s12138_s19  ;;  %456 = vrot.lane.b32.xlu1 %v12368_v47, %s12136_s17 }
 0x124   : > { %v12388_v51 = vpop.permute.xlu2 %566 }
 0x125   : > { %22650 = vst [vmem:[#allocation23_spill] sm:$0xff] %v12388_v51  ;;  %v12390_v52 = vpop.permute.xlu0 %502  ;;  %v12392_v53 = vpop.permute.xlu1 %504  ;;  %v1180_v28 = vrot.slane %v12388_v51, 4 }
 0x126   : > { %22651 = vst [vmem:[#allocation24_spill] sm:$0xff] %v12390_v52  ;;  %v622_v26 = vrot.slane %v12390_v52, 4 }
 0x127   : > { %22652 = vst [vmem:[#allocation25_spill] sm:$0xff] %v12392_v53  ;;  %v1181_v17 = vsel %vm584_vm2, %v1180_v28, %v12362_v44 }
 0x12a   : > { %545 = vrot.lane.b32.xlu2 %v12330_v37, %s12139_s20 }
 0x12b   : > { %535 = vrot.lane.b32.xlu0 %v12342_v40, %s12139_s20  ;;  %483 = vrot.lane.b32.xlu1 %v12368_v47, %s12137_s18 }
 0x12c   : > { %v12400_v54 = vpop.permute.xlu2 %425 }
 0x12d   : > { %22653 = vst [vmem:[#allocation26_spill] sm:$0xff] %v12400_v54  ;;  %v12402_v55 = vpop.permute.xlu0 %529  ;;  %v12404_v56 = vpop.permute.xlu1 %531 }
 0x12e   : > { %22654 = vst [vmem:[#allocation27_spill] sm:$0xff] %v12402_v55  ;;  %v720_v14 = vrot.slane %v12404_v56, 4 }
 0x12f   : > { %22655 = vst [vmem:[#allocation28_spill] sm:$0xff] %v12404_v56 }
 0x132   : > { %572 = vrot.lane.b32.xlu2 %v12330_v37, %s12140_s23 }
 0x133   : > { %562 = vrot.lane.b32.xlu0 %v12342_v40, %s12140_s23  ;;  %510 = vrot.lane.b32.xlu1 %v12368_v47, %s12138_s19 }
 0x134   : > { %v12412_v57 = vpop.permute.xlu2 %452 }
 0x135   : > { %22656 = vst [vmem:[#allocation29_spill] sm:$0xff] %v12412_v57  ;;  %v12414_v58 = vpop.permute.xlu0 %556  ;;  %v12416_v59 = vpop.permute.xlu1 %558 }
 0x136   : > { %22657 = vst [vmem:[#allocation30_spill] sm:$0xff] %v12414_v58  ;;  %v620_v27 = vrot.slane %v12414_v58, 4 }
 0x137   : > { %22658 = vst [vmem:[#allocation31_spill] sm:$0xff] %v12416_v59 }
 0x13a   : > { %2472 = vrot.lane.b32.xlu2 %v12280_v33, %s12141_s24 }
 0x13b   : > { %2468 = vrot.lane.b32.xlu0 %v12234_v29, %s12141_s24  ;;  %537 = vrot.lane.b32.xlu1 %v12368_v47, %s12139_s20  ;;  %v1170_v29 = vrot.slane %v12350_v41, 4 }
 0x13c   : > { %v12424_v60 = vpop.permute.xlu2 %479 }
 0x13d   : > { %22659 = vst [vmem:[#allocation32_spill] sm:$0xff] %v12424_v60  ;;  %v12426_v61 = vpop.permute.xlu0 %396  ;;  %v12428_v62 = vpop.permute.xlu1 %398  ;;  %v1171_v7 = vsel %vm584_vm2, %v12376_v48, %v1170_v29  ;;  %v634_v29 = vrot.slane %v12517_v25, 4 }
 0x13e   : > { %22660 = vst [vmem:[#allocation33_spill] sm:$0xff] %v12426_v61  ;;  %v1179_v25 = vperm.slane %v1171_v7, %v12457_v10  ;;  %v708_v7 = vrot.slane %v12366_v46, 4 }
 0x142   : > { %402 = vrot.lane.b32.xlu2 %v12368_v47, %s12134_s15 }
 0x143   : > { %2474 = vrot.lane.b32.xlu0 %v12342_v40, %s12141_s24  ;;  %564 = vrot.lane.b32.xlu1 %v12368_v47, %s12140_s23  ;;  %s11649_s23 = smul.u32 72, %s24183_s22 }
 0x144   : > { %v12436_v63 = vpop.permute.xlu2 %506 }
 0x145   : > { %22661 = vst [vmem:[#allocation34_spill] sm:$0xff] %v12436_v63  ;;  %v12438_v0 = vpop.permute.xlu0 %406  ;;  %v12440_v1 = vpop.permute.xlu1 %408  ;;  %s21906_s28 = scalar_lea.vmem %s21970_s5, %s11649_s23 }
 0x146   : > { %22662 = vst [vmem:[#allocation35_spill] sm:$0xff] %v12438_v0 }
 0x147   : > { %22663 = vst [vmem:[#allocation36_spill] sm:$0xff] %v12440_v1 }
 0x14a   : > { %2478 = vrot.lane.b32.xlu2 %v12238_v30, %s12141_s24  ;;  %v1182_v30 = vrot.slane %v12362_v44, 4 }
 0x14b   : > { %2480 = vrot.lane.b32.xlu0 %v12278_v32, %s12141_s24  ;;  %2476 = vrot.lane.b32.xlu1 %v12368_v47, %s12141_s24 }
 0x14c   : > { %v12450_v6 = vpop.permute.xlu2 %533  ;;  %v1183_v48 = vsel %vm584_vm2, %v12388_v51, %v1182_v30  ;;  %v635_v30 = vsel %vm584_vm2, %v12527_v24, %v634_v29  ;;  %v12573_v51 = vperm.slane %v697_v11, %v12457_v10  ;;  %v12581_v29 = vperm.slane %v647_v21, %v12509_v3 }
 0x14d   : > { %22664 = vst [vmem:[#allocation37_spill] sm:$0xff] %v12450_v6  ;;  %v12453_v8 = vpop.permute.xlu0 %433  ;;  %v12455_v9 = vpop.permute.xlu1 %435  ;;  %v1191_v16 = vperm.slane %v1183_v48, %v12457_v10  ;;  %v12586_v15 = vperm.slane %v635_v30, %v12509_v3  ;;  %v1175_v48 = vperm.slane %v1169_v23, %v12457_v10  ;;  %v1230_v11 = vrot.slane %v1179_v25, 4 }
 0x14e   : > { %22665 = vst [vmem:[#allocation38_spill] sm:$0xff] %v12453_v8  ;;  %v1187_v30 = vperm.slane %v1181_v17, %v12457_v10  ;;  %v608_v17 = vrot.slane %v12402_v55, 4 }
 0x14f   : > { %22666 = vst [vmem:[#allocation39_spill] sm:$0xff] %v12455_v9  ;;  %v1228_v19 = vrot.slane %v1191_v16, 4  ;;  %v1231_v23 = vsel %vm584_vm2, %v1191_v16, %v1230_v11  ;;  %v1218_v11 = vrot.slane %v1175_v48, 4 }
 0x150   : > { %22681 = vst [vmem:[#allocation54_spill] sm:$0xff] %v12581_v29  ;;  %v12622_v18 = vperm.slane %v1231_v23, %v12509_v3  ;;  %v1216_v24 = vrot.slane %v1187_v30, 4  ;;  %v609_v23 = vsel %vm584_vm2, %v608_v17, %v12378_v49  ;;  %v723_v17 = vsel %vm584_vm2, %v12404_v56, %v722_v5 }
 0x151   : > { %22682 = vst [vmem:[#allocation55_spill] sm:$0xff] %v12586_v15  ;;  %v1219_v28 = vsel %vm584_vm2, %v1187_v30, %v1218_v11  ;;  %v1229_v16 = vsel %vm584_vm2, %v1228_v19, %v1179_v25  ;;  %v734_v15 = vrot.slane %v12392_v53, 4  ;;  %v808_v11 = vrot.slane %v12400_v54, 4 }
 0x152   : > { %2484 = vrot.lane.b32.xlu2 %v12330_v37, %s12141_s24  ;;  %22686 = vst [vmem:[#allocation59_spill] sm:$0xff] %v12622_v18  ;;  %v623_v25 = vsel %vm584_vm2, %v12414_v58, %v622_v26  ;;  %v12642_v19 = vperm.slane %v1219_v28, %v12509_v3  ;;  %v22689_v26 = vrot.slane %v12280_v33, 4  ;;  %v721_v28 = vsel %vm584_vm2, %v720_v14, %v12380_v50 }
 0x153   : > { %2486 = vrot.lane.b32.xlu0 %v12340_v39, %s12141_s24  ;;  %2482 = vrot.lane.b32.xlu1 %v12288_v34, %s12141_s24  ;;  %v631_v14 = vperm.slane %v623_v25, %v12457_v10 }
 0x154   : > { %v12489_v2 = vpop.permute.xlu2 %560  ;;  %22687 = vst [vmem:[#allocation60_spill] sm:$0xff] %v12642_v19  ;;  %v811_v44 = vsel %vm584_vm2, %v12400_v54, %v22689_v26  ;;  %v621_v26 = vsel %vm584_vm2, %v620_v27, %v12390_v52  ;;  %v727_v52 = vperm.slane %v721_v28, %v12457_v10 }
 0x155   : > { %v12499_v12 = vpop.permute.xlu0 %460  ;;  %v12501_v13 = vpop.permute.xlu1 %462  ;;  %v12689_v27 = vperm.slane %v811_v44, %v12457_v10 }
 0x156   : > { %22670 = vst [vmem:[#allocation43_spill] sm:$0xff] %v12499_v12 }
 0x157   : > { %22671 = vst [vmem:[#allocation44_spill] sm:$0xff] %v12501_v13 }
 0x15a   : > { %2496 = vrot.lane.b32.xlu2 %v12320_v35, %s12141_s24 }
 0x15b   : > { %2504 = vrot.lane.b32.xlu0 %v12352_v42, %s12141_s24  ;;  %2488 = vrot.lane.b32.xlu1 %v12426_v61, %s12141_s24  ;;  %v610_v42 = vrot.slane %v12378_v49, 4 }
 0x15c   : > { %v12550_v35 = vpop.permute.xlu2 %410 }
 0x15d   : > { %22676 = vst [vmem:[#allocation49_spill] sm:$0xff] %v12550_v35  ;;  %v12560_v37 = vpop.permute.xlu0 %487  ;;  %v12562_v20 = vpop.permute.xlu1 %489  ;;  %v1254_v35 = vrot.slane %v12535_v22, 4 }
 0x15e   : > { %22679 = vst [vmem:[#allocation52_spill] sm:$0xff] %v12560_v37 }
 0x15f   : > { %22680 = vst [vmem:[#allocation53_spill] sm:$0xff] %v12562_v20 }
 0x162   : > { %2514 = vrot.lane.b32.xlu2 %v12328_v36, %s12141_s24  ;;  %v12645_v36 = vperm.slane %v1229_v16, %v12509_v3  ;;  %v735_v16 = vsel %vm584_vm2, %v12416_v59, %v734_v15  ;;  %v12677_v15 = vsel %vm584_vm2, %v1216_v24, %v1175_v48  ;;  %v770_v48 = vrot.slane %v727_v52, 4 }
 0x163   : > { %2522 = vrot.lane.b32.xlu0 %v12364_v45, %s12141_s24  ;;  %2506 = vrot.lane.b32.xlu1 %v12354_v43, %s12141_s24  ;;  %v611_v45 = vsel %vm584_vm2, %v12402_v55, %v610_v42  ;;  %v732_v42 = vrot.slane %v12416_v59, 4  ;;  %22692 = vst [vmem:[#allocation64_spill] sm:$0xff] %v12677_v15  ;;  %v743_v24 = vperm.slane %v735_v16, %v12457_v10  ;;  %v668_v15 = vrot.slane %v631_v14, 4 }
 0x164   : > { %v12609_v21 = vpop.permute.xlu2 %437  ;;  %22688 = vst [vmem:[#allocation61_spill] sm:$0xff] %v12645_v36  ;;  %v619_v4 = vperm.slane %v611_v45, %v12457_v10  ;;  %v12667_v45 = vsel %vm584_vm2, %v12622_v18, %v1254_v35  ;;  %v709_v16 = vsel %vm584_vm2, %v708_v7, %v12426_v61 }
 0x165   : > { %22684 = vst [vmem:[#allocation57_spill] sm:$0xff] %v12609_v21  ;;  %v12616_v22 = vpop.permute.xlu0 %514  ;;  %v12618_v43 = vpop.permute.xlu1 %516  ;;  %v733_v35 = vsel %vm584_vm2, %v732_v42, %v12392_v53  ;;  %v627_v42 = vperm.slane %v621_v26, %v12457_v10  ;;  %v780_v26 = vrot.slane %v743_v24, 4  ;;  %v715_v56 = vperm.slane %v709_v16, %v12457_v10 }
 0x166   : > { %22685 = vst [vmem:[#allocation58_spill] sm:$0xff] %v12616_v22  ;;  %v670_v25 = vrot.slane %v619_v4, 4  ;;  %v739_v53 = vperm.slane %v733_v35, %v12457_v10  ;;  %v820_v35 = vrot.slane %v12412_v57, 4 }
 0x167   : > { %22690 = vst [vmem:[#allocation62_spill] sm:$0xff] %v12667_v45 }
 0x168   : > { %v671_v44 = vsel %vm584_vm2, %v631_v14, %v670_v25  ;;  %v821_v45 = vsel %vm584_vm2, %v820_v35, %v12428_v62 }
 0x169   : > { %v12714_v28 = vperm.slane %v671_v44, %v12509_v3 }
 0x16a   : > { %2532 = vrot.lane.b32.xlu2 %v12338_v38, %s12141_s24  ;;  %v615_v38 = vperm.slane %v609_v23, %v12457_v10  ;;  %v731_v23 = vperm.slane %v723_v17, %v12457_v10  ;;  %v669_v17 = vsel %vm584_vm2, %v668_v15, %v619_v4  ;;  %v656_v4 = vrot.slane %v627_v42, 4 }
 0x16b   : > { %2540 = vrot.lane.b32.xlu0 %v12378_v49, %s12141_s24  ;;  %2524 = vrot.lane.b32.xlu1 %v12366_v46, %s12141_s24  ;;  %v809_v49 = vsel %vm584_vm2, %v808_v11, %v12280_v33  ;;  %v710_v11 = vrot.slane %v12426_v61, 4  ;;  %22693 = vst [vmem:[#allocation65_spill] sm:$0xff] %v12714_v28  ;;  %v22713_v61 = vrot.slane %v12278_v32, 4 }
 0x16c   : > { %v12674_v30 = vpop.permute.xlu2 %464  ;;  %v12698_v33 = vperm.slane %v809_v49, %v12457_v10  ;;  %v658_v47 = vrot.slane %v615_v38, 4  ;;  %v782_v14 = vrot.slane %v731_v23, 4  ;;  %v771_v49 = vsel %vm584_vm2, %v739_v53, %v770_v48 }
 0x16d   : > { %22691 = vst [vmem:[#allocation63_spill] sm:$0xff] %v12674_v30  ;;  %v12684_v18 = vpop.permute.xlu0 %541  ;;  %v12686_v5 = vpop.permute.xlu1 %543  ;;  %v711_v44 = vsel %vm584_vm2, %v12366_v46, %v710_v11  ;;  %v768_v48 = vrot.slane %v739_v53, 4  ;;  %v781_v16 = vsel %vm584_vm2, %v780_v26, %v731_v23  ;;  %v22699_v11 = vrot.slane %v12581_v29, 4 }
 0x16e   : > { %v659_v25 = vsel %vm584_vm2, %v627_v42, %v658_v47  ;;  %v858_v7 = vrot.slane %v12698_v33, 4  ;;  %v783_v47 = vsel %vm584_vm2, %v743_v24, %v782_v14  ;;  %v12741_v24 = vperm.slane %v669_v17, %v12509_v3 }
 0x16f   : > { %v12737_v15 = vperm.slane %v659_v25, %v12509_v3  ;;  %v12747_v14 = vsel %vm584_vm2, %v12714_v28, %v22699_v11  ;;  %v12750_v35 = vperm.slane %v771_v49, %v12509_v3  ;;  %v719_v25 = vperm.slane %v711_v44, %v12457_v10 }
 0x170   : > { %22698 = vst [vmem:[#allocation70_spill] sm:$0xff] %v12741_v24  ;;  %v744_v53 = vrot.slane %v715_v56, 4  ;;  %v22702_v23 = vrot.slane %v12573_v51, 4  ;;  %v827_v26 = vperm.slane %v821_v45, %v12457_v10  ;;  %v12761_v11 = vperm.slane %v781_v16, %v12509_v3 }
 0x171   : > { %22697 = vst [vmem:[#allocation69_spill] sm:$0xff] %v12737_v15  ;;  %v12764_v49 = vperm.slane %v783_v47, %v12509_v3  ;;  %v12769_v44 = vsel %vm584_vm2, %v656_v4, %v615_v38  ;;  %v12774_v45 = vsel %vm584_vm2, %v768_v48, %v727_v52  ;;  %v22708_v52 = vrot.slane %v12565_v31, 4 }
 0x172   : > { %2550 = vrot.lane.b32.xlu2 %v12350_v41, %s12141_s24  ;;  %22700 = vst [vmem:[#allocation71_spill] sm:$0xff] %v12747_v14  ;;  %v747_v17 = vsel %vm584_vm2, %v715_v56, %v22702_v23  ;;  %v834_v23 = vrot.slane %v12424_v60, 4  ;;  %v745_v38 = vsel %vm584_vm2, %v744_v53, %v12573_v51  ;;  %v856_v47 = vrot.slane %v827_v26, 4 }
 0x173   : > { %2498 = vrot.lane.b32.xlu0 %v12438_v0, %s12141_s24  ;;  %2542 = vrot.lane.b32.xlu1 %v12380_v50, %s12141_s24  ;;  %v822_v50 = vrot.slane %v12428_v62, 4  ;;  %22701 = vst [vmem:[#allocation72_spill] sm:$0xff] %v12750_v35  ;;  %v759_v4 = vsel %vm584_vm2, %v719_v25, %v22708_v52  ;;  %v859_v46 = vsel %vm584_vm2, %v827_v26, %v858_v7  ;;  %v756_v53 = vrot.slane %v719_v25, 4 }
 0x174   : > { %v12724_v55 = vpop.permute.xlu2 %491  ;;  %22703 = vst [vmem:[#allocation73_spill] sm:$0xff] %v12761_v11  ;;  %v846_v52 = vrot.slane %v12436_v63, 4  ;;  %v12813_v7 = vperm.slane %v759_v4, %v12509_v3  ;;  %v1256_v56 = vrot.slane %v12453_v8, 4  ;;  %v857_v25 = vsel %vm584_vm2, %v856_v47, %v12698_v33 }
 0x175   : > { %22694 = vst [vmem:[#allocation66_spill] sm:$0xff] %v12724_v55  ;;  %v12732_v36 = vpop.permute.xlu0 %568  ;;  %v12734_v19 = vpop.permute.xlu1 %570  ;;  %v823_v42 = vsel %vm584_vm2, %v12412_v57, %v822_v50  ;;  %v12782_v50 = vperm.slane %v747_v17, %v12509_v3  ;;  %v12810_v17 = vperm.slane %v745_v38, %v12509_v3  ;;  %v12820_v51 = vperm.slane %v859_v46, %v12509_v3 }
 0x176   : > { %22695 = vst [vmem:[#allocation67_spill] sm:$0xff] %v12732_v36  ;;  %v831_v48 = vperm.slane %v823_v42, %v12457_v10  ;;  %v832_v42 = vrot.slane %v12450_v6, 4  ;;  %v1259_v4 = vsel %vm584_vm2, %v12453_v8, %v22713_v61  ;;  %v844_v26 = vrot.slane %v12489_v2, 4 }
 0x177   : > { %22696 = vst [vmem:[#allocation68_spill] sm:$0xff] %v12734_v19  ;;  %v1268_v11 = vrot.slane %v12499_v12, 4  ;;  %v12833_v33 = vsel %vm584_vm2, %v756_v53, %v12565_v31  ;;  %v1270_v46 = vrot.slane %v12438_v0, 4 }
 0x178   : > { %22704 = vst [vmem:[#allocation74_spill] sm:$0xff] %v12764_v49  ;;  %v868_v39 = vrot.slane %v831_v48, 4  ;;  %v833_v47 = vsel %vm584_vm2, %v832_v42, %v12424_v60  ;;  %v22716_v42 = vrot.slane %v12689_v27, 4  ;;  %v845_v49 = vsel %vm584_vm2, %v844_v26, %v12436_v63 }
 0x179   : > { %22705 = vst [vmem:[#allocation75_spill] sm:$0xff] %v12769_v44  ;;  %v1269_v53 = vsel %vm584_vm2, %v1268_v11, %v12438_v0  ;;  %v22744_v0 = vld [vmem:[#allocation49_spill] sm:$0xff]  ;;  %v22750_v44 = vrot.slane %v12342_v40, 4 }
 0x17a   : > { %22706 = vst [vmem:[#allocation76_spill] sm:$0xff] %v12774_v45  ;;  %2490 = vrot.lane.b32.xlu2 %v12428_v62, %s12141_s24  ;;  %v835_v45 = vsel %vm584_vm2, %v12450_v6, %v834_v23  ;;  %v847_v23 = vsel %vm584_vm2, %v12489_v2, %v846_v52  ;;  %v12843_v52 = vperm.slane %v857_v25, %v12509_v3 }
 0x17b   : > { %22707 = vst [vmem:[#allocation77_spill] sm:$0xff] %v12782_v50  ;;  %2516 = vrot.lane.b32.xlu0 %v12453_v8, %s12141_s24  ;;  %2500 = vrot.lane.b32.xlu1 %v12440_v1, %s12141_s24  ;;  %v843_v38 = vperm.slane %v835_v45, %v12457_v10  ;;  %v1368_v45 = vrot.slane %v12455_v9, 4  ;;  %v1257_v50 = vsel %vm584_vm2, %v1256_v56, %v12278_v32  ;;  %v1282_v8 = vrot.slane %v12560_v37, 4 }
 0x17c   : > { %v12794_v16 = vpop.permute.xlu2 %518  ;;  %22710 = vst [vmem:[#allocation79_spill] sm:$0xff] %v12810_v17  ;;  %v855_v31 = vperm.slane %v847_v23, %v12457_v10  ;;  %v871_v61 = vsel %vm584_vm2, %v831_v48, %v22716_v42  ;;  %v1267_v25 = vperm.slane %v1259_v4, %v12457_v10  ;;  %v1271_v17 = vsel %vm584_vm2, %v12499_v12, %v1270_v46 }
 0x17d   : > { %v12799_v59 = vpop.permute.xlu0 %427  ;;  %v12801_v35 = vpop.permute.xlu1 %400  ;;  %22711 = vst [vmem:[#allocation80_spill] sm:$0xff] %v12813_v7  ;;  %v839_v23 = vperm.slane %v833_v47, %v12457_v10  ;;  %v894_v32 = vrot.slane %v843_v38, 4  ;;  %v12872_v48 = vsel %vm584_vm2, %v868_v39, %v12689_v27  ;;  %v12875_v4 = vperm.slane %v1257_v50, %v12457_v10 }
 0x17e   : > { %22709 = vst [vmem:[#allocation78_spill] sm:$0xff] %v12799_v59  ;;  %v1369_v46 = vsel %vm584_vm2, %v1368_v45, %v12288_v34  ;;  %v22721_v47 = vrot.slane %v12288_v34, 4  ;;  %v12884_v11 = vperm.slane %v871_v61, %v12509_v3  ;;  %v1279_v39 = vperm.slane %v1271_v17, %v12457_v10 }
 0x17f   : > { %22712 = vst [vmem:[#allocation81_spill] sm:$0xff] %v12820_v51  ;;  %v895_v58 = vsel %vm584_vm2, %v855_v31, %v894_v32  ;;  %v1382_v27 = vrot.slane %v12440_v1, 4  ;;  %v851_v50 = vperm.slane %v845_v49, %v12457_v10  ;;  %v12892_v45 = vperm.slane %v1269_v53, %v12457_v10 }
 0x180   : > { %22714 = vst [vmem:[#allocation82_spill] sm:$0xff] %v12833_v33  ;;  %v1371_v26 = vsel %vm584_vm2, %v12455_v9, %v22721_v47  ;;  %v882_v34 = vrot.slane %v839_v23, 4  ;;  %v1318_v14 = vrot.slane %v1267_v25, 4  ;;  %v12895_v47 = vperm.slane %v1369_v46, %v12457_v10 }
 0x181   : > { %22715 = vst [vmem:[#allocation83_spill] sm:$0xff] %v12843_v52  ;;  %v1379_v61 = vperm.slane %v1371_v26, %v12457_v10  ;;  %v1306_v42 = vrot.slane %v12875_v4, 4  ;;  %v12900_v32 = vperm.slane %v895_v58, %v12509_v3  ;;  %v1380_v17 = vrot.slane %v12501_v13, 4 }
 0x182   : > { %2508 = vrot.lane.b32.xlu2 %v12400_v54, %s12141_s24  ;;  %22719 = vst [vmem:[#allocation86_spill] sm:$0xff] %v12872_v48  ;;  %v892_v48 = vrot.slane %v855_v31, 4  ;;  %v1383_v49 = vsel %vm584_vm2, %v12501_v13, %v1382_v27  ;;  %v918_v53 = vrot.slane %v12884_v11, 4  ;;  %v1316_v46 = vrot.slane %v1279_v39, 4  ;;  %v22770_v54 = vld [vmem:[#allocation42_spill] sm:$0xff] }
 0x183   : > { %2534 = vrot.lane.b32.xlu0 %v12499_v12, %s12141_s24  ;;  %2518 = vrot.lane.b32.xlu1 %v12455_v9, %s12141_s24  ;;  %22720 = vst [vmem:[#allocation87_spill] sm:$0xff] %v12875_v4  ;;  %v1319_v26 = vsel %vm584_vm2, %v1279_v39, %v1318_v14  ;;  %v880_v58 = vrot.slane %v851_v50, 4  ;;  %v883_v51 = vsel %vm584_vm2, %v851_v50, %v882_v34  ;;  %v1418_v52 = vrot.slane %v12895_v47, 4 }
 0x184   : > { %v12859_v56 = vpop.permute.xlu2 %545  ;;  %22722 = vst [vmem:[#allocation88_spill] sm:$0xff] %v12884_v11  ;;  %v893_v27 = vsel %vm584_vm2, %v892_v48, %v843_v38  ;;  %v1307_v4 = vsel %vm584_vm2, %v12892_v45, %v1306_v42  ;;  %v1391_v14 = vperm.slane %v1383_v49, %v12457_v10  ;;  %v1430_v38 = vrot.slane %v1379_v61, 4 }
 0x185   : > { %22717 = vst [vmem:[#allocation84_spill] sm:$0xff] %v12859_v56  ;;  %v12866_v7 = vpop.permute.xlu0 %454  ;;  %v12868_v33 = vpop.permute.xlu1 %2470  ;;  %v12932_v48 = vsel %vm584_vm2, %v12900_v32, %v918_v53  ;;  %v12935_v42 = vperm.slane %v1319_v26, %v12509_v3  ;;  %v1381_v50 = vsel %vm584_vm2, %v1380_v17, %v12440_v1  ;;  %v12940_v49 = vperm.slane %v883_v51, %v12509_v3 }
 0x186   : > { %22718 = vst [vmem:[#allocation85_spill] sm:$0xff] %v12866_v7  ;;  %v12946_v28 = vperm.slane %v1307_v4, %v12509_v3  ;;  %v1317_v34 = vsel %vm584_vm2, %v1316_v46, %v1267_v25  ;;  %v12950_v53 = vsel %vm584_vm2, %v880_v58, %v839_v23  ;;  %v12959_v9 = vperm.slane %v1381_v50, %v12457_v10 }
 0x187   : > { %22723 = vst [vmem:[#allocation89_spill] sm:$0xff] %v12892_v45  ;;  %v1428_v4 = vrot.slane %v1391_v14, 4  ;;  %v12962_v25 = vperm.slane %v1317_v34, %v12509_v3  ;;  %v1294_v23 = vrot.slane %v12616_v22, 4  ;;  %v1280_v46 = vrot.slane %v12684_v18, 4 }
 0x188   : > { %22724 = vst [vmem:[#allocation90_spill] sm:$0xff] %v12895_v47  ;;  %v12943_v47 = vperm.slane %v893_v27, %v12509_v3  ;;  %v1283_v58 = vsel %vm584_vm2, %v12684_v18, %v1282_v8  ;;  %v1431_v34 = vsel %vm584_vm2, %v1391_v14, %v1430_v38  ;;  %v1394_v8 = vrot.slane %v12562_v20, 4 }
 0x189   : > { %22725 = vst [vmem:[#allocation91_spill] sm:$0xff] %v12900_v32  ;;  %v1292_v27 = vrot.slane %v12732_v36, 4  ;;  %v1295_v17 = vsel %vm584_vm2, %v12732_v36, %v1294_v23  ;;  %v1419_v50 = vsel %vm584_vm2, %v12959_v9, %v1418_v52  ;;  %v1429_v26 = vsel %vm584_vm2, %v1428_v4, %v1379_v61 }
 0x18a   : > { %2526 = vrot.lane.b32.xlu2 %v12412_v57, %s12141_s24  ;;  %22729 = vst [vmem:[#allocation95_spill] sm:$0xff] %v12932_v48  ;;  %v1291_v12 = vperm.slane %v1283_v58, %v12457_v10  ;;  %v1406_v23 = vrot.slane %v12618_v43, 4  ;;  %v1281_v32 = vsel %vm584_vm2, %v1280_v46, %v12560_v37  ;;  %v13000_v52 = vperm.slane %v1431_v34, %v12509_v3 }
 0x18b   : > { %2492 = vrot.lane.b32.xlu0 %v12801_v35, %s12141_s24  ;;  %2536 = vrot.lane.b32.xlu1 %v12501_v13, %s12141_s24  ;;  %22730 = vst [vmem:[#allocation96_spill] sm:$0xff] %v12935_v42  ;;  %v1392_v13 = vrot.slane %v12686_v5, 4  ;;  %v1395_v61 = vsel %vm584_vm2, %v12686_v5, %v1394_v8  ;;  %v1303_v4 = vperm.slane %v1295_v17, %v12457_v10  ;;  %v1404_v58 = vrot.slane %v12734_v19, 4 }
 0x18c   : > { %v12918_v31 = vpop.permute.xlu2 %572  ;;  %22731 = vst [vmem:[#allocation97_spill] sm:$0xff] %v12940_v49  ;;  %v13007_v49 = vperm.slane %v1419_v50, %v12509_v3  ;;  %v13010_v38 = vperm.slane %v1429_v26, %v12509_v3  ;;  %v1407_v46 = vsel %vm584_vm2, %v12734_v19, %v1406_v23  ;;  %v1486_v34 = vrot.slane %v12674_v30, 4 }
 0x18d   : > { %22726 = vst [vmem:[#allocation92_spill] sm:$0xff] %v12918_v31  ;;  %v12922_v39 = vpop.permute.xlu0 %481  ;;  %v12924_v11 = vpop.permute.xlu1 %429  ;;  %v13018_v8 = vperm.slane %v1281_v32, %v12457_v10  ;;  %v1342_v17 = vrot.slane %v1291_v12, 4  ;;  %v1415_v50 = vperm.slane %v1407_v46, %v12457_v10 }
 0x18e   : > { %22727 = vst [vmem:[#allocation93_spill] sm:$0xff] %v12922_v39 }
 0x18f   : > { %22728 = vst [vmem:[#allocation94_spill] sm:$0xff] %v12924_v11  ;;  %v1343_v1 = vsel %vm584_vm2, %v1303_v4, %v1342_v17  ;;  %v1487_v17 = vsel %vm584_vm2, %v1486_v34, %v22744_v0 }
 0x190   : > { %22732 = vst [vmem:[#allocation98_spill] sm:$0xff] %v12943_v47  ;;  %v1480_v47 = vrot.slane %v12609_v21, 4  ;;  %v1491_v45 = vperm.slane %v1487_v17, %v12457_v10 }
 0x191   : > { %22733 = vst [vmem:[#allocation99_spill] sm:$0xff] %v12946_v28  ;;  %v22742_v28 = vld [vmem:[#allocation10_spill] sm:$0xff] }
 0x192   : > { %22734 = vst [vmem:[#allocation100_spill] sm:$0xff] %v12950_v53  ;;  %2544 = vrot.lane.b32.xlu2 %v12424_v60, %s12141_s24  ;;  %v1293_v53 = vsel %vm584_vm2, %v1292_v27, %v12616_v22  ;;  %v13025_v26 = vsel %vm584_vm2, %v1480_v47, %v22742_v28  ;;  %v1403_v27 = vperm.slane %v1395_v61, %v12457_v10  ;;  %v1478_v61 = vrot.slane %v13000_v52, 4  ;;  %v22785_v60 = vld [vmem:[#allocation25_spill] sm:$0xff] }
 0x193   : > { %22735 = vst [vmem:[#allocation101_spill] sm:$0xff] %v12959_v9  ;;  %2510 = vrot.lane.b32.xlu0 %v12799_v59, %s12141_s24  ;;  %2554 = vrot.lane.b32.xlu1 %v12562_v20, %s12141_s24  ;;  %v1299_v32 = vperm.slane %v1293_v53, %v12457_v10  ;;  %v1340_v28 = vrot.slane %v1303_v4, 4  ;;  %v13059_v53 = vperm.slane %v1343_v1, %v12509_v3  ;;  %v1032_v4 = vrot.slane %v12924_v11, 4 }
 0x194   : > { %22736 = vst [vmem:[#allocation102_spill] sm:$0xff] %v12962_v25  ;;  %v12983_v51 = vpop.permute.xlu2 %2472  ;;  %v1393_v25 = vsel %vm584_vm2, %v1392_v13, %v12562_v20  ;;  %v1405_v13 = vsel %vm584_vm2, %v1404_v58, %v12618_v43  ;;  %v1330_v58 = vrot.slane %v13018_v8, 4  ;;  %v1454_v20 = vrot.slane %v1403_v27, 4 }
 0x195   : > { %v12990_v48 = vpop.permute.xlu0 %508  ;;  %v12992_v14 = vpop.permute.xlu1 %456  ;;  %22739 = vst [vmem:[#allocation105_spill] sm:$0xff] %v13000_v52  ;;  %v1399_v9 = vperm.slane %v1393_v25, %v12457_v10  ;;  %v1411_v34 = vperm.slane %v1405_v13, %v12457_v10  ;;  %v1341_v25 = vsel %vm584_vm2, %v1340_v28, %v1291_v12  ;;  %v932_v13 = vrot.slane %v12866_v7, 4 }
 0x196   : > { %22737 = vst [vmem:[#allocation103_spill] sm:$0xff] %v12990_v48  ;;  %v1331_v52 = vsel %vm584_vm2, %v1299_v32, %v1330_v58  ;;  %v1455_v1 = vsel %vm584_vm2, %v1415_v50, %v1454_v20  ;;  %v923_v12 = vsel %vm584_vm2, %v12799_v59, %v22750_v44  ;;  %v13084_v20 = vperm.slane %v1341_v25, %v12509_v3 }
 0x197   : > { %22738 = vst [vmem:[#allocation104_spill] sm:$0xff] %v12992_v14  ;;  %v1442_v29 = vrot.slane %v1399_v9, 4  ;;  %v13074_v24 = vperm.slane %v1331_v52, %v12509_v3  ;;  %v1440_v15 = vrot.slane %v1411_v34, 4  ;;  %v22752_v28 = vrot.slane %v12935_v42, 4 }
 0x198   : > { %22740 = vst [vmem:[#allocation106_spill] sm:$0xff] %v13007_v49  ;;  %v920_v49 = vrot.slane %v12799_v59, 4  ;;  %v13097_v44 = vrot.slane %v1491_v45, 4  ;;  %v933_v45 = vsel %vm584_vm2, %v932_v13, %v12801_v35 }
 0x199   : > { %22741 = vst [vmem:[#allocation107_spill] sm:$0xff] %v13010_v38  ;;  %v1452_v38 = vrot.slane %v1415_v50, 4  ;;  %v1443_v17 = vsel %vm584_vm2, %v1411_v34, %v1442_v29  ;;  %v13100_v50 = vperm.slane %v1455_v1, %v12509_v3 }
 0x19a   : > { %22743 = vst [vmem:[#allocation108_spill] sm:$0xff] %v13025_v26  ;;  %2502 = vrot.lane.b32.xlu2 %v22744_v0, %s12141_s24  ;;  %v934_v0 = vrot.slane %v12801_v35, 4  ;;  %v1328_v26 = vrot.slane %v1299_v32, 4  ;;  %v921_v29 = vsel %vm584_vm2, %v920_v49, %v12342_v40  ;;  %v931_v49 = vperm.slane %v923_v12, %v12457_v10 }
 0x19b   : > { %2528 = vrot.lane.b32.xlu0 %v12866_v7, %s12141_s24  ;;  %22748 = vst [vmem:[#allocation112_spill] sm:$0xff] %v13059_v53  ;;  %v1453_v52 = vsel %vm584_vm2, %v1452_v38, %v1403_v27  ;;  %v13109_v27 = vperm.slane %v1443_v17, %v12509_v3  ;;  %v13129_v12 = vperm.slane %v921_v29, %v12457_v10 }
 0x19c   : > { %v13042_v23 = vpop.permute.xlu2 %402  ;;  %v935_v58 = vsel %vm584_vm2, %v12866_v7, %v934_v0  ;;  %22749 = vst [vmem:[#allocation113_spill] sm:$0xff] %v13074_v24  ;;  %v13090_v0 = vsel %vm584_vm2, %v13059_v53, %v22752_v28  ;;  %v13122_v28 = vsel %vm584_vm2, %v1328_v26, %v13018_v8  ;;  %v13126_v17 = vperm.slane %v1453_v52, %v12509_v3 }
 0x19d   : > { %22745 = vst [vmem:[#allocation109_spill] sm:$0xff] %v13042_v23  ;;  %2494 = vrot.lane.b32.xlu1 %v13042_v23, %s12141_s24  ;;  %v13050_v46 = vpop.permute.xlu0 %535  ;;  %v13052_v47 = vpop.permute.xlu1 %483  ;;  %v943_v32 = vperm.slane %v935_v58, %v12457_v10  ;;  %v13134_v38 = vsel %vm584_vm2, %v1440_v15, %v1399_v9  ;;  %v13139_v8 = vsel %vm584_vm2, %v13100_v50, %v1478_v61  ;;  %v1492_v26 = vrot.slane %v12859_v56, 4 }
 0x19e   : > { %22746 = vst [vmem:[#allocation110_spill] sm:$0xff] %v13050_v46  ;;  %v13143_v52 = vperm.slane %v933_v45, %v12457_v10  ;;  %v982_v13 = vrot.slane %v931_v49, 4  ;;  %v970_v61 = vrot.slane %v13129_v12, 4  ;;  %v22764_v45 = vld [vmem:[#allocation19_spill] sm:$0xff]  ;;  %v1046_v15 = vrot.slane %v13042_v23, 4 }
 0x19f   : > { %22747 = vst [vmem:[#allocation111_spill] sm:$0xff] %v13052_v47  ;;  %v980_v29 = vrot.slane %v943_v32, 4  ;;  %v944_v57 = vrot.slane %v13050_v46, 4 }
 0x1a0   : > { %22751 = vst [vmem:[#allocation114_spill] sm:$0xff] %v13084_v20  ;;  %v983_v34 = vsel %vm584_vm2, %v943_v32, %v982_v13  ;;  %v971_v9 = vsel %vm584_vm2, %v13143_v52, %v970_v61 }
 0x1a1   : > { %22753 = vst [vmem:[#allocation115_spill] sm:$0xff] %v13090_v0  ;;  %v945_v59 = vsel %vm584_vm2, %v944_v57, %v12922_v39 }
 0x1a2   : > { %2520 = vrot.lane.b32.xlu2 %v12609_v21, %s12141_s24  ;;  %22754 = vst [vmem:[#allocation116_spill] sm:$0xff] %v13097_v44  ;;  %v1498_v44 = vrot.slane %v12918_v31, 4  ;;  %v1044_v21 = vrot.slane %v12992_v14, 4  ;;  %v951_v20 = vperm.slane %v945_v59, %v12457_v10 }
 0x1a3   : > { %2546 = vrot.lane.b32.xlu0 %v12922_v39, %s12141_s24  ;;  %22755 = vst [vmem:[#allocation117_spill] sm:$0xff] %v13100_v50 }
 0x1a4   : > { %v13103_v25 = vpop.permute.xlu2 %2478  ;;  %22756 = vst [vmem:[#allocation118_spill] sm:$0xff] %v13109_v27  ;;  %v1499_v27 = vsel %vm584_vm2, %v1498_v44, %v12794_v16  ;;  %v1045_v32 = vsel %vm584_vm2, %v1044_v21, %v13042_v23  ;;  %v13185_v21 = vperm.slane %v983_v34, %v12509_v3  ;;  %v946_v44 = vrot.slane %v12922_v39, 4 }
 0x1a5   : > { %2512 = vrot.lane.b32.xlu1 %v12924_v11, %s12141_s24  ;;  %v13116_v1 = vpop.permute.xlu0 %562  ;;  %v13118_v58 = vpop.permute.xlu1 %510  ;;  %22758 = vst [vmem:[#allocation120_spill] sm:$0xff] %v13122_v28  ;;  %v1051_v34 = vperm.slane %v1045_v32, %v12457_v10  ;;  %v22771_v32 = vrot.slane %v22770_v54, 4 }
 0x1a6   : > { %22757 = vst [vmem:[#allocation119_spill] sm:$0xff] %v13118_v58  ;;  %v947_v7 = vsel %vm584_vm2, %v13050_v46, %v946_v44  ;;  %v956_v53 = vrot.slane %v13116_v1, 4 }
 0x1a7   : > { %22759 = vst [vmem:[#allocation121_spill] sm:$0xff] %v13126_v17  ;;  %v955_v54 = vperm.slane %v947_v7, %v12457_v10 }
 0x1a8   : > { %22760 = vst [vmem:[#allocation122_spill] sm:$0xff] %v13129_v12  ;;  %v981_v12 = vsel %vm584_vm2, %v980_v29, %v931_v49  ;;  %v1503_v29 = vperm.slane %v1499_v27, %v12457_v10  ;;  %v958_v27 = vrot.slane %v12990_v48, 4 }
 0x1a9   : > { %22761 = vst [vmem:[#allocation123_spill] sm:$0xff] %v13134_v38  ;;  %v1493_v38 = vsel %vm584_vm2, %v1492_v26, %v12724_v55  ;;  %v13198_v17 = vperm.slane %v981_v12, %v12509_v3  ;;  %v1047_v12 = vsel %vm584_vm2, %v12992_v14, %v1046_v15  ;;  %v1006_v24 = vrot.slane %v955_v54, 4 }
 0x1aa   : > { %22762 = vst [vmem:[#allocation124_spill] sm:$0xff] %v13139_v8  ;;  %2538 = vrot.lane.b32.xlu2 %v12674_v30, %s12141_s24  ;;  %v1497_v50 = vperm.slane %v1493_v38, %v12457_v10  ;;  %v13195_v30 = vperm.slane %v971_v9, %v12509_v3  ;;  %v22769_v9 = vld [vmem:[#allocation41_spill] sm:$0xff]  ;;  %v1510_v0 = vrot.slane %v1503_v29, 4  ;;  %v959_v44 = vsel %vm584_vm2, %v13116_v1, %v958_v27 }
 0x1ab   : > { %22763 = vst [vmem:[#allocation125_spill] sm:$0xff] %v13143_v52  ;;  %2552 = vrot.lane.b32.xlu0 %v12560_v37, %s12141_s24  ;;  %v1033_v37 = vsel %vm584_vm2, %v1032_v4, %v22764_v45  ;;  %v22766_v4 = vrot.slane %v22764_v45, 4  ;;  %v1055_v29 = vperm.slane %v1047_v12, %v12457_v10  ;;  %v967_v15 = vperm.slane %v959_v44, %v12457_v10  ;;  %v22808_v12 = vld [vmem:[#allocation59_spill] sm:$0xff] }
 0x1ac   : > { %v13170_v13 = vpop.permute.xlu2 %2484  ;;  %22765 = vst [vmem:[#allocation19_spill] sm:$0xff] %v13185_v21  ;;  %v1039_v49 = vperm.slane %v1033_v37, %v12457_v10  ;;  %v1193_v37 = vsel %vm584_vm2, %v22771_v32, %v22769_v9  ;;  %v22772_v9 = vld [vmem:[#allocation24_spill] sm:$0xff] }
 0x1ad   : > { %2530 = vrot.lane.b32.xlu1 %v12992_v14, %s12141_s24  ;;  %v13178_v26 = vpop.permute.xlu0 %2468  ;;  %v13180_v61 = vpop.permute.xlu1 %537  ;;  %v1035_v8 = vsel %vm584_vm2, %v12924_v11, %v22766_v4  ;;  %22767 = vst [vmem:[#allocation126_spill] sm:$0xff] %v13195_v30  ;;  %v1080_v4 = vrot.slane %v1051_v34, 4  ;;  %v13233_v52 = vperm.slane %v1193_v37, %v12509_v3  ;;  %v13248_v37 = vsel %vm584_vm2, %v1510_v0, %v1497_v50  ;;  %v22807_v30 = vld [vmem:[#allocation48_spill] sm:$0xff] }
 0x1ae   : > { %22768 = vst [vmem:[#allocation127_spill] sm:$0xff] %v13198_v17  ;;  %v13208_v38 = vperm.slane %v1035_v8, %v12457_v10  ;;  %v1082_v32 = vrot.slane %v1039_v49, 4  ;;  %v1004_v59 = vrot.slane %v967_v15, 4  ;;  %v1058_v11 = vrot.slane %v13052_v47, 4 }
 0x1af   : > { %22775 = vst [vmem:[#allocation42_spill] sm:$0xff] %v13248_v37  ;;  %v1081_v42 = vsel %vm584_vm2, %v1080_v4, %v1039_v49  ;;  %v1007_v4 = vsel %vm584_vm2, %v967_v15, %v1006_v24  ;;  %v1056_v50 = vrot.slane %v13180_v61, 4  ;;  %v1070_v15 = vrot.slane %v13118_v58, 4  ;;  %v22783_v37 = vld [vmem:[#allocation47_spill] sm:$0xff] }
 0x1b0   : > { %v1094_v8 = vrot.slane %v13208_v38, 4  ;;  %v1083_v44 = vsel %vm584_vm2, %v1051_v34, %v1082_v32  ;;  %v13270_v32 = vperm.slane %v1081_v42, %v12509_v3  ;;  %v13286_v42 = vperm.slane %v1007_v4, %v12509_v3  ;;  %v22782_v34 = vld [vmem:[#allocation46_spill] sm:$0xff] }
 0x1b1   : > { %v1005_v24 = vsel %vm584_vm2, %v1004_v59, %v955_v54 }
 0x1b2   : > { %2556 = vrot.lane.b32.xlu2 %v12724_v55, %s12141_s24  ;;  %v957_v55 = vsel %vm584_vm2, %v956_v53, %v12990_v48  ;;  %v1095_v57 = vsel %vm584_vm2, %v1055_v29, %v1094_v8  ;;  %v13265_v53 = vperm.slane %v1083_v44, %v12509_v3  ;;  %22779 = vst [vmem:[#allocation129_spill] sm:$0xff] %v13270_v32  ;;  %v1092_v8 = vrot.slane %v1055_v29, 4  ;;  %v22793_v32 = vld [vmem:[#allocation50_spill] sm:$0xff] }
 0x1b3   : > { %2558 = vrot.lane.b32.xlu0 %v22772_v9, %s12141_s24  ;;  %v963_v49 = vperm.slane %v957_v55, %v12457_v10  ;;  %v13277_v9 = vperm.slane %v1095_v57, %v12509_v3  ;;  %v994_v44 = vrot.slane %v951_v20, 4  ;;  %22781 = vst [vmem:[#allocation131_spill] sm:$0xff] %v13286_v42  ;;  %v1059_v29 = vsel %vm584_vm2, %v13180_v61, %v1058_v11 }
 0x1b4   : > { %v13230_v27 = vpop.permute.xlu2 %2496  ;;  %22778 = vst [vmem:[#allocation128_spill] sm:$0xff] %v13265_v53  ;;  %v1067_v55 = vperm.slane %v1059_v29, %v12457_v10 }
 0x1b5   : > { %2548 = vrot.lane.b32.xlu1 %v13052_v47, %s12141_s24  ;;  %v13239_v7 = vpop.permute.xlu0 %2474  ;;  %v13241_v17 = vpop.permute.xlu1 %564  ;;  %22780 = vst [vmem:[#allocation130_spill] sm:$0xff] %v13277_v9  ;;  %v995_v41 = vsel %vm584_vm2, %v963_v49, %v994_v44  ;;  %v1142_v59 = vrot.slane %v13277_v9, 4  ;;  %v992_v44 = vrot.slane %v963_v49, 4  ;;  %v22792_v9 = vld [vmem:[#allocation64_spill] sm:$0xff] }
 0x1b6   : > { %22773 = vst [vmem:[#allocation41_spill] sm:$0xff] %v13241_v17  ;;  %v1068_v4 = vrot.slane %v13241_v17, 4  ;;  %v1071_v54 = vsel %vm584_vm2, %v13241_v17, %v1070_v15 }
 0x1b7   : > { %v1079_v29 = vperm.slane %v1071_v54, %v12457_v10  ;;  %v13356_v54 = vsel %vm584_vm2, %v992_v44, %v951_v20 }
 0x1b8   : > { %22797 = vst [vmem:[#allocation50_spill] sm:$0xff] %v13356_v54 }
 0x1ba   : > { %2562 = vrot.lane.b32.xlu2 %v12436_v63, %s12141_s24  ;;  %v22784_v63 = vrot.slane %v22783_v37, 4  ;;  %v13309_v37 = vsel %vm584_vm2, %v1092_v8, %v13208_v38  ;;  %v13323_v38 = vperm.slane %v995_v41, %v12509_v3  ;;  %v13326_v8 = vperm.slane %v1005_v24, %v12509_v3  ;;  %v22791_v41 = vld [vmem:[#allocation16_spill] sm:$0xff] }
 0x1bb   : > { %2564 = vrot.lane.b32.xlu0 %v12990_v48, %s12141_s24  ;;  %22786 = vst [vmem:[#allocation46_spill] sm:$0xff] %v13309_v37  ;;  %v22794_v37 = vrot.slane %v22793_v32, 4 }
 0x1bc   : > { %v13291_v57 = vpop.permute.xlu2 %2514  ;;  %v633_v48 = vsel %vm584_vm2, %v22784_v63, %v22782_v34  ;;  %v1057_v34 = vsel %vm584_vm2, %v1056_v50, %v13052_v47  ;;  %22787 = vst [vmem:[#allocation47_spill] sm:$0xff] %v13323_v38  ;;  %v22789_v50 = vrot.slane %v13185_v21, 4  ;;  %v22795_v21 = vld [vmem:[#allocation60_spill] sm:$0xff]  ;;  %v1118_v63 = vrot.slane %v1067_v55, 4 }
 0x1bd   : > { %2560 = vrot.lane.b32.xlu1 %v22785_v60, %s12141_s24  ;;  %v13303_v39 = vpop.permute.xlu0 %2480  ;;  %v13305_v11 = vpop.permute.xlu1 %2476  ;;  %v13319_v53 = vperm.slane %v633_v48, %v12509_v3  ;;  %v3246_v60 = vrot.slane %v13103_v25, 4  ;;  %22788 = vst [vmem:[#allocation132_spill] sm:$0xff] %v13326_v8  ;;  %v13335_v49 = vperm.slane %v1057_v34, %v12457_v10  ;;  %v1069_v48 = vsel %vm584_vm2, %v1068_v4, %v13118_v58 }
 0x1be   : > { %v13332_v15 = vsel %vm584_vm2, %v13286_v42, %v22789_v50  ;;  %v1223_v34 = vperm.slane %v22792_v9, %v12509_v3  ;;  %v13353_v4 = vsel %vm584_vm2, %v22795_v21, %v22794_v37  ;;  %v1075_v37 = vperm.slane %v1069_v48, %v12457_v10  ;;  %v22798_v42 = vld [vmem:[#allocation20_spill] sm:$0xff]  ;;  %v22803_v50 = vld [vmem:[#allocation51_spill] sm:$0xff] }
 0x1bf   : > { %22790 = vst [vmem:[#allocation133_spill] sm:$0xff] %v13332_v15  ;;  %v1106_v20 = vrot.slane %v13335_v49, 4  ;;  %v1119_v44 = vsel %vm584_vm2, %v1079_v29, %v1118_v63  ;;  %v2092_v9 = vrot.slane %v13353_v4, 4  ;;  %v22799_v48 = vrot.slane %v13233_v52, 4 }
 0x1c0   : > { %22796 = vst [vmem:[#allocation64_spill] sm:$0xff] %v13353_v4  ;;  %v1240_v8 = vrot.slane %v1223_v34, 4  ;;  %v22801_v63 = vrot.slane %v22795_v21, 4  ;;  %v22804_v14 = vrot.slane %v22803_v50, 4  ;;  %v22805_v4 = vld [vmem:[#allocation61_spill] sm:$0xff]  ;;  %v1104_v0 = vrot.slane %v1075_v37, 4 }
 0x1c1   : > { %v13380_v38 = vsel %vm584_vm2, %v1223_v34, %v22799_v48  ;;  %v22809_v34 = vrot.slane %v22808_v12, 4  ;;  %v1107_v21 = vsel %vm584_vm2, %v1075_v37, %v1106_v20 }
 0x1c2   : > { %2568 = vrot.lane.b32.xlu2 %v22791_v41, %s12141_s24  ;;  %v1116_v41 = vrot.slane %v1079_v29, 4  ;;  %22800 = vst [vmem:[#allocation60_spill] sm:$0xff] %v13380_v38  ;;  %v13386_v54 = vsel %vm584_vm2, %v22801_v63, %v22793_v32  ;;  %v13394_v29 = vsel %vm584_vm2, %v22805_v4, %v22804_v14  ;;  %v13404_v32 = vperm.slane %v1119_v44, %v12509_v3 }
 0x1c3   : > { %2570 = vrot.lane.b32.xlu0 %v12616_v22, %s12141_s24  ;;  %22802 = vst [vmem:[#allocation20_spill] sm:$0xff] %v13386_v54  ;;  %v3258_v22 = vrot.slane %v13230_v27, 4  ;;  %v13400_v48 = vsel %vm584_vm2, %v22809_v34, %v22807_v30  ;;  %v3247_v63 = vsel %vm584_vm2, %v13291_v57, %v3246_v60  ;;  %v2080_v14 = vrot.slane %v13386_v54, 4 }
 0x1c4   : > { %v2533_v47 = vpop.permute.xlu2 %2532  ;;  %22806 = vst [vmem:[#allocation51_spill] sm:$0xff] %v13394_v29  ;;  %v2093_v12 = vsel %vm584_vm2, %v2092_v9, %v13380_v38  ;;  %v1117_v30 = vsel %vm584_vm2, %v1116_v41, %v1067_v55  ;;  %v13417_v20 = vsel %vm584_vm2, %v1240_v8, %v13233_v52  ;;  %v2104_v60 = vrot.slane %v13400_v48, 4  ;;  %v22816_v9 = vld [vmem:[#allocation27_spill] sm:$0xff] }
 0x1c5   : > { %2566 = vrot.lane.b32.xlu1 %v13118_v58, %s12141_s24  ;;  %v13370_v24 = vpop.permute.xlu0 %2486  ;;  %v13372_v15 = vpop.permute.xlu1 %2482  ;;  %v3244_v58 = vrot.slane %v13291_v57, 4  ;;  %22810 = vst [vmem:[#allocation61_spill] sm:$0xff] %v13400_v48  ;;  %v3256_v23 = vrot.slane %v2533_v47, 4  ;;  %v3259_v28 = vsel %vm584_vm2, %v2533_v47, %v3258_v22  ;;  %v22813_v57 = vld [vmem:[#allocation62_spill] sm:$0xff]  ;;  %v13425_v47 = vperm.slane %v1107_v21, %v12509_v3  ;;  %v22830_v38 = vld [vmem:[#allocation55_spill] sm:$0xff] }
 0x1c6   : > { %22811 = vst [vmem:[#allocation48_spill] sm:$0xff] %v13404_v32  ;;  %v22814_v37 = vrot.slane %v22813_v57, 4  ;;  %v3255_v41 = vperm.slane %v3247_v63, %v12457_v10  ;;  %v22817_v52 = vrot.slane %v22805_v4, 4  ;;  %v13440_v44 = vsel %vm584_vm2, %v13404_v32, %v1142_v59  ;;  %v22821_v59 = vld [vmem:[#allocation23_spill] sm:$0xff] }
 0x1c7   : > { %22812 = vst [vmem:[#allocation59_spill] sm:$0xff] %v13417_v20  ;;  %v3245_v55 = vsel %vm584_vm2, %v3244_v58, %v13103_v25  ;;  %v3257_v34 = vsel %vm584_vm2, %v3256_v23, %v13230_v27  ;;  %v3267_v25 = vperm.slane %v3259_v28, %v12457_v10  ;;  %v13448_v21 = vperm.slane %v2093_v12, %v12457_v10 }
 0x1c8   : > { %v2117_v22 = vsel %vm584_vm2, %v22814_v37, %v13394_v29  ;;  %22815 = vst [vmem:[#allocation134_spill] sm:$0xff] %v13425_v47  ;;  %v13436_v8 = vsel %vm584_vm2, %v22817_v52, %v22803_v50  ;;  %v2081_v23 = vsel %vm584_vm2, %v2080_v14, %v13417_v20  ;;  %v13463_v27 = vperm.slane %v1117_v30, %v12509_v3 }
 0x1c9   : > { %22818 = vst [vmem:[#allocation27_spill] sm:$0xff] %v13436_v8  ;;  %v13460_v28 = vperm.slane %v2117_v22, %v12457_v10  ;;  %v3251_v52 = vperm.slane %v3245_v55, %v12457_v10  ;;  %v2105_v63 = vsel %vm584_vm2, %v2104_v60, %v13436_v8  ;;  %v13471_v57 = vsel %vm584_vm2, %v1104_v0, %v13335_v49  ;;  %v22826_v60 = vld [vmem:[#allocation75_spill] sm:$0xff] }
 0x1ca   : > { %2574 = vrot.lane.b32.xlu2 %v12794_v16, %s12141_s24  ;;  %22819 = vst [vmem:[#allocation135_spill] sm:$0xff] %v13440_v44  ;;  %v3306_v14 = vrot.slane %v3255_v41, 4  ;;  %v3263_v22 = vperm.slane %v3257_v34, %v12457_v10  ;;  %v3304_v30 = vrot.slane %v3267_v25, 4  ;;  %v13477_v54 = vperm.slane %v2081_v23, %v12457_v10  ;;  %v22829_v44 = vld [vmem:[#allocation28_spill] sm:$0xff] }
 0x1cb   : > { %2576 = vrot.lane.b32.xlu0 %v22816_v9, %s12141_s24  ;;  %22820 = vst [vmem:[#allocation136_spill] sm:$0xff] %v13448_v21  ;;  %v2128_v55 = vrot.slane %v13448_v21, 4  ;;  %v663_v32 = vperm.slane %v22826_v60, %v12509_v3  ;;  %v13484_v0 = vperm.slane %v2105_v63, %v12457_v10  ;;  %v2152_v49 = vrot.slane %v13460_v28, 4 }
 0x1cc   : > { %v13445_v58 = vpop.permute.xlu2 %2550  ;;  %22822 = vst [vmem:[#allocation137_spill] sm:$0xff] %v13460_v28  ;;  %v3307_v12 = vsel %vm584_vm2, %v3267_v25, %v3306_v14  ;;  %v3294_v37 = vrot.slane %v3251_v52, 4  ;;  %v3292_v21 = vrot.slane %v3263_v22, 4  ;;  %v3305_v34 = vsel %vm584_vm2, %v3304_v30, %v3255_v41  ;;  %v22831_v14 = vld [vmem:[#allocation69_spill] sm:$0xff]  ;;  %v22846_v30 = vld [vmem:[#allocation54_spill] sm:$0xff] }
 0x1cd   : > { %2572 = vrot.lane.b32.xlu1 %v12618_v43, %s12141_s24  ;;  %v2505_v50 = vpop.permute.xlu0 %2504  ;;  %v13453_v4 = vpop.permute.xlu1 %2488  ;;  %22823 = vst [vmem:[#allocation138_spill] sm:$0xff] %v13463_v27  ;;  %v13500_v48 = vperm.slane %v3307_v12, %v12509_v3  ;;  %v2129_v28 = vsel %vm584_vm2, %v2128_v55, %v13477_v54  ;;  %v680_v63 = vrot.slane %v663_v32, 4  ;;  %v22832_v8 = vrot.slane %v22831_v14, 4 }
 0x1ce   : > { %22824 = vst [vmem:[#allocation139_spill] sm:$0xff] %v13471_v57  ;;  %v3295_v60 = vsel %vm584_vm2, %v3263_v22, %v3294_v37  ;;  %v2153_v12 = vsel %vm584_vm2, %v2152_v49, %v13484_v0  ;;  %v2698_v22 = vrot.slane %v13370_v24, 4  ;;  %v2684_v55 = vrot.slane %v2505_v50, 4 }
 0x1cf   : > { %22825 = vst [vmem:[#allocation140_spill] sm:$0xff] %v13477_v54  ;;  %v13512_v37 = vsel %vm584_vm2, %v22832_v8, %v22830_v38  ;;  %v22834_v54 = vrot.slane %v22830_v38, 4  ;;  %v3293_v47 = vsel %vm584_vm2, %v3292_v21, %v3251_v52  ;;  %v13527_v8 = vperm.slane %v3295_v60, %v12509_v3  ;;  %v22842_v52 = vld [vmem:[#allocation56_spill] sm:$0xff]  ;;  %v22844_v60 = vld [vmem:[#allocation70_spill] sm:$0xff] }
 0x1d0   : > { %22827 = vst [vmem:[#allocation75_spill] sm:$0xff] %v13484_v0  ;;  %v13530_v41 = vperm.slane %v3305_v34, %v12509_v3  ;;  %v13533_v49 = vperm.slane %v2129_v28, %v12509_v3  ;;  %v22839_v29 = vrot.slane %v13178_v26, 4  ;;  %v13545_v21 = vsel %vm584_vm2, %v680_v63, %v13319_v53  ;;  %v22847_v0 = vld [vmem:[#allocation65_spill] sm:$0xff] }
 0x1d1   : > { %22828 = vst [vmem:[#allocation141_spill] sm:$0xff] %v13500_v48  ;;  %v13523_v27 = vsel %vm584_vm2, %v22831_v14, %v22834_v54  ;;  %v1520_v54 = vrot.slane %v13512_v37, 4  ;;  %v13541_v14 = vperm.slane %v2153_v12, %v12509_v3  ;;  %v22843_v34 = vrot.slane %v22842_v52, 4 }
 0x1d2   : > { %2580 = vrot.lane.b32.xlu2 %v12450_v6, %s12141_s24  ;;  %22833 = vst [vmem:[#allocation28_spill] sm:$0xff] %v13512_v37  ;;  %v2687_v38 = vsel %vm584_vm2, %v2505_v50, %v22839_v29  ;;  %v22848_v57 = vrot.slane %v22847_v0, 4  ;;  %v1532_v50 = vrot.slane %v13523_v27, 4  ;;  %v13561_v12 = vperm.slane %v3293_v47, %v12509_v3 }
 0x1d3   : > { %2582 = vrot.lane.b32.xlu0 %v13050_v46, %s12141_s24  ;;  %22835 = vst [vmem:[#allocation55_spill] sm:$0xff] %v13523_v27  ;;  %v13551_v28 = vsel %vm584_vm2, %v22844_v60, %v22843_v34  ;;  %v2685_v63 = vsel %vm584_vm2, %v2684_v55, %v13178_v26  ;;  %v22851_v34 = vrot.slane %v13319_v53, 4  ;;  %v1521_v53 = vsel %vm584_vm2, %v1520_v54, %v13545_v21 }
 0x1d4   : > { %v13502_v23 = vpop.permute.xlu2 %2490  ;;  %22836 = vst [vmem:[#allocation69_spill] sm:$0xff] %v13527_v8  ;;  %v13557_v29 = vsel %vm584_vm2, %v22848_v57, %v22846_v30  ;;  %v2695_v30 = vperm.slane %v2687_v38, %v12457_v10  ;;  %v2691_v38 = vperm.slane %v2685_v63, %v12457_v10  ;;  %v22855_v54 = vrot.slane %v22844_v60, 4 }
 0x1d5   : > { %2578 = vrot.lane.b32.xlu1 %v22829_v44, %s12141_s24  ;;  %v2523_v25 = vpop.permute.xlu0 %2522  ;;  %v2507_v20 = vpop.permute.xlu1 %2506  ;;  %22837 = vst [vmem:[#allocation142_spill] sm:$0xff] %v13530_v41  ;;  %v13570_v48 = vsel %vm584_vm2, %v663_v32, %v22851_v34  ;;  %v1544_v32 = vrot.slane %v13557_v29, 4  ;;  %v22853_v34 = vld [vmem:[#allocation71_spill] sm:$0xff]  ;;  %v1527_v46 = vperm.slane %v1521_v53, %v12457_v10 }
 0x1d6   : > { %22838 = vst [vmem:[#allocation143_spill] sm:$0xff] %v13533_v49  ;;  %v2696_v37 = vrot.slane %v2523_v25, 4  ;;  %v2699_v47 = vsel %vm584_vm2, %v2523_v25, %v2698_v22  ;;  %v22854_v57 = vrot.slane %v22853_v34, 4  ;;  %v2810_v25 = vrot.slane %v13453_v4, 4 }
 0x1d7   : > { %22840 = vst [vmem:[#allocation144_spill] sm:$0xff] %v13541_v14  ;;  %v1533_v34 = vsel %vm584_vm2, %v1532_v50, %v13570_v48  ;;  %v2707_v27 = vperm.slane %v2699_v47, %v12457_v10  ;;  %v2796_v41 = vrot.slane %v2507_v20, 4  ;;  %v2746_v8 = vrot.slane %v2695_v30, 4 }
 0x1d8   : > { %22841 = vst [vmem:[#allocation145_spill] sm:$0xff] %v13545_v21  ;;  %v1557_v0 = vsel %vm584_vm2, %v22854_v57, %v13551_v28  ;;  %v2697_v63 = vsel %vm584_vm2, %v2696_v37, %v13370_v24  ;;  %v1539_v50 = vperm.slane %v1533_v34, %v12457_v10  ;;  %v2734_v24 = vrot.slane %v2691_v38, 4 }
 0x1d9   : > { %22845 = vst [vmem:[#allocation56_spill] sm:$0xff] %v13551_v28  ;;  %v13609_v60 = vperm.slane %v1557_v0, %v12457_v10  ;;  %v2703_v37 = vperm.slane %v2697_v63, %v12457_v10  ;;  %v22857_v47 = vrot.slane %v12868_v33, 4  ;;  %v2744_v21 = vrot.slane %v2707_v27, 4  ;;  %v22858_v63 = vld [vmem:[#allocation30_spill] sm:$0xff] }
 0x1da   : > { %22849 = vst [vmem:[#allocation70_spill] sm:$0xff] %v13557_v29  ;;  %2586 = vrot.lane.b32.xlu2 %v22798_v42, %s12141_s24  ;;  %v13598_v29 = vsel %vm584_vm2, %v22855_v54, %v22842_v52  ;;  %v2797_v0 = vsel %vm584_vm2, %v2796_v41, %v12868_v33  ;;  %v1570_v53 = vrot.slane %v1527_v46, 4  ;;  %v1568_v28 = vrot.slane %v1539_v50, 4 }
 0x1db   : > { %22850 = vst [vmem:[#allocation54_spill] sm:$0xff] %v13561_v12  ;;  %2588 = vrot.lane.b32.xlu0 %v12684_v18, %s12141_s24  ;;  %v1545_v57 = vsel %vm584_vm2, %v1544_v32, %v13598_v29  ;;  %v2799_v6 = vsel %vm584_vm2, %v2507_v20, %v22857_v47  ;;  %v2176_v32 = vrot.slane %v13541_v14, 4  ;;  %v1592_v47 = vrot.slane %v13609_v60, 4 }
 0x1dc   : > { %22852 = vst [vmem:[#allocation65_spill] sm:$0xff] %v13570_v48  ;;  %v13579_v55 = vpop.permute.xlu2 %2508  ;;  %v1551_v20 = vperm.slane %v1545_v57, %v12457_v10  ;;  %v2807_v33 = vperm.slane %v2799_v6, %v12457_v10  ;;  %v2922_v14 = vrot.slane %v13502_v23, 4  ;;  %v2803_v48 = vperm.slane %v2797_v0, %v12457_v10 }
 0x1dd   : > { %2584 = vrot.lane.b32.xlu1 %v13180_v61, %s12141_s24  ;;  %v13592_v22 = vpop.permute.xlu0 %2540  ;;  %v2525_v26 = vpop.permute.xlu1 %2524  ;;  %22856 = vst [vmem:[#allocation146_spill] sm:$0xff] %v13598_v29  ;;  %v2747_v29 = vsel %vm584_vm2, %v2707_v27, %v2746_v8  ;;  %v2745_v6 = vsel %vm584_vm2, %v2744_v21, %v2695_v30  ;;  %v1571_v12 = vsel %vm584_vm2, %v1539_v50, %v1570_v53 }
 0x1de   : > { %v2808_v52 = vrot.slane %v2525_v26, 4  ;;  %v2811_v54 = vsel %vm584_vm2, %v2525_v26, %v2810_v25  ;;  %v2732_v26 = vrot.slane %v2703_v37, 4  ;;  %v2735_v25 = vsel %vm584_vm2, %v2703_v37, %v2734_v24 }
 0x1df   : > { %v2819_v8 = vperm.slane %v2811_v54, %v12457_v10  ;;  %v13652_v24 = vperm.slane %v2747_v29, %v12509_v3  ;;  %v1593_v0 = vsel %vm584_vm2, %v1592_v47, %v1551_v20  ;;  %v2858_v21 = vrot.slane %v2807_v33, 4 }
 0x1e0   : > { %v2809_v41 = vsel %vm584_vm2, %v2808_v52, %v13453_v4  ;;  %v2908_v4 = vrot.slane %v13579_v55, 4  ;;  %v13649_v52 = vsel %vm584_vm2, %v2176_v32, %v13533_v49  ;;  %v1569_v54 = vsel %vm584_vm2, %v1568_v28, %v1527_v46 }
 0x1e1   : > { %22859 = vst [vmem:[#allocation147_spill] sm:$0xff] %v13649_v52  ;;  %v2815_v37 = vperm.slane %v2809_v41, %v12457_v10  ;;  %v13663_v32 = vperm.slane %v2745_v6, %v12509_v3  ;;  %v2846_v29 = vrot.slane %v2803_v48, 4  ;;  %v1594_v49 = vrot.slane %v1551_v20, 4  ;;  %v22874_v52 = vld [vmem:[#allocation76_spill] sm:$0xff] }
 0x1e2   : > { %2592 = vrot.lane.b32.xlu2 %v12859_v56, %s12141_s24  ;;  %22860 = vst [vmem:[#allocation148_spill] sm:$0xff] %v13652_v24  ;;  %v13658_v56 = vperm.slane %v2735_v25, %v12509_v3  ;;  %v2909_v41 = vsel %vm584_vm2, %v2908_v4, %v12983_v51  ;;  %v22863_v47 = vrot.slane %v12983_v51, 4  ;;  %v2856_v53 = vrot.slane %v2819_v8, 4 }
 0x1e3   : > { %2594 = vrot.lane.b32.xlu0 %v22858_v63, %s12141_s24  ;;  %v2733_v63 = vsel %vm584_vm2, %v2732_v26, %v2691_v38  ;;  %22862 = vst [vmem:[#allocation150_spill] sm:$0xff] %v13663_v32  ;;  %v13674_v46 = vperm.slane %v1593_v0, %v12509_v3  ;;  %v2844_v38 = vrot.slane %v2815_v37, 4  ;;  %v2859_v20 = vsel %vm584_vm2, %v2819_v8, %v2858_v21 }
 0x1e4   : > { %v2527_v34 = vpop.permute.xlu2 %2526  ;;  %22861 = vst [vmem:[#allocation149_spill] sm:$0xff] %v13658_v56  ;;  %v2911_v50 = vsel %vm584_vm2, %v13579_v55, %v22863_v47  ;;  %v13681_v51 = vperm.slane %v1569_v54, %v12509_v3  ;;  %v13684_v55 = vperm.slane %v2733_v63, %v12509_v3  ;;  %v2915_v8 = vperm.slane %v2909_v41, %v12457_v10  ;;  %v22867_v54 = vld [vmem:[#allocation31_spill] sm:$0xff] }
 0x1e5   : > { %2590 = vrot.lane.b32.xlu1 %v12686_v5, %s12141_s24  ;;  %v13640_v57 = vpop.permute.xlu0 %2498  ;;  %v13642_v27 = vpop.permute.xlu1 %2542  ;;  %v2920_v30 = vrot.slane %v2527_v34, 4  ;;  %22864 = vst [vmem:[#allocation151_spill] sm:$0xff] %v13674_v46  ;;  %v2923_v6 = vsel %vm584_vm2, %v2527_v34, %v2922_v14  ;;  %v2919_v0 = vperm.slane %v2911_v50, %v12457_v10  ;;  %v2847_v21 = vsel %vm584_vm2, %v2815_v37, %v2846_v29 }
 0x1e6   : > { %22865 = vst [vmem:[#allocation152_spill] sm:$0xff] %v13681_v51  ;;  %v2857_v14 = vsel %vm584_vm2, %v2856_v53, %v2807_v33  ;;  %v13705_v34 = vperm.slane %v2859_v20, %v12509_v3  ;;  %v1579_v41 = vperm.slane %v1571_v12, %v12509_v3  ;;  %v2845_v29 = vsel %vm584_vm2, %v2844_v38, %v2803_v48  ;;  %v22871_v48 = vld [vmem:[#allocation82_spill] sm:$0xff] }
 0x1e7   : > { %22866 = vst [vmem:[#allocation153_spill] sm:$0xff] %v13684_v55  ;;  %v2921_v25 = vsel %vm584_vm2, %v2920_v30, %v13502_v23  ;;  %v1595_v23 = vsel %vm584_vm2, %v13609_v60, %v1594_v49  ;;  %v1616_v30 = vrot.slane %v13674_v46, 4  ;;  %v2931_v26 = vperm.slane %v2923_v6, %v12457_v10  ;;  %v22875_v55 = vld [vmem:[#allocation80_spill] sm:$0xff] }
 0x1e8   : > { %22868 = vst [vmem:[#allocation31_spill] sm:$0xff] %v13705_v34  ;;  %v2927_v50 = vperm.slane %v2921_v25, %v12457_v10  ;;  %v13716_v60 = vperm.slane %v2847_v21, %v12509_v3  ;;  %v1603_v33 = vperm.slane %v1595_v23, %v12509_v3  ;;  %v2958_v53 = vrot.slane %v2915_v8, 4 }
 0x1e9   : > { %v2970_v20 = vrot.slane %v2919_v0, 4  ;;  %v13720_v12 = vperm.slane %v2857_v14, %v12509_v3  ;;  %v13724_v38 = vperm.slane %v22871_v48, %v12509_v3  ;;  %v13727_v25 = vperm.slane %v2845_v29, %v12509_v3 }
 0x1ea   : > { %2598 = vrot.lane.b32.xlu2 %v12489_v2, %s12141_s24  ;;  %22869 = vst [vmem:[#allocation154_spill] sm:$0xff] %v13716_v60  ;;  %v13734_v21 = vsel %vm584_vm2, %v1616_v30, %v13681_v51  ;;  %v1622_v23 = vrot.slane %v1579_v41, 4  ;;  %v2956_v28 = vrot.slane %v2927_v50, 4  ;;  %v2959_v14 = vsel %vm584_vm2, %v2927_v50, %v2958_v53  ;;  %v22881_v60 = vld [vmem:[#allocation77_spill] sm:$0xff] }
 0x1eb   : > { %2600 = vrot.lane.b32.xlu0 %v13116_v1, %s12141_s24  ;;  %22870 = vst [vmem:[#allocation155_spill] sm:$0xff] %v13720_v12  ;;  %v2968_v37 = vrot.slane %v2931_v26, 4  ;;  %v3370_v48 = vrot.slane %v13640_v57, 4  ;;  %v2971_v6 = vsel %vm584_vm2, %v2931_v26, %v2970_v20  ;;  %v1620_v30 = vrot.slane %v1603_v33, 4  ;;  %v22877_v20 = vld [vmem:[#allocation74_spill] sm:$0xff] }
 0x1ec   : > { %v13690_v4 = vpop.permute.xlu2 %2544  ;;  %22872 = vst [vmem:[#allocation82_spill] sm:$0xff] %v13727_v25  ;;  %v802_v29 = vrot.slane %v13724_v38, 4  ;;  %v22876_v26 = vrot.slane %v22875_v55, 4  ;;  %v13761_v51 = vperm.slane %v2959_v14, %v12509_v3  ;;  %v13764_v12 = vsel %vm584_vm2, %v1603_v33, %v1622_v23 }
 0x1ed   : > { %2596 = vrot.lane.b32.xlu1 %v22867_v54, %s12141_s24  ;;  %v13697_v63 = vpop.permute.xlu0 %2516  ;;  %v13699_v47 = vpop.permute.xlu1 %2500  ;;  %22873 = vst [vmem:[#allocation156_spill] sm:$0xff] %v13734_v21  ;;  %v775_v21 = vperm.slane %v22874_v52, %v12509_v3  ;;  %v2957_v32 = vsel %vm584_vm2, %v2956_v28, %v2915_v8  ;;  %v13779_v25 = vsel %vm584_vm2, %v1620_v30, %v1579_v41  ;;  %v22888_v28 = vrot.slane %v13303_v39, 4 }
 0x1ee   : > { %v13757_v49 = vsel %vm584_vm2, %v22877_v20, %v22876_v26  ;;  %22879 = vst [vmem:[#allocation80_spill] sm:$0xff] %v13761_v51  ;;  %v13775_v26 = vperm.slane %v2971_v6, %v12509_v3  ;;  %v3356_v34 = vrot.slane %v13697_v63, 4  ;;  %v13798_v30 = vperm.slane %v2957_v32, %v12509_v3 }
 0x1ef   : > { %22878 = vst [vmem:[#allocation76_spill] sm:$0xff] %v13757_v49  ;;  %v3359_v8 = vsel %vm584_vm2, %v13697_v63, %v22888_v28 }
 0x1f0   : > { %22880 = vst [vmem:[#allocation74_spill] sm:$0xff] %v13764_v12  ;;  %v22898_v12 = vld [vmem:[#allocation4_spill] sm:$0xff] }
 0x1f1   : > { %22891 = vst [vmem:[#allocation158_spill] sm:$0xff] %v13798_v30 }
 0x1f2   : > { %2604 = vrot.lane.b32.xlu2 %v22821_v59, %s12141_s24  ;;  %v22883_v59 = vld [vmem:[#allocation72_spill] sm:$0xff] }
 0x1f3   : > { %2606 = vrot.lane.b32.xlu0 %v12732_v36, %s12141_s24  ;;  %v2969_v36 = vsel %vm584_vm2, %v2968_v37, %v2919_v0  ;;  %22885 = vst [vmem:[#allocation72_spill] sm:$0xff] %v13779_v25  ;;  %v22886_v33 = vrot.slane %v22883_v59, 4  ;;  %v792_v0 = vrot.slane %v775_v21, 4  ;;  %v22889_v37 = vld [vmem:[#allocation73_spill] sm:$0xff] }
 0x1f4   : > { %v13743_v46 = vpop.permute.xlu2 %2502  ;;  %v13794_v6 = vsel %vm584_vm2, %v22889_v37, %v802_v29  ;;  %v22896_v29 = vrot.slane %v22877_v20, 4 }
 0x1f5   : > { %2602 = vrot.lane.b32.xlu1 %v13241_v17, %s12141_s24  ;;  %v2535_v50 = vpop.permute.xlu0 %2534  ;;  %v13748_v53 = vpop.permute.xlu1 %2518  ;;  %v22882_v17 = vrot.slane %v22881_v60, 4  ;;  %v13785_v23 = vsel %vm584_vm2, %v22886_v33, %v22881_v60  ;;  %22890 = vst [vmem:[#allocation73_spill] sm:$0xff] %v13794_v6  ;;  %v22893_v60 = vld [vmem:[#allocation79_spill] sm:$0xff] }
 0x1f6   : > { %v3368_v14 = vrot.slane %v2535_v50, 4  ;;  %22887 = vst [vmem:[#allocation157_spill] sm:$0xff] %v13785_v23  ;;  %v22894_v33 = vrot.slane %v22893_v60, 4  ;;  %v13814_v28 = vsel %vm584_vm2, %v22896_v29, %v22875_v55  ;;  %v3367_v55 = vperm.slane %v3359_v8, %v12457_v10 }
 0x1f7   : > { %v13770_v52 = vsel %vm584_vm2, %v22883_v59, %v22882_v17  ;;  %v1668_v17 = vrot.slane %v13757_v49, 4  ;;  %v13801_v59 = vperm.slane %v2969_v36, %v12509_v3  ;;  %22897 = vst [vmem:[#allocation160_spill] sm:$0xff] %v13814_v28  ;;  %v3357_v36 = vsel %vm584_vm2, %v3356_v34, %v13303_v39 }
 0x1f8   : > { %22884 = vst [vmem:[#allocation77_spill] sm:$0xff] %v13770_v52  ;;  %v1644_v41 = vrot.slane %v13770_v52, 4  ;;  %v13808_v63 = vsel %vm584_vm2, %v775_v21, %v22894_v33  ;;  %v3371_v52 = vsel %vm584_vm2, %v2535_v50, %v3370_v48  ;;  %v22899_v21 = vld [vmem:[#allocation2_spill] sm:$0xff]  ;;  %v3369_v29 = vsel %vm584_vm2, %v3368_v14, %v13640_v57 }
 0x1f9   : > { %22892 = vst [vmem:[#allocation159_spill] sm:$0xff] %v13801_v59  ;;  %v22900_v33 = vpack.i.bf16 %v22898_v12, %v22899_v21  ;;  %v1669_v39 = vsel %vm584_vm2, %v1668_v17, %v13794_v6  ;;  %v3482_v34 = vrot.slane %v13699_v47, 4  ;;  %v13840_v50 = vsel %vm584_vm2, %v792_v0, %v22893_v60 }
 0x1fa   : > { %2610 = vrot.lane.b32.xlu2 %v12918_v31, %s12141_s24  ;;  %22895 = vst [vmem:[#allocation79_spill] sm:$0xff] %v13808_v63  ;;  %v1645_v57 = vsel %vm584_vm2, %v1644_v41, %v13808_v63  ;;  %v1656_v14 = vrot.slane %v13814_v28, 4  ;;  %v3363_v8 = vperm.slane %v3357_v36, %v12457_v10  ;;  %v3379_v17 = vperm.slane %v3371_v52, %v12457_v10 }
 0x1fb   : > { %11678 = vrot.lane.b32.xlu0 %v22900_v33, %s12144_s25  ;;  %22901 = vst [vmem:[#allocation4_spill] sm:$0xff] %v13840_v50  ;;  %v3468_v21 = vrot.slane %v13748_v53, 4  ;;  %v22902_v33 = vrot.slane %v22889_v37, 4  ;;  %v3375_v60 = vperm.slane %v3369_v29, %v12457_v10  ;;  %v1632_v41 = vrot.slane %v13785_v23, 4  ;;  %v22908_v29 = vld [vmem:[#allocation5_spill] sm:$0xff] }
 0x1fc   : > { %v13829_v32 = vpop.permute.xlu2 %2520  ;;  %v13858_v20 = vperm.slane %v1669_v39, %v12457_v10  ;;  %v3418_v52 = vrot.slane %v3367_v55, 4  ;;  %v13863_v25 = vperm.slane %v1645_v57, %v12457_v10  ;;  %v3406_v0 = vrot.slane %v3363_v8, 4  ;;  %v22905_v57 = vld [vmem:[#allocation3_spill] sm:$0xff] }
 0x1fd   : > { %2608 = vrot.lane.b32.xlu1 %v12734_v19, %s12141_s24  ;;  %v13836_v48 = vpop.permute.xlu0 %2492  ;;  %v2537_v12 = vpop.permute.xlu1 %2536  ;;  %v13852_v49 = vsel %vm584_vm2, %v22902_v33, %v13724_v38  ;;  %v22904_v38 = vrot.slane %v13372_v15, 4  ;;  %v3416_v23 = vrot.slane %v3379_v17, 4  ;;  %v3469_v28 = vsel %vm584_vm2, %v3468_v21, %v13372_v15  ;;  %v23046_v19 = vld [vmem:[#allocation63_spill] sm:$0xff] }
 0x1fe   : > { %22903 = vst [vmem:[#allocation2_spill] sm:$0xff] %v13852_v49  ;;  %v3480_v33 = vrot.slane %v2537_v12, 4  ;;  %v1657_v39 = vsel %vm584_vm2, %v1656_v14, %v13852_v49  ;;  %v3419_v36 = vsel %vm584_vm2, %v3379_v17, %v3418_v52  ;;  %v22906_v30 = vpack.i.bf16 %v22905_v57, %v22764_v45  ;;  %v22914_v49 = vld [vmem:[#allocation89_spill] sm:$0xff] }
 0x1ff   : > { %v3471_v37 = vsel %vm584_vm2, %v13748_v53, %v22904_v38  ;;  %v3404_v31 = vrot.slane %v3375_v60, 4  ;;  %v3483_v53 = vsel %vm584_vm2, %v2537_v12, %v3482_v34  ;;  %v22907_v38 = vld [vmem:[#allocation7_spill] sm:$0xff]  ;;  %v1633_v14 = vsel %vm584_vm2, %v1632_v41, %v13840_v50  ;;  %v22943_v50 = vld [vmem:[#allocation113_spill] sm:$0xff] }
 0x200   : > { %v22909_v63 = vpack.i.bf16 %v22907_v38, %v22908_v29  ;;  %v1704_v17 = vrot.slane %v13858_v20, 4  ;;  %v3479_v15 = vperm.slane %v3471_v37, %v12457_v10  ;;  %v1663_v45 = vperm.slane %v1657_v39, %v12457_v10  ;;  %v22911_v37 = vld [vmem:[#allocation6_spill] sm:$0xff] }
 0x201   : > { %v3407_v34 = vsel %vm584_vm2, %v3375_v60, %v3406_v0  ;;  %v13893_v12 = vperm.slane %v3419_v36, %v12509_v3  ;;  %v3481_v41 = vsel %vm584_vm2, %v3480_v33, %v13699_v47  ;;  %v22912_v29 = vpack.i.bf16 %v12342_v40, %v22911_v37  ;;  %v22913_v33 = vld [vmem:[#allocation87_spill] sm:$0xff] }
 0x202   : > { %11688 = vrot.lane.b32.xlu2 %v22906_v30, %s12144_s25  ;;  %v1680_v30 = vrot.slane %v13863_v25, 4  ;;  %v3417_v39 = vsel %vm584_vm2, %v3416_v23, %v3367_v55  ;;  %v3491_v0 = vperm.slane %v3483_v53, %v12457_v10  ;;  %v1639_v36 = vperm.slane %v1633_v14, %v12457_v10 }
 0x203   : > { %11693 = vrot.lane.b32.xlu0 %v22909_v63, %s12144_s25  ;;  %22910 = vst [vmem:[#allocation3_spill] sm:$0xff] %v13893_v12  ;;  %v3475_v63 = vperm.slane %v3469_v28, %v12457_v10  ;;  %v3405_v28 = vsel %vm584_vm2, %v3404_v31, %v3363_v8  ;;  %v1705_v47 = vsel %vm584_vm2, %v1704_v17, %v1663_v45  ;;  %v22915_v40 = vrot.slane %v22914_v49, 4  ;;  %v22959_v12 = vld [vmem:[#allocation26_spill] sm:$0xff] }
 0x204   : > { %v2539_v21 = vpop.permute.xlu2 %2538  ;;  %v3580_v23 = vrot.slane %v13829_v32, 4  ;;  %v3487_v55 = vperm.slane %v3481_v41, %v12457_v10  ;;  %v1681_v53 = vsel %vm584_vm2, %v1680_v30, %v1639_v36  ;;  %v13921_v31 = vperm.slane %v3417_v39, %v12509_v3  ;;  %v22919_v32 = vld [vmem:[#allocation33_spill] sm:$0xff] }
 0x205   : > { %11683 = vrot.lane.b32.xlu1 %v22912_v29, %s12144_s25  ;;  %v2511_v57 = vpop.permute.xlu0 %2510  ;;  %v13902_v38 = vpop.permute.xlu1 %2554  ;;  %v3586_v60 = vrot.slane %v2539_v21, 4  ;;  %v1305_v37 = vsel %vm584_vm2, %v22915_v40, %v22913_v33  ;;  %v13915_v29 = vperm.slane %v3407_v34, %v12509_v3  ;;  %v3518_v14 = vrot.slane %v3475_v63, 4  ;;  %v22920_v33 = vld [vmem:[#allocation12_spill] sm:$0xff] }
 0x206   : > { %22917 = vst [vmem:[#allocation5_spill] sm:$0xff] %v13921_v31  ;;  %v3530_v17 = vrot.slane %v3479_v15, 4  ;;  %v13925_v49 = vperm.slane %v3405_v28, %v12509_v3  ;;  %v3528_v21 = vrot.slane %v3491_v0, 4  ;;  %v22921_v41 = vpack.i.bf16 %v22919_v32, %v22920_v33 }
 0x207   : > { %22916 = vst [vmem:[#allocation7_spill] sm:$0xff] %v13915_v29  ;;  %v3587_v34 = vsel %vm584_vm2, %v3586_v60, %v13743_v46  ;;  %v13934_v30 = vperm.slane %v1705_v47, %v12509_v3  ;;  %v22923_v39 = vpack.i.bf16 %v12801_v35, %v12428_v62  ;;  %v13941_v28 = vperm.slane %v1681_v53, %v12509_v3 }
 0x208   : > { %22918 = vst [vmem:[#allocation6_spill] sm:$0xff] %v13925_v49  ;;  %v13944_v40 = vperm.slane %v1305_v37, %v12509_v3  ;;  %v1682_v46 = vrot.slane %v1639_v36, 4  ;;  %v1706_v60 = vrot.slane %v1663_v45, 4  ;;  %v3581_v32 = vsel %vm584_vm2, %v3580_v23, %v13170_v13  ;;  %v22925_v36 = vld [vmem:[#allocation10_spill] sm:$0xff] }
 0x209   : > { %22922 = vst [vmem:[#allocation87_spill] sm:$0xff] %v13934_v30  ;;  %v3516_v47 = vrot.slane %v3487_v55, 4  ;;  %v3531_v33 = vsel %vm584_vm2, %v3491_v0, %v3530_v17  ;;  %v3519_v35 = vsel %vm584_vm2, %v3487_v55, %v3518_v14  ;;  %v3591_v53 = vperm.slane %v3587_v34, %v12457_v10 }
 0x20a   : > { %11698 = vrot.lane.b32.xlu2 %v22921_v41, %s12144_s25  ;;  %22924 = vst [vmem:[#allocation89_spill] sm:$0xff] %v13941_v28  ;;  %v3020_v37 = vrot.slane %v2511_v57, 4  ;;  %v3034_v13 = vrot.slane %v13836_v48, 4  ;;  %v3529_v23 = vsel %vm584_vm2, %v3528_v21, %v3479_v15  ;;  %v1728_v0 = vrot.slane %v13934_v30, 4  ;;  %v22947_v30 = vld [vmem:[#allocation114_spill] sm:$0xff] }
 0x20b   : > { %11703 = vrot.lane.b32.xlu0 %v22923_v39, %s12144_s25  ;;  %v3585_v17 = vperm.slane %v3581_v32, %v12457_v10  ;;  %v13963_v62 = vperm.slane %v3531_v33, %v12509_v3  ;;  %v1683_v14 = vsel %vm584_vm2, %v13863_v25, %v1682_v46  ;;  %v1707_v34 = vsel %vm584_vm2, %v13858_v20, %v1706_v60  ;;  %v22930_v20 = vld [vmem:[#allocation36_spill] sm:$0xff] }
 0x20c   : > { %v13950_v41 = vpop.permute.xlu2 %2556  ;;  %v13973_v39 = vperm.slane %v3519_v35, %v12509_v3  ;;  %v13977_v32 = vperm.slane %v3529_v23, %v12509_v3  ;;  %v3604_v33 = vrot.slane %v3591_v53, 4  ;;  %v3021_v52 = vsel %vm584_vm2, %v3020_v37, %v13239_v7  ;;  %v22934_v35 = vld [vmem:[#allocation120_spill] sm:$0xff]  ;;  %v22935_v37 = vld [vmem:[#allocation86_spill] sm:$0xff] }
 0x20d   : > { %4584 = vrot.lane.b32.xlu1 %v22925_v36, %s12144_s25  ;;  %v2529_v45 = vpop.permute.xlu0 %2528  ;;  %22926 = vst [vmem:[#allocation33_spill] sm:$0xff] %v13963_v62  ;;  %v3517_v36 = vsel %vm584_vm2, %v3516_v47, %v3475_v63  ;;  %v22929_v25 = vrot.slane %v13239_v7, 4  ;;  %v22931_v63 = vld [vmem:[#allocation35_spill] sm:$0xff]  ;;  %v13990_v47 = vsel %vm584_vm2, %v1728_v0, %v13941_v28  ;;  %v1354_v53 = vrot.slane %v13944_v40, 4 }
 0x20e   : > { %22927 = vst [vmem:[#allocation12_spill] sm:$0xff] %v13973_v39  ;;  %v3032_v15 = vrot.slane %v2529_v45, 4  ;;  %v3035_v21 = vsel %vm584_vm2, %v2529_v45, %v3034_v13  ;;  %v22932_v60 = vpack.i.bf16 %v22930_v20, %v22931_v63  ;;  %v1335_v45 = vperm.slane %v22934_v35, %v12509_v3 }
 0x20f   : > { %v13965_v55 = vpop.permute.xlu1 %2494  ;;  %22928 = vst [vmem:[#allocation10_spill] sm:$0xff] %v13977_v32  ;;  %v3023_v46 = vsel %vm584_vm2, %v2511_v57, %v22929_v25  ;;  %v13997_v13 = vperm.slane %v22935_v37, %v12509_v3  ;;  %v14000_v7 = vperm.slane %v3517_v36, %v12509_v3  ;;  %v3043_v23 = vperm.slane %v3035_v21, %v12457_v10  ;;  %v22937_v25 = vld [vmem:[#allocation49_spill] sm:$0xff]  ;;  %v22945_v37 = vld [vmem:[#allocation102_spill] sm:$0xff] }
 0x210   : > { %22933 = vst [vmem:[#allocation36_spill] sm:$0xff] %v13990_v47  ;;  %v1691_v0 = vperm.slane %v1683_v14, %v12509_v3  ;;  %v3027_v20 = vperm.slane %v3021_v52, %v12457_v10  ;;  %v3031_v63 = vperm.slane %v3023_v46, %v12457_v10  ;;  %v1715_v36 = vperm.slane %v1707_v34, %v12509_v3  ;;  %v22938_v14 = vld [vmem:[#allocation8_spill] sm:$0xff]  ;;  %v22939_v52 = vld [vmem:[#allocation109_spill] sm:$0xff] }
 0x211   : > { %22936 = vst [vmem:[#allocation35_spill] sm:$0xff] %v14000_v7  ;;  %v3605_v57 = vsel %vm584_vm2, %v3604_v33, %v3585_v17  ;;  %v22940_v8 = vpack.i.bf16 %v22938_v14, %v22939_v52  ;;  %v22946_v21 = vrot.slane %v22945_v37, 4  ;;  %v22949_v33 = vld [vmem:[#allocation96_spill] sm:$0xff]  ;;  %v3080_v47 = vrot.slane %v3043_v23, 4 }
 0x212   : > { %11713 = vrot.lane.b32.xlu2 %v22932_v60, %s12144_s25  ;;  %v3033_v60 = vsel %vm584_vm2, %v3032_v15, %v13836_v48  ;;  %v1352_v48 = vrot.slane %v1335_v45, 4  ;;  %v22941_v15 = vld [vmem:[#allocation99_spill] sm:$0xff]  ;;  %v3070_v32 = vrot.slane %v3027_v20, 4  ;;  %v3082_v62 = vrot.slane %v3031_v63, 4 }
 0x213   : > { %4602 = vrot.lane.b32.xlu0 %v22937_v25, %s12144_s25  ;;  %v22942_v6 = vrot.slane %v22941_v15, 4  ;;  %v14034_v17 = vsel %vm584_vm2, %v22947_v30, %v22946_v21  ;;  %v22950_v25 = vld [vmem:[#allocation112_spill] sm:$0xff]  ;;  %v3039_v52 = vperm.slane %v3033_v60, %v12457_v10  ;;  %v22953_v39 = vrot.slane %v22943_v50, 4  ;;  %v22956_v60 = vld [vmem:[#allocation115_spill] sm:$0xff] }
 0x214   : > { %v14011_v35 = vpop.permute.xlu2 %2562  ;;  %22948 = vst [vmem:[#allocation86_spill] sm:$0xff] %v14034_v17  ;;  %v22951_v28 = vrot.slane %v22950_v25, 4  ;;  %v1732_v31 = vrot.slane %v1715_v36, 4  ;;  %v14051_v25 = vperm.slane %v3605_v57, %v12509_v3  ;;  %v22957_v14 = vrot.slane %v22956_v60, 4 }
 0x215   : > { %11708 = vrot.lane.b32.xlu1 %v22940_v8, %s12144_s25  ;;  %v14022_v46 = vpop.permute.xlu0 %2546  ;;  %v14028_v34 = vsel %vm584_vm2, %v22943_v50, %v22942_v6  ;;  %v1734_v6 = vrot.slane %v1691_v0, 4  ;;  %v14048_v21 = vsel %vm584_vm2, %v22953_v39, %v22941_v15  ;;  %v3083_v29 = vsel %vm584_vm2, %v3043_v23, %v3082_v62  ;;  %v22958_v50 = vld [vmem:[#allocation78_spill] sm:$0xff] }
 0x216   : > { %22944 = vst [vmem:[#allocation120_spill] sm:$0xff] %v14028_v34  ;;  %v14040_v8 = vsel %vm584_vm2, %v22951_v28, %v22949_v33  ;;  %v2204_v28 = vrot.slane %v14028_v34, 4  ;;  %v2229_v7 = vsel %vm584_vm2, %v22957_v14, %v14034_v17  ;;  %v22960_v39 = vpack.i.bf16 %v22958_v50, %v22959_v12  ;;  %v22965_v12 = vld [vmem:[#allocation9_spill] sm:$0xff]  ;;  %v22966_v50 = vld [vmem:[#allocation94_spill] sm:$0xff]  ;;  %v22991_v34 = vld [vmem:[#allocation88_spill] sm:$0xff] }
 0x217   : > { %22952 = vst [vmem:[#allocation49_spill] sm:$0xff] %v14040_v8  ;;  %v2513_v49 = vpop.permute.xlu1 %2512  ;;  %v2216_v33 = vrot.slane %v14040_v8, 4  ;;  %v14066_v57 = vsel %vm584_vm2, %v1352_v48, %v13944_v40  ;;  %v14069_v15 = vsel %vm584_vm2, %v1335_v45, %v1354_v53  ;;  %v22963_v8 = vrot.slane %v22947_v30, 4  ;;  %v22972_v48 = vld [vmem:[#allocation15_spill] sm:$0xff] }
 0x218   : > { %22954 = vst [vmem:[#allocation8_spill] sm:$0xff] %v14048_v21  ;;  %v3068_v14 = vrot.slane %v3039_v52, 4  ;;  %v3071_v62 = vsel %vm584_vm2, %v3039_v52, %v3070_v32  ;;  %v3081_v23 = vsel %vm584_vm2, %v3080_v47, %v3031_v63  ;;  %v2192_v40 = vrot.slane %v14048_v21, 4  ;;  %v22985_v21 = vld [vmem:[#allocation17_spill] sm:$0xff] }
 0x219   : > { %22955 = vst [vmem:[#allocation109_spill] sm:$0xff] %v14051_v25  ;;  %v14075_v60 = vsel %vm584_vm2, %v22963_v8, %v22945_v37  ;;  %v14087_v53 = vperm.slane %v2229_v7, %v12457_v10  ;;  %v14090_v30 = vsel %vm584_vm2, %v1732_v31, %v1691_v0  ;;  %v14093_v37 = vsel %vm584_vm2, %v1715_v36, %v1734_v6  ;;  %v22973_v8 = vld [vmem:[#allocation14_spill] sm:$0xff] }
 0x21a   : > { %11723 = vrot.lane.b32.xlu2 %v22960_v39, %s12144_s25  ;;  %22961 = vst [vmem:[#allocation99_spill] sm:$0xff] %v14066_v57  ;;  %v22967_v39 = vpack.i.bf16 %v22965_v12, %v22966_v50  ;;  %v914_v32 = vrot.slane %v13997_v13, 4  ;;  %v14098_v63 = vperm.slane %v3083_v29, %v12509_v3  ;;  %v22974_v52 = vpack.i.bf16 %v22972_v48, %v22973_v8 }
 0x21b   : > { %22962 = vst [vmem:[#allocation113_spill] sm:$0xff] %v14069_v15  ;;  %v2205_v31 = vsel %vm584_vm2, %v2204_v28, %v14069_v15  ;;  %v2217_v0 = vsel %vm584_vm2, %v2216_v33, %v14075_v60  ;;  %v14111_v36 = vperm.slane %v3071_v62, %v12509_v3  ;;  %v14114_v6 = vperm.slane %v3081_v23, %v12509_v3  ;;  %v22977_v33 = vld [vmem:[#allocation100_spill] sm:$0xff] }
 0x21c   : > { %22964 = vst [vmem:[#allocation102_spill] sm:$0xff] %v14075_v60  ;;  %11728 = vrot.lane.b32.xlu0 %v22967_v39, %s12144_s25  ;;  %v14084_v45 = vpop.permute.xlu2 %2568  ;;  %v3146_v29 = vrot.slane %v13965_v55, 4  ;;  %v3069_v50 = vsel %vm584_vm2, %v3068_v14, %v3027_v20  ;;  %v2193_v48 = vsel %vm584_vm2, %v2192_v40, %v14066_v57  ;;  %v887_v8 = vperm.slane %v22977_v33, %v12509_v3  ;;  %v22984_v14 = vld [vmem:[#allocation18_spill] sm:$0xff]  ;;  %v22988_v57 = vld [vmem:[#allocation97_spill] sm:$0xff] }
 0x21d   : > { %22968 = vst [vmem:[#allocation114_spill] sm:$0xff] %v14087_v53  ;;  %11718 = vrot.lane.b32.xlu1 %v22974_v52, %s12144_s25  ;;  %v14104_v7 = vpop.permute.xlu0 %2552  ;;  %v3132_v62 = vrot.slane %v2513_v49, 4  ;;  %v14125_v52 = vperm.slane %v2205_v31, %v12457_v10  ;;  %v14128_v23 = vperm.slane %v2217_v0, %v12457_v10  ;;  %v2264_v12 = vrot.slane %v14087_v53, 4  ;;  %v22982_v0 = vld [vmem:[#allocation57_spill] sm:$0xff] }
 0x21e   : > { %22969 = vst [vmem:[#allocation96_spill] sm:$0xff] %v14090_v30  ;;  %v22980_v40 = vrot.slane %v13305_v11, 4  ;;  %v14137_v33 = vperm.slane %v3069_v50, %v12509_v3  ;;  %v14144_v15 = vperm.slane %v2193_v48, %v12457_v10  ;;  %v22987_v50 = vld [vmem:[#allocation81_spill] sm:$0xff]  ;;  %v22989_v53 = vrot.slane %v22988_v57, 4 }
 0x21f   : > { %22970 = vst [vmem:[#allocation112_spill] sm:$0xff] %v14093_v37  ;;  %v2531_v39 = vpop.permute.xlu1 %2530  ;;  %v22992_v37 = vld [vmem:[#allocation91_spill] sm:$0xff] }
 0x220   : > { %22971 = vst [vmem:[#allocation78_spill] sm:$0xff] %v14098_v63  ;;  %v3135_v28 = vsel %vm584_vm2, %v2513_v49, %v22980_v40  ;;  %v3144_v47 = vrot.slane %v2531_v39, 4  ;;  %v3147_v20 = vsel %vm584_vm2, %v2531_v39, %v3146_v29  ;;  %v22986_v49 = vpack.i.bf16 %v22984_v14, %v22985_v21 }
 0x221   : > { %22975 = vst [vmem:[#allocation26_spill] sm:$0xff] %v14111_v36  ;;  %v904_v40 = vrot.slane %v887_v8, 4  ;;  %v14155_v31 = vsel %vm584_vm2, %v22989_v53, %v22987_v50  ;;  %v3133_v29 = vsel %vm584_vm2, %v3132_v62, %v13305_v11  ;;  %v3143_v39 = vperm.slane %v3135_v28, %v12457_v10  ;;  %v23000_v53 = vld [vmem:[#allocation98_spill] sm:$0xff]  ;;  %v23003_v28 = vld [vmem:[#allocation83_spill] sm:$0xff] }
 0x222   : > { %22976 = vst [vmem:[#allocation9_spill] sm:$0xff] %v14114_v6  ;;  %4620 = vrot.lane.b32.xlu2 %v22982_v0, %s12144_s25  ;;  %v22993_v0 = vrot.slane %v22992_v37, 4  ;;  %v2240_v14 = vrot.slane %v14125_v52, 4  ;;  %v3145_v37 = vsel %vm584_vm2, %v3144_v47, %v13965_v55  ;;  %v22998_v62 = vrot.slane %v22987_v50, 4 }
 0x223   : > { %22978 = vst [vmem:[#allocation94_spill] sm:$0xff] %v14125_v52  ;;  %v14190_v55 = vsel %vm584_vm2, %v23000_v53, %v914_v32  ;;  %v1744_v47 = vrot.slane %v14155_v31, 4  ;;  %v3151_v60 = vperm.slane %v3145_v37, %v12457_v10 }
 0x224   : > { %22979 = vst [vmem:[#allocation15_spill] sm:$0xff] %v14128_v23  ;;  %11738 = vrot.lane.b32.xlu0 %v22986_v49, %s12144_s25  ;;  %v14161_v48 = vsel %vm584_vm2, %v22993_v0, %v22991_v34  ;;  %v14166_v21 = vpop.permute.xlu2 %2574  ;;  %v2265_v49 = vsel %vm584_vm2, %v2264_v12, %v14128_v23  ;;  %v22995_v34 = vld [vmem:[#allocation39_spill] sm:$0xff]  ;;  %v22996_v0 = vld [vmem:[#allocation38_spill] sm:$0xff]  ;;  %v14185_v52 = vsel %vm584_vm2, %v22988_v57, %v22998_v62  ;;  %v3194_v62 = vrot.slane %v3143_v39, 4 }
 0x225   : > { %22981 = vst [vmem:[#allocation14_spill] sm:$0xff] %v14137_v33  ;;  %v22997_v30 = vpack.i.bf16 %v22995_v34, %v22996_v0  ;;  %v14178_v11 = vpop.permute.xlu0 %2558  ;;  %v3155_v12 = vperm.slane %v3147_v20, %v12457_v10  ;;  %v3139_v34 = vperm.slane %v3133_v29, %v12457_v10  ;;  %v14198_v50 = vperm.slane %v2265_v49, %v12509_v3  ;;  %v23015_v49 = vld [vmem:[#allocation43_spill] sm:$0xff] }
 0x226   : > { %22983 = vst [vmem:[#allocation100_spill] sm:$0xff] %v14144_v15  ;;  %v14202_v57 = vsel %vm584_vm2, %v904_v40, %v23003_v28  ;;  %v23005_v20 = vrot.slane %v23000_v53, 4  ;;  %v2241_v29 = vsel %vm584_vm2, %v2240_v14, %v14144_v15  ;;  %v23007_v40 = vrot.slane %v23003_v28, 4  ;;  %v23011_v14 = vld [vmem:[#allocation11_spill] sm:$0xff] }
 0x227   : > { %22990 = vst [vmem:[#allocation57_spill] sm:$0xff] %v14155_v31  ;;  %11733 = vrot.lane.b32.xlu1 %v22997_v30, %s12144_s25  ;;  %v1768_v30 = vrot.slane %v14161_v48, 4  ;;  %v14195_v0 = vpop.permute.xlu1 %2548  ;;  %v3192_v37 = vrot.slane %v3155_v12, 4  ;;  %v3195_v25 = vsel %vm584_vm2, %v3155_v12, %v3194_v62  ;;  %v1745_v31 = vsel %vm584_vm2, %v1744_v47, %v14202_v57  ;;  %v23018_v62 = vld [vmem:[#allocation90_spill] sm:$0xff] }
 0x228   : > { %22994 = vst [vmem:[#allocation18_spill] sm:$0xff] %v14161_v48  ;;  %v14208_v32 = vsel %vm584_vm2, %v23005_v20, %v13997_v13  ;;  %v1756_v48 = vrot.slane %v14185_v52, 4  ;;  %v14219_v23 = vsel %vm584_vm2, %v887_v8, %v23007_v40  ;;  %v23009_v13 = vld [vmem:[#allocation95_spill] sm:$0xff]  ;;  %v3182_v28 = vrot.slane %v3139_v34, 4  ;;  %v23014_v40 = vld [vmem:[#allocation44_spill] sm:$0xff] }
 0x229   : > { %22999 = vst [vmem:[#allocation17_spill] sm:$0xff] %v14185_v52  ;;  %v23010_v53 = vrot.slane %v23009_v13, 4  ;;  %v23012_v52 = vld [vmem:[#allocation104_spill] sm:$0xff]  ;;  %v1769_v8 = vsel %vm584_vm2, %v1768_v30, %v14208_v32  ;;  %v23016_v17 = vpack.i.bf16 %v23014_v40, %v23015_v49  ;;  %v2288_v12 = vrot.slane %v14198_v50, 4  ;;  %v23022_v40 = vld [vmem:[#allocation85_spill] sm:$0xff] }
 0x22a   : > { %23001 = vst [vmem:[#allocation81_spill] sm:$0xff] %v14190_v55  ;;  %v23013_v15 = vpack.i.bf16 %v23011_v14, %v23012_v52  ;;  %v23019_v52 = vld [vmem:[#allocation101_spill] sm:$0xff]  ;;  %v3180_v13 = vrot.slane %v3151_v60, 4  ;;  %v1757_v33 = vsel %vm584_vm2, %v1756_v48, %v14219_v23  ;;  %v14254_v49 = vperm.slane %v3195_v25, %v12509_v3 }
 0x22b   : > { %23002 = vst [vmem:[#allocation97_spill] sm:$0xff] %v14198_v50  ;;  %v1781_v20 = vsel %vm584_vm2, %v23010_v53, %v14190_v55  ;;  %v14239_v53 = vperm.slane %v2241_v29, %v12509_v3  ;;  %v3183_v29 = vsel %vm584_vm2, %v3151_v60, %v3182_v28  ;;  %v1775_v47 = vperm.slane %v1769_v8, %v12457_v10  ;;  %v23029_v8 = vld [vmem:[#allocation21_spill] sm:$0xff] }
 0x22c   : > { %23004 = vst [vmem:[#allocation88_spill] sm:$0xff] %v14202_v57  ;;  %11748 = vrot.lane.b32.xlu2 %v23013_v15, %s12144_s25  ;;  %11753 = vrot.lane.b32.xlu0 %v23016_v17, %s12144_s25  ;;  %v23020_v15 = vrot.slane %v23019_v52, 4  ;;  %v14247_v30 = vpop.permute.xlu2 %2580  ;;  %v1787_v17 = vperm.slane %v1781_v20, %v12457_v10  ;;  %v23023_v52 = vld [vmem:[#allocation29_spill] sm:$0xff]  ;;  %v3193_v20 = vsel %vm584_vm2, %v3192_v37, %v3143_v39  ;;  %v23032_v37 = vld [vmem:[#allocation106_spill] sm:$0xff]  ;;  %v23037_v57 = vld [vmem:[#allocation32_spill] sm:$0xff] }
 0x22d   : > { %23006 = vst [vmem:[#allocation91_spill] sm:$0xff] %v14208_v32  ;;  %v23024_v50 = vpack.i.bf16 %v23022_v40, %v23023_v52  ;;  %v14272_v40 = vsel %vm584_vm2, %v2288_v12, %v14239_v53  ;;  %v3181_v52 = vsel %vm584_vm2, %v3180_v13, %v3139_v34  ;;  %v14279_v39 = vperm.slane %v3183_v29, %v12509_v3  ;;  %v23031_v34 = vld [vmem:[#allocation123_spill] sm:$0xff] }
 0x22e   : > { %23008 = vst [vmem:[#allocation39_spill] sm:$0xff] %v14219_v23  ;;  %v1417_v14 = vsel %vm584_vm2, %v23020_v15, %v23018_v62  ;;  %v14260_v62 = vpop.permute.xlu0 %2564  ;;  %v1751_v15 = vperm.slane %v1745_v31, %v12457_v10  ;;  %v1763_v31 = vperm.slane %v1757_v33, %v12457_v10  ;;  %v14283_v60 = vperm.slane %v3193_v20, %v12509_v3  ;;  %v23028_v33 = vld [vmem:[#allocation22_spill] sm:$0xff] }
 0x22f   : > { %23017 = vst [vmem:[#allocation38_spill] sm:$0xff] %v14239_v53  ;;  %11743 = vrot.lane.b32.xlu1 %v23024_v50, %s12144_s25  ;;  %v1423_v25 = vperm.slane %v1417_v14, %v12509_v3  ;;  %v14268_v28 = vpop.permute.xlu1 %2560  ;;  %v1816_v14 = vrot.slane %v1787_v17, 4  ;;  %v1818_v53 = vrot.slane %v1775_v47, 4  ;;  %v23030_v32 = vpack.i.bf16 %v23028_v33, %v23029_v8  ;;  %v23034_v23 = vld [vmem:[#allocation118_spill] sm:$0xff]  ;;  %v23036_v50 = vld [vmem:[#allocation93_spill] sm:$0xff] }
 0x230   : > { %23021 = vst [vmem:[#allocation98_spill] sm:$0xff] %v14254_v49  ;;  %v1794_v48 = vrot.slane %v1751_v15, 4  ;;  %v1447_v13 = vperm.slane %v23031_v34, %v12509_v3  ;;  %v23033_v55 = vrot.slane %v23032_v37, 4  ;;  %v14300_v12 = vperm.slane %v3181_v52, %v12509_v3  ;;  %v23041_v49 = vld [vmem:[#allocation121_spill] sm:$0xff] }
 0x231   : > { %23025 = vst [vmem:[#allocation83_spill] sm:$0xff] %v14272_v40  ;;  %v1466_v29 = vrot.slane %v1423_v25, 4  ;;  %v23038_v40 = vpack.i.bf16 %v23036_v50, %v23037_v57  ;;  %v1792_v8 = vrot.slane %v1763_v31, 4  ;;  %v23044_v57 = vrot.slane %v23034_v23, 4  ;;  %v23051_v50 = vld [vmem:[#allocation124_spill] sm:$0xff] }
 0x232   : > { %23026 = vst [vmem:[#allocation11_spill] sm:$0xff] %v14279_v39  ;;  %v14297_v20 = vsel %vm584_vm2, %v23034_v23, %v23033_v55  ;;  %v1817_v55 = vsel %vm584_vm2, %v1816_v14, %v1775_v47  ;;  %v1464_v63 = vrot.slane %v1447_v13, 4  ;;  %v1795_v47 = vsel %vm584_vm2, %v1763_v31, %v1794_v48 }
 0x233   : > { %23027 = vst [vmem:[#allocation104_spill] sm:$0xff] %v14283_v60  ;;  %v2316_v6 = vrot.slane %v14297_v20, 4  ;;  %v14315_v52 = vsel %vm584_vm2, %v1447_v13, %v1466_v29  ;;  %v1819_v14 = vsel %vm584_vm2, %v1787_v17, %v1818_v53  ;;  %v23047_v13 = vld [vmem:[#allocation105_spill] sm:$0xff]  ;;  %v1793_v53 = vsel %vm584_vm2, %v1792_v8, %v1751_v15 }
 0x234   : > { %11758 = vrot.lane.b32.xlu2 %v23030_v32, %s12144_s25  ;;  %23035 = vst [vmem:[#allocation44_spill] sm:$0xff] %v14297_v20  ;;  %11763 = vrot.lane.b32.xlu0 %v23038_v40, %s12144_s25  ;;  %v23039_v32 = vld [vmem:[#allocation107_spill] sm:$0xff]  ;;  %v2587_v36 = vpop.permute.xlu2 %2586  ;;  %v14321_v40 = vsel %vm584_vm2, %v23044_v57, %v23032_v37  ;;  %v23048_v29 = vld [vmem:[#allocation117_spill] sm:$0xff]  ;;  %v14349_v17 = vperm.slane %v1817_v55, %v12509_v3 }
 0x235   : > { %v23040_v33 = vrot.slane %v23039_v32, 4  ;;  %23043 = vst [vmem:[#allocation90_spill] sm:$0xff] %v14315_v52  ;;  %v23049_v56 = vrot.slane %v23048_v29, 4  ;;  %v2304_v37 = vrot.slane %v14321_v40, 4  ;;  %v2317_v57 = vsel %vm584_vm2, %v2316_v6, %v14315_v52 }
 0x236   : > { %23045 = vst [vmem:[#allocation101_spill] sm:$0xff] %v14321_v40  ;;  %v14327_v20 = vpop.permute.xlu0 %2570  ;;  %v23056_v29 = vrot.slane %v23041_v49, 4  ;;  %v1803_v48 = vperm.slane %v1795_v47, %v12509_v3  ;;  %v1827_v15 = vperm.slane %v1819_v14, %v12509_v3  ;;  %v3268_v8 = vrot.slane %v2587_v36, 4 }
 0x237   : > { %v14310_v34 = vsel %vm584_vm2, %v23041_v49, %v23040_v33  ;;  %v2932_v33 = vrot.slane %v14247_v30, 4  ;;  %4638 = vrot.lane.b32.xlu1 %v23046_v19, %s12144_s25  ;;  %v14335_v23 = vsel %vm584_vm2, %v23049_v56, %v23047_v13  ;;  %v23052_v19 = vrot.slane %v23051_v50, 4  ;;  %v14345_v31 = vpop.permute.xlu1 %2566  ;;  %23053 = vst [vmem:[#allocation29_spill] sm:$0xff] %v14349_v17 }
 0x238   : > { %23042 = vst [vmem:[#allocation43_spill] sm:$0xff] %v14310_v34  ;;  %v14352_v56 = vsel %vm584_vm2, %v1464_v63, %v1423_v25  ;;  %v23055_v13 = vrot.slane %v13690_v4, 4  ;;  %v14367_v55 = vperm.slane %v2317_v57, %v12457_v10  ;;  %v2328_v63 = vrot.slane %v14335_v23, 4 }
 0x239   : > { %23050 = vst [vmem:[#allocation85_spill] sm:$0xff] %v14335_v23  ;;  %v2341_v39 = vsel %vm584_vm2, %v23052_v19, %v14310_v34  ;;  %v14362_v19 = vsel %vm584_vm2, %v23056_v29, %v23039_v32  ;;  %v2933_v49 = vsel %vm584_vm2, %v2932_v33, %v13690_v4  ;;  %v23060_v32 = vld [vmem:[#allocation53_spill] sm:$0xff]  ;;  %v14381_v14 = vperm.slane %v1793_v53, %v12509_v3  ;;  %v23068_v23 = vld [vmem:[#allocation111_spill] sm:$0xff] }
 0x23a   : > { %23054 = vst [vmem:[#allocation22_spill] sm:$0xff] %v14352_v56  ;;  %v2935_v6 = vsel %vm584_vm2, %v14247_v30, %v23055_v13  ;;  %v14371_v25 = vperm.slane %v2341_v39, %v12457_v10  ;;  %v23061_v13 = vld [vmem:[#allocation52_spill] sm:$0xff]  ;;  %v2305_v57 = vsel %vm584_vm2, %v2304_v37, %v14352_v56  ;;  %v23064_v39 = vld [vmem:[#allocation66_spill] sm:$0xff]  ;;  %v1840_v30 = vrot.slane %v14349_v17, 4 }
 0x23b   : > { %23057 = vst [vmem:[#allocation21_spill] sm:$0xff] %v14362_v19  ;;  %v23062_v47 = vpack.i.bf16 %v23060_v32, %v23061_v13  ;;  %v14386_v29 = vperm.slane %v2935_v6, %v12457_v10  ;;  %v2329_v4 = vsel %vm584_vm2, %v2328_v63, %v14362_v19  ;;  %v23065_v32 = vrot.slane %v13445_v58, 4  ;;  %v23067_v63 = vld [vmem:[#allocation13_spill] sm:$0xff] }
 0x23c   : > { %23058 = vst [vmem:[#allocation123_spill] sm:$0xff] %v14367_v55  ;;  %4656 = vrot.lane.b32.xlu0 %v23064_v39, %s12144_s25  ;;  %v2376_v33 = vrot.slane %v14371_v25, 4  ;;  %v2593_v13 = vpop.permute.xlu2 %2592  ;;  %v14398_v37 = vperm.slane %v2329_v4, %v12457_v10  ;;  %v1844_v6 = vrot.slane %v1827_v15, 4  ;;  %v14401_v50 = vperm.slane %v2933_v49, %v12457_v10 }
 0x23d   : > { %23059 = vst [vmem:[#allocation106_spill] sm:$0xff] %v14371_v25  ;;  %11773 = vrot.lane.b32.xlu2 %v23062_v47, %s12144_s25  ;;  %v3271_v53 = vsel %vm584_vm2, %v2587_v36, %v23065_v32  ;;  %v1846_v47 = vrot.slane %v1803_v48, 4  ;;  %v3269_v39 = vsel %vm584_vm2, %v3268_v8, %v13445_v58  ;;  %v23069_v40 = vpack.i.bf16 %v23067_v63, %v23068_v23 }
 0x23e   : > { %23063 = vst [vmem:[#allocation118_spill] sm:$0xff] %v14381_v14  ;;  %v2577_v25 = vpop.permute.xlu0 %2576  ;;  %v14410_v36 = vperm.slane %v2305_v57, %v12457_v10  ;;  %v2352_v4 = vrot.slane %v14367_v55, 4  ;;  %v3592_v49 = vrot.slane %v2593_v13, 4  ;;  %v2994_v24 = vrot.slane %v14386_v29, 4 }
 0x23f   : > { %23066 = vst [vmem:[#allocation93_spill] sm:$0xff] %v14398_v37  ;;  %11768 = vrot.lane.b32.xlu1 %v23069_v40, %s12144_s25  ;;  %v2708_v60 = vrot.slane %v2577_v25, 4  ;;  %v14417_v58 = vperm.slane %v3271_v53, %v12457_v10  ;;  %v14419_v8 = vpop.permute.xlu1 %2572  ;;  %v14423_v40 = vsel %vm584_vm2, %v1840_v30, %v14381_v14  ;;  %v2377_v23 = vsel %vm584_vm2, %v2376_v33, %v14398_v37  ;;  %v23147_v37 = vld [vmem:[#allocation92_spill] sm:$0xff] }
 0x240   : > { %23070 = vst [vmem:[#allocation32_spill] sm:$0xff] %v14410_v36  ;;  %v14429_v63 = vperm.slane %v3269_v39, %v12457_v10  ;;  %v23072_v13 = vrot.slane %v13592_v22, 4  ;;  %v14435_v53 = vsel %vm584_vm2, %v1827_v15, %v1846_v47  ;;  %v2982_v17 = vrot.slane %v14401_v50, 4  ;;  %v23076_v47 = vld [vmem:[#allocation34_spill] sm:$0xff] }
 0x241   : > { %23071 = vst [vmem:[#allocation107_spill] sm:$0xff] %v14423_v40  ;;  %v2353_v55 = vsel %vm584_vm2, %v2352_v4, %v14410_v36  ;;  %v14442_v33 = vsel %vm584_vm2, %v1844_v6, %v1803_v48  ;;  %v14447_v57 = vsel %vm584_vm2, %v3592_v49, %v13950_v41  ;;  %v2709_v15 = vsel %vm584_vm2, %v2708_v60, %v13592_v22  ;;  %v23079_v4 = vld [vmem:[#allocation16_spill] sm:$0xff]  ;;  %v23080_v41 = vld [vmem:[#allocation119_spill] sm:$0xff]  ;;  %v23084_v22 = vld [vmem:[#allocation25_spill] sm:$0xff] }
 0x242   : > { %v2711_v32 = vsel %vm584_vm2, %v2577_v25, %v23072_v13  ;;  %23073 = vst [vmem:[#allocation121_spill] sm:$0xff] %v14435_v53  ;;  %v23075_v25 = vld [vmem:[#allocation103_spill] sm:$0xff]  ;;  %v14456_v30 = vperm.slane %v2377_v23, %v12509_v3  ;;  %v23081_v49 = vpack.i.bf16 %v23079_v4, %v23080_v41  ;;  %v14472_v39 = vperm.slane %v2353_v55, %v12509_v3  ;;  %v23152_v53 = vld [vmem:[#allocation41_spill] sm:$0xff] }
 0x243   : > { %23074 = vst [vmem:[#allocation63_spill] sm:$0xff] %v14442_v33  ;;  %v23077_v13 = vpack.i.bf16 %v23075_v25, %v23076_v47  ;;  %v14460_v6 = vperm.slane %v2711_v32, %v12457_v10  ;;  %v14477_v4 = vperm.slane %v2709_v15, %v12457_v10  ;;  %v23085_v47 = vld [vmem:[#allocation24_spill] sm:$0xff]  ;;  %v23087_v34 = vrot.slane %v14022_v46, 4 }
 0x244   : > { %23078 = vst [vmem:[#allocation105_spill] sm:$0xff] %v14456_v30  ;;  %11788 = vrot.lane.b32.xlu0 %v23081_v49, %s12144_s25  ;;  %v2599_v23 = vpop.permute.xlu2 %2598  ;;  %v23083_v49 = vrot.slane %v14011_v35, 4  ;;  %v23086_v25 = vpack.i.bf16 %v23084_v22, %v23085_v47  ;;  %v2400_v15 = vrot.slane %v14456_v30, 4 }
 0x245   : > { %11783 = vrot.lane.b32.xlu2 %v23077_v13, %s12144_s25  ;;  %23082 = vst [vmem:[#allocation117_spill] sm:$0xff] %v14472_v39  ;;  %v2944_v41 = vrot.slane %v2599_v23, 4 }
 0x246   : > { %v2947_v60 = vsel %vm584_vm2, %v2599_v23, %v23083_v49  ;;  %v2583_v13 = vpop.permute.xlu0 %2582 }
 0x247   : > { %11778 = vrot.lane.b32.xlu1 %v23086_v25, %s12144_s25  ;;  %v2955_v55 = vperm.slane %v2947_v60, %v12457_v10  ;;  %v3044_v48 = vrot.slane %v2583_v13, 4  ;;  %v3047_v32 = vsel %vm584_vm2, %v2583_v13, %v23087_v34  ;;  %v2945_v23 = vsel %vm584_vm2, %v2944_v41, %v14011_v35  ;;  %v2579_v25 = vpop.permute.xlu1 %2578  ;;  %v23113_v13 = vld [vmem:[#allocation141_spill] sm:$0xff] }
 0x248   : > { %v14496_v22 = vperm.slane %v3047_v32, %v12457_v10  ;;  %v2951_v60 = vperm.slane %v2945_v23, %v12457_v10  ;;  %v2820_v35 = vrot.slane %v2579_v25, 4 }
 0x249   : > { %v2992_v47 = vrot.slane %v2955_v55, 4  ;;  %v2995_v49 = vsel %vm584_vm2, %v2955_v55, %v2994_v24  ;;  %v3045_v34 = vsel %vm584_vm2, %v3044_v48, %v14022_v46  ;;  %v14514_v24 = vsel %vm584_vm2, %v2400_v15, %v14472_v39 }
 0x24a   : > { %v3003_v19 = vperm.slane %v2995_v49, %v12509_v3  ;;  %v14505_v52 = vperm.slane %v3045_v34, %v12457_v10  ;;  %v2980_v41 = vrot.slane %v2951_v60, 4  ;;  %v2983_v32 = vsel %vm584_vm2, %v2951_v60, %v2982_v17  ;;  %23088 = vst [vmem:[#allocation53_spill] sm:$0xff] %v14514_v24 }
 0x24b   : > { %v2993_v23 = vsel %vm584_vm2, %v2992_v47, %v14386_v29  ;;  %v14517_v46 = vperm.slane %v2983_v32, %v12509_v3  ;;  %v23091_v49 = vrot.slane %v13775_v26, 4  ;;  %v2821_v60 = vsel %vm584_vm2, %v2820_v35, %v13642_v27 }
 0x24c   : > { %v14520_v48 = vperm.slane %v2993_v23, %v12509_v3  ;;  %v3016_v55 = vrot.slane %v3003_v19, 4  ;;  %v2981_v29 = vsel %vm584_vm2, %v2980_v41, %v14401_v50  ;;  %v23094_v47 = vrot.slane %v13642_v27, 4  ;;  %v2605_v32 = vpop.permute.xlu2 %2604  ;;  %v23096_v50 = vld [vmem:[#allocation58_spill] sm:$0xff] }
 0x24d   : > { %4674 = vrot.lane.b32.xlu2 %v12794_v16, %s12144_s25  ;;  %23089 = vst [vmem:[#allocation52_spill] sm:$0xff] %v14517_v46  ;;  %v14525_v17 = vsel %vm584_vm2, %v3003_v19, %v23091_v49  ;;  %v23093_v16 = vpack.i.bf16 %v22829_v44, %v22816_v9  ;;  %v14540_v19 = vperm.slane %v2981_v29, %v12509_v3  ;;  %v23098_v27 = vrot.slane %v13761_v51, 4 }
 0x24e   : > { %23090 = vst [vmem:[#allocation66_spill] sm:$0xff] %v14520_v48  ;;  %v2823_v34 = vsel %vm584_vm2, %v2579_v25, %v23094_v47  ;;  %v23097_v41 = vpack.i.bf16 %v12618_v43, %v23096_v50  ;;  %v2589_v35 = vpop.permute.xlu0 %2588  ;;  %v23100_v49 = vrot.slane %v13801_v59, 4  ;;  %v14563_v29 = vsel %vm584_vm2, %v3016_v55, %v13775_v26 }
 0x24f   : > { %23092 = vst [vmem:[#allocation13_spill] sm:$0xff] %v14525_v17  ;;  %11798 = vrot.lane.b32.xlu0 %v23093_v16, %s12144_s25  ;;  %v14553_v25 = vsel %vm584_vm2, %v14517_v46, %v23098_v27  ;;  %v14566_v43 = vperm.slane %v2821_v60, %v12457_v10  ;;  %v3280_v27 = vrot.slane %v2605_v32, 4  ;;  %v2585_v9 = vpop.permute.xlu1 %2584  ;;  %v23103_v44 = vrot.slane %v14084_v45, 4 }
 0x250   : > { %23095 = vst [vmem:[#allocation111_spill] sm:$0xff] %v14540_v19  ;;  %11793 = vrot.lane.b32.xlu1 %v23097_v41, %s12144_s25  ;;  %v14559_v16 = vsel %vm584_vm2, %v14520_v48, %v23100_v49  ;;  %v14571_v41 = vperm.slane %v2823_v34, %v12457_v10  ;;  %v3380_v55 = vrot.slane %v2589_v35, 4  ;;  %v23104_v50 = vrot.slane %v14104_v7, 4 }
 0x251   : > { %23099 = vst [vmem:[#allocation103_spill] sm:$0xff] %v14553_v25  ;;  %v3283_v26 = vsel %vm584_vm2, %v2605_v32, %v23103_v44  ;;  %v3281_v60 = vsel %vm584_vm2, %v3280_v27, %v14084_v45  ;;  %v3156_v15 = vrot.slane %v2585_v9, 4  ;;  %v23105_v45 = vpack.i.bf16 %v22798_v42, %v13180_v61 }
 0x252   : > { %23101 = vst [vmem:[#allocation34_spill] sm:$0xff] %v14559_v16  ;;  %v3291_v47 = vperm.slane %v3283_v26, %v12457_v10  ;;  %v3383_v34 = vsel %vm584_vm2, %v2589_v35, %v23104_v50  ;;  %v3287_v23 = vperm.slane %v3281_v60, %v12457_v10  ;;  %v3381_v49 = vsel %vm584_vm2, %v3380_v55, %v14104_v7 }
 0x253   : > { %23102 = vst [vmem:[#allocation16_spill] sm:$0xff] %v14563_v29  ;;  %v14589_v32 = vperm.slane %v3383_v34, %v12457_v10  ;;  %v23106_v35 = vrot.slane %v14417_v58, 4  ;;  %v14600_v26 = vperm.slane %v3381_v49, %v12457_v10  ;;  %v23107_v7 = vpack.i.bf16 %v12686_v5, %v12684_v18 }
 0x254   : > { %v3328_v27 = vrot.slane %v3291_v47, 4  ;;  %v3316_v55 = vrot.slane %v3287_v23, 4  ;;  %v23108_v60 = vrot.slane %v14429_v63, 4  ;;  %v3157_v34 = vsel %vm584_vm2, %v3156_v15, %v14195_v0 }
 0x255   : > { %11808 = vrot.lane.b32.xlu2 %v23105_v45, %s12144_s25  ;;  %v3331_v50 = vsel %vm584_vm2, %v3291_v47, %v23106_v35  ;;  %v2611_v45 = vpop.permute.xlu2 %2610  ;;  %v23109_v5 = vrot.slane %v14195_v0, 4  ;;  %v23122_v39 = vrot.slane %v14178_v11, 4  ;;  %v23125_v44 = vrot.slane %v13902_v38, 4 }
 0x256   : > { %v3319_v61 = vsel %vm584_vm2, %v3287_v23, %v23108_v60  ;;  %v3339_v42 = vperm.slane %v3331_v50, %v12509_v3  ;;  %v3329_v49 = vsel %vm584_vm2, %v3328_v27, %v14417_v58  ;;  %v23110_v23 = vld [vmem:[#allocation110_spill] sm:$0xff]  ;;  %v3317_v15 = vsel %vm584_vm2, %v3316_v55, %v14429_v63  ;;  %v2595_v63 = vpop.permute.xlu0 %2594  ;;  %v23116_v55 = vld [vmem:[#allocation69_spill] sm:$0xff] }
 0x257   : > { %11813 = vrot.lane.b32.xlu0 %v23107_v7, %s12144_s25  ;;  %v14613_v47 = vperm.slane %v3319_v61, %v12509_v3  ;;  %v3159_v35 = vsel %vm584_vm2, %v2585_v9, %v23109_v5  ;;  %v23111_v7 = vld [vmem:[#allocation37_spill] sm:$0xff]  ;;  %v14628_v60 = vperm.slane %v3329_v49, %v12509_v3  ;;  %v23114_v58 = vrot.slane %v23113_v13, 4  ;;  %v2591_v9 = vpop.permute.xlu1 %2590  ;;  %v23143_v5 = vld [vmem:[#allocation150_spill] sm:$0xff] }
 0x258   : > { %v23112_v50 = vpack.i.bf16 %v23110_v23, %v23111_v7  ;;  %v3352_v61 = vrot.slane %v3339_v42, 4  ;;  %v14636_v0 = vperm.slane %v3317_v15, %v12509_v3  ;;  %v14641_v23 = vperm.slane %v3157_v34, %v12457_v10 }
 0x259   : > { %v14633_v27 = vsel %vm584_vm2, %v3339_v42, %v23114_v58  ;;  %v23117_v49 = vrot.slane %v23116_v55, 4  ;;  %v14660_v34 = vperm.slane %v3159_v35, %v12457_v10  ;;  %v2720_v30 = vrot.slane %v2595_v63, 4  ;;  %v23123_v35 = vld [vmem:[#allocation30_spill] sm:$0xff] }
 0x25a   : > { %11803 = vrot.lane.b32.xlu1 %v23112_v50, %s12144_s25  ;;  %23115 = vst [vmem:[#allocation119_spill] sm:$0xff] %v14633_v27  ;;  %v23118_v50 = vld [vmem:[#allocation142_spill] sm:$0xff]  ;;  %v14657_v58 = vsel %vm584_vm2, %v3352_v61, %v23113_v13  ;;  %v2723_v13 = vsel %vm584_vm2, %v2595_v63, %v23122_v39  ;;  %v23124_v61 = vpack.i.bf16 %v22867_v54, %v23123_v35  ;;  %v23157_v24 = vrot.slane %v14571_v41, 4 }
 0x25b   : > { %v14647_v7 = vsel %vm584_vm2, %v14613_v47, %v23117_v49  ;;  %v23119_v42 = vrot.slane %v23118_v50, 4  ;;  %23121 = vst [vmem:[#allocation24_spill] sm:$0xff] %v14657_v58  ;;  %v2731_v18 = vperm.slane %v2723_v13, %v12457_v10  ;;  %v3492_v49 = vrot.slane %v2591_v9, 4 }
 0x25c   : > { %v3495_v56 = vsel %vm584_vm2, %v2591_v9, %v23125_v44  ;;  %v2721_v63 = vsel %vm584_vm2, %v2720_v30, %v14178_v11 }
 0x25d   : > { %v14653_v15 = vsel %vm584_vm2, %v14628_v60, %v23119_v42  ;;  %v3598_v42 = vrot.slane %v2611_v45, 4  ;;  %11818 = vrot.lane.b32.xlu2 %v23124_v61, %s12144_s25  ;;  %v23126_v45 = vpack.i.bf16 %v13116_v1, %v12489_v2  ;;  %v14689_v13 = vperm.slane %v3495_v56, %v12457_v10  ;;  %v14691_v35 = vpop.permute.xlu2 %11688 }
 0x25e   : > { %23120 = vst [vmem:[#allocation25_spill] sm:$0xff] %v14653_v15  ;;  %v2727_v9 = vperm.slane %v2721_v63, %v12457_v10  ;;  %v2768_v61 = vrot.slane %v2731_v18, 4  ;;  %v23127_v2 = vrot.slane %v14460_v6, 4  ;;  %v3493_v11 = vsel %vm584_vm2, %v3492_v49, %v13902_v38  ;;  %v23132_v49 = vld [vmem:[#allocation148_spill] sm:$0xff] }
 0x25f   : > { %11823 = vrot.lane.b32.xlu0 %v23126_v45, %s12144_s25  ;;  %v3599_v54 = vsel %vm584_vm2, %v3598_v42, %v14166_v21  ;;  %v23128_v45 = vld [vmem:[#allocation84_spill] sm:$0xff]  ;;  %v23129_v63 = vrot.slane %v14477_v4, 4  ;;  %v23155_v40 = vunpack.i.l.bf16 %v14691_v35 }
 0x260   : > { %v3603_v44 = vperm.slane %v3599_v54, %v12457_v10  ;;  %v2771_v1 = vsel %vm584_vm2, %v2731_v18, %v23127_v2  ;;  %v2756_v54 = vrot.slane %v2727_v9, 4  ;;  %v2769_v18 = vsel %vm584_vm2, %v2768_v61, %v14460_v6 }
 0x261   : > { %v2779_v21 = vperm.slane %v2771_v1, %v12509_v3  ;;  %v2759_v39 = vsel %vm584_vm2, %v2727_v9, %v23129_v63  ;;  %v14714_v1 = vperm.slane %v2769_v18, %v12509_v3  ;;  %v14729_v61 = vperm.slane %v3493_v11, %v12457_v10  ;;  %v23141_v11 = vld [vmem:[#allocation67_spill] sm:$0xff] }
 0x262   : > { %4692 = vrot.lane.b32.xlu1 %v23128_v45, %s12144_s25  ;;  %v3610_v42 = vrot.slane %v3603_v44, 4  ;;  %v14711_v2 = vperm.slane %v2759_v39, %v12509_v3  ;;  %v23133_v45 = vrot.slane %v23132_v49, 4  ;;  %v23135_v44 = vperm.slane %v14447_v57, %v12457_v10 }
 0x263   : > { %23131 = vst [vmem:[#allocation110_spill] sm:$0xff] %v14714_v1  ;;  %v2792_v38 = vrot.slane %v2779_v21, 4  ;;  %v2757_v6 = vsel %vm584_vm2, %v2756_v54, %v14477_v4  ;;  %v2601_v4 = vpop.permute.xlu0 %2600  ;;  %v2597_v54 = vpop.permute.xlu1 %2596 }
 0x264   : > { %23130 = vst [vmem:[#allocation58_spill] sm:$0xff] %v14711_v2  ;;  %v14719_v56 = vsel %vm584_vm2, %v2779_v21, %v23133_v45  ;;  %v3611_v9 = vsel %vm584_vm2, %v3610_v42, %v23135_v44  ;;  %v14735_v18 = vperm.slane %v2757_v6, %v12509_v3  ;;  %v23137_v45 = vld [vmem:[#allocation149_spill] sm:$0xff]  ;;  %v23140_v44 = vld [vmem:[#allocation68_spill] sm:$0xff]  ;;  %v23144_v6 = vrot.slane %v23143_v5, 4  ;;  %v23178_v5 = vld [vmem:[#allocation154_spill] sm:$0xff] }
 0x265   : > { %23134 = vst [vmem:[#allocation37_spill] sm:$0xff] %v14719_v56  ;;  %v14732_v63 = vperm.slane %v3611_v9, %v12509_v3  ;;  %v23138_v57 = vrot.slane %v23137_v45, 4  ;;  %v23142_v39 = vpack.i.bf16 %v23140_v44, %v23141_v11  ;;  %v14757_v30 = vsel %vm584_vm2, %v2792_v38, %v23132_v49  ;;  %v23151_v44 = vld [vmem:[#allocation23_spill] sm:$0xff] }
 0x266   : > { %23136 = vst [vmem:[#allocation141_spill] sm:$0xff] %v14735_v18  ;;  %v14753_v21 = vsel %vm584_vm2, %v14714_v1, %v23144_v6  ;;  %v23148_v9 = vunpack.i.h.bf16 %v14691_v35  ;;  %v14769_v6 = vpop.permute.xlu2 %11698  ;;  %v3056_v49 = vrot.slane %v2601_v4, 4  ;;  %v14787_v56 = vrot.slane %v23155_v40, 4 }
 0x267   : > { %v14742_v42 = vsel %vm584_vm2, %v14711_v2, %v23138_v57  ;;  %11833 = vrot.lane.b32.xlu2 %v23142_v39, %s12144_s25  ;;  %23145 = vst [vmem:[#allocation142_spill] sm:$0xff] %v14753_v21  ;;  %4710 = vrot.lane.b32.xlu0 %v23147_v37, %s12144_s25  ;;  %v23150_v57 = vrot.slane %v14260_v62, 4  ;;  %v2832_v37 = vrot.slane %v2597_v54, 4  ;;  %v23153_v39 = vpack.i.bf16 %v23151_v44, %v23152_v53 }
 0x268   : > { %23139 = vst [vmem:[#allocation69_spill] sm:$0xff] %v14742_v42  ;;  %v14767_v36 = vrot.slane %v23148_v9, 4  ;;  %v23154_v9 = vrot.slane %v14268_v28, 4  ;;  %v23168_v42 = vld [vmem:[#allocation26_spill] sm:$0xff]  ;;  %v23179_v2 = vrot.slane %v23178_v5, 4  ;;  %v23181_v1 = vunpack.i.l.bf16 %v14769_v6 }
 0x269   : > { %23146 = vst [vmem:[#allocation30_spill] sm:$0xff] %v14757_v30  ;;  %v3059_v14 = vsel %vm584_vm2, %v2601_v4, %v23150_v57  ;;  %v3057_v4 = vsel %vm584_vm2, %v3056_v49, %v14260_v62  ;;  %v2833_v53 = vsel %vm584_vm2, %v2832_v37, %v14268_v28  ;;  %v23158_v28 = vunpack.i.h.bf16 %v14769_v6 }
 0x26a   : > { %23149 = vst [vmem:[#allocation84_spill] sm:$0xff] %v14769_v6  ;;  %11828 = vrot.lane.b32.xlu1 %v23153_v39, %s12144_s25  ;;  %v3067_v11 = vperm.slane %v3059_v14, %v12457_v10  ;;  %v2835_v33 = vsel %vm584_vm2, %v2597_v54, %v23154_v9  ;;  %v3063_v57 = vperm.slane %v3057_v4, %v12457_v10  ;;  %v23156_v54 = vrot.slane %v14496_v22, 4 }
 0x26b   : > { %v2843_v14 = vperm.slane %v2835_v33, %v12457_v10  ;;  %v2839_v9 = vperm.slane %v2833_v53, %v12457_v10  ;;  %v14805_v49 = vrot.slane %v23158_v28, 4  ;;  %v23160_v37 = vrot.slane %v14505_v52, 4 }
 0x26c   : > { %v3104_v44 = vrot.slane %v3067_v11, 4  ;;  %v3107_v39 = vsel %vm584_vm2, %v3067_v11, %v23156_v54  ;;  %v3092_v33 = vrot.slane %v3063_v57, 4  ;;  %v23192_v5 = vrot.slane %v14589_v32, 4 }
 0x26d   : > { %v3115_v40 = vperm.slane %v3107_v39, %v12509_v3  ;;  %v2880_v38 = vrot.slane %v2843_v14, 4  ;;  %v2883_v62 = vsel %vm584_vm2, %v2843_v14, %v23157_v24  ;;  %23159 = vst [vmem:[#allocation148_spill] sm:$0xff] %v14805_v49  ;;  %v3095_v4 = vsel %vm584_vm2, %v3063_v57, %v23160_v37  ;;  %v23163_v14 = vld [vmem:[#allocation78_spill] sm:$0xff] }
 0x26e   : > { %v3105_v11 = vsel %vm584_vm2, %v3104_v44, %v14496_v22  ;;  %v2868_v53 = vrot.slane %v2839_v9, 4  ;;  %v14813_v54 = vperm.slane %v3095_v4, %v12509_v3  ;;  %v23164_v21 = vrot.slane %v23163_v14, 4 }
 0x26f   : > { %v14816_v39 = vperm.slane %v3105_v11, %v12509_v3  ;;  %v3128_v24 = vrot.slane %v3115_v40, 4  ;;  %v3093_v30 = vsel %vm584_vm2, %v3092_v33, %v14505_v52  ;;  %v23166_v44 = vrot.slane %v14566_v43, 4  ;;  %v23171_v33 = vld [vmem:[#allocation9_spill] sm:$0xff] }
 0x270   : > { %23161 = vst [vmem:[#allocation68_spill] sm:$0xff] %v14813_v54  ;;  %v14821_v28 = vsel %vm584_vm2, %v3115_v40, %v23164_v21  ;;  %v2869_v22 = vsel %vm584_vm2, %v2868_v53, %v14566_v43  ;;  %v14832_v4 = vperm.slane %v3093_v30, %v12509_v3  ;;  %v23169_v21 = vrot.slane %v23168_v42, 4 }
 0x271   : > { %23162 = vst [vmem:[#allocation67_spill] sm:$0xff] %v14816_v39  ;;  %v2871_v37 = vsel %vm584_vm2, %v2839_v9, %v23166_v44  ;;  %v23172_v57 = vrot.slane %v23171_v33, 4  ;;  %v14850_v30 = vsel %vm584_vm2, %v3128_v24, %v23163_v14  ;;  %v14853_v9 = vperm.slane %v2869_v22, %v12509_v3  ;;  %v2607_v44 = vpop.permute.xlu0 %2606  ;;  %v23184_v22 = vld [vmem:[#allocation155_spill] sm:$0xff] }
 0x272   : > { %23165 = vst [vmem:[#allocation92_spill] sm:$0xff] %v14821_v28  ;;  %v14839_v40 = vsel %vm584_vm2, %v14813_v54, %v23169_v21  ;;  %v14856_v53 = vperm.slane %v2871_v37, %v12509_v3  ;;  %v2603_v21 = vpop.permute.xlu1 %2602  ;;  %v2891_v14 = vperm.slane %v2883_v62, %v12509_v3  ;;  %v14877_v11 = vrot.slane %v23181_v1, 4 }
 0x273   : > { %23167 = vst [vmem:[#allocation23_spill] sm:$0xff] %v14832_v4  ;;  %v14846_v43 = vsel %vm584_vm2, %v14816_v39, %v23172_v57  ;;  %v2881_v57 = vsel %vm584_vm2, %v2880_v38, %v14571_v41  ;;  %v3392_v41 = vrot.slane %v2607_v44, 4  ;;  %v23183_v38 = vrot.slane %v14327_v20, 4 }
 0x274   : > { %23170 = vst [vmem:[#allocation41_spill] sm:$0xff] %v14839_v40  ;;  %v14864_v24 = vperm.slane %v2881_v57, %v12509_v3  ;;  %v14873_v52 = vsel %vm584_vm2, %v14856_v53, %v23179_v2  ;;  %v23185_v45 = vrot.slane %v23184_v22, 4  ;;  %v2904_v18 = vrot.slane %v2891_v14, 4  ;;  %v23187_v2 = vld [vmem:[#allocation31_spill] sm:$0xff] }
 0x275   : > { %23173 = vst [vmem:[#allocation78_spill] sm:$0xff] %v14846_v43  ;;  %v3395_v57 = vsel %vm584_vm2, %v2607_v44, %v23183_v38  ;;  %v3393_v44 = vsel %vm584_vm2, %v3392_v41, %v14327_v20  ;;  %v23191_v22 = vrot.slane %v14345_v31, 4  ;;  %v23219_v49 = vrot.slane %v14419_v8, 4 }
 0x276   : > { %23174 = vst [vmem:[#allocation161_spill] sm:$0xff] %v14850_v30  ;;  %v14887_v37 = vsel %vm584_vm2, %v14864_v24, %v23185_v45  ;;  %v3403_v38 = vperm.slane %v3395_v57, %v12457_v10  ;;  %v14901_v62 = vsel %vm584_vm2, %v2904_v18, %v23187_v2  ;;  %v3399_v45 = vperm.slane %v3393_v44, %v12457_v10 }
 0x277   : > { %23175 = vst [vmem:[#allocation162_spill] sm:$0xff] %v14853_v9  ;;  %v23193_v18 = vrot.slane %v14600_v26, 4 }
 0x278   : > { %23176 = vst [vmem:[#allocation163_spill] sm:$0xff] %v14856_v53  ;;  %v3440_v1 = vrot.slane %v3403_v38, 4  ;;  %v3443_v20 = vsel %vm584_vm2, %v3403_v38, %v23192_v5  ;;  %v3428_v57 = vrot.slane %v3399_v45, 4 }
 0x279   : > { %23177 = vst [vmem:[#allocation164_spill] sm:$0xff] %v14864_v24  ;;  %v3168_v24 = vrot.slane %v2603_v21, 4  ;;  %v3451_v44 = vperm.slane %v3443_v20, %v12509_v3 }
 0x27a   : > { %23180 = vst [vmem:[#allocation165_spill] sm:$0xff] %v14873_v52  ;;  %v23188_v52 = vrot.slane %v23187_v2, 4  ;;  %v3431_v2 = vsel %vm584_vm2, %v3399_v45, %v23193_v18  ;;  %v23195_v18 = vld [vmem:[#allocation3_spill] sm:$0xff] }
 0x27b   : > { %23182 = vst [vmem:[#allocation166_spill] sm:$0xff] %v14877_v11  ;;  %v3464_v20 = vrot.slane %v3451_v44, 4 }
 0x27c   : > { %23186 = vst [vmem:[#allocation167_spill] sm:$0xff] %v14887_v37  ;;  %v14892_v53 = vsel %vm584_vm2, %v2891_v14, %v23188_v52  ;;  %v3171_v52 = vsel %vm584_vm2, %v2603_v21, %v23191_v22  ;;  %v14919_v21 = vperm.slane %v3431_v2, %v12509_v3  ;;  %v3441_v22 = vsel %vm584_vm2, %v3440_v1, %v14589_v32  ;;  %v14936_v2 = vpop.permute.xlu0 %11678  ;;  %v2609_v32 = vpop.permute.xlu1 %2608  ;;  %v23197_v37 = vld [vmem:[#allocation7_spill] sm:$0xff] }
 0x27d   : > { %23189 = vst [vmem:[#allocation31_spill] sm:$0xff] %v14892_v53  ;;  %v3179_v41 = vperm.slane %v3171_v52, %v12457_v10  ;;  %v3169_v53 = vsel %vm584_vm2, %v3168_v24, %v14345_v31  ;;  %v14924_v52 = vpop.permute.xlu2 %11713  ;;  %v3429_v14 = vsel %vm584_vm2, %v3428_v57, %v14600_v26  ;;  %v14929_v45 = vperm.slane %v3441_v22, %v12509_v3 }
 0x27e   : > { %23190 = vst [vmem:[#allocation168_spill] sm:$0xff] %v14901_v62  ;;  %v3175_v5 = vperm.slane %v3169_v53, %v12457_v10  ;;  %v23196_v31 = vrot.slane %v23195_v18, 4  ;;  %v14939_v53 = vperm.slane %v3429_v14, %v12509_v3  ;;  %v23198_v62 = vrot.slane %v23197_v37, 4 }
 0x27f   : > { %v3216_v38 = vrot.slane %v3179_v41, 4  ;;  %23194 = vst [vmem:[#allocation169_spill] sm:$0xff] %v14924_v52  ;;  %v14958_v14 = vsel %vm584_vm2, %v3464_v20, %v23195_v18  ;;  %v23201_v57 = vrot.slane %v14641_v23, 4  ;;  %v23202_v18 = vrot.slane %v14660_v34, 4 }
 0x280   : > { %v14934_v24 = vsel %vm584_vm2, %v3451_v44, %v23196_v31  ;;  %v14946_v26 = vsel %vm584_vm2, %v14919_v21, %v23198_v62  ;;  %v23199_v44 = vld [vmem:[#allocation5_spill] sm:$0xff]  ;;  %v3204_v1 = vrot.slane %v3175_v5, 4  ;;  %v22333_v51 = vunpack.i.h.bf16 %v14936_v2 }
 0x281   : > { %v23200_v31 = vrot.slane %v23199_v44, 4  ;;  %v3207_v22 = vsel %vm584_vm2, %v3175_v5, %v23201_v57  ;;  %v3217_v20 = vsel %vm584_vm2, %v3216_v38, %v14660_v34  ;;  %v3219_v17 = vsel %vm584_vm2, %v3179_v41, %v23202_v18  ;;  %v23203_v57 = vld [vmem:[#allocation11_spill] sm:$0xff]  ;;  %v23205_v34 = vld [vmem:[#allocation109_spill] sm:$0xff]  ;;  %v23208_v18 = vld [vmem:[#allocation104_spill] sm:$0xff] }
 0x282   : > { %v3205_v29 = vsel %vm584_vm2, %v3204_v1, %v14641_v23  ;;  %v14980_v16 = vperm.slane %v3217_v20, %v12509_v3  ;;  %v3227_v5 = vperm.slane %v3219_v17, %v12509_v3  ;;  %v3616_v23 = vrot.slane %v14732_v63, 4 }
 0x283   : > { %v14954_v9 = vsel %vm584_vm2, %v14929_v45, %v23200_v31  ;;  %v14969_v31 = vperm.slane %v3207_v22, %v12509_v3  ;;  %v14977_v62 = vperm.slane %v3205_v29, %v12509_v3  ;;  %v23204_v22 = vrot.slane %v23203_v57, 4 }
 0x284   : > { %v23206_v41 = vrot.slane %v23205_v34, 4  ;;  %v23209_v25 = vrot.slane %v23208_v18, 4  ;;  %v3240_v48 = vrot.slane %v3227_v5, 4  ;;  %v22329_v17 = vunpack.i.l.bf16 %v14924_v52 }
 0x285   : > { %v14989_v38 = vsel %vm584_vm2, %v14969_v31, %v23204_v22  ;;  %v23211_v22 = vld [vmem:[#allocation98_spill] sm:$0xff]  ;;  %v3504_v19 = vrot.slane %v2609_v32, 4  ;;  %v3507_v11 = vsel %vm584_vm2, %v2609_v32, %v23219_v49  ;;  %v15051_v43 = vrot.slane %v22333_v51, 4 }
 0x286   : > { %v14995_v29 = vsel %vm584_vm2, %v14732_v63, %v23206_v41  ;;  %v15003_v1 = vsel %vm584_vm2, %v14980_v16, %v23209_v25  ;;  %v23212_v59 = vrot.slane %v23211_v22, 4  ;;  %v15013_v41 = vsel %vm584_vm2, %v3616_v23, %v23205_v34 }
 0x287   : > { %23207 = vst [vmem:[#allocation3_spill] sm:$0xff] %v14995_v29  ;;  %v15018_v20 = vsel %vm584_vm2, %v3240_v48, %v23211_v22  ;;  %v4531_v23 = vperm.slane %v14995_v29, %v12457_v10  ;;  %v22328_v34 = vunpack.i.h.bf16 %v14924_v52  ;;  %v15031_v48 = vpop.permute.xlu0 %11693  ;;  %v15033_v22 = vpop.permute.xlu1 %11683  ;;  %v15043_v29 = vrot.slane %v22329_v17, 4 }
 0x288   : > { %23210 = vst [vmem:[#allocation7_spill] sm:$0xff] %v15003_v1  ;;  %v15008_v46 = vsel %vm584_vm2, %v3227_v5, %v23212_v59  ;;  %v4521_v59 = vperm.slane %v15013_v41, %v12457_v10  ;;  %v15024_v5 = vpop.permute.xlu2 %11723  ;;  %v3515_v49 = vperm.slane %v3507_v11, %v12457_v10  ;;  %v11685_v1 = vunpack.i.l.bf16 %v15033_v22 }
 0x289   : > { %23213 = vst [vmem:[#allocation5_spill] sm:$0xff] %v15008_v46  ;;  %v4536_v6 = vrot.slane %v4531_v23, 4  ;;  %v15039_v63 = vrot.slane %v22328_v34, 4  ;;  %v3505_v34 = vsel %vm584_vm2, %v3504_v19, %v14419_v8 }
 0x28a   : > { %23214 = vst [vmem:[#allocation11_spill] sm:$0xff] %v15013_v41  ;;  %v4538_v25 = vrot.slane %v4521_v59, 4  ;;  %v22332_v41 = vunpack.i.l.bf16 %v14936_v2 }
 0x28b   : > { %23215 = vst [vmem:[#allocation109_spill] sm:$0xff] %v15018_v20  ;;  %v4537_v17 = vsel %vm584_vm2, %v4536_v6, %v4521_v59  ;;  %v23221_v6 = vrot.slane %v14729_v61, 4  ;;  %v3552_v59 = vrot.slane %v3515_v49, 4 }
 0x28c   : > { %23216 = vst [vmem:[#allocation104_spill] sm:$0xff] %v15031_v48  ;;  %v4539_v28 = vsel %vm584_vm2, %v4531_v23, %v4538_v25  ;;  %v15055_v30 = vrot.slane %v22332_v41, 4  ;;  %v15064_v32 = vperm.slane %v4537_v17, %v12509_v3  ;;  %v11726_v25 = vunpack.i.h.bf16 %v15024_v5 }
 0x28d   : > { %23217 = vst [vmem:[#allocation98_spill] sm:$0xff] %v15039_v63  ;;  %v4547_v52 = vperm.slane %v4539_v28, %v12509_v3  ;;  %v3511_v63 = vperm.slane %v3505_v34, %v12457_v10  ;;  %v11725_v23 = vunpack.i.l.bf16 %v15024_v5  ;;  %v23222_v17 = vrot.slane %v14689_v13, 4 }
 0x28e   : > { %23218 = vst [vmem:[#allocation170_spill] sm:$0xff] %v15043_v29  ;;  %11396 = vmatpush.xpose.msk.msra.mxu1 %vm6668_vm3, %v15064_v32  ;;  %11636 = vmatpush.xpose.msk.msra.mxu2 %vm6668_vm3, %v15064_v32  ;;  %v5120_v34 = vrot.slane %v11726_v25, 4 }
 0x28f   : > { %23220 = vst [vmem:[#allocation171_spill] sm:$0xff] %v15064_v32  ;;  %11432 = vmatpush.xpose.msk.msrb.mxu3 %vm6668_vm3, %v4547_v52  ;;  %v4562_v8 = vrot.slane %v4547_v52, 4  ;;  %v3540_v19 = vrot.slane %v3511_v63, 4  ;;  %v3543_v28 = vsel %vm584_vm2, %v3511_v63, %v23221_v6  ;;  %v3555_v5 = vsel %vm584_vm2, %v3515_v49, %v23222_v17  ;;  %v23223_v49 = vld [vmem:[#allocation12_spill] sm:$0xff] }
 0x290   : > { %v3551_v11 = vperm.slane %v3543_v28, %v12509_v3  ;;  %v5008_v52 = vrot.slane %v11725_v23, 4  ;;  %v3553_v6 = vsel %vm584_vm2, %v3552_v59, %v14689_v13  ;;  %v3563_v41 = vperm.slane %v3555_v5, %v12509_v3 }
 0x291   : > { %v4563_v51 = vsel %vm584_vm2, 0.0, %v4562_v8  ;;  %v3541_v63 = vsel %vm584_vm2, %v3540_v19, %v14729_v61  ;;  %v3559_v32 = vperm.slane %v3553_v6, %v12509_v3  ;;  %v23224_v17 = vrot.slane %v23223_v49, 4  ;;  %v4621_v8 = vpop.permute.xlu2 %4620  ;;  %v23226_v61 = vld [vmem:[#allocation33_spill] sm:$0xff]  ;;  %v4585_v6 = vpop.permute.xlu1 %4584 }
 0x292   : > { %11450 = vmatpush.xpose.msk.msrb.mxu0 %vm6668_vm3, %v4563_v51  ;;  %v3547_v28 = vperm.slane %v3541_v63, %v12509_v3  ;;  %v3568_v29 = vrot.slane %v3551_v11, 4  ;;  %v3576_v39 = vrot.slane %v3563_v41, 4  ;;  %v23227_v19 = vrot.slane %v23226_v61, 4  ;;  %v15105_v63 = vpop.permute.xlu0 %11703 }
 0x293   : > { %v15093_v40 = vsel %vm584_vm2, %v3551_v11, %v23224_v17  ;;  %v23229_v59 = vunpack.i.h.bf16 %v15031_v48  ;;  %v22347_v5 = vunpack.i.l.bf16 %v15031_v48  ;;  %v3572_v54 = vrot.slane %v3559_v32, 4  ;;  %v23231_v11 = vld [vmem:[#allocation10_spill] sm:$0xff] }
 0x294   : > { %23225 = vst [vmem:[#allocation12_spill] sm:$0xff] %v15093_v40  ;;  %v15098_v13 = vsel %vm584_vm2, %v3563_v41, %v23227_v19  ;;  %v3564_v33 = vrot.slane %v3547_v28, 4  ;;  %v23232_v17 = vrot.slane %v23231_v11, 4  ;;  %v15115_v41 = vsel %vm584_vm2, %v3576_v39, %v23226_v61  ;;  %v23236_v61 = vld [vmem:[#allocation35_spill] sm:$0xff] }
 0x295   : > { %23228 = vst [vmem:[#allocation33_spill] sm:$0xff] %v15098_v13  ;;  %v15102_v51 = vrot.slane %v23229_v59, 4  ;;  %v4440_v4 = vrot.slane %v15098_v13, 4  ;;  %v15120_v59 = vrot.slane %v22347_v5, 4  ;;  %v4428_v46 = vrot.slane %v15115_v41, 4 }
 0x296   : > { %v15110_v42 = vsel %vm584_vm2, %v3559_v32, %v23232_v17  ;;  %23234 = vst [vmem:[#allocation173_spill] sm:$0xff] %v15115_v41  ;;  %v5680_v32 = vrot.slane %v4621_v8, 4  ;;  %v22350_v17 = vunpack.i.h.bf16 %v15105_v63  ;;  %v22351_v39 = vunpack.i.l.bf16 %v15105_v63 }
 0x297   : > { %23230 = vst [vmem:[#allocation172_spill] sm:$0xff] %v15102_v51  ;;  %v11686_v51 = vunpack.i.h.bf16 %v15033_v22  ;;  %v15130_v19 = vsel %vm584_vm2, %v3564_v33, %v23236_v61  ;;  %v5009_v5 = vsel %vm584_vm2, %v5008_v52, %v11685_v1  ;;  %v5010_v48 = vrot.slane %v11685_v1, 4 }
 0x298   : > { %23233 = vst [vmem:[#allocation10_spill] sm:$0xff] %v15110_v42  ;;  %v15138_v22 = vrot.slane %v22350_v17, 4  ;;  %v15141_v8 = vperm.slane %v5009_v5, %v12457_v10  ;;  %v15149_v33 = vsel %vm584_vm2, %v5680_v32, %v4585_v6  ;;  %v15174_v32 = vsel %vm584_vm2, %v3572_v54, %v23231_v11 }
 0x299   : > { %23235 = vst [vmem:[#allocation174_spill] sm:$0xff] %v15120_v59  ;;  %v5122_v13 = vrot.slane %v11686_v51, 4  ;;  %v5121_v20 = vsel %vm584_vm2, %v5120_v34, %v11686_v51  ;;  %v15146_v51 = vrot.slane %v22351_v39, 4  ;;  %v5011_v1 = vsel %vm584_vm2, %v11725_v23, %v5010_v48  ;;  %v11749_v5 = vpop.permute.xlu2 %11748 }
 0x29a   : > { %23237 = vst [vmem:[#allocation35_spill] sm:$0xff] %v15130_v19  ;;  %v15134_v59 = vperm.slane %v5121_v20, %v12457_v10  ;;  %v15159_v17 = vperm.slane %v5011_v1, %v12457_v10  ;;  %v15169_v48 = vsel %vm584_vm2, %v3568_v29, %v23223_v49  ;;  %v4429_v29 = vsel %vm584_vm2, %v4428_v46, %v15174_v32  ;;  %v11709_v49 = vpop.permute.xlu1 %11708 }
 0x29b   : > { %23238 = vst [vmem:[#allocation175_spill] sm:$0xff] %v15141_v8  ;;  %v5123_v34 = vsel %vm584_vm2, %v11726_v25, %v5122_v13  ;;  %v23240_v13 = vrot.slane %v23236_v61, 4  ;;  %v4435_v11 = vperm.slane %v4429_v29, %v12457_v10  ;;  %v4441_v1 = vsel %vm584_vm2, %v4440_v4, %v15110_v42 }
 0x29c   : > { %23239 = vst [vmem:[#allocation176_spill] sm:$0xff] %v15149_v33  ;;  %v15153_v20 = vperm.slane %v5123_v34, %v12457_v10  ;;  %v4404_v34 = vrot.slane %v15169_v48, 4  ;;  %v11751_v23 = vunpack.i.h.bf16 %v11749_v5  ;;  %v11750_v39 = vunpack.i.l.bf16 %v11749_v5 }
 0x29d   : > { %v15165_v6 = vsel %vm584_vm2, %v3547_v28, %v23240_v13  ;;  %23242 = vst [vmem:[#allocation178_spill] sm:$0xff] %v15169_v48  ;;  %v4416_v28 = vrot.slane %v15093_v40, 4  ;;  %v4447_v13 = vperm.slane %v4441_v1, %v12457_v10  ;;  %v4478_v33 = vrot.slane %v4435_v11, 4 }
 0x29e   : > { %23241 = vst [vmem:[#allocation177_spill] sm:$0xff] %v15165_v6  ;;  %v4405_v25 = vsel %vm584_vm2, %v4404_v34, %v15130_v19  ;;  %v11711_v34 = vunpack.i.h.bf16 %v11709_v49  ;;  %v5356_v54 = vrot.slane %v11751_v23, 4  ;;  %v11710_v29 = vunpack.i.l.bf16 %v11709_v49 }
 0x29f   : > { %23243 = vst [vmem:[#allocation179_spill] sm:$0xff] %v15174_v32  ;;  %v4411_v52 = vperm.slane %v4405_v25, %v12457_v10  ;;  %v4417_v61 = vsel %vm584_vm2, %v4416_v28, %v15165_v6  ;;  %v4476_v41 = vrot.slane %v4447_v13, 4  ;;  %v5244_v48 = vrot.slane %v11750_v39, 4 }
 0x2a0   : > { %v4423_v46 = vperm.slane %v4417_v61, %v12457_v10  ;;  %v4479_v4 = vsel %vm584_vm2, %v4447_v13, %v4478_v33  ;;  %v5358_v25 = vrot.slane %v11711_v34, 4  ;;  %v5246_v6 = vrot.slane %v11710_v29, 4 }
 0x2a1   : > { %v4454_v32 = vrot.slane %v4411_v52, 4  ;;  %v4477_v42 = vsel %vm584_vm2, %v4476_v41, %v4435_v11  ;;  %v4487_v1 = vperm.slane %v4479_v4, %v12509_v3  ;;  %v5245_v49 = vsel %vm584_vm2, %v5244_v48, %v11710_v29 }
 0x2a2   : > { %v4452_v40 = vrot.slane %v4423_v46, 4  ;;  %v15200_v61 = vperm.slane %v4477_v42, %v12509_v3  ;;  %v5247_v41 = vsel %vm584_vm2, %v11750_v39, %v5246_v6  ;;  %v5357_v42 = vsel %vm584_vm2, %v5356_v54, %v11711_v34  ;;  %v23244_v54 = vld [vmem:[#allocation6_spill] sm:$0xff] }
 0x2a3   : > { %v4455_v28 = vsel %vm584_vm2, %v4423_v46, %v4454_v32  ;;  %v4504_v33 = vrot.slane %v4487_v1, 4  ;;  %v15209_v32 = vperm.slane %v5245_v49, %v12457_v10  ;;  %v15220_v46 = vperm.slane %v5357_v42, %v12457_v10 }
 0x2a4   : > { %v4453_v5 = vsel %vm584_vm2, %v4452_v40, %v4411_v52  ;;  %v4463_v19 = vperm.slane %v4455_v28, %v12509_v3  ;;  %v4500_v13 = vrot.slane %v15200_v61, 4  ;;  %v15213_v40 = vperm.slane %v5247_v41, %v12457_v10  ;;  %v23251_v28 = vld [vmem:[#allocation54_spill] sm:$0xff] }
 0x2a5   : > { %v15205_v8 = vperm.slane %v4453_v5, %v12509_v3  ;;  %v5359_v52 = vsel %vm584_vm2, %v11751_v23, %v5358_v25  ;;  %v23245_v23 = vrot.slane %v14939_v53, 4  ;;  %v23246_v4 = vrot.slane %v23244_v54, 4 }
 0x2a6   : > { %v4505_v48 = vsel %vm584_vm2, %v4504_v33, %v4463_v19  ;;  %v15223_v39 = vperm.slane %v5359_v52, %v12457_v10  ;;  %v23247_v49 = vrot.slane %v14919_v21, 4  ;;  %v23248_v41 = vrot.slane %v14929_v45, 4 }
 0x2a7   : > { %v4501_v6 = vsel %vm584_vm2, %v4500_v13, %v15205_v8  ;;  %11433 = vmatpush.xpose.msk.msrb.mxu3 %vm6668_vm3, %v4505_v48  ;;  %v15233_v34 = vsel %vm584_vm2, %v23245_v23, %v23244_v54  ;;  %v15239_v25 = vsel %vm584_vm2, %v14939_v53, %v23246_v4  ;;  %v15257_v13 = vpop.permute.xlu0 %4602  ;;  %v4304_v48 = vrot.slane %v14946_v26, 4 }
 0x2a8   : > { %11397 = vmatpush.xpose.msk.msra.mxu1 %vm6668_vm3, %v4501_v6  ;;  %11637 = vmatpush.xpose.msk.msra.mxu2 %vm6668_vm3, %v4501_v6  ;;  %v15249_v33 = vsel %vm584_vm2, %v23247_v49, %v23197_v37  ;;  %v15255_v53 = vsel %vm584_vm2, %v23248_v41, %v23199_v44  ;;  %v23249_v37 = vrot.slane %v14958_v14, 4  ;;  %v23250_v44 = vrot.slane %v14934_v24, 4 }
 0x2a9   : > { %v4292_v42 = vrot.slane %v15249_v33, 4  ;;  %v4506_v23 = vrot.slane %v4463_v19, 4  ;;  %v4305_v49 = vsel %vm584_vm2, %v4304_v48, %v15239_v25 }
 0x2aa   : > { %v4317_v21 = vsel %vm584_vm2, %v23249_v37, %v15255_v53  ;;  %v4329_v54 = vsel %vm584_vm2, %v23250_v44, %v14954_v9  ;;  %v4311_v45 = vperm.slane %v4305_v49, %v12457_v10  ;;  %v23252_v44 = vrot.slane %v14636_v0, 4 }
 0x2ab   : > { %v4293_v4 = vsel %vm584_vm2, %v4292_v42, %v15233_v34  ;;  %v4323_v41 = vperm.slane %v4317_v21, %v12457_v10  ;;  %v4335_v6 = vperm.slane %v4329_v54, %v12457_v10  ;;  %v4507_v52 = vsel %vm584_vm2, %v4487_v1, %v4506_v23 }
 0x2ac   : > { %v4299_v37 = vperm.slane %v4293_v4, %v12457_v10  ;;  %v15285_v19 = vsel %vm584_vm2, %v23252_v44, %v23251_v28  ;;  %11451 = vmatpush.xpose.msk.msrb.mxu0 %vm6668_vm3, %v4507_v52  ;;  %v23253_v21 = vrot.slane %v23251_v28, 4  ;;  %v23254_v4 = vrot.slane %v14613_v47, 4 }
 0x2ad   : > { %v4364_v42 = vrot.slane %v4335_v6, 4  ;;  %v4366_v48 = vrot.slane %v4323_v41, 4  ;;  %v4340_v23 = vrot.slane %v4311_v45, 4  ;;  %v23255_v44 = vrot.slane %v14628_v60, 4 }
 0x2ae   : > { %v15292_v54 = vsel %vm584_vm2, %v14636_v0, %v23253_v21  ;;  %v15298_v1 = vsel %vm584_vm2, %v23254_v4, %v23116_v55  ;;  %v4342_v49 = vrot.slane %v4299_v37, 4  ;;  %v4192_v47 = vrot.slane %v14647_v7, 4 }
 0x2af   : > { %v15304_v52 = vsel %vm584_vm2, %v23255_v44, %v23118_v50  ;;  %v4180_v28 = vrot.slane %v15298_v1, 4  ;;  %v4365_v11 = vsel %vm584_vm2, %v4364_v42, %v4323_v41  ;;  %v4367_v0 = vsel %vm584_vm2, %v4335_v6, %v4366_v48  ;;  %v11729_v21 = vpop.permute.xlu0 %11728 }
 0x2b0   : > { %v4341_v55 = vsel %vm584_vm2, %v4340_v23, %v4299_v37  ;;  %v15313_v4 = vperm.slane %v4365_v11, %v12509_v3  ;;  %v4343_v60 = vsel %vm584_vm2, %v4311_v45, %v4342_v49  ;;  %v4375_v50 = vperm.slane %v4367_v0, %v12509_v3  ;;  %v15328_v23 = vpop.permute.xlu2 %11758 }
 0x2b1   : > { %v15318_v44 = vperm.slane %v4341_v55, %v12509_v3  ;;  %v4351_v41 = vperm.slane %v4343_v60, %v12509_v3  ;;  %v4181_v6 = vsel %vm584_vm2, %v4180_v28, %v15285_v19  ;;  %v4193_v42 = vsel %vm584_vm2, %v4192_v47, %v15292_v54  ;;  %23256 = vst [vmem:[#allocation6_spill] sm:$0xff] %v15328_v23 }
 0x2b2   : > { %v4388_v37 = vrot.slane %v15313_v4, 4  ;;  %v4392_v48 = vrot.slane %v4375_v50, 4  ;;  %v4187_v11 = vperm.slane %v4181_v6, %v12457_v10  ;;  %v4199_v49 = vperm.slane %v4193_v42, %v12457_v10 }
 0x2b3   : > { %v23257_v0 = vrot.slane %v14657_v58, 4  ;;  %v23258_v47 = vrot.slane %v14633_v27, 4  ;;  %v4394_v28 = vrot.slane %v4351_v41, 4  ;;  %v22365_v29 = vunpack.i.l.bf16 %v15328_v23 }
 0x2b4   : > { %v4389_v6 = vsel %vm584_vm2, %v4388_v37, %v15318_v44  ;;  %v4393_v45 = vsel %vm584_vm2, %v4392_v48, %v4351_v41  ;;  %v11731_v48 = vunpack.i.h.bf16 %v11729_v21  ;;  %v4230_v27 = vrot.slane %v4187_v11, 4 }
 0x2b5   : > { %v4205_v55 = vsel %vm584_vm2, %v23257_v0, %v15304_v52  ;;  %v4217_v60 = vsel %vm584_vm2, %v23258_v47, %v14653_v15  ;;  %11398 = vmatpush.xpose.msk.msra.mxu1 %vm6668_vm3, %v4389_v6  ;;  %11638 = vmatpush.xpose.msk.msra.mxu2 %vm6668_vm3, %v4389_v6  ;;  %v4228_v0 = vrot.slane %v4199_v49, 4  ;;  %v22366_v47 = vunpack.i.h.bf16 %v15328_v23 }
 0x2b6   : > { %v15344_v42 = vperm.slane %v4205_v55, %v12457_v10  ;;  %v15347_v5 = vperm.slane %v4217_v60, %v12457_v10  ;;  %11434 = vmatpush.xpose.msk.msrb.mxu3 %vm6668_vm3, %v4393_v45  ;;  %v11730_v55 = vunpack.i.l.bf16 %v11729_v21  ;;  %v4395_v15 = vsel %vm584_vm2, %v4375_v50, %v4394_v28 }
 0x2b7   : > { %v4229_v60 = vsel %vm584_vm2, %v4228_v0, %v4187_v11  ;;  %v15359_v6 = vrot.slane %v22366_v47, 4  ;;  %v15363_v41 = vrot.slane %v22365_v29, 4  ;;  %11452 = vmatpush.xpose.msk.msrb.mxu0 %vm6668_vm3, %v4395_v15  ;;  %v5344_v21 = vrot.slane %v11731_v48, 4 }
 0x2b8   : > { %v4252_v37 = vrot.slane %v15347_v5, 4  ;;  %v15366_v58 = vperm.slane %v4229_v60, %v12509_v3  ;;  %v5232_v11 = vrot.slane %v11730_v55, 4  ;;  %v5235_v28 = vsel %vm584_vm2, %v11730_v55, %v14787_v56 }
 0x2b9   : > { %23259 = vst [vmem:[#allocation54_spill] sm:$0xff] %v15359_v6  ;;  %v5347_v0 = vsel %vm584_vm2, %v11731_v48, %v14767_v36  ;;  %v4231_v29 = vsel %vm584_vm2, %v4199_v49, %v4230_v27  ;;  %v23261_v60 = vunpack.i.l.bf16 %v14691_v35  ;;  %v23262_v15 = vunpack.i.h.bf16 %v14691_v35  ;;  %v11739_v6 = vpop.permute.xlu0 %11738 }
 0x2ba   : > { %23260 = vst [vmem:[#allocation180_spill] sm:$0xff] %v15363_v41  ;;  %v4253_v45 = vsel %vm584_vm2, %v4252_v37, %v15344_v42  ;;  %v5243_v37 = vperm.slane %v5235_v28, %v12457_v10  ;;  %v15391_v27 = vperm.slane %v4231_v29, %v12509_v3  ;;  %v23263_v49 = vrot.slane %v15213_v40, 4 }
 0x2bb   : > { %v15372_v50 = vperm.slane %v4253_v45, %v12509_v3  ;;  %v5233_v47 = vsel %vm584_vm2, %v5232_v11, %v23261_v60  ;;  %v5345_v23 = vsel %vm584_vm2, %v5344_v21, %v23262_v15  ;;  %v5355_v45 = vperm.slane %v5347_v0, %v12457_v10 }
 0x2bc   : > { %v5239_v56 = vperm.slane %v5233_v47, %v12457_v10  ;;  %v5351_v36 = vperm.slane %v5345_v23, %v12457_v10  ;;  %v5293_v48 = vsel %vm584_vm2, %v23263_v49, %v5243_v37  ;;  %v5294_v55 = vrot.slane %v5243_v37, 4 }
 0x2bd   : > { %v4276_v41 = vrot.slane %v15372_v50, 4  ;;  %v23264_v35 = vrot.slane %v15223_v39, 4  ;;  %v5406_v11 = vrot.slane %v5355_v45, 4  ;;  %v23265_v47 = vrot.slane %v15209_v32, 4 }
 0x2be   : > { %v5282_v0 = vrot.slane %v5239_v56, 4  ;;  %v15405_v29 = vperm.slane %v5293_v48, %v12509_v3  ;;  %v5295_v37 = vsel %vm584_vm2, %v15213_v40, %v5294_v55 }
 0x2bf   : > { %v5405_v21 = vsel %vm584_vm2, %v23264_v35, %v5355_v45  ;;  %v4277_v28 = vsel %vm584_vm2, %v4276_v41, %v15366_v58  ;;  %v5281_v23 = vsel %vm584_vm2, %v23265_v47, %v5239_v56  ;;  %v23268_v41 = vrot.slane %v15220_v46, 4 }
 0x2c0   : > { %23266 = vst [vmem:[#allocation181_spill] sm:$0xff] %v15405_v29  ;;  %11399 = vmatpush.xpose.msk.msra.mxu1 %vm6668_vm3, %v4277_v28  ;;  %11639 = vmatpush.xpose.msk.msra.mxu2 %vm6668_vm3, %v4277_v28  ;;  %v15410_v60 = vperm.slane %v5281_v23, %v12509_v3  ;;  %v5394_v45 = vrot.slane %v5351_v36, 4  ;;  %v5283_v56 = vsel %vm584_vm2, %v15209_v32, %v5282_v0  ;;  %v11719_v28 = vpop.permute.xlu1 %11718 }
 0x2c1   : > { %v5393_v15 = vsel %vm584_vm2, %v23268_v41, %v5351_v36  ;;  %v15420_v49 = vperm.slane %v5295_v37, %v12509_v3  ;;  %v15427_v47 = vperm.slane %v5283_v56, %v12509_v3  ;;  %v5407_v32 = vsel %vm584_vm2, %v15223_v39, %v5406_v11 }
 0x2c2   : > { %23267 = vst [vmem:[#allocation182_spill] sm:$0xff] %v15410_v60  ;;  %v15424_v35 = vperm.slane %v5393_v15, %v12509_v3  ;;  %v5395_v36 = vsel %vm584_vm2, %v15220_v46, %v5394_v45  ;;  %v15439_v0 = vperm.slane %v5405_v21, %v12509_v3  ;;  %v15442_v37 = vperm.slane %v5407_v32, %v12509_v3 }
 0x2c3   : > { %23269 = vst [vmem:[#allocation183_spill] sm:$0xff] %v15420_v49  ;;  %v15436_v23 = vperm.slane %v5395_v36, %v12509_v3  ;;  %v4254_v46 = vrot.slane %v15344_v42, 4  ;;  %v11721_v45 = vunpack.i.h.bf16 %v11719_v28  ;;  %v11720_v36 = vunpack.i.l.bf16 %v11719_v28 }
 0x2c4   : > { %23270 = vst [vmem:[#allocation184_spill] sm:$0xff] %v15424_v35  ;;  %v23275_v41 = vrot.slane %v14977_v62, 4 }
 0x2c5   : > { %23271 = vst [vmem:[#allocation185_spill] sm:$0xff] %v15427_v47  ;;  %v4255_v21 = vsel %vm584_vm2, %v15347_v5, %v4254_v46  ;;  %v4896_v48 = vrot.slane %v11721_v45, 4  ;;  %v4899_v32 = vsel %vm584_vm2, %v11721_v45, %v15051_v43  ;;  %v4784_v39 = vrot.slane %v11720_v36, 4 }
 0x2c6   : > { %23272 = vst [vmem:[#allocation186_spill] sm:$0xff] %v15436_v23  ;;  %v15458_v42 = vsel %vm584_vm2, %v23275_v41, %v14300_v12  ;;  %v4263_v40 = vperm.slane %v4255_v21, %v12509_v3  ;;  %v15462_v11 = vperm.slane %v4899_v32, %v12457_v10  ;;  %v4787_v28 = vsel %vm584_vm2, %v11720_v36, %v15055_v30 }
 0x2c7   : > { %23273 = vst [vmem:[#allocation187_spill] sm:$0xff] %v15439_v0  ;;  %v23276_v5 = vunpack.i.h.bf16 %v14936_v2  ;;  %v15470_v43 = vperm.slane %v4787_v28, %v12457_v10  ;;  %v23277_v45 = vrot.slane %v14300_v12, 4  ;;  %v23278_v21 = vrot.slane %v14969_v31, 4  ;;  %v23293_v0 = vld [vmem:[#allocation68_spill] sm:$0xff] }
 0x2c8   : > { %23274 = vst [vmem:[#allocation188_spill] sm:$0xff] %v15442_v37  ;;  %v4280_v30 = vrot.slane %v4263_v40, 4  ;;  %v23279_v28 = vunpack.i.l.bf16 %v14936_v2  ;;  %v23280_v31 = vrot.slane %v14980_v16, 4  ;;  %v23283_v2 = vld [vmem:[#allocation7_spill] sm:$0xff]  ;;  %v23294_v23 = vrot.slane %v23293_v0, 4 }
 0x2c9   : > { %v4897_v46 = vsel %vm584_vm2, %v4896_v48, %v23276_v5  ;;  %v15476_v41 = vsel %vm584_vm2, %v14977_v62, %v23277_v45  ;;  %v15482_v32 = vsel %vm584_vm2, %v23278_v21, %v23203_v57  ;;  %v4080_v21 = vrot.slane %v14989_v38, 4  ;;  %v23286_v62 = vld [vmem:[#allocation14_spill] sm:$0xff]  ;;  %v23297_v37 = vld [vmem:[#allocation67_spill] sm:$0xff] }
 0x2ca   : > { %v15485_v36 = vperm.slane %v4897_v46, %v12457_v10  ;;  %v4785_v12 = vsel %vm584_vm2, %v4784_v39, %v23279_v28  ;;  %v15499_v57 = vsel %vm584_vm2, %v23280_v31, %v23208_v18  ;;  %v4068_v46 = vrot.slane %v15482_v32, 4 }
 0x2cb   : > { %v15492_v5 = vperm.slane %v4785_v12, %v12457_v10  ;;  %v4281_v45 = vsel %vm584_vm2, %v4280_v30, %v15391_v27  ;;  %v23281_v12 = vld [vmem:[#allocation109_spill] sm:$0xff]  ;;  %v4081_v56 = vsel %vm584_vm2, %v4080_v21, %v15476_v41  ;;  %v4282_v48 = vrot.slane %v15391_v27, 4  ;;  %v23292_v27 = vld [vmem:[#allocation26_spill] sm:$0xff] }
 0x2cc   : > { %11435 = vmatpush.xpose.msk.msrb.mxu3 %vm6668_vm3, %v4281_v45  ;;  %v4069_v16 = vsel %vm584_vm2, %v4068_v46, %v15458_v42  ;;  %v23282_v31 = vrot.slane %v23281_v12, 4  ;;  %v4087_v39 = vperm.slane %v4081_v56, %v12457_v10  ;;  %v23284_v46 = vld [vmem:[#allocation5_spill] sm:$0xff]  ;;  %v15545_v35 = vsel %vm584_vm2, %v23294_v23, %v23292_v27 }
 0x2cd   : > { %v4075_v15 = vperm.slane %v4069_v16, %v12457_v10  ;;  %v23285_v28 = vrot.slane %v23284_v46, 4  ;;  %23295 = vst [vmem:[#allocation14_spill] sm:$0xff] %v15545_v35 }
 0x2ce   : > { %v4093_v30 = vsel %vm584_vm2, %v23282_v31, %v15499_v57  ;;  %v23287_v31 = vld [vmem:[#allocation23_spill] sm:$0xff]  ;;  %v4116_v60 = vrot.slane %v4087_v39, 4 }
 0x2cf   : > { %v4099_v45 = vperm.slane %v4093_v30, %v12457_v10  ;;  %v4105_v18 = vsel %vm584_vm2, %v23285_v28, %v23283_v2  ;;  %v23288_v29 = vrot.slane %v23287_v31, 4  ;;  %v4118_v55 = vrot.slane %v4075_v15, 4 }
 0x2d0   : > { %v4111_v21 = vperm.slane %v4105_v18, %v12457_v10  ;;  %v23290_v30 = vrot.slane %v23286_v62, 4  ;;  %v4283_v28 = vsel %vm584_vm2, %v4263_v40, %v4282_v48  ;;  %v23298_v18 = vrot.slane %v23297_v37, 4 }
 0x2d1   : > { %v15531_v16 = vsel %vm584_vm2, %v23288_v29, %v23286_v62  ;;  %v4142_v47 = vrot.slane %v4099_v45, 4  ;;  %v23296_v29 = vld [vmem:[#allocation9_spill] sm:$0xff]  ;;  %11453 = vmatpush.xpose.msk.msrb.mxu0 %vm6668_vm3, %v4283_v28  ;;  %v3956_v40 = vrot.slane %v15545_v35, 4  ;;  %v4117_v0 = vsel %vm584_vm2, %v4116_v60, %v4075_v15 }
 0x2d2   : > { %23289 = vst [vmem:[#allocation109_spill] sm:$0xff] %v15531_v16  ;;  %v15538_v56 = vsel %vm584_vm2, %v23287_v31, %v23290_v30  ;;  %v15551_v49 = vsel %vm584_vm2, %v23298_v18, %v23296_v29  ;;  %v4140_v62 = vrot.slane %v4111_v21, 4  ;;  %v4119_v31 = vsel %vm584_vm2, %v4087_v39, %v4118_v55  ;;  %v23300_v39 = vld [vmem:[#allocation41_spill] sm:$0xff]  ;;  %v15575_v18 = vpop.permute.xlu2 %11773 }
 0x2d3   : > { %23291 = vst [vmem:[#allocation7_spill] sm:$0xff] %v15538_v56  ;;  %v4143_v30 = vsel %vm584_vm2, %v4111_v21, %v4142_v47  ;;  %v4127_v23 = vperm.slane %v4119_v31, %v12509_v3  ;;  %v15562_v27 = vperm.slane %v4117_v0, %v12509_v3  ;;  %v3957_v55 = vsel %vm584_vm2, %v3956_v40, %v15531_v16  ;;  %v23304_v0 = vld [vmem:[#allocation78_spill] sm:$0xff] }
 0x2d4   : > { %23299 = vst [vmem:[#allocation23_spill] sm:$0xff] %v15551_v49  ;;  %v4151_v48 = vperm.slane %v4143_v30, %v12509_v3  ;;  %v4141_v29 = vsel %vm584_vm2, %v4140_v62, %v4099_v45  ;;  %v3968_v47 = vrot.slane %v23300_v39, 4  ;;  %v15572_v15 = vperm.slane %v3957_v55, %v12457_v10  ;;  %v23302_v45 = vld [vmem:[#allocation161_spill] sm:$0xff] }
 0x2d5   : > { %v15569_v21 = vperm.slane %v4141_v29, %v12509_v3  ;;  %23301 = vst [vmem:[#allocation26_spill] sm:$0xff] %v15575_v18  ;;  %v23303_v62 = vrot.slane %v23302_v45, 4  ;;  %v23305_v29 = vld [vmem:[#allocation92_spill] sm:$0xff]  ;;  %v4170_v40 = vrot.slane %v4127_v23, 4 }
 0x2d6   : > { %v4168_v60 = vrot.slane %v4151_v48, 4  ;;  %v3969_v31 = vsel %vm584_vm2, %v3968_v47, %v15538_v56  ;;  %v23306_v37 = vrot.slane %v23305_v29, 4  ;;  %v22388_v29 = vunpack.i.h.bf16 %v15575_v18 }
 0x2d7   : > { %v3981_v30 = vsel %vm584_vm2, %v23303_v62, %v15551_v49  ;;  %v4164_v28 = vrot.slane %v15569_v21, 4  ;;  %v3975_v35 = vperm.slane %v3969_v31, %v12457_v10  ;;  %v11740_v49 = vunpack.i.l.bf16 %v11739_v6 }
 0x2d8   : > { %v3993_v55 = vsel %vm584_vm2, %v23306_v37, %v23304_v0  ;;  %v4169_v39 = vsel %vm584_vm2, %v4168_v60, %v4127_v23  ;;  %v15592_v47 = vperm.slane %v3981_v30, %v12457_v10  ;;  %v22389_v37 = vunpack.i.l.bf16 %v15575_v18 }
 0x2d9   : > { %11436 = vmatpush.xpose.msk.msrb.mxu3 %vm6668_vm3, %v4169_v39  ;;  %v15596_v62 = vperm.slane %v3993_v55, %v12457_v10  ;;  %v4165_v0 = vsel %vm584_vm2, %v4164_v28, %v15562_v27  ;;  %v4004_v45 = vrot.slane %v3975_v35, 4  ;;  %v11741_v60 = vunpack.i.h.bf16 %v11739_v6 }
 0x2da   : > { %11400 = vmatpush.xpose.msk.msra.mxu1 %vm6668_vm3, %v4165_v0  ;;  %11640 = vmatpush.xpose.msk.msra.mxu2 %vm6668_vm3, %v4165_v0  ;;  %v4171_v31 = vsel %vm584_vm2, %v4151_v48, %v4170_v40  ;;  %v15608_v23 = vrot.slane %v22388_v29, 4  ;;  %v15612_v30 = vrot.slane %v22389_v37, 4  ;;  %v4796_v55 = vrot.slane %v11740_v49, 4  ;;  %v23309_v0 = vld [vmem:[#allocation166_spill] sm:$0xff]  ;;  %v23311_v37 = vld [vmem:[#allocation148_spill] sm:$0xff] }
 0x2db   : > { %v4028_v39 = vrot.slane %v15596_v62, 4  ;;  %v4005_v28 = vsel %vm584_vm2, %v4004_v45, %v15572_v15  ;;  %11454 = vmatpush.xpose.msk.msrb.mxu0 %vm6668_vm3, %v4171_v31  ;;  %v4908_v6 = vrot.slane %v11741_v60, 4  ;;  %v4799_v56 = vsel %vm584_vm2, %v11740_v49, %v23309_v0  ;;  %v23313_v31 = vld [vmem:[#allocation84_spill] sm:$0xff] }
 0x2dc   : > { %23307 = vst [vmem:[#allocation68_spill] sm:$0xff] %v15608_v23  ;;  %v15620_v48 = vperm.slane %v4005_v28, %v12509_v3  ;;  %v4807_v29 = vperm.slane %v4799_v56, %v12457_v10  ;;  %v4911_v18 = vsel %vm584_vm2, %v11741_v60, %v23311_v37  ;;  %v23315_v49 = vunpack.i.h.bf16 %v23313_v31 }
 0x2dd   : > { %23308 = vst [vmem:[#allocation9_spill] sm:$0xff] %v15612_v30  ;;  %v4029_v40 = vsel %vm584_vm2, %v4028_v39, %v15592_v47  ;;  %v23314_v30 = vunpack.i.l.bf16 %v23313_v31  ;;  %v4919_v0 = vperm.slane %v4911_v18, %v12457_v10  ;;  %v23316_v56 = vrot.slane %v15470_v43, 4 }
 0x2de   : > { %23310 = vst [vmem:[#allocation67_spill] sm:$0xff] %v15620_v48  ;;  %v15628_v45 = vperm.slane %v4029_v40, %v12509_v3  ;;  %v4909_v28 = vsel %vm584_vm2, %v4908_v6, %v23315_v49  ;;  %v4844_v16 = vrot.slane %v4807_v29, 4 }
 0x2df   : > { %v4797_v23 = vsel %vm584_vm2, %v4796_v55, %v23314_v30  ;;  %v4847_v37 = vsel %vm584_vm2, %v4807_v29, %v23316_v56  ;;  %v4915_v60 = vperm.slane %v4909_v28, %v12457_v10  ;;  %v4956_v30 = vrot.slane %v4919_v0, 4 }
 0x2e0   : > { %23312 = vst [vmem:[#allocation166_spill] sm:$0xff] %v15628_v45  ;;  %v4803_v39 = vperm.slane %v4797_v23, %v12457_v10  ;;  %v4052_v40 = vrot.slane %v15628_v45, 4  ;;  %v15644_v46 = vperm.slane %v4847_v37, %v12509_v3  ;;  %v23318_v55 = vrot.slane %v15462_v11, 4 }
 0x2e1   : > { %v23319_v23 = vrot.slane %v15492_v5, 4  ;;  %v4845_v29 = vsel %vm584_vm2, %v4844_v16, %v15470_v43  ;;  %v4944_v49 = vrot.slane %v4915_v60, 4  ;;  %v23322_v16 = vrot.slane %v15485_v36, 4 }
 0x2e2   : > { %23317 = vst [vmem:[#allocation148_spill] sm:$0xff] %v15644_v46  ;;  %v4959_v6 = vsel %vm584_vm2, %v4919_v0, %v23318_v55  ;;  %v4832_v18 = vrot.slane %v4803_v39, 4  ;;  %v4053_v28 = vsel %vm584_vm2, %v4052_v40, %v15620_v48  ;;  %v15660_v37 = vperm.slane %v4845_v29, %v12509_v3  ;;  %v23334_v29 = vld [vmem:[#allocation172_spill] sm:$0xff] }
 0x2e3   : > { %v4835_v31 = vsel %vm584_vm2, %v4803_v39, %v23319_v23  ;;  %11401 = vmatpush.xpose.msk.msra.mxu1 %vm6668_vm3, %v4053_v28  ;;  %11641 = vmatpush.xpose.msk.msra.mxu2 %vm6668_vm3, %v4053_v28  ;;  %v4945_v43 = vsel %vm584_vm2, %v4944_v49, %v15485_v36  ;;  %v4947_v40 = vsel %vm584_vm2, %v4915_v60, %v23322_v16  ;;  %v4006_v55 = vrot.slane %v15572_v15, 4  ;;  %v23336_v0 = vld [vmem:[#allocation52_spill] sm:$0xff] }
 0x2e4   : > { %v15657_v56 = vperm.slane %v4835_v31, %v12509_v3  ;;  %23321 = vst [vmem:[#allocation189_spill] sm:$0xff] %v15660_v37  ;;  %v4833_v39 = vsel %vm584_vm2, %v4832_v18, %v15492_v5  ;;  %v15679_v28 = vperm.slane %v4945_v43, %v12509_v3  ;;  %v11734_v5 = vpop.permute.xlu1 %11733  ;;  %v15682_v18 = vperm.slane %v4947_v40, %v12509_v3 }
 0x2e5   : > { %v15674_v23 = vperm.slane %v4833_v39, %v12509_v3  ;;  %v4957_v36 = vsel %vm584_vm2, %v4956_v30, %v15462_v11  ;;  %v15687_v60 = vperm.slane %v4959_v6, %v12509_v3  ;;  %v4007_v15 = vsel %vm584_vm2, %v3975_v35, %v4006_v55  ;;  %v23328_v35 = vld [vmem:[#allocation158_spill] sm:$0xff]  ;;  %v23329_v55 = vld [vmem:[#allocation111_spill] sm:$0xff] }
 0x2e6   : > { %23320 = vst [vmem:[#allocation84_spill] sm:$0xff] %v15657_v56  ;;  %v15692_v39 = vperm.slane %v4957_v36, %v12509_v3  ;;  %v4015_v16 = vperm.slane %v4007_v15, %v12509_v3  ;;  %v4030_v11 = vrot.slane %v15592_v47, 4  ;;  %v11736_v30 = vunpack.i.h.bf16 %v11734_v5 }
 0x2e7   : > { %23323 = vst [vmem:[#allocation190_spill] sm:$0xff] %v15674_v23  ;;  %v11735_v31 = vunpack.i.l.bf16 %v11734_v5  ;;  %v23330_v49 = vrot.slane %v23329_v55, 4  ;;  %v23332_v43 = vrot.slane %v23328_v35, 4  ;;  %v23335_v5 = vld [vmem:[#allocation80_spill] sm:$0xff]  ;;  %v23337_v37 = vrot.slane %v23336_v0, 4  ;;  %v23342_v0 = vld [vmem:[#allocation159_spill] sm:$0xff] }
 0x2e8   : > { %23324 = vst [vmem:[#allocation191_spill] sm:$0xff] %v15679_v28  ;;  %v4031_v40 = vsel %vm584_vm2, %v15596_v62, %v4030_v11  ;;  %v5568_v47 = vrot.slane %v11736_v30, 4  ;;  %v5571_v6 = vsel %vm584_vm2, %v11736_v30, %v23334_v29  ;;  %v23340_v62 = vld [vmem:[#allocation104_spill] sm:$0xff]  ;;  %v23343_v30 = vld [vmem:[#allocation66_spill] sm:$0xff]  ;;  %v23347_v28 = vld [vmem:[#allocation103_spill] sm:$0xff] }
 0x2e9   : > { %23325 = vst [vmem:[#allocation192_spill] sm:$0xff] %v15682_v18  ;;  %v15704_v36 = vsel %vm584_vm2, %v23330_v49, %v23328_v35  ;;  %v15710_v15 = vsel %vm584_vm2, %v23329_v55, %v23332_v43  ;;  %v15720_v56 = vsel %vm584_vm2, %v23337_v37, %v23335_v5  ;;  %v4039_v49 = vperm.slane %v4031_v40, %v12509_v3  ;;  %v23339_v55 = vld [vmem:[#allocation174_spill] sm:$0xff] }
 0x2ea   : > { %23326 = vst [vmem:[#allocation193_spill] sm:$0xff] %v15687_v60  ;;  %v15724_v35 = vperm.slane %v5571_v6, %v12457_v10  ;;  %v5456_v43 = vrot.slane %v11735_v31, 4  ;;  %v5459_v23 = vsel %vm584_vm2, %v11735_v31, %v23339_v55  ;;  %v23341_v11 = vunpack.i.h.bf16 %v23340_v62  ;;  %v23351_v60 = vld [vmem:[#allocation13_spill] sm:$0xff] }
 0x2eb   : > { %23327 = vst [vmem:[#allocation194_spill] sm:$0xff] %v15692_v39  ;;  %v15732_v29 = vperm.slane %v5459_v23, %v12457_v10  ;;  %v23344_v37 = vrot.slane %v23343_v30, 4  ;;  %v3844_v40 = vrot.slane %v15720_v56, 4  ;;  %v4056_v6 = vrot.slane %v4039_v49, 4 }
 0x2ec   : > { %23331 = vst [vmem:[#allocation158_spill] sm:$0xff] %v15704_v36  ;;  %v5569_v39 = vsel %vm584_vm2, %v5568_v47, %v23341_v11  ;;  %v23346_v55 = vunpack.i.l.bf16 %v23340_v62  ;;  %v3856_v62 = vrot.slane %v23347_v28, 4  ;;  %v23352_v46 = vrot.slane %v23351_v60, 4 }
 0x2ed   : > { %23333 = vst [vmem:[#allocation111_spill] sm:$0xff] %v15710_v15  ;;  %v15738_v5 = vsel %vm584_vm2, %v23344_v37, %v23342_v0  ;;  %v15742_v18 = vperm.slane %v5569_v39, %v12457_v10  ;;  %v3845_v0 = vsel %vm584_vm2, %v3844_v40, %v15704_v36  ;;  %v4057_v37 = vsel %vm584_vm2, %v4056_v6, %v4015_v16  ;;  %v23350_v39 = vld [vmem:[#allocation34_spill] sm:$0xff] }
 0x2ee   : > { %23338 = vst [vmem:[#allocation172_spill] sm:$0xff] %v15720_v56  ;;  %v5457_v47 = vsel %vm584_vm2, %v5456_v43, %v23346_v55  ;;  %v3851_v31 = vperm.slane %v3845_v0, %v12457_v10  ;;  %11437 = vmatpush.xpose.msk.msrb.mxu3 %vm6668_vm3, %v4057_v37  ;;  %v3857_v6 = vsel %vm584_vm2, %v3856_v62, %v15710_v15  ;;  %v4058_v43 = vrot.slane %v4015_v16, 4  ;;  %v23353_v56 = vld [vmem:[#allocation82_spill] sm:$0xff] }
 0x2ef   : > { %23345 = vst [vmem:[#allocation80_spill] sm:$0xff] %v15738_v5  ;;  %v15749_v23 = vperm.slane %v5457_v47, %v12457_v10  ;;  %v23348_v47 = vld [vmem:[#allocation16_spill] sm:$0xff]  ;;  %v3881_v37 = vsel %vm584_vm2, %v23352_v46, %v23350_v39  ;;  %v3863_v55 = vperm.slane %v3857_v6, %v12457_v10  ;;  %v23359_v16 = vld [vmem:[#allocation154_spill] sm:$0xff]  ;;  %v23360_v6 = vld [vmem:[#allocation163_spill] sm:$0xff] }
 0x2f0   : > { %v23349_v11 = vrot.slane %v23348_v47, 4  ;;  %v3887_v28 = vperm.slane %v3881_v37, %v12457_v10  ;;  %v3894_v47 = vrot.slane %v3851_v31, 4  ;;  %v4059_v62 = vsel %vm584_vm2, %v4039_v49, %v4058_v43  ;;  %v23363_v49 = vld [vmem:[#allocation155_spill] sm:$0xff]  ;;  %v23364_v43 = vld [vmem:[#allocation164_spill] sm:$0xff] }
 0x2f1   : > { %v23361_v60 = vrot.slane %v23360_v6, 4  ;;  %v3892_v39 = vrot.slane %v3863_v55, 4  ;;  %11455 = vmatpush.xpose.msk.msrb.mxu0 %vm6668_vm3, %v4059_v62  ;;  %v23365_v45 = vrot.slane %v23364_v43, 4 }
 0x2f2   : > { %v3869_v40 = vsel %vm584_vm2, %v23349_v11, %v15738_v5  ;;  %v23354_v11 = vld [vmem:[#allocation162_spill] sm:$0xff]  ;;  %v23357_v5 = vrot.slane %v23353_v56, 4  ;;  %v3916_v15 = vrot.slane %v3887_v28, 4 }
 0x2f3   : > { %v3875_v0 = vperm.slane %v3869_v40, %v12457_v10  ;;  %v23355_v36 = vrot.slane %v23354_v11, 4  ;;  %v15793_v37 = vsel %vm584_vm2, %v23361_v60, %v23359_v16  ;;  %v3893_v16 = vsel %vm584_vm2, %v3892_v39, %v3851_v31  ;;  %v11754_v60 = vpop.permute.xlu0 %11753 }
 0x2f4   : > { %v15787_v46 = vsel %vm584_vm2, %v23354_v11, %v23357_v5  ;;  %23362 = vst [vmem:[#allocation104_spill] sm:$0xff] %v15793_v37  ;;  %v3732_v6 = vrot.slane %v15793_v37, 4  ;;  %v15812_v43 = vperm.slane %v3893_v16, %v12509_v3  ;;  %v23373_v37 = vld [vmem:[#allocation31_spill] sm:$0xff] }
 0x2f5   : > { %v15780_v30 = vsel %vm584_vm2, %v23355_v36, %v23353_v56  ;;  %v3918_v40 = vrot.slane %v3875_v0, 4  ;;  %23358 = vst [vmem:[#allocation174_spill] sm:$0xff] %v15787_v46  ;;  %v3895_v36 = vsel %vm584_vm2, %v3863_v55, %v3894_v47  ;;  %v15801_v56 = vsel %vm584_vm2, %v23365_v45, %v23363_v49  ;;  %v23367_v47 = vld [vmem:[#allocation165_spill] sm:$0xff] }
 0x2f6   : > { %23356 = vst [vmem:[#allocation52_spill] sm:$0xff] %v15780_v30  ;;  %v3903_v5 = vperm.slane %v3895_v36, %v12509_v3  ;;  %v3917_v62 = vsel %vm584_vm2, %v3916_v15, %v3875_v0  ;;  %v3744_v48 = vrot.slane %v23367_v47, 4  ;;  %v15820_v36 = vpop.permute.xlu2 %11783  ;;  %v23370_v0 = vld [vmem:[#allocation168_spill] sm:$0xff]  ;;  %v23372_v47 = vld [vmem:[#allocation167_spill] sm:$0xff] }
 0x2f7   : > { %23366 = vst [vmem:[#allocation159_spill] sm:$0xff] %v15801_v56  ;;  %v3919_v11 = vsel %vm584_vm2, %v3887_v28, %v3918_v40  ;;  %v15815_v45 = vperm.slane %v3917_v62, %v12509_v3  ;;  %v3733_v28 = vsel %vm584_vm2, %v3732_v6, %v15780_v30  ;;  %v23371_v49 = vrot.slane %v23370_v0, 4 }
 0x2f8   : > { %v3927_v55 = vperm.slane %v3919_v11, %v12509_v3  ;;  %23369 = vst [vmem:[#allocation82_spill] sm:$0xff] %v15820_v36  ;;  %v3739_v15 = vperm.slane %v3733_v28, %v12457_v10  ;;  %v3745_v39 = vsel %vm584_vm2, %v3744_v48, %v15787_v46  ;;  %v23374_v48 = vrot.slane %v23373_v37, 4 }
 0x2f9   : > { %23368 = vst [vmem:[#allocation66_spill] sm:$0xff] %v15815_v45  ;;  %v3757_v11 = vsel %vm584_vm2, %v23371_v49, %v15801_v56  ;;  %v3940_v16 = vrot.slane %v15815_v45, 4  ;;  %v3751_v62 = vperm.slane %v3745_v39, %v12457_v10  ;;  %v3946_v0 = vrot.slane %v3903_v5, 4  ;;  %v23377_v56 = vld [vmem:[#allocation170_spill] sm:$0xff] }
 0x2fa   : > { %v3944_v31 = vrot.slane %v3927_v55, 4  ;;  %v15833_v40 = vperm.slane %v3757_v11, %v12457_v10  ;;  %v3769_v46 = vsel %vm584_vm2, %v23374_v48, %v23372_v47  ;;  %v22419_v49 = vunpack.i.h.bf16 %v15820_v36 }
 0x2fb   : > { %v3941_v30 = vsel %vm584_vm2, %v3940_v16, %v15812_v43  ;;  %v3775_v39 = vperm.slane %v3769_v46, %v12457_v10  ;;  %v3780_v11 = vrot.slane %v3751_v62, 4  ;;  %v22420_v6 = vunpack.i.l.bf16 %v15820_v36 }
 0x2fc   : > { %v3945_v28 = vsel %vm584_vm2, %v3944_v31, %v3903_v5  ;;  %11402 = vmatpush.xpose.msk.msra.mxu1 %vm6668_vm3, %v3941_v30  ;;  %11642 = vmatpush.xpose.msk.msra.mxu2 %vm6668_vm3, %v3941_v30  ;;  %v3947_v31 = vsel %vm584_vm2, %v3927_v55, %v3946_v0  ;;  %v15851_v5 = vrot.slane %v22419_v49, 4  ;;  %v11756_v48 = vunpack.i.h.bf16 %v11754_v60 }
 0x2fd   : > { %11438 = vmatpush.xpose.msk.msrb.mxu3 %vm6668_vm3, %v3945_v28  ;;  %v11755_v37 = vunpack.i.l.bf16 %v11754_v60  ;;  %v3781_v16 = vsel %vm584_vm2, %v3780_v11, %v3739_v15  ;;  %v3804_v28 = vrot.slane %v3775_v39, 4  ;;  %11456 = vmatpush.xpose.msk.msrb.mxu0 %vm6668_vm3, %v3947_v31  ;;  %v15857_v46 = vrot.slane %v22420_v6, 4 }
 0x2fe   : > { %23375 = vst [vmem:[#allocation162_spill] sm:$0xff] %v15851_v5  ;;  %v3782_v47 = vrot.slane %v3739_v15, 4  ;;  %v15860_v30 = vperm.slane %v3781_v16, %v12509_v3  ;;  %v5580_v55 = vrot.slane %v11756_v48, 4  ;;  %v23378_v5 = vld [vmem:[#allocation98_spill] sm:$0xff]  ;;  %v23379_v16 = vld [vmem:[#allocation169_spill] sm:$0xff] }
 0x2ff   : > { %23376 = vst [vmem:[#allocation154_spill] sm:$0xff] %v15857_v46  ;;  %v5468_v0 = vrot.slane %v11755_v37, 4  ;;  %v5471_v49 = vsel %vm584_vm2, %v11755_v37, %v23377_v56  ;;  %v3805_v60 = vsel %vm584_vm2, %v3804_v28, %v15833_v40  ;;  %v5583_v31 = vsel %vm584_vm2, %v11756_v48, %v23378_v5 }
 0x300   : > { %v5479_v11 = vperm.slane %v5471_v49, %v12457_v10  ;;  %v3783_v6 = vsel %vm584_vm2, %v3751_v62, %v3782_v47  ;;  %v15871_v15 = vperm.slane %v3805_v60, %v12509_v3  ;;  %v23380_v36 = vunpack.i.l.bf16 %v23379_v16 }
 0x301   : > { %v23381_v45 = vunpack.i.h.bf16 %v23379_v16  ;;  %v5591_v56 = vperm.slane %v5583_v31, %v12457_v10  ;;  %v23382_v5 = vrot.slane %v15732_v29, 4 }
 0x302   : > { %v5469_v46 = vsel %vm584_vm2, %v5468_v0, %v23380_v36  ;;  %v5516_v28 = vrot.slane %v5479_v11, 4  ;;  %v3828_v48 = vrot.slane %v15871_v15, 4  ;;  %v23384_v0 = vrot.slane %v15724_v35, 4 }
 0x303   : > { %v5581_v37 = vsel %vm584_vm2, %v5580_v55, %v23381_v45  ;;  %v5475_v49 = vperm.slane %v5469_v46, %v12457_v10  ;;  %v5519_v47 = vsel %vm584_vm2, %v5479_v11, %v23382_v5  ;;  %v5628_v36 = vrot.slane %v5591_v56, 4 }
 0x304   : > { %v5587_v62 = vperm.slane %v5581_v37, %v12457_v10  ;;  %v15887_v60 = vperm.slane %v5519_v47, %v12509_v3  ;;  %v5631_v45 = vsel %vm584_vm2, %v5591_v56, %v23384_v0  ;;  %v23385_v46 = vrot.slane %v15749_v23, 4 }
 0x305   : > { %v5504_v55 = vrot.slane %v5475_v49, 4  ;;  %v5517_v11 = vsel %vm584_vm2, %v5516_v28, %v15732_v29  ;;  %v3829_v37 = vsel %vm584_vm2, %v3828_v48, %v15860_v30  ;;  %v23388_v28 = vrot.slane %v15742_v18, 4 }
 0x306   : > { %23383 = vst [vmem:[#allocation163_spill] sm:$0xff] %v15887_v60  ;;  %v5507_v31 = vsel %vm584_vm2, %v5475_v49, %v23385_v46  ;;  %v5616_v16 = vrot.slane %v5587_v62, 4  ;;  %v15903_v47 = vperm.slane %v5517_v11, %v12509_v3  ;;  %11403 = vmatpush.xpose.msk.msra.mxu1 %vm6668_vm3, %v3829_v37  ;;  %11643 = vmatpush.xpose.msk.msra.mxu2 %vm6668_vm3, %v3829_v37  ;;  %v3806_v0 = vrot.slane %v15833_v40, 4 }
 0x307   : > { %v15900_v5 = vperm.slane %v5507_v31, %v12509_v3  ;;  %v5505_v49 = vsel %vm584_vm2, %v5504_v55, %v15749_v23  ;;  %v5619_v48 = vsel %vm584_vm2, %v5587_v62, %v23388_v28  ;;  %v11744_v23 = vpop.permute.xlu1 %11743  ;;  %v15930_v62 = vperm.slane %v5631_v45, %v12509_v3  ;;  %v23394_v31 = vld [vmem:[#allocation153_spill] sm:$0xff] }
 0x308   : > { %23387 = vst [vmem:[#allocation164_spill] sm:$0xff] %v15903_v47  ;;  %v5617_v29 = vsel %vm584_vm2, %v5616_v16, %v15742_v18  ;;  %v15917_v46 = vperm.slane %v5505_v49, %v12509_v3  ;;  %v15925_v55 = vperm.slane %v5619_v48, %v12509_v3  ;;  %v5629_v18 = vsel %vm584_vm2, %v5628_v36, %v15724_v35  ;;  %v23395_v16 = vld [vmem:[#allocation141_spill] sm:$0xff] }
 0x309   : > { %23386 = vst [vmem:[#allocation155_spill] sm:$0xff] %v15900_v5  ;;  %v15922_v37 = vperm.slane %v5617_v29, %v12509_v3  ;;  %v15933_v40 = vperm.slane %v3783_v6, %v12509_v3  ;;  %v15937_v49 = vperm.slane %v5629_v18, %v12509_v3  ;;  %v3807_v28 = vsel %vm584_vm2, %v3775_v39, %v3806_v0  ;;  %v23398_v6 = vld [vmem:[#allocation149_spill] sm:$0xff] }
 0x30a   : > { %23389 = vst [vmem:[#allocation170_spill] sm:$0xff] %v15917_v46  ;;  %v15944_v35 = vperm.slane %v3807_v28, %v12509_v3  ;;  %v11746_v36 = vunpack.i.h.bf16 %v11744_v23  ;;  %v11745_v45 = vunpack.i.l.bf16 %v11744_v23  ;;  %v23396_v56 = vrot.slane %v23395_v16, 4  ;;  %v23399_v23 = vld [vmem:[#allocation58_spill] sm:$0xff] }
 0x30b   : > { %23390 = vst [vmem:[#allocation98_spill] sm:$0xff] %v15922_v37  ;;  %v23397_v29 = vrot.slane %v23394_v31, 4  ;;  %v23400_v11 = vrot.slane %v23399_v23, 4  ;;  %v23405_v23 = vunpack.i.l.bf16 %v15105_v63 }
 0x30c   : > { %23391 = vst [vmem:[#allocation169_spill] sm:$0xff] %v15925_v55  ;;  %v15951_v18 = vsel %vm584_vm2, %v23396_v56, %v23394_v31  ;;  %v3832_v0 = vrot.slane %v15944_v35, 4  ;;  %v5132_v28 = vrot.slane %v11746_v36, 4  ;;  %v5135_v48 = vsel %vm584_vm2, %v11746_v36, %v15138_v22 }
 0x30d   : > { %23392 = vst [vmem:[#allocation195_spill] sm:$0xff] %v15930_v62  ;;  %v15957_v39 = vsel %vm584_vm2, %v23395_v16, %v23397_v29  ;;  %v15966_v47 = vsel %vm584_vm2, %v23400_v11, %v23398_v6  ;;  %v5143_v56 = vperm.slane %v5135_v48, %v12457_v10  ;;  %v5020_v5 = vrot.slane %v11745_v45, 4  ;;  %v23401_v16 = vld [vmem:[#allocation150_spill] sm:$0xff]  ;;  %v23431_v62 = vld [vmem:[#allocation35_spill] sm:$0xff] }
 0x30e   : > { %23393 = vst [vmem:[#allocation196_spill] sm:$0xff] %v15937_v49  ;;  %v5023_v31 = vsel %vm584_vm2, %v11745_v45, %v15146_v51  ;;  %v23402_v29 = vld [vmem:[#allocation110_spill] sm:$0xff]  ;;  %v3833_v22 = vsel %vm584_vm2, %v3832_v0, %v15933_v40  ;;  %v23404_v36 = vunpack.i.h.bf16 %v15105_v63  ;;  %v3620_v48 = vrot.slane %v15966_v47, 4 }
 0x30f   : > { %v23403_v46 = vrot.slane %v23402_v29, 4  ;;  %v5031_v6 = vperm.slane %v5023_v31, %v12457_v10  ;;  %11439 = vmatpush.xpose.msk.msrb.mxu3 %vm6668_vm3, %v3833_v22  ;;  %v5180_v45 = vrot.slane %v5143_v56, 4  ;;  %v23407_v31 = vrot.slane %v15159_v17, 4 }
 0x310   : > { %v5133_v11 = vsel %vm584_vm2, %v5132_v28, %v23404_v36  ;;  %v23410_v63 = vrot.slane %v15134_v59, 4  ;;  %v23432_v60 = vrot.slane %v23431_v62, 4 }
 0x311   : > { %v15975_v49 = vsel %vm584_vm2, %v23403_v46, %v23401_v16  ;;  %v5139_v51 = vperm.slane %v5133_v11, %v12457_v10  ;;  %v5021_v46 = vsel %vm584_vm2, %v5020_v5, %v23405_v23  ;;  %v23406_v16 = vrot.slane %v15153_v20, 4 }
 0x312   : > { %v5027_v29 = vperm.slane %v5021_v46, %v12457_v10  ;;  %v5068_v28 = vrot.slane %v5031_v6, 4  ;;  %v5071_v36 = vsel %vm584_vm2, %v5031_v6, %v23407_v31  ;;  %v23411_v46 = vld [vmem:[#allocation175_spill] sm:$0xff] }
 0x313   : > { %v5183_v0 = vsel %vm584_vm2, %v5143_v56, %v23406_v16  ;;  %v5168_v11 = vrot.slane %v5139_v51, 4  ;;  %v16000_v55 = vperm.slane %v5071_v36, %v12509_v3  ;;  %v5171_v5 = vsel %vm584_vm2, %v5139_v51, %v23410_v63  ;;  %v23423_v51 = vld [vmem:[#allocation37_spill] sm:$0xff] }
 0x314   : > { %v15997_v22 = vperm.slane %v5183_v0, %v12509_v3  ;;  %v5181_v56 = vsel %vm584_vm2, %v5180_v45, %v15153_v20  ;;  %v5056_v23 = vrot.slane %v5027_v29, 4  ;;  %v23412_v16 = vrot.slane %v23411_v46, 4 }
 0x315   : > { %23409 = vst [vmem:[#allocation141_spill] sm:$0xff] %v16000_v55  ;;  %v5069_v6 = vsel %vm584_vm2, %v5068_v28, %v15159_v17  ;;  %v16013_v0 = vperm.slane %v5171_v5, %v12509_v3  ;;  %v5169_v20 = vsel %vm584_vm2, %v5168_v11, %v15134_v59  ;;  %v16030_v17 = vperm.slane %v5181_v56, %v12509_v3  ;;  %v23420_v5 = vld [vmem:[#allocation30_spill] sm:$0xff] }
 0x316   : > { %23408 = vst [vmem:[#allocation153_spill] sm:$0xff] %v15997_v22  ;;  %v5059_v37 = vsel %vm584_vm2, %v5027_v29, %v23412_v16  ;;  %v16019_v36 = vperm.slane %v5069_v6, %v12509_v3  ;;  %v5057_v45 = vsel %vm584_vm2, %v5056_v23, %v23411_v46  ;;  %v16027_v29 = vperm.slane %v5169_v20, %v12509_v3  ;;  %v23419_v20 = vld [vmem:[#allocation69_spill] sm:$0xff]  ;;  %v23422_v59 = vld [vmem:[#allocation142_spill] sm:$0xff] }
 0x317   : > { %23413 = vst [vmem:[#allocation149_spill] sm:$0xff] %v16013_v0  ;;  %v16016_v31 = vperm.slane %v5059_v37, %v12509_v3  ;;  %v16034_v28 = vperm.slane %v5057_v45, %v12509_v3  ;;  %v3621_v46 = vsel %vm584_vm2, %v3620_v48, %v15951_v18  ;;  %v3632_v45 = vrot.slane %v23419_v20, 4 }
 0x318   : > { %23415 = vst [vmem:[#allocation150_spill] sm:$0xff] %v16019_v36  ;;  %v3627_v6 = vperm.slane %v3621_v46, %v12457_v10  ;;  %v23421_v37 = vrot.slane %v23420_v5, 4  ;;  %v23424_v48 = vrot.slane %v23423_v51, 4  ;;  %v3834_v16 = vrot.slane %v15933_v40, 4 }
 0x319   : > { %23414 = vst [vmem:[#allocation58_spill] sm:$0xff] %v16016_v31  ;;  %v3633_v46 = vsel %vm584_vm2, %v3632_v45, %v15957_v39  ;;  %v23425_v31 = vld [vmem:[#allocation171_spill] sm:$0xff] }
 0x31a   : > { %23416 = vst [vmem:[#allocation110_spill] sm:$0xff] %v16027_v29  ;;  %v3645_v11 = vsel %vm584_vm2, %v23421_v37, %v15975_v49  ;;  %v3657_v56 = vsel %vm584_vm2, %v23424_v48, %v23422_v59  ;;  %v3639_v37 = vperm.slane %v3633_v46, %v12457_v10  ;;  %v3835_v23 = vsel %vm584_vm2, %v15944_v35, %v3834_v16  ;;  %v23428_v29 = vld [vmem:[#allocation3_spill] sm:$0xff]  ;;  %v16076_v46 = vpop.permute.xlu2 %4674 }
 0x31b   : > { %23417 = vst [vmem:[#allocation175_spill] sm:$0xff] %v16030_v17  ;;  %v3651_v36 = vperm.slane %v3645_v11, %v12457_v10  ;;  %v3663_v63 = vperm.slane %v3657_v56, %v12457_v10  ;;  %v23426_v17 = vld [vmem:[#allocation11_spill] sm:$0xff]  ;;  %v23429_v40 = vrot.slane %v23428_v29, 4  ;;  %11457 = vmatpush.xpose.msk.msrb.mxu0 %vm6668_vm3, %v3835_v23  ;;  %v3670_v16 = vrot.slane %v3627_v6, 4  ;;  %v23433_v23 = vld [vmem:[#allocation178_spill] sm:$0xff] }
 0x31c   : > { %23418 = vst [vmem:[#allocation197_spill] sm:$0xff] %v16034_v28  ;;  %v4560_v28 = vrot.slane %v23425_v31, 4  ;;  %v23427_v0 = vrot.slane %v23426_v17, 4  ;;  %v3668_v35 = vrot.slane %v3639_v37, 4 }
 0x31d   : > { %v4527_v22 = vsel %vm584_vm2, 0.0, %v23429_v40  ;;  %v3692_v45 = vrot.slane %v3663_v63, 4  ;;  %23430 = vst [vmem:[#allocation69_spill] sm:$0xff] %v16076_v46  ;;  %v3694_v17 = vrot.slane %v3651_v36, 4  ;;  %v3671_v46 = vsel %vm584_vm2, %v3639_v37, %v3670_v16 }
 0x31e   : > { %v4517_v48 = vsel %vm584_vm2, 0.0, %v23427_v0  ;;  %v4561_v11 = vsel %vm584_vm2, 0.0, %v4560_v28  ;;  %v4535_v56 = vperm.slane %v4527_v22, %v12457_v10  ;;  %v4502_v0 = vrot.slane %v15205_v8, 4 }
 0x31f   : > { %v4525_v31 = vperm.slane %v4517_v48, %v12457_v10  ;;  %v3693_v29 = vsel %vm584_vm2, %v3692_v45, %v3651_v36  ;;  %v4407_v28 = vsel %vm584_vm2, %v23433_v23, %v23432_v60  ;;  %v3669_v48 = vsel %vm584_vm2, %v3668_v35, %v3627_v6 }
 0x320   : > { %v4548_v55 = vrot.slane %v4535_v56, 4  ;;  %v16086_v22 = vperm.slane %v3693_v29, %v12509_v3  ;;  %v3695_v51 = vsel %vm584_vm2, %v3663_v63, %v3694_v17  ;;  %v16091_v8 = vperm.slane %v3669_v48, %v12509_v3  ;;  %v23434_v29 = vld [vmem:[#allocation177_spill] sm:$0xff]  ;;  %v23436_v48 = vld [vmem:[#allocation12_spill] sm:$0xff] }
 0x321   : > { %v4550_v40 = vrot.slane %v4525_v31, 4  ;;  %v3679_v45 = vperm.slane %v3671_v46, %v12509_v3  ;;  %v3703_v62 = vperm.slane %v3695_v51, %v12509_v3  ;;  %v4503_v37 = vsel %vm584_vm2, %v15200_v61, %v4502_v0  ;;  %v23439_v0 = vld [vmem:[#allocation173_spill] sm:$0xff] }
 0x322   : > { %v4549_v36 = vsel %vm584_vm2, %v4548_v55, %v4525_v31  ;;  %v3716_v60 = vrot.slane %v16086_v22, 4  ;;  %v4415_v55 = vperm.slane %v4407_v28, %v12457_v10  ;;  %v16105_v31 = vpop.permute.xlu0 %11763  ;;  %v23435_v23 = vrot.slane %v23434_v29, 4 }
 0x323   : > { %v16098_v6 = vperm.slane %v4549_v36, %v12509_v3  ;;  %v4551_v35 = vsel %vm584_vm2, %v4535_v56, %v4550_v40  ;;  %v3720_v63 = vrot.slane %v3703_v62, 4  ;;  %v3722_v17 = vrot.slane %v3679_v45, 4  ;;  %v23437_v40 = vld [vmem:[#allocation179_spill] sm:$0xff] }
 0x324   : > { %v4559_v16 = vperm.slane %v4551_v35, %v12509_v3  ;;  %v3717_v51 = vsel %vm584_vm2, %v3716_v60, %v16091_v8  ;;  %v4419_v56 = vsel %vm584_vm2, %v23436_v48, %v23435_v23  ;;  %v23438_v61 = vrot.slane %v23437_v40, 4  ;;  %v4639_v35 = vpop.permute.xlu1 %4638  ;;  %v23440_v48 = vld [vmem:[#allocation10_spill] sm:$0xff] }
 0x325   : > { %11404 = vmatpush.xpose.msk.msra.mxu1 %vm6668_vm3, %v3717_v51  ;;  %11644 = vmatpush.xpose.msk.msra.mxu2 %vm6668_vm3, %v3717_v51  ;;  %v3721_v28 = vsel %vm584_vm2, %v3720_v63, %v3679_v45  ;;  %v3723_v60 = vsel %vm584_vm2, %v3703_v62, %v3722_v17  ;;  %v4427_v46 = vperm.slane %v4419_v56, %v12457_v10  ;;  %v23441_v40 = vrot.slane %v23440_v48, 4  ;;  %v16137_v56 = vpop.permute.xlu2 %11808  ;;  %v23444_v48 = vld [vmem:[#allocation147_spill] sm:$0xff] }
 0x326   : > { %v4431_v36 = vsel %vm584_vm2, %v23439_v0, %v23438_v61  ;;  %v4566_v29 = vrot.slane %v4559_v16, 4  ;;  %v23442_v61 = vld [vmem:[#allocation33_spill] sm:$0xff]  ;;  %v22457_v51 = vunpack.i.h.bf16 %v16105_v31  ;;  %v22456_v45 = vunpack.i.l.bf16 %v16105_v31  ;;  %11440 = vmatpush.xpose.msk.msrb.mxu3 %vm6668_vm3, %v3721_v28  ;;  %11458 = vmatpush.xpose.msk.msrb.mxu0 %vm6668_vm3, %v3723_v60 }
 0x327   : > { %v4439_v23 = vperm.slane %v4431_v36, %v12457_v10  ;;  %v4443_v0 = vsel %vm584_vm2, %v23442_v61, %v23441_v40  ;;  %v4464_v62 = vrot.slane %v4427_v46, 4  ;;  %v5686_v17 = vrot.slane %v4639_v35, 4  ;;  %v23443_v36 = vld [vmem:[#allocation156_spill] sm:$0xff] }
 0x328   : > { %v4567_v63 = vsel %vm584_vm2, 0.0, %v4566_v29  ;;  %11405 = vmatmul.msk.f32.vlgmr.msra.gmra.mxu1 %vm6668_vm3, %v23443_v36  ;;  %11410 = vmatmul.msk.f32.vlgmr.msra.gmra.mxu2 %vm6668_vm3, %v23444_v48  ;;  %v16145_v40 = vrot.slane %v22457_v51, 4  ;;  %v16149_v28 = vrot.slane %v22456_v45, 4  ;;  %v4466_v60 = vrot.slane %v4415_v55, 4  ;;  %v23445_v48 = vld [vmem:[#allocation72_spill] sm:$0xff]  ;;  %v23446_v51 = vld [vmem:[#allocation74_spill] sm:$0xff] }
 0x329   : > { %11414 = vmatpush.xpose.msk.msrb.mxu2 %vm6668_vm3, %v4561_v11  ;;  %11468 = vmatpush.xpose.msk.msrb.mxu1 %vm6668_vm3, %v16098_v6  ;;  %v4451_v11 = vperm.slane %v4443_v0, %v12457_v10  ;;  %v4490_v61 = vrot.slane %v4439_v23, 4  ;;  %v4465_v35 = vsel %vm584_vm2, %v4464_v62, %v4415_v55  ;;  %v5687_v0 = vsel %vm584_vm2, %v5686_v17, %v15257_v13 }
 0x32a   : > { %11504 = vmatpush.xpose.msk.msra.mxu3 %vm6668_vm3, %v4559_v16  ;;  %11522 = vmatpush.xpose.msk.msra.mxu0 %vm6668_vm3, %v4567_v63  ;;  %v4390_v36 = vrot.slane %v15318_v44, 4  ;;  %v16161_v45 = vperm.slane %v4465_v35, %v12509_v3  ;;  %v5691_v16 = vperm.slane %v5687_v0, %v12457_v10  ;;  %v4467_v55 = vsel %vm584_vm2, %v4427_v46, %v4466_v60 }
 0x32b   : > { %v4488_v29 = vrot.slane %v4451_v11, 4  ;;  %11441 = vmatmul.msk.f32.vlgmr.msrb.gmra.mxu3 %vm6668_vm3, %v23445_v48  ;;  %v11811_v62 = vunpack.i.h.bf16 %v16137_v56  ;;  %11459 = vmatmul.msk.f32.vlgmr.msrb.gmra.mxu0 %vm6668_vm3, %v23446_v51  ;;  %v4475_v13 = vperm.slane %v4467_v55, %v12509_v3  ;;  %v4491_v44 = vsel %vm584_vm2, %v4451_v11, %v4490_v61 }
 0x32c   : > { %v5704_v35 = vrot.slane %v5691_v16, 4  ;;  %v4499_v46 = vperm.slane %v4491_v44, %v12509_v3  ;;  %v23447_v60 = vrot.slane %v15233_v34, 4  ;;  %v23450_v0 = vrot.slane %v14954_v9, 4 }
 0x32d   : > { %11415 = vmatpush.xpose.msk.msrb.mxu2 %vm6668_vm3, %v4503_v37  ;;  %v4489_v63 = vsel %vm584_vm2, %v4488_v29, %v4439_v23  ;;  %v4391_v37 = vsel %vm584_vm2, %v15313_v4, %v4390_v36  ;;  %v23448_v29 = vrot.slane %v15239_v25, 4  ;;  %v23449_v4 = vrot.slane %v15255_v53, 4 }
 0x32e   : > { %v16174_v17 = vperm.slane %v4489_v63, %v12509_v3  ;;  %v4295_v23 = vsel %vm584_vm2, %v15249_v33, %v23447_v60  ;;  %v4331_v34 = vsel %vm584_vm2, %v14934_v24, %v23450_v0  ;;  %v23451_v33 = vld [vmem:[#allocation176_spill] sm:$0xff]  ;;  %v4512_v16 = vrot.slane %v4499_v46, 4 }
 0x32f   : > { %v4303_v51 = vperm.slane %v4295_v23, %v12457_v10  ;;  %v4307_v11 = vsel %vm584_vm2, %v14946_v26, %v23448_v29  ;;  %v4319_v61 = vsel %vm584_vm2, %v14958_v14, %v23449_v4  ;;  %v23452_v48 = vperm.slane %v23451_v33, %v12457_v10 }
 0x330   : > { %v4508_v36 = vrot.slane %v16174_v17, 4  ;;  %v4315_v26 = vperm.slane %v4307_v11, %v12457_v10  ;;  %v4327_v9 = vperm.slane %v4319_v61, %v12457_v10  ;;  %v4339_v14 = vperm.slane %v4331_v34, %v12457_v10 }
 0x331   : > { %v5705_v25 = vsel %vm584_vm2, %v5704_v35, %v23452_v48  ;;  %11416 = vmatpush.xpose.msk.msrb.mxu2 %vm6668_vm3, %v4391_v37  ;;  %v4514_v24 = vrot.slane %v4475_v13, 4  ;;  %v4513_v63 = vsel %vm584_vm2, %v4512_v16, %v4475_v13  ;;  %v23454_v35 = vld [vmem:[#allocation36_spill] sm:$0xff]  ;;  %v23455_v37 = vld [vmem:[#allocation83_spill] sm:$0xff]  ;;  %v4354_v60 = vrot.slane %v4303_v51, 4 }
 0x332   : > { %v16202_v53 = vperm.slane %v5705_v25, %v12509_v3  ;;  %v4509_v55 = vsel %vm584_vm2, %v4508_v36, %v16161_v45  ;;  %v4352_v44 = vrot.slane %v4315_v26, 4  ;;  %11406 = vmatmul.msk.f32.gmra.mxu1 %vm6668_vm3, %v23454_v35  ;;  %11411 = vmatmul.msk.f32.gmra.mxu2 %vm6668_vm3, %v23455_v37  ;;  %v4376_v29 = vrot.slane %v4339_v14, 4  ;;  %v23456_v36 = vld [vmem:[#allocation96_spill] sm:$0xff] }
 0x333   : > { %11469 = vmatpush.xpose.msk.msrb.mxu1 %vm6668_vm3, %v4509_v55  ;;  %11505 = vmatpush.xpose.msk.msra.mxu3 %vm6668_vm3, %v4513_v63  ;;  %v4515_v11 = vsel %vm584_vm2, %v4499_v46, %v4514_v24  ;;  %v4378_v4 = vrot.slane %v4327_v9, 4  ;;  %v4355_v61 = vsel %vm584_vm2, %v4315_v26, %v4354_v60  ;;  %v5368_v0 = vrot.slane %v11811_v62, 4  ;;  %v23457_v25 = vld [vmem:[#allocation112_spill] sm:$0xff] }
 0x334   : > { %23453 = vst [vmem:[#allocation30_spill] sm:$0xff] %v16202_v53  ;;  %v4353_v13 = vsel %vm584_vm2, %v4352_v44, %v4303_v51  ;;  %11523 = vmatpush.xpose.msk.msra.mxu0 %vm6668_vm3, %v4515_v11  ;;  %v11810_v34 = vunpack.i.l.bf16 %v16137_v56  ;;  %11442 = vmatmul.msk.f32.gmra.mxu3 %vm6668_vm3, %v23456_v36  ;;  %v4377_v46 = vsel %vm584_vm2, %v4376_v29, %v4327_v9  ;;  %v4278_v55 = vrot.slane %v15366_v58, 4  ;;  %v23461_v37 = vld [vmem:[#allocation24_spill] sm:$0xff]  ;;  %v23462_v29 = vld [vmem:[#allocation25_spill] sm:$0xff] }
 0x335   : > { %v16226_v33 = vperm.slane %v4353_v13, %v12509_v3  ;;  %v4363_v48 = vperm.slane %v4355_v61, %v12509_v3  ;;  %v4379_v51 = vsel %vm584_vm2, %v4339_v14, %v4378_v4  ;;  %11460 = vmatmul.msk.f32.gmra.mxu0 %vm6668_vm3, %v23457_v25  ;;  %v16234_v16 = vperm.slane %v4377_v46, %v12509_v3  ;;  %v23464_v4 = vld [vmem:[#allocation119_spill] sm:$0xff]  ;;  %v11769_v13 = vpop.permute.xlu1 %11768 }
 0x336   : > { %v4387_v26 = vperm.slane %v4379_v51, %v12509_v3  ;;  %v5256_v24 = vrot.slane %v11810_v34, 4  ;;  %v23458_v63 = vrot.slane %v15285_v19, 4  ;;  %v23459_v44 = vrot.slane %v15292_v54, 4 }
 0x337   : > { %v23460_v35 = vrot.slane %v15304_v52, 4  ;;  %v23463_v11 = vrot.slane %v23462_v29, 4  ;;  %v4396_v19 = vrot.slane %v16234_v16, 4  ;;  %v4279_v54 = vsel %vm584_vm2, %v15372_v50, %v4278_v55  ;;  %v23466_v50 = vld [vmem:[#allocation53_spill] sm:$0xff] }
 0x338   : > { %v4183_v9 = vsel %vm584_vm2, %v15298_v1, %v23458_v63  ;;  %v4195_v14 = vsel %vm584_vm2, %v14647_v7, %v23459_v44  ;;  %v4400_v61 = vrot.slane %v4387_v26, 4  ;;  %11417 = vmatpush.xpose.msk.msrb.mxu2 %vm6668_vm3, %v4279_v54  ;;  %v4402_v46 = vrot.slane %v4363_v48, 4 }
 0x339   : > { %v4207_v60 = vsel %vm584_vm2, %v23461_v37, %v23460_v35  ;;  %v4219_v58 = vsel %vm584_vm2, %v23464_v4, %v23463_v11  ;;  %v4191_v1 = vperm.slane %v4183_v9, %v12457_v10  ;;  %v4203_v7 = vperm.slane %v4195_v14, %v12457_v10  ;;  %v23465_v35 = vld [vmem:[#allocation107_spill] sm:$0xff] }
 0x33a   : > { %v4215_v52 = vperm.slane %v4207_v60, %v12457_v10  ;;  %v4227_v36 = vperm.slane %v4219_v58, %v12457_v10  ;;  %v4397_v51 = vsel %vm584_vm2, %v4396_v19, %v16226_v33  ;;  %v4401_v25 = vsel %vm584_vm2, %v4400_v61, %v4363_v48  ;;  %11407 = vmatmul.msk.f32.gmra.mxu1 %vm6668_vm3, %v23465_v35  ;;  %v23467_v4 = vld [vmem:[#allocation63_spill] sm:$0xff]  ;;  %v23469_v61 = vld [vmem:[#allocation121_spill] sm:$0xff]  ;;  %v16306_v35 = vpop.permute.xlu0 %4656 }
 0x33b   : > { %v11771_v63 = vunpack.i.h.bf16 %v11769_v13  ;;  %v11770_v44 = vunpack.i.l.bf16 %v11769_v13  ;;  %11412 = vmatmul.msk.f32.gmra.mxu2 %vm6668_vm3, %v23466_v50  ;;  %11470 = vmatpush.xpose.msk.msrb.mxu1 %vm6668_vm3, %v4397_v51  ;;  %v4240_v55 = vrot.slane %v4203_v7, 4  ;;  %v4403_v14 = vsel %vm584_vm2, %v4387_v26, %v4402_v46 }
 0x33c   : > { %11506 = vmatpush.xpose.msk.msra.mxu3 %vm6668_vm3, %v4401_v25  ;;  %v4264_v9 = vrot.slane %v4227_v36, 4  ;;  %v4242_v37 = vrot.slane %v4191_v1, 4  ;;  %11524 = vmatpush.xpose.msk.msra.mxu0 %vm6668_vm3, %v4403_v14  ;;  %v4266_v50 = vrot.slane %v4215_v52, 4  ;;  %v4166_v56 = vrot.slane %v15562_v27, 4 }
 0x33d   : > { %v5370_v48 = vrot.slane %v11771_v63, 4  ;;  %v5257_v60 = vsel %vm584_vm2, %v5256_v24, %v11770_v44  ;;  %v5258_v29 = vrot.slane %v11770_v44, 4  ;;  %v5369_v11 = vsel %vm584_vm2, %v5368_v0, %v11771_v63  ;;  %11443 = vmatmul.msk.f32.gmra.mxu3 %vm6668_vm3, %v23467_v4  ;;  %11461 = vmatmul.msk.f32.gmra.mxu0 %vm6668_vm3, %v23469_v61  ;;  %v23476_v61 = vld [vmem:[#allocation5_spill] sm:$0xff]  ;;  %v23500_v63 = vld [vmem:[#allocation66_spill] sm:$0xff] }
 0x33e   : > { %v4241_v58 = vsel %vm584_vm2, %v4240_v55, %v4191_v1  ;;  %v4265_v13 = vsel %vm584_vm2, %v4264_v9, %v4215_v52  ;;  %v16280_v19 = vperm.slane %v5257_v60, %v12457_v10  ;;  %v16283_v26 = vperm.slane %v5369_v11, %v12457_v10  ;;  %v16323_v52 = vpop.permute.xlu2 %11818 }
 0x33f   : > { %v16288_v24 = vperm.slane %v4241_v58, %v12509_v3  ;;  %v16291_v0 = vperm.slane %v4265_v13, %v12509_v3  ;;  %v5259_v54 = vsel %vm584_vm2, %v11810_v34, %v5258_v29  ;;  %v5371_v1 = vsel %vm584_vm2, %v11811_v62, %v5370_v48 }
 0x340   : > { %23468 = vst [vmem:[#allocation142_spill] sm:$0xff] %v16280_v19  ;;  %v16298_v46 = vperm.slane %v5259_v54, %v12457_v10  ;;  %v16302_v25 = vperm.slane %v5371_v1, %v12457_v10  ;;  %v4243_v34 = vsel %vm584_vm2, %v4203_v7, %v4242_v37  ;;  %v23472_v14 = vrot.slane %v15458_v42, 4 }
 0x341   : > { %v4284_v44 = vrot.slane %v16291_v0, 4  ;;  %v4251_v9 = vperm.slane %v4243_v34, %v12509_v3  ;;  %v4267_v29 = vsel %vm584_vm2, %v4227_v36, %v4266_v50  ;;  %v4167_v7 = vsel %vm584_vm2, %v15569_v21, %v4166_v56 }
 0x342   : > { %23470 = vst [vmem:[#allocation171_spill] sm:$0xff] %v16298_v46  ;;  %v4071_v48 = vsel %vm584_vm2, %v15482_v32, %v23472_v14  ;;  %v4275_v37 = vperm.slane %v4267_v29, %v12509_v3  ;;  %11418 = vmatpush.xpose.msk.msrb.mxu2 %vm6668_vm3, %v4167_v7  ;;  %v23473_v42 = vrot.slane %v15476_v41, 4  ;;  %v23474_v36 = vrot.slane %v15499_v57, 4 }
 0x343   : > { %23471 = vst [vmem:[#allocation11_spill] sm:$0xff] %v16302_v25  ;;  %v4285_v60 = vsel %vm584_vm2, %v4284_v44, %v16288_v24  ;;  %v4079_v27 = vperm.slane %v4071_v48, %v12457_v10  ;;  %v4290_v11 = vrot.slane %v4251_v9, 4  ;;  %v23475_v13 = vrot.slane %v23283_v2, 4 }
 0x344   : > { %11471 = vmatpush.xpose.msk.msrb.mxu1 %vm6668_vm3, %v4285_v60  ;;  %v4083_v32 = vsel %vm584_vm2, %v14989_v38, %v23473_v42  ;;  %v4095_v21 = vsel %vm584_vm2, %v23281_v12, %v23474_v36  ;;  %v4288_v41 = vrot.slane %v4275_v37, 4  ;;  %v11821_v57 = vunpack.i.h.bf16 %v16323_v52  ;;  %v23477_v42 = vld [vmem:[#allocation67_spill] sm:$0xff] }
 0x345   : > { %v4091_v4 = vperm.slane %v4083_v32, %v12457_v10  ;;  %v4103_v58 = vperm.slane %v4095_v21, %v12457_v10  ;;  %v4107_v54 = vsel %vm584_vm2, %v23476_v61, %v23475_v13  ;;  %v4130_v1 = vrot.slane %v4079_v27, 4  ;;  %v23478_v21 = vld [vmem:[#allocation109_spill] sm:$0xff] }
 0x346   : > { %v4115_v44 = vperm.slane %v4107_v54, %v12457_v10  ;;  %v4291_v38 = vsel %vm584_vm2, %v4275_v37, %v4290_v11  ;;  %v11820_v56 = vunpack.i.l.bf16 %v16323_v52  ;;  %v4289_v2 = vsel %vm584_vm2, %v4288_v41, %v4251_v9  ;;  %v23482_v41 = vld [vmem:[#allocation7_spill] sm:$0xff] }
 0x347   : > { %v4128_v34 = vrot.slane %v4091_v4, 4  ;;  %11525 = vmatpush.xpose.msk.msra.mxu0 %vm6668_vm3, %v4291_v38  ;;  %v4131_v12 = vsel %vm584_vm2, %v4091_v4, %v4130_v1  ;;  %v4154_v50 = vrot.slane %v4103_v58, 4  ;;  %v4932_v60 = vrot.slane %v11821_v57, 4  ;;  %11507 = vmatpush.xpose.msk.msra.mxu3 %vm6668_vm3, %v4289_v2  ;;  %v23480_v4 = vld [vmem:[#allocation14_spill] sm:$0xff]  ;;  %v23484_v38 = vld [vmem:[#allocation41_spill] sm:$0xff]  ;;  %v23485_v2 = vld [vmem:[#allocation23_spill] sm:$0xff] }
 0x348   : > { %v4152_v14 = vrot.slane %v4115_v44, 4  ;;  %v4139_v48 = vperm.slane %v4131_v12, %v12509_v3  ;;  %v4820_v37 = vrot.slane %v11820_v56, 4  ;;  %v4054_v32 = vrot.slane %v23477_v42, 4  ;;  %v23488_v42 = vld [vmem:[#allocation78_spill] sm:$0xff] }
 0x349   : > { %v4129_v29 = vsel %vm584_vm2, %v4128_v34, %v4079_v27  ;;  %v4155_v7 = vsel %vm584_vm2, %v4115_v44, %v4154_v50  ;;  %v23479_v11 = vrot.slane %v23478_v21, 4  ;;  %v23481_v27 = vld [vmem:[#allocation166_spill] sm:$0xff]  ;;  %v23483_v44 = vrot.slane %v23482_v41, 4  ;;  %v16373_v34 = vpop.permute.xlu0 %11788 }
 0x34a   : > { %v16355_v36 = vperm.slane %v4129_v29, %v12509_v3  ;;  %v4153_v52 = vsel %vm584_vm2, %v4152_v14, %v4103_v58  ;;  %v4163_v9 = vperm.slane %v4155_v7, %v12509_v3  ;;  %v4055_v54 = vsel %vm584_vm2, %v23481_v27, %v4054_v32  ;;  %v23487_v29 = vld [vmem:[#allocation161_spill] sm:$0xff] }
 0x34b   : > { %v3959_v13 = vsel %vm584_vm2, %v23480_v4, %v23479_v11  ;;  %v16364_v61 = vperm.slane %v4153_v52, %v12509_v3  ;;  %v3971_v58 = vsel %vm584_vm2, %v23484_v38, %v23483_v44  ;;  %11419 = vmatpush.xpose.msk.msrb.mxu2 %vm6668_vm3, %v4055_v54  ;;  %v23486_v14 = vrot.slane %v23485_v2, 4  ;;  %v23490_v52 = vld [vmem:[#allocation92_spill] sm:$0xff]  ;;  %v11779_v11 = vpop.permute.xlu1 %11778 }
 0x34c   : > { %v3967_v1 = vperm.slane %v3959_v13, %v12457_v10  ;;  %v4176_v12 = vrot.slane %v4163_v9, 4  ;;  %v3979_v50 = vperm.slane %v3971_v58, %v12457_v10  ;;  %v23489_v32 = vrot.slane %v23488_v42, 4 }
 0x34d   : > { %v3983_v7 = vsel %vm584_vm2, %v23487_v29, %v23486_v14  ;;  %v4172_v4 = vrot.slane %v16364_v61, 4  ;;  %v4178_v54 = vrot.slane %v4139_v48, 4  ;;  %v22459_v38 = vunpack.i.h.bf16 %v16373_v34 }
 0x34e   : > { %v3995_v21 = vsel %vm584_vm2, %v23490_v52, %v23489_v32  ;;  %v3991_v13 = vperm.slane %v3983_v7, %v12457_v10  ;;  %v4177_v41 = vsel %vm584_vm2, %v4176_v12, %v4139_v48  ;;  %v4016_v44 = vrot.slane %v3979_v50, 4 }
 0x34f   : > { %v4003_v27 = vperm.slane %v3995_v21, %v12457_v10  ;;  %v22458_v58 = vunpack.i.l.bf16 %v16373_v34  ;;  %v4173_v2 = vsel %vm584_vm2, %v4172_v4, %v16355_v36  ;;  %11508 = vmatpush.xpose.msk.msra.mxu3 %vm6668_vm3, %v4177_v41  ;;  %v4179_v29 = vsel %vm584_vm2, %v4163_v9, %v4178_v54 }
 0x350   : > { %v11781_v42 = vunpack.i.h.bf16 %v11779_v11  ;;  %11472 = vmatpush.xpose.msk.msrb.mxu1 %vm6668_vm3, %v4173_v2  ;;  %v4017_v7 = vsel %vm584_vm2, %v4016_v44, %v3967_v1  ;;  %11526 = vmatpush.xpose.msk.msra.mxu0 %vm6668_vm3, %v4179_v29  ;;  %v16400_v48 = vrot.slane %v22459_v38, 4  ;;  %v11780_v32 = vunpack.i.l.bf16 %v11779_v11  ;;  %v23505_v38 = vld [vmem:[#allocation125_spill] sm:$0xff] }
 0x351   : > { %v4040_v14 = vrot.slane %v4003_v27, 4  ;;  %v16404_v12 = vrot.slane %v22458_v58, 4  ;;  %v16407_v52 = vperm.slane %v4017_v7, %v12509_v3  ;;  %v4018_v7 = vrot.slane %v3967_v1, 4 }
 0x352   : > { %v4934_v21 = vrot.slane %v11781_v42, 4  ;;  %v4933_v4 = vsel %vm584_vm2, %v4932_v60, %v11781_v42  ;;  %v4821_v41 = vsel %vm584_vm2, %v4820_v37, %v11780_v32  ;;  %v4822_v44 = vrot.slane %v11780_v32, 4 }
 0x353   : > { %v4041_v9 = vsel %vm584_vm2, %v4040_v14, %v3991_v13  ;;  %v16416_v2 = vperm.slane %v4933_v4, %v12457_v10  ;;  %v16419_v29 = vperm.slane %v4821_v41, %v12457_v10  ;;  %v4042_v55 = vrot.slane %v3991_v13, 4 }
 0x354   : > { %v16412_v54 = vperm.slane %v4041_v9, %v12509_v3  ;;  %v4935_v11 = vsel %vm584_vm2, %v11821_v57, %v4934_v21  ;;  %v4823_v60 = vsel %vm584_vm2, %v11820_v56, %v4822_v44  ;;  %v4019_v4 = vsel %vm584_vm2, %v3979_v50, %v4018_v7  ;;  %v23493_v50 = vld [vmem:[#allocation172_spill] sm:$0xff] }
 0x355   : > { %v16425_v42 = vperm.slane %v4935_v11, %v12457_v10  ;;  %v16429_v32 = vperm.slane %v4823_v60, %v12457_v10  ;;  %v4043_v57 = vsel %vm584_vm2, %v4003_v27, %v4042_v55  ;;  %v4027_v56 = vperm.slane %v4019_v4, %v12509_v3  ;;  %v23491_v11 = vld [vmem:[#allocation158_spill] sm:$0xff]  ;;  %v23494_v27 = vld [vmem:[#allocation111_spill] sm:$0xff] }
 0x356   : > { %v4060_v14 = vrot.slane %v16412_v54, 4  ;;  %v4051_v21 = vperm.slane %v4043_v57, %v12509_v3  ;;  %v3942_v44 = vrot.slane %v15812_v43, 4  ;;  %v23492_v60 = vrot.slane %v23491_v11, 4  ;;  %v23499_v43 = vld [vmem:[#allocation16_spill] sm:$0xff] }
 0x357   : > { %v23495_v7 = vrot.slane %v23494_v27, 4  ;;  %v23501_v27 = vld [vmem:[#allocation34_spill] sm:$0xff]  ;;  %v4066_v58 = vrot.slane %v4027_v56, 4 }
 0x358   : > { %v4061_v1 = vsel %vm584_vm2, %v4060_v14, %v16407_v52  ;;  %v3847_v55 = vsel %vm584_vm2, %v23493_v50, %v23492_v60  ;;  %v23496_v14 = vld [vmem:[#allocation103_spill] sm:$0xff]  ;;  %v4064_v23 = vrot.slane %v4051_v21, 4  ;;  %v3943_v60 = vsel %vm584_vm2, %v23500_v63, %v3942_v44 }
 0x359   : > { %11473 = vmatpush.xpose.msk.msrb.mxu1 %vm6668_vm3, %v4061_v1  ;;  %v3859_v51 = vsel %vm584_vm2, %v23496_v14, %v23495_v7  ;;  %v16451_v4 = vperm.slane %v3847_v55, %v12457_v10  ;;  %v23497_v1 = vld [vmem:[#allocation80_spill] sm:$0xff]  ;;  %v23502_v7 = vrot.slane %v23501_v27, 4  ;;  %v23503_v14 = vld [vmem:[#allocation13_spill] sm:$0xff]  ;;  %11420 = vmatpush.xpose.msk.msrb.mxu2 %vm6668_vm3, %v3943_v60  ;;  %v23506_v63 = vrot.slane %v23505_v38, 4  ;;  %v23509_v60 = vld [vmem:[#allocation47_spill] sm:$0xff] }
 0x35a   : > { %v16454_v57 = vperm.slane %v3859_v51, %v12457_v10  ;;  %v23498_v62 = vrot.slane %v23497_v1, 4  ;;  %v4065_v51 = vsel %vm584_vm2, %v4064_v23, %v4027_v56  ;;  %v23508_v56 = vld [vmem:[#allocation126_spill] sm:$0xff] }
 0x35b   : > { %v3883_v55 = vsel %vm584_vm2, %v23503_v14, %v23502_v7  ;;  %11509 = vmatpush.xpose.msk.msra.mxu3 %vm6668_vm3, %v4065_v51  ;;  %v23507_v7 = vld [vmem:[#allocation50_spill] sm:$0xff]  ;;  %v23510_v14 = vrot.slane %v23509_v60, 4  ;;  %v23512_v51 = vrot.slane %v23508_v56, 4 }
 0x35c   : > { %v3871_v11 = vsel %vm584_vm2, %v23499_v43, %v23498_v62  ;;  %v3891_v1 = vperm.slane %v3883_v55, %v12457_v10  ;;  %v3904_v62 = vrot.slane %v16454_v57, 4  ;;  %v23504_v43 = vld [vmem:[#allocation122_spill] sm:$0xff]  ;;  %v999_v23 = vperm.slane %v23507_v7, %v12509_v3 }
 0x35d   : > { %v16463_v50 = vperm.slane %v3871_v11, %v12457_v10  ;;  %v969_v44 = vsel %vm584_vm2, %v23506_v63, %v23504_v43  ;;  %v4067_v11 = vsel %vm584_vm2, %v4051_v21, %v4066_v58  ;;  %v16486_v55 = vsel %vm584_vm2, %v23510_v14, %v23508_v56  ;;  %v23514_v21 = vld [vmem:[#allocation127_spill] sm:$0xff]  ;;  %v23515_v43 = vld [vmem:[#allocation132_spill] sm:$0xff] }
 0x35e   : > { %v975_v27 = vperm.slane %v969_v44, %v12509_v3  ;;  %23511 = vst [vmem:[#allocation3_spill] sm:$0xff] %v16486_v55  ;;  %v3905_v38 = vsel %vm584_vm2, %v3904_v62, %v16451_v4  ;;  %v3928_v9 = vrot.slane %v3891_v1, 4  ;;  %11527 = vmatpush.xpose.msk.msra.mxu0 %vm6668_vm3, %v4067_v11  ;;  %v16495_v58 = vsel %vm584_vm2, %v23509_v60, %v23512_v51  ;;  %v23521_v60 = vld [vmem:[#allocation19_spill] sm:$0xff] }
 0x35f   : > { %23513 = vst [vmem:[#allocation35_spill] sm:$0xff] %v16495_v58  ;;  %v23516_v63 = vrot.slane %v23515_v43, 4  ;;  %v16504_v7 = vperm.slane %v3905_v38, %v12509_v3  ;;  %v1016_v14 = vrot.slane %v999_v23, 4  ;;  %v23519_v37 = vrot.slane %v23514_v21, 4  ;;  %v23522_v51 = vld [vmem:[#allocation131_spill] sm:$0xff] }
 0x360   : > { %v1018_v62 = vrot.slane %v975_v27, 4  ;;  %v3929_v56 = vsel %vm584_vm2, %v3928_v9, %v16463_v50  ;;  %v23523_v41 = vrot.slane %v23522_v51, 4  ;;  %v1856_v38 = vrot.slane %v16486_v55, 4  ;;  %v23533_v51 = vld [vmem:[#allocation42_spill] sm:$0xff] }
 0x361   : > { %v16501_v44 = vsel %vm584_vm2, %v23516_v63, %v23514_v21  ;;  %23518 = vst [vmem:[#allocation177_spill] sm:$0xff] %v16504_v7  ;;  %v16510_v11 = vsel %vm584_vm2, %v23515_v43, %v23519_v37  ;;  %v1868_v13 = vrot.slane %v16495_v58, 4  ;;  %v16523_v25 = vperm.slane %v3929_v56, %v12509_v3  ;;  %v16550_v58 = vpop.permute.xlu2 %11833 }
 0x362   : > { %23517 = vst [vmem:[#allocation178_spill] sm:$0xff] %v16501_v44  ;;  %v16518_v63 = vsel %vm584_vm2, %v23523_v41, %v23521_v60  ;;  %v16526_v21 = vsel %vm584_vm2, %v1016_v14, %v975_v27  ;;  %v16529_v37 = vsel %vm584_vm2, %v999_v23, %v1018_v62  ;;  %v23528_v41 = vld [vmem:[#allocation133_spill] sm:$0xff] }
 0x363   : > { %23520 = vst [vmem:[#allocation12_spill] sm:$0xff] %v16510_v11  ;;  %v1880_v9 = vrot.slane %v16518_v63, 4  ;;  %v1857_v43 = vsel %vm584_vm2, %v1856_v38, %v16526_v21  ;;  %v1869_v60 = vsel %vm584_vm2, %v1868_v13, %v16529_v37  ;;  %v3948_v56 = vrot.slane %v16523_v25, 4 }
 0x364   : > { %23524 = vst [vmem:[#allocation179_spill] sm:$0xff] %v16518_v63  ;;  %v1863_v27 = vperm.slane %v1857_v43, %v12457_v10  ;;  %v1875_v14 = vperm.slane %v1869_v60, %v12457_v10  ;;  %v23529_v63 = vrot.slane %v23528_v41, 4  ;;  %v1515_v41 = vperm.slane %v23533_v51, %v12509_v3 }
 0x365   : > { %23525 = vst [vmem:[#allocation173_spill] sm:$0xff] %v16523_v25  ;;  %v1881_v23 = vsel %vm584_vm2, %v1880_v9, %v16501_v44  ;;  %v3949_v43 = vsel %vm584_vm2, %v3948_v56, %v16504_v7  ;;  %v23530_v9 = vld [vmem:[#allocation108_spill] sm:$0xff]  ;;  %v3930_v56 = vrot.slane %v16463_v50, 4 }
 0x366   : > { %23526 = vst [vmem:[#allocation10_spill] sm:$0xff] %v16526_v21  ;;  %v1887_v38 = vperm.slane %v1881_v23, %v12457_v10  ;;  %v1893_v13 = vsel %vm584_vm2, %v23529_v63, %v16510_v11  ;;  %v23531_v62 = vperm.slane %v23530_v9, %v12457_v10  ;;  %v23532_v44 = vld [vmem:[#allocation116_spill] sm:$0xff]  ;;  %11474 = vmatpush.xpose.msk.msrb.mxu1 %vm6668_vm3, %v3949_v43  ;;  %v3906_v11 = vrot.slane %v16451_v4, 4 }
 0x367   : > { %23527 = vst [vmem:[#allocation33_spill] sm:$0xff] %v16529_v37  ;;  %v1899_v60 = vperm.slane %v1893_v13, %v12457_v10  ;;  %v1904_v37 = vrot.slane %v1875_v14, 4  ;;  %v22470_v21 = vunpack.i.h.bf16 %v16550_v58  ;;  %v3931_v50 = vsel %vm584_vm2, %v3891_v1, %v3930_v56 }
 0x368   : > { %v1505_v23 = vsel %vm584_vm2, %v23532_v44, %v23531_v62  ;;  %v1516_v62 = vrot.slane %v1515_v41, 4 }
 0x369   : > { %v1509_v63 = vperm.slane %v1505_v23, %v12509_v3  ;;  %v1905_v13 = vsel %vm584_vm2, %v1904_v37, %v1863_v27  ;;  %v1928_v55 = vrot.slane %v1899_v60, 4  ;;  %v3907_v23 = vsel %vm584_vm2, %v16454_v57, %v3906_v11  ;;  %v23543_v11 = vld [vmem:[#allocation104_spill] sm:$0xff] }
 0x36a   : > { %v16570_v44 = vperm.slane %v1905_v13, %v12509_v3  ;;  %v3915_v4 = vperm.slane %v3907_v23, %v12509_v3  ;;  %v16579_v37 = vrot.slane %v22470_v21, 4  ;;  %v3939_v57 = vperm.slane %v3931_v50, %v12509_v3  ;;  %v23541_v21 = vld [vmem:[#allocation52_spill] sm:$0xff] }
 0x36b   : > { %v1518_v43 = vrot.slane %v1509_v63, 4  ;;  %v1929_v51 = vsel %vm584_vm2, %v1928_v55, %v1887_v38  ;;  %v16585_v13 = vsel %vm584_vm2, %v1516_v62, %v1509_v63  ;;  %v3830_v23 = vrot.slane %v15860_v30, 4 }
 0x36c   : > { %23534 = vst [vmem:[#allocation156_spill] sm:$0xff] %v16570_v44  ;;  %v16582_v9 = vperm.slane %v1929_v51, %v12509_v3  ;;  %v16594_v1 = vperm.slane %v16585_v13, %v12457_v10  ;;  %v3952_v62 = vrot.slane %v3939_v57, 4  ;;  %v1906_v50 = vrot.slane %v1863_v27, 4 }
 0x36d   : > { %23536 = vst [vmem:[#allocation72_spill] sm:$0xff] %v16585_v13  ;;  %v16588_v25 = vsel %vm584_vm2, %v1515_v41, %v1518_v43  ;;  %v23540_v41 = vunpack.i.l.bf16 %v16550_v58  ;;  %v1930_v55 = vrot.slane %v1887_v38, 4  ;;  %v23542_v13 = vrot.slane %v23541_v21, 4 }
 0x36e   : > { %23535 = vst [vmem:[#allocation147_spill] sm:$0xff] %v16582_v9  ;;  %v16599_v56 = vperm.slane %v16588_v25, %v12457_v10  ;;  %v1952_v63 = vrot.slane %v16582_v9, 4  ;;  %v3953_v9 = vsel %vm584_vm2, %v3952_v62, %v3915_v4  ;;  %v1907_v21 = vsel %vm584_vm2, %v1875_v14, %v1906_v50  ;;  %v16640_v62 = vpop.permute.xlu1 %11793  ;;  %v23551_v50 = vld [vmem:[#allocation167_spill] sm:$0xff] }
 0x36f   : > { %23537 = vst [vmem:[#allocation74_spill] sm:$0xff] %v16588_v25  ;;  %v16604_v43 = vrot.slane %v23540_v41, 4  ;;  %v3735_v7 = vsel %vm584_vm2, %v23543_v11, %v23542_v13  ;;  %v3831_v41 = vsel %vm584_vm2, %v15871_v15, %v3830_v23  ;;  %11510 = vmatpush.xpose.msk.msra.mxu3 %vm6668_vm3, %v3953_v9  ;;  %v1931_v27 = vsel %vm584_vm2, %v1899_v60, %v1930_v55  ;;  %v11799_v13 = vpop.permute.xlu0 %11798  ;;  %v23547_v9 = vld [vmem:[#allocation165_spill] sm:$0xff]  ;;  %v23550_v23 = vld [vmem:[#allocation168_spill] sm:$0xff] }
 0x370   : > { %23538 = vst [vmem:[#allocation176_spill] sm:$0xff] %v16594_v1  ;;  %v2436_v51 = vrot.slane %v16599_v56, 4  ;;  %v1953_v25 = vsel %vm584_vm2, %v1952_v63, %v16570_v44  ;;  %v16618_v19 = vperm.slane %v3735_v7, %v12457_v10  ;;  %v3954_v38 = vrot.slane %v3915_v4, 4  ;;  %11421 = vmatpush.xpose.msk.msrb.mxu2 %vm6668_vm3, %v3831_v41  ;;  %v23545_v7 = vld [vmem:[#allocation174_spill] sm:$0xff]  ;;  %v23548_v4 = vld [vmem:[#allocation159_spill] sm:$0xff] }
 0x371   : > { %23539 = vst [vmem:[#allocation36_spill] sm:$0xff] %v16599_v56  ;;  %11408 = vmatmul.msk.f32.gmra.mxu1 %vm6668_vm3, %v1953_v25  ;;  %v16631_v15 = vperm.slane %v1907_v21, %v12509_v3  ;;  %v16634_v25 = vperm.slane %v1931_v27, %v12509_v3  ;;  %v23546_v63 = vrot.slane %v23545_v7, 4  ;;  %v23549_v55 = vrot.slane %v23548_v4, 4 }
 0x372   : > { %v2437_v30 = vsel %vm584_vm2, %v2436_v51, %v16594_v1  ;;  %v23552_v41 = vrot.slane %v23551_v50, 4  ;;  %v3955_v27 = vsel %vm584_vm2, %v3939_v57, %v3954_v38  ;;  %v11795_v57 = vunpack.i.l.bf16 %v16640_v62 }
 0x373   : > { %v16627_v11 = vperm.slane %v2437_v30, %v12509_v3  ;;  %v3747_v14 = vsel %vm584_vm2, %v23547_v9, %v23546_v63  ;;  %v3759_v51 = vsel %vm584_vm2, %v23550_v23, %v23549_v55  ;;  %v23553_v30 = vld [vmem:[#allocation31_spill] sm:$0xff]  ;;  %v1956_v7 = vrot.slane %v16634_v25, 4  ;;  %11528 = vmatpush.xpose.msk.msra.mxu0 %vm6668_vm3, %v3955_v27 }
 0x374   : > { %v16643_v60 = vperm.slane %v3747_v14, %v12457_v10  ;;  %v3771_v21 = vsel %vm584_vm2, %v23553_v30, %v23552_v41  ;;  %v16658_v63 = vperm.slane %v3759_v51, %v12457_v10  ;;  %v11801_v14 = vunpack.i.h.bf16 %v11799_v13  ;;  %v23554_v41 = vld [vmem:[#allocation54_spill] sm:$0xff] }
 0x375   : > { %23544 = vst [vmem:[#allocation83_spill] sm:$0xff] %v16627_v11  ;;  %11413 = vmatmul.msk.f32.gmra.mxu2 %vm6668_vm3, %v16627_v11  ;;  %v16661_v9 = vperm.slane %v3771_v21, %v12457_v10  ;;  %v11800_v55 = vunpack.i.l.bf16 %v11799_v13  ;;  %v11796_v23 = vunpack.i.h.bf16 %v16640_v62  ;;  %v1957_v38 = vsel %vm584_vm2, %v1956_v7, %v16631_v15  ;;  %v23555_v13 = vld [vmem:[#allocation180_spill] sm:$0xff] }
 0x376   : > { %v3792_v4 = vrot.slane %v16643_v60, 4  ;;  %v4920_v51 = vrot.slane %v11801_v14, 4  ;;  %v4923_v30 = vsel %vm584_vm2, %v11801_v14, %v23554_v41  ;;  %11444 = vmatmul.msk.f32.gmra.mxu3 %vm6668_vm3, %v1957_v38  ;;  %v23556_v14 = vld [vmem:[#allocation6_spill] sm:$0xff] }
 0x377   : > { %v3816_v50 = vrot.slane %v16661_v9, 4  ;;  %v4808_v27 = vrot.slane %v11800_v55, 4  ;;  %v4811_v11 = vsel %vm584_vm2, %v11800_v55, %v23555_v13  ;;  %v4931_v62 = vperm.slane %v4923_v30, %v12457_v10 }
 0x378   : > { %v3793_v21 = vsel %vm584_vm2, %v3792_v4, %v16618_v19  ;;  %v4819_v1 = vperm.slane %v4811_v11, %v12457_v10  ;;  %v23557_v41 = vunpack.i.h.bf16 %v23556_v14  ;;  %v23558_v44 = vunpack.i.l.bf16 %v23556_v14 }
 0x379   : > { %v16679_v56 = vperm.slane %v3793_v21, %v12509_v3  ;;  %v3817_v7 = vsel %vm584_vm2, %v3816_v50, %v16658_v63  ;;  %v23559_v21 = vrot.slane %v16425_v42, 4  ;;  %v23560_v11 = vrot.slane %v16429_v32, 4 }
 0x37a   : > { %v4921_v38 = vsel %vm584_vm2, %v4920_v51, %v23557_v41  ;;  %v16688_v4 = vperm.slane %v3817_v7, %v12509_v3  ;;  %v4809_v55 = vsel %vm584_vm2, %v4808_v27, %v23558_v44  ;;  %v4870_v51 = vrot.slane %v4819_v1, 4 }
 0x37b   : > { %v4927_v30 = vperm.slane %v4921_v38, %v12457_v10  ;;  %v4981_v13 = vsel %vm584_vm2, %v23559_v21, %v4931_v62  ;;  %v4815_v50 = vperm.slane %v4809_v55, %v12457_v10  ;;  %v4869_v53 = vsel %vm584_vm2, %v23560_v11, %v4819_v1 }
 0x37c   : > { %v4982_v41 = vrot.slane %v4931_v62, 4  ;;  %v3836_v7 = vrot.slane %v16688_v4, 4  ;;  %v16703_v14 = vperm.slane %v4869_v53, %v12509_v3  ;;  %v23562_v44 = vrot.slane %v16416_v2, 4 }
 0x37d   : > { %v4970_v38 = vrot.slane %v4927_v30, 4  ;;  %v23563_v21 = vrot.slane %v16419_v29, 4  ;;  %v4858_v46 = vrot.slane %v4815_v50, 4  ;;  %v4871_v11 = vsel %vm584_vm2, %v16429_v32, %v4870_v51 }
 0x37e   : > { %23561 = vst [vmem:[#allocation96_spill] sm:$0xff] %v16703_v14  ;;  %v4969_v27 = vsel %vm584_vm2, %v23562_v44, %v4927_v30  ;;  %v3837_v53 = vsel %vm584_vm2, %v3836_v7, %v16679_v56  ;;  %v16722_v44 = vperm.slane %v4871_v11, %v12509_v3  ;;  %v4983_v51 = vsel %vm584_vm2, %v16425_v42, %v4982_v41  ;;  %v23569_v11 = vld [vmem:[#allocation148_spill] sm:$0xff] }
 0x37f   : > { %v4857_v55 = vsel %vm584_vm2, %v23563_v21, %v4815_v50  ;;  %v16714_v1 = vperm.slane %v4969_v27, %v12509_v3  ;;  %11475 = vmatpush.xpose.msk.msrb.mxu1 %vm6668_vm3, %v3837_v53  ;;  %v4859_v50 = vsel %vm584_vm2, %v16419_v29, %v4858_v46  ;;  %v4971_v32 = vsel %vm584_vm2, %v16416_v2, %v4970_v38 }
 0x380   : > { %v16719_v62 = vperm.slane %v4857_v55, %v12509_v3  ;;  %23566 = vst [vmem:[#allocation25_spill] sm:$0xff] %v16722_v44  ;;  %v16733_v7 = vperm.slane %v4981_v13, %v12509_v3  ;;  %v16736_v27 = vperm.slane %v4859_v50, %v12509_v3  ;;  %v23570_v53 = vrot.slane %v23569_v11, 4  ;;  %v23600_v11 = vld [vmem:[#allocation152_spill] sm:$0xff] }
 0x381   : > { %23564 = vst [vmem:[#allocation112_spill] sm:$0xff] %v16714_v1  ;;  %v16747_v2 = vperm.slane %v4971_v32, %v12509_v3  ;;  %v16750_v29 = vperm.slane %v4983_v51, %v12509_v3  ;;  %v5606_v38 = vrot.slane %v11796_v23, 4  ;;  %v5493_v50 = vsel %vm584_vm2, %v16604_v43, %v11795_v57  ;;  %v23574_v32 = vld [vmem:[#allocation193_spill] sm:$0xff] }
 0x382   : > { %23565 = vst [vmem:[#allocation24_spill] sm:$0xff] %v16719_v62  ;;  %v16744_v46 = vsel %vm584_vm2, %v16722_v44, %v23570_v53  ;;  %v5494_v55 = vrot.slane %v11795_v57, 4  ;;  %v23575_v21 = vrot.slane %v23574_v32, 4  ;;  %v16766_v42 = vperm.slane %v5493_v50, %v12457_v10 }
 0x383   : > { %23567 = vst [vmem:[#allocation119_spill] sm:$0xff] %v16733_v7  ;;  %v23577_v41 = vunpack.i.l.bf16 %v16550_v58  ;;  %v5605_v43 = vsel %vm584_vm2, %v16579_v37, %v11796_v23  ;;  %v23578_v57 = vunpack.i.h.bf16 %v16550_v58  ;;  %v1958_v53 = vrot.slane %v16631_v15, 4 }
 0x384   : > { %23568 = vst [vmem:[#allocation107_spill] sm:$0xff] %v16736_v27  ;;  %v16763_v51 = vsel %vm584_vm2, %v16750_v29, %v23575_v21  ;;  %v16782_v50 = vperm.slane %v5605_v43, %v12457_v10  ;;  %v3794_v58 = vrot.slane %v16618_v19, 4  ;;  %v3818_v23 = vrot.slane %v16658_v63, 4 }
 0x385   : > { %23571 = vst [vmem:[#allocation53_spill] sm:$0xff] %v16744_v46  ;;  %v5495_v13 = vsel %vm584_vm2, %v23577_v41, %v5494_v55  ;;  %v5607_v30 = vsel %vm584_vm2, %v23578_v57, %v5606_v38  ;;  %v1959_v37 = vsel %vm584_vm2, %v16634_v25, %v1958_v53  ;;  %v3718_v15 = vrot.slane %v16091_v8, 4  ;;  %v11814_v41 = vpop.permute.xlu0 %11813 }
 0x386   : > { %23572 = vst [vmem:[#allocation63_spill] sm:$0xff] %v16747_v2  ;;  %v16778_v46 = vperm.slane %v5495_v13, %v12457_v10  ;;  %v16785_v44 = vperm.slane %v5607_v30, %v12457_v10  ;;  %11462 = vmatmul.msk.f32.gmra.mxu0 %vm6668_vm3, %v1959_v37  ;;  %v23579_v30 = vrot.slane %v15951_v18, 4  ;;  %v3795_v19 = vsel %vm584_vm2, %v16643_v60, %v3794_v58  ;;  %v23583_v58 = vld [vmem:[#allocation37_spill] sm:$0xff] }
 0x387   : > { %23573 = vst [vmem:[#allocation121_spill] sm:$0xff] %v16750_v29  ;;  %v3819_v25 = vsel %vm584_vm2, %v16661_v9, %v3818_v23  ;;  %v3719_v8 = vsel %vm584_vm2, %v16086_v22, %v3718_v15  ;;  %v3803_v53 = vperm.slane %v3795_v19, %v12509_v3  ;;  %v23580_v18 = vrot.slane %v15957_v39, 4 }
 0x388   : > { %23576 = vst [vmem:[#allocation5_spill] sm:$0xff] %v16763_v51  ;;  %v3623_v38 = vsel %vm584_vm2, %v15966_v47, %v23579_v30  ;;  %v3827_v43 = vperm.slane %v3819_v25, %v12509_v3  ;;  %11422 = vmatpush.xpose.msk.msrb.mxu2 %vm6668_vm3, %v3719_v8  ;;  %v23581_v60 = vrot.slane %v15975_v49, 4  ;;  %v23582_v37 = vrot.slane %v23422_v59, 4  ;;  %v23586_v25 = vld [vmem:[#allocation139_spill] sm:$0xff]  ;;  %v23587_v8 = vld [vmem:[#allocation128_spill] sm:$0xff] }
 0x389   : > { %v3631_v63 = vperm.slane %v3623_v38, %v12457_v10  ;;  %v3635_v47 = vsel %vm584_vm2, %v23419_v20, %v23580_v18  ;;  %v23584_v15 = vrot.slane %v16098_v6, 4  ;;  %v3842_v49 = vrot.slane %v3803_v53, 4  ;;  %v23588_v18 = vld [vmem:[#allocation134_spill] sm:$0xff] }
 0x38a   : > { %v3647_v9 = vsel %vm584_vm2, %v23420_v5, %v23581_v60  ;;  %v3643_v22 = vperm.slane %v3635_v47, %v12457_v10  ;;  %v3659_v23 = vsel %vm584_vm2, %v23583_v58, %v23582_v37  ;;  %v3840_v30 = vrot.slane %v3827_v43, 4  ;;  %v23585_v5 = vld [vmem:[#allocation46_spill] sm:$0xff] }
 0x38b   : > { %v3655_v57 = vperm.slane %v3647_v9, %v12457_v10  ;;  %v4565_v39 = vsel %vm584_vm2, 0.0, %v23584_v15  ;;  %v3667_v20 = vperm.slane %v3659_v23, %v12457_v10  ;;  %v1099_v38 = vperm.slane %v23585_v5, %v12509_v3  ;;  %v23591_v15 = vld [vmem:[#allocation138_spill] sm:$0xff] }
 0x38c   : > { %11486 = vmatpush.xpose.msk.msra.mxu2 %vm6668_vm3, %v4565_v39  ;;  %v3680_v19 = vrot.slane %v3643_v22, 4  ;;  %v1111_v59 = vperm.slane %v23586_v25, %v12509_v3  ;;  %v23589_v47 = vrot.slane %v23588_v18, 4  ;;  %v23590_v60 = vrot.slane %v23587_v8, 4 }
 0x38d   : > { %v3841_v37 = vsel %vm584_vm2, %v3840_v30, %v3803_v53  ;;  %v3704_v58 = vrot.slane %v3667_v20, 4  ;;  %v3843_v23 = vsel %vm584_vm2, %v3827_v43, %v3842_v49  ;;  %v23592_v39 = vrot.slane %v23591_v15, 4  ;;  %v23595_v49 = vld [vmem:[#allocation130_spill] sm:$0xff] }
 0x38e   : > { %v16837_v6 = vsel %vm584_vm2, %v23589_v47, %v23587_v8  ;;  %v16843_v9 = vsel %vm584_vm2, %v23588_v18, %v23590_v60  ;;  %11511 = vmatpush.xpose.msk.msra.mxu3 %vm6668_vm3, %v3841_v37  ;;  %v3681_v25 = vsel %vm584_vm2, %v3680_v19, %v3631_v63  ;;  %11529 = vmatpush.xpose.msk.msra.mxu0 %vm6668_vm3, %v3843_v23  ;;  %v1128_v8 = vrot.slane %v1111_v59, 4  ;;  %v23593_v47 = vld [vmem:[#allocation129_spill] sm:$0xff] }
 0x38f   : > { %v16850_v5 = vsel %vm584_vm2, %v23592_v39, %v1099_v38  ;;  %v23594_v18 = vrot.slane %v23593_v47, 4  ;;  %v1138_v53 = vrot.slane %v1099_v38, 4  ;;  %v16861_v43 = vperm.slane %v3681_v25, %v12509_v3  ;;  %v23596_v39 = vld [vmem:[#allocation48_spill] sm:$0xff] }
 0x390   : > { %v3705_v30 = vsel %vm584_vm2, %v3704_v58, %v3655_v57  ;;  %v23597_v21 = vrot.slane %v23596_v39, 4  ;;  %v1968_v19 = vrot.slane %v16837_v6, 4  ;;  %v1980_v58 = vrot.slane %v16843_v9, 4 }
 0x391   : > { %v16858_v60 = vsel %vm584_vm2, %v1111_v59, %v23594_v18  ;;  %v16872_v23 = vperm.slane %v3705_v30, %v12509_v3  ;;  %v16876_v59 = vsel %vm584_vm2, %v1128_v8, %v23593_v47  ;;  %v16880_v38 = vsel %vm584_vm2, %v23591_v15, %v1138_v53 }
 0x392   : > { %v16868_v37 = vsel %vm584_vm2, %v23597_v21, %v23595_v49  ;;  %v1969_v25 = vsel %vm584_vm2, %v1968_v19, %v16876_v59  ;;  %v1981_v47 = vsel %vm584_vm2, %v1980_v58, %v16858_v60  ;;  %v23598_v19 = vld [vmem:[#allocation135_spill] sm:$0xff]  ;;  %v3682_v55 = vrot.slane %v3631_v63, 4 }
 0x393   : > { %v1992_v30 = vrot.slane %v16868_v37, 4  ;;  %v3724_v49 = vrot.slane %v16872_v23, 4  ;;  %v1975_v8 = vperm.slane %v1969_v25, %v12457_v10  ;;  %v1987_v53 = vperm.slane %v1981_v47, %v12457_v10 }
 0x394   : > { %v23599_v21 = vrot.slane %v23598_v19, 4  ;;  %v1618_v14 = vrot.slane %v23600_v11, 4  ;;  %v11816_v51 = vunpack.i.h.bf16 %v11814_v41 }
 0x395   : > { %v1993_v39 = vsel %vm584_vm2, %v1992_v30, %v16850_v5  ;;  %v3725_v25 = vsel %vm584_vm2, %v3724_v49, %v16861_v43  ;;  %v2016_v47 = vrot.slane %v1987_v53, 4  ;;  %v3706_v30 = vrot.slane %v3655_v57, 4 }
 0x396   : > { %v2005_v18 = vsel %vm584_vm2, %v23599_v21, %v16880_v38  ;;  %v1999_v58 = vperm.slane %v1993_v39, %v12457_v10  ;;  %11476 = vmatpush.xpose.msk.msrb.mxu1 %vm6668_vm3, %v3725_v25  ;;  %v2018_v27 = vrot.slane %v1975_v8, 4  ;;  %v3683_v21 = vsel %vm584_vm2, %v3643_v22, %v3682_v55 }
 0x397   : > { %v2011_v15 = vperm.slane %v2005_v18, %v12457_v10  ;;  %v2017_v29 = vsel %vm584_vm2, %v2016_v47, %v1975_v8  ;;  %v3691_v49 = vperm.slane %v3683_v21, %v12509_v3  ;;  %v3707_v39 = vsel %vm584_vm2, %v3667_v20, %v3706_v30  ;;  %v23601_v18 = vld [vmem:[#allocation151_spill] sm:$0xff] }
 0x398   : > { %v2042_v13 = vrot.slane %v1999_v58, 4  ;;  %v1619_v63 = vsel %vm584_vm2, %v23601_v18, %v1618_v14  ;;  %v16914_v25 = vperm.slane %v2017_v29, %v12509_v3  ;;  %v3715_v57 = vperm.slane %v3707_v39, %v12509_v3 }
 0x399   : > { %v2040_v62 = vrot.slane %v2011_v15, 4  ;;  %11423 = vmatmul.msk.f32.vlgmr.msrb.gmra.mxu2 %vm6668_vm3, %v1619_v63  ;;  %v2019_v55 = vsel %vm584_vm2, %v1987_v53, %v2018_v27  ;;  %v3730_v14 = vrot.slane %v3691_v49, 4  ;;  %v23602_v27 = vld [vmem:[#allocation68_spill] sm:$0xff]  ;;  %v4510_v39 = vrot.slane %v16161_v45, 4  ;;  %v23603_v63 = vld [vmem:[#allocation9_spill] sm:$0xff] }
 0x39a   : > { %v16924_v8 = vperm.slane %v2019_v55, %v12509_v3  ;;  %v2043_v20 = vsel %vm584_vm2, %v2011_v15, %v2042_v13  ;;  %v3728_v47 = vrot.slane %v3715_v57, 4  ;;  %v5595_v53 = vsel %vm584_vm2, %v11816_v51, %v23602_v27 }
 0x39b   : > { %v2041_v11 = vsel %vm584_vm2, %v2040_v62, %v1999_v58  ;;  %v16928_v29 = vperm.slane %v2043_v20, %v12509_v3  ;;  %v5592_v62 = vrot.slane %v11816_v51, 4  ;;  %v11815_v58 = vunpack.i.l.bf16 %v11814_v41  ;;  %v23604_v51 = vld [vmem:[#allocation26_spill] sm:$0xff] }
 0x39c   : > { %v16921_v22 = vperm.slane %v2041_v11, %v12509_v3  ;;  %v3731_v21 = vsel %vm584_vm2, %v3715_v57, %v3730_v14  ;;  %v3729_v18 = vsel %vm584_vm2, %v3728_v47, %v3691_v49  ;;  %v23605_v55 = vunpack.i.h.bf16 %v23604_v51 }
 0x39d   : > { %v2068_v13 = vrot.slane %v16928_v29, 4  ;;  %11530 = vmatpush.xpose.msk.msra.mxu0 %vm6668_vm3, %v3731_v21  ;;  %v5480_v15 = vrot.slane %v11815_v58, 4  ;;  %v5483_v11 = vsel %vm584_vm2, %v11815_v58, %v23603_v63  ;;  %11512 = vmatpush.xpose.msk.msra.mxu3 %vm6668_vm3, %v3729_v18  ;;  %v5603_v49 = vperm.slane %v5595_v53, %v12457_v10 }
 0x39e   : > { %v2064_v30 = vrot.slane %v16921_v22, 4  ;;  %v5491_v57 = vperm.slane %v5483_v11, %v12457_v10  ;;  %v5593_v45 = vsel %vm584_vm2, %v5592_v62, %v23605_v55  ;;  %v23606_v14 = vunpack.i.l.bf16 %v23604_v51 }
 0x39f   : > { %v2069_v20 = vsel %vm584_vm2, %v2068_v13, %v16924_v8  ;;  %v5599_v58 = vperm.slane %v5593_v45, %v12457_v10  ;;  %v23607_v21 = vrot.slane %v16778_v46, 4  ;;  %v23608_v18 = vrot.slane %v16785_v44, 4 }
 0x3a0   : > { %v2065_v41 = vsel %vm584_vm2, %v2064_v30, %v16914_v25  ;;  %v5481_v47 = vsel %vm584_vm2, %v5480_v15, %v23606_v14  ;;  %v4511_v30 = vsel %vm584_vm2, %v16174_v17, %v4510_v39  ;;  %11445 = vmatmul.msk.f32.gmra.mxu3 %vm6668_vm3, %v2069_v20  ;;  %v5542_v53 = vrot.slane %v5491_v57, 4 }
 0x3a1   : > { %11409 = vmatmul.msk.f32.gmra.mxu1 %vm6668_vm3, %v2065_v41  ;;  %v5487_v62 = vperm.slane %v5481_v47, %v12457_v10  ;;  %v5541_v27 = vsel %vm584_vm2, %v23607_v21, %v5491_v57  ;;  %v5653_v13 = vsel %vm584_vm2, %v23608_v18, %v5603_v49  ;;  %11487 = vmatpush.xpose.msk.msra.mxu2 %vm6668_vm3, %v4511_v30  ;;  %v23610_v17 = vrot.slane %v16782_v50, 4  ;;  %v11804_v21 = vpop.permute.xlu1 %11803  ;;  %v23615_v18 = vld [vmem:[#allocation163_spill] sm:$0xff] }
 0x3a2   : > { %v16967_v15 = vperm.slane %v5541_v27, %v12509_v3  ;;  %v5642_v63 = vrot.slane %v5599_v58, 4  ;;  %v5654_v11 = vrot.slane %v5603_v49, 4  ;;  %v23611_v41 = vrot.slane %v16766_v42, 4 }
 0x3a3   : > { %v5641_v39 = vsel %vm584_vm2, %v23610_v17, %v5599_v58  ;;  %v5530_v57 = vrot.slane %v5487_v62, 4  ;;  %v5543_v55 = vsel %vm584_vm2, %v16778_v46, %v5542_v53  ;;  %v23616_v17 = vrot.slane %v23615_v18, 4  ;;  %v23622_v53 = vld [vmem:[#allocation28_spill] sm:$0xff]  ;;  %v23641_v18 = vld [vmem:[#allocation137_spill] sm:$0xff] }
 0x3a4   : > { %23609 = vst [vmem:[#allocation67_spill] sm:$0xff] %v16967_v15  ;;  %v5529_v51 = vsel %vm584_vm2, %v23611_v41, %v5487_v62  ;;  %v16978_v45 = vperm.slane %v5641_v39, %v12509_v3  ;;  %v16984_v14 = vperm.slane %v5543_v55, %v12509_v3  ;;  %v5643_v49 = vsel %vm584_vm2, %v16782_v50, %v5642_v63  ;;  %v23620_v50 = vld [vmem:[#allocation145_spill] sm:$0xff]  ;;  %v23643_v15 = vld [vmem:[#allocation154_spill] sm:$0xff] }
 0x3a5   : > { %v16981_v20 = vperm.slane %v5529_v51, %v12509_v3  ;;  %v5531_v58 = vsel %vm584_vm2, %v16766_v42, %v5530_v57  ;;  %v16992_v30 = vperm.slane %v5643_v49, %v12509_v3  ;;  %v5655_v46 = vsel %vm584_vm2, %v16785_v44, %v5654_v11  ;;  %v23618_v49 = vld [vmem:[#allocation195_spill] sm:$0xff] }
 0x3a6   : > { %23613 = vst [vmem:[#allocation14_spill] sm:$0xff] %v16984_v14  ;;  %v16997_v62 = vperm.slane %v5653_v13, %v12509_v3  ;;  %v17000_v27 = vperm.slane %v5531_v58, %v12509_v3  ;;  %v17008_v42 = vsel %vm584_vm2, %v16984_v14, %v23616_v17  ;;  %v17011_v39 = vperm.slane %v5655_v46, %v12509_v3  ;;  %v23634_v44 = vld [vmem:[#allocation71_spill] sm:$0xff]  ;;  %v23640_v14 = vld [vmem:[#allocation136_spill] sm:$0xff] }
 0x3a7   : > { %23612 = vst [vmem:[#allocation109_spill] sm:$0xff] %v16981_v20  ;;  %v11806_v41 = vunpack.i.h.bf16 %v11804_v21  ;;  %v11805_v51 = vunpack.i.l.bf16 %v11804_v21  ;;  %v2070_v57 = vrot.slane %v16924_v8, 4  ;;  %v23619_v58 = vrot.slane %v23618_v49, 4 }
 0x3a8   : > { %23614 = vst [vmem:[#allocation166_spill] sm:$0xff] %v17000_v27  ;;  %v4398_v17 = vrot.slane %v16226_v33, 4  ;;  %v23621_v47 = vrot.slane %v23620_v50, 4  ;;  %v23624_v50 = vunpack.i.l.bf16 %v16105_v31 }
 0x3a9   : > { %23617 = vst [vmem:[#allocation7_spill] sm:$0xff] %v17008_v42  ;;  %v17023_v46 = vsel %vm584_vm2, %v17011_v39, %v23619_v58  ;;  %v5144_v11 = vrot.slane %v11806_v41, 4  ;;  %v5147_v21 = vsel %vm584_vm2, %v11806_v41, %v16145_v40  ;;  %v5032_v8 = vrot.slane %v11805_v51, 4  ;;  %v23648_v42 = vld [vmem:[#allocation162_spill] sm:$0xff] }
 0x3aa   : > { %v1523_v63 = vsel %vm584_vm2, %v23622_v53, %v23621_v47  ;;  %v5035_v55 = vsel %vm584_vm2, %v11805_v51, %v16149_v28  ;;  %v17035_v13 = vperm.slane %v5147_v21, %v12457_v10  ;;  %v2071_v33 = vsel %vm584_vm2, %v16928_v29, %v2070_v57  ;;  %v23625_v51 = vld [vmem:[#allocation89_spill] sm:$0xff]  ;;  %v23628_v21 = vld [vmem:[#allocation55_spill] sm:$0xff] }
 0x3ab   : > { %v17038_v58 = vperm.slane %v5035_v55, %v12457_v10  ;;  %v4399_v47 = vsel %vm584_vm2, %v16234_v16, %v4398_v17  ;;  %v23623_v53 = vunpack.i.h.bf16 %v16105_v31  ;;  %v5033_v28 = vsel %vm584_vm2, %v5032_v8, %v23624_v50  ;;  %11463 = vmatmul.msk.f32.gmra.mxu0 %vm6668_vm3, %v2071_v33  ;;  %v23626_v31 = vld [vmem:[#allocation65_spill] sm:$0xff]  ;;  %v23629_v33 = vld [vmem:[#allocation146_spill] sm:$0xff]  ;;  %v23632_v50 = vld [vmem:[#allocation56_spill] sm:$0xff] }
 0x3ac   : > { %11488 = vmatpush.xpose.msk.msra.mxu2 %vm6668_vm3, %v4399_v47  ;;  %v17053_v41 = vperm.slane %v1523_v63, %v12457_v10  ;;  %v1730_v29 = vrot.slane %v23625_v51, 4  ;;  %v5039_v55 = vperm.slane %v5033_v28, %v12457_v10  ;;  %v23627_v17 = vrot.slane %v23626_v31, 4  ;;  %v11824_v28 = vpop.permute.xlu0 %11823 }
 0x3ad   : > { %v5145_v40 = vsel %vm584_vm2, %v5144_v11, %v23623_v53  ;;  %v5094_v11 = vrot.slane %v17038_v58, 4  ;;  %v23630_v47 = vrot.slane %v23629_v33, 4  ;;  %v23631_v53 = vld [vmem:[#allocation70_spill] sm:$0xff]  ;;  %v23633_v51 = vrot.slane %v23632_v50, 4  ;;  %v23637_v33 = vld [vmem:[#allocation87_spill] sm:$0xff] }
 0x3ae   : > { %v5151_v57 = vperm.slane %v5145_v40, %v12457_v10  ;;  %v1535_v8 = vsel %vm584_vm2, %v23628_v21, %v23627_v17  ;;  %v5082_v7 = vrot.slane %v5039_v55, 4  ;;  %v11825_v1 = vunpack.i.l.bf16 %v11824_v28 }
 0x3af   : > { %v1547_v63 = vsel %vm584_vm2, %v23631_v53, %v23630_v47  ;;  %v1559_v40 = vsel %vm584_vm2, %v23634_v44, %v23633_v51  ;;  %v17074_v31 = vperm.slane %v1535_v8, %v12457_v10  ;;  %v1731_v47 = vsel %vm584_vm2, %v23637_v33, %v1730_v29  ;;  %v23638_v53 = vld [vmem:[#allocation140_spill] sm:$0xff]  ;;  %v23639_v44 = vld [vmem:[#allocation75_spill] sm:$0xff] }
 0x3b0   : > { %v5194_v32 = vrot.slane %v5151_v57, 4  ;;  %v17077_v17 = vperm.slane %v1547_v63, %v12457_v10  ;;  %v17080_v21 = vperm.slane %v1559_v40, %v12457_v10  ;;  %v2130_v50 = vrot.slane %v23638_v53, 4  ;;  %11424 = vmatmul.msk.f32.gmra.mxu2 %vm6668_vm3, %v1731_v47 }
 0x3b1   : > { %v2154_v51 = vrot.slane %v23639_v44, 4  ;;  %v1580_v16 = vrot.slane %v17074_v31, 4  ;;  %v11826_v8 = vunpack.i.h.bf16 %v11824_v28  ;;  %v4286_v33 = vrot.slane %v16288_v24, 4 }
 0x3b2   : > { %23635 = vst [vmem:[#allocation41_spill] sm:$0xff] %v17077_v17  ;;  %v1604_v63 = vrot.slane %v17080_v21, 4  ;;  %v2131_v40 = vsel %vm584_vm2, %v23640_v14, %v2130_v50  ;;  %v5044_v50 = vrot.slane %v11825_v1, 4 }
 0x3b3   : > { %23636 = vst [vmem:[#allocation23_spill] sm:$0xff] %v17080_v21  ;;  %v2155_v29 = vsel %vm584_vm2, %v23641_v18, %v2154_v51  ;;  %v1581_v53 = vsel %vm584_vm2, %v1580_v16, %v17053_v41  ;;  %v17098_v44 = vperm.slane %v2131_v40, %v12509_v3  ;;  %v5156_v2 = vrot.slane %v11826_v8, 4  ;;  %v23645_v40 = vld [vmem:[#allocation82_spill] sm:$0xff] }
 0x3b4   : > { %v2163_v47 = vperm.slane %v2155_v29, %v12509_v3  ;;  %v17102_v28 = vperm.slane %v1581_v53, %v12509_v3  ;;  %v1605_v14 = vsel %vm584_vm2, %v1604_v63, %v17077_v17  ;;  %v5047_v18 = vsel %vm584_vm2, %v11825_v1, %v23643_v15  ;;  %v23659_v53 = vld [vmem:[#allocation157_spill] sm:$0xff] }
 0x3b5   : > { %v17109_v24 = vperm.slane %v1605_v14, %v12509_v3  ;;  %v5055_v51 = vperm.slane %v5047_v18, %v12457_v10  ;;  %v23646_v27 = vunpack.i.h.bf16 %v23645_v40  ;;  %v23647_v20 = vunpack.i.l.bf16 %v23645_v40 }
 0x3b6   : > { %23642 = vst [vmem:[#allocation161_spill] sm:$0xff] %v17102_v28  ;;  %v2180_v16 = vrot.slane %v2163_v47, 4  ;;  %v5159_v21 = vsel %vm584_vm2, %v11826_v8, %v23648_v42  ;;  %v4693_v42 = vpop.permute.xlu1 %4692 }
 0x3b7   : > { %23644 = vst [vmem:[#allocation78_spill] sm:$0xff] %v17109_v24  ;;  %v5157_v29 = vsel %vm584_vm2, %v5156_v2, %v23646_v27  ;;  %v5045_v63 = vsel %vm584_vm2, %v5044_v50, %v23647_v20  ;;  %v1624_v15 = vrot.slane %v17109_v24, 4  ;;  %v5092_v17 = vrot.slane %v5055_v51, 4 }
 0x3b8   : > { %v5163_v1 = vperm.slane %v5157_v29, %v12457_v10  ;;  %v2181_v14 = vsel %vm584_vm2, %v2180_v16, %v17098_v44  ;;  %v5051_v18 = vperm.slane %v5045_v63, %v12457_v10  ;;  %v5095_v2 = vsel %vm584_vm2, %v5055_v51, %v5094_v11 }
 0x3b9   : > { %11446 = vmatmul.msk.f32.gmra.mxu3 %vm6668_vm3, %v2181_v14  ;;  %v5167_v27 = vperm.slane %v5159_v21, %v12457_v10  ;;  %v1625_v8 = vsel %vm584_vm2, %v1624_v15, %v17102_v28  ;;  %v5093_v16 = vsel %vm584_vm2, %v5092_v17, %v17038_v58  ;;  %v23666_v15 = vld [vmem:[#allocation77_spill] sm:$0xff]  ;;  %v23681_v28 = vld [vmem:[#allocation114_spill] sm:$0xff] }
 0x3ba   : > { %v5192_v20 = vrot.slane %v5163_v1, 4  ;;  %v5195_v50 = vsel %vm584_vm2, %v5163_v1, %v5194_v32  ;;  %v5080_v40 = vrot.slane %v5051_v18, 4  ;;  %v5083_v29 = vsel %vm584_vm2, %v5051_v18, %v5082_v7  ;;  %11477 = vmatmul.msk.f32.vlgmr.msrb.gmra.mxu1 %vm6668_vm3, %v1625_v8  ;;  %v23667_v18 = vld [vmem:[#allocation2_spill] sm:$0xff] }
 0x3bb   : > { %v17137_v63 = vperm.slane %v5083_v29, %v12509_v3  ;;  %v17140_v11 = vperm.slane %v5093_v16, %v12509_v3  ;;  %v17143_v32 = vperm.slane %v5095_v2, %v12509_v3  ;;  %v17151_v58 = vperm.slane %v5195_v50, %v12509_v3  ;;  %v23653_v2 = vld [vmem:[#allocation141_spill] sm:$0xff] }
 0x3bc   : > { %v5193_v21 = vsel %vm584_vm2, %v5192_v20, %v5151_v57  ;;  %v5081_v51 = vsel %vm584_vm2, %v5080_v40, %v5039_v55  ;;  %v5204_v17 = vrot.slane %v5167_v27, 4  ;;  %v23654_v57 = vrot.slane %v23653_v2, 4  ;;  %v23701_v2 = vld [vmem:[#allocation88_spill] sm:$0xff] }
 0x3bd   : > { %23649 = vst [vmem:[#allocation92_spill] sm:$0xff] %v17137_v63  ;;  %v17148_v7 = vperm.slane %v5193_v21, %v12509_v3  ;;  %v17154_v1 = vperm.slane %v5081_v51, %v12509_v3  ;;  %v23656_v50 = vrot.slane %v17035_v13, 4  ;;  %v4287_v51 = vsel %vm584_vm2, %v16291_v0, %v4286_v33  ;;  %v23660_v21 = vld [vmem:[#allocation153_spill] sm:$0xff]  ;;  %v23719_v63 = vld [vmem:[#allocation156_spill] sm:$0xff] }
 0x3be   : > { %23650 = vst [vmem:[#allocation158_spill] sm:$0xff] %v17140_v11  ;;  %v17163_v55 = vsel %vm584_vm2, %v17143_v32, %v23654_v57  ;;  %v5205_v20 = vsel %vm584_vm2, %v5204_v17, %v17035_v13  ;;  %11489 = vmatpush.xpose.msk.msra.mxu2 %vm6668_vm3, %v4287_v51  ;;  %v5692_v17 = vrot.slane %v4693_v42, 4  ;;  %v2182_v13 = vrot.slane %v17098_v44, 4  ;;  %v23657_v57 = vld [vmem:[#allocation4_spill] sm:$0xff]  ;;  %v4711_v51 = vpop.permute.xlu0 %4710 }
 0x3bf   : > { %23651 = vst [vmem:[#allocation172_spill] sm:$0xff] %v17143_v32  ;;  %v5207_v8 = vsel %vm584_vm2, %v5167_v27, %v23656_v50  ;;  %v17172_v29 = vperm.slane %v5205_v20, %v12509_v3  ;;  %v4174_v27 = vrot.slane %v16355_v36, 4  ;;  %v23658_v50 = vrot.slane %v23657_v57, 4  ;;  %v23704_v11 = vld [vmem:[#allocation188_spill] sm:$0xff] }
 0x3c0   : > { %23652 = vst [vmem:[#allocation111_spill] sm:$0xff] %v17154_v1  ;;  %v17175_v16 = vperm.slane %v5207_v8, %v12509_v3  ;;  %v23661_v14 = vrot.slane %v23660_v21, 4  ;;  %v5693_v44 = vsel %vm584_vm2, %v5692_v17, %v16306_v35  ;;  %v23668_v36 = vrot.slane %v23667_v18, 4  ;;  %v23669_v8 = vld [vmem:[#allocation160_spill] sm:$0xff]  ;;  %v23670_v17 = vld [vmem:[#allocation73_spill] sm:$0xff]  ;;  %v23676_v18 = vld [vmem:[#allocation118_spill] sm:$0xff] }
 0x3c1   : > { %23655 = vst [vmem:[#allocation103_spill] sm:$0xff] %v17163_v55  ;;  %v1635_v20 = vsel %vm584_vm2, %v23659_v53, %v23658_v50  ;;  %v2183_v53 = vsel %vm584_vm2, %v2163_v47, %v2182_v13  ;;  %v4175_v42 = vsel %vm584_vm2, %v16364_v61, %v4174_v27  ;;  %v5697_v57 = vperm.slane %v5693_v44, %v12457_v10  ;;  %v23672_v13 = vld [vmem:[#allocation76_spill] sm:$0xff]  ;;  %v11829_v27 = vpop.permute.xlu1 %11828 }
 0x3c2   : > { %v17193_v0 = vsel %vm584_vm2, %v17175_v16, %v23661_v14  ;;  %v17196_v33 = vperm.slane %v1635_v20, %v12457_v10  ;;  %11464 = vmatmul.msk.f32.gmra.mxu0 %vm6668_vm3, %v2183_v53  ;;  %v23664_v14 = vld [vmem:[#allocation79_spill] sm:$0xff]  ;;  %v1659_v35 = vsel %vm584_vm2, %v23669_v8, %v23668_v36  ;;  %v23671_v47 = vrot.slane %v23670_v17, 4  ;;  %11490 = vmatpush.xpose.msk.msra.mxu2 %vm6668_vm3, %v4175_v42  ;;  %v23677_v8 = vld [vmem:[#allocation100_spill] sm:$0xff] }
 0x3c3   : > { %23662 = vst [vmem:[#allocation80_spill] sm:$0xff] %v17193_v0  ;;  %v23665_v50 = vrot.slane %v23664_v14, 4  ;;  %v17223_v53 = vperm.slane %v1659_v35, %v12457_v10  ;;  %v1842_v14 = vrot.slane %v23676_v18, 4  ;;  %v2242_v36 = vrot.slane %v23677_v8, 4 }
 0x3c4   : > { %23663 = vst [vmem:[#allocation16_spill] sm:$0xff] %v17196_v33  ;;  %v1671_v61 = vsel %vm584_vm2, %v23672_v13, %v23671_v47  ;;  %v5698_v40 = vrot.slane %v4711_v51, 4  ;;  %v4062_v47 = vrot.slane %v16407_v52, 4  ;;  %v23679_v13 = vld [vmem:[#allocation29_spill] sm:$0xff]  ;;  %v11831_v24 = vunpack.i.h.bf16 %v11829_v27 }
 0x3c5   : > { %v1647_v20 = vsel %vm584_vm2, %v23666_v15, %v23665_v50  ;;  %23674 = vst [vmem:[#allocation34_spill] sm:$0xff] %v17223_v53  ;;  %v17226_v15 = vperm.slane %v1671_v61, %v12457_v10  ;;  %v23678_v50 = vld [vmem:[#allocation15_spill] sm:$0xff]  ;;  %v1843_v35 = vsel %vm584_vm2, %v23679_v13, %v1842_v14  ;;  %v23680_v61 = vld [vmem:[#allocation94_spill] sm:$0xff] }
 0x3c6   : > { %v17220_v44 = vperm.slane %v1647_v20, %v12457_v10  ;;  %v2266_v17 = vrot.slane %v23678_v50, 4  ;;  %11425 = vmatmul.msk.f32.gmra.mxu2 %vm6668_vm3, %v1843_v35  ;;  %v2243_v18 = vsel %vm584_vm2, %v23680_v61, %v2242_v36  ;;  %v23682_v50 = vld [vmem:[#allocation69_spill] sm:$0xff]  ;;  %v4063_v52 = vsel %vm584_vm2, %v16412_v54, %v4062_v47 }
 0x3c7   : > { %23675 = vst [vmem:[#allocation13_spill] sm:$0xff] %v17226_v15  ;;  %v1716_v20 = vrot.slane %v17226_v15, 4  ;;  %v5699_v51 = vsel %vm584_vm2, %v5698_v40, %v23682_v50  ;;  %v2251_v13 = vperm.slane %v2243_v18, %v12509_v3  ;;  %11491 = vmatpush.xpose.msk.msra.mxu2 %vm6668_vm3, %v4063_v52  ;;  %v5380_v36 = vrot.slane %v11831_v24, 4 }
 0x3c8   : > { %23673 = vst [vmem:[#allocation66_spill] sm:$0xff] %v17220_v44  ;;  %v1692_v42 = vrot.slane %v17220_v44, 4  ;;  %v2267_v8 = vsel %vm584_vm2, %v23681_v28, %v2266_v17  ;;  %v5703_v54 = vperm.slane %v5699_v51, %v12457_v10  ;;  %v5383_v47 = vsel %vm584_vm2, %v11831_v24, %v16400_v48  ;;  %v23714_v44 = vld [vmem:[#allocation18_spill] sm:$0xff] }
 0x3c9   : > { %v1717_v14 = vsel %vm584_vm2, %v1716_v20, %v17223_v53  ;;  %v2275_v35 = vperm.slane %v2267_v8, %v12509_v3  ;;  %v2294_v20 = vrot.slane %v2251_v13, 4  ;;  %v23685_v8 = vunpack.i.h.bf16 %v16373_v34 }
 0x3ca   : > { %v1693_v55 = vsel %vm584_vm2, %v1692_v42, %v17196_v33  ;;  %v17256_v40 = vperm.slane %v1717_v14, %v12509_v3  ;;  %v11830_v42 = vunpack.i.l.bf16 %v11829_v27  ;;  %v5710_v18 = vrot.slane %v5703_v54, 4 }
 0x3cb   : > { %v17253_v28 = vperm.slane %v1693_v55, %v12509_v3  ;;  %v2292_v17 = vrot.slane %v2275_v35, 4  ;;  %v5381_v55 = vsel %vm584_vm2, %v5380_v36, %v23685_v8  ;;  %v5391_v50 = vperm.slane %v5383_v47, %v12457_v10 }
 0x3cc   : > { %23684 = vst [vmem:[#allocation125_spill] sm:$0xff] %v17256_v40  ;;  %v1736_v61 = vrot.slane %v17256_v40, 4  ;;  %v5387_v51 = vperm.slane %v5381_v55, %v12457_v10  ;;  %v5268_v14 = vrot.slane %v11830_v42, 4  ;;  %v5271_v32 = vsel %vm584_vm2, %v11830_v42, %v16404_v12 }
 0x3cd   : > { %23683 = vst [vmem:[#allocation122_spill] sm:$0xff] %v17253_v28  ;;  %v2293_v52 = vsel %vm584_vm2, %v2292_v17, %v2251_v13  ;;  %v5711_v24 = vsel %vm584_vm2, %v5710_v18, %v5697_v57  ;;  %v5428_v27 = vrot.slane %v5391_v50, 4  ;;  %v5279_v54 = vperm.slane %v5271_v32, %v12457_v10  ;;  %v23688_v18 = vld [vmem:[#allocation171_spill] sm:$0xff] }
 0x3ce   : > { %v1737_v48 = vsel %vm584_vm2, %v1736_v61, %v17253_v28  ;;  %11447 = vmatmul.msk.f32.gmra.mxu3 %vm6668_vm3, %v2293_v52  ;;  %v17277_v13 = vperm.slane %v5711_v24, %v12509_v3  ;;  %v5416_v36 = vrot.slane %v5387_v51, 4  ;;  %v23686_v17 = vunpack.i.l.bf16 %v16373_v34 }
 0x3cf   : > { %11478 = vmatmul.msk.f32.gmra.mxu1 %vm6668_vm3, %v1737_v48  ;;  %v23687_v47 = vrot.slane %v16283_v26, 4  ;;  %v5316_v57 = vrot.slane %v5279_v54, 4  ;;  %v23689_v8 = vrot.slane %v23688_v18, 4  ;;  %v23690_v48 = vld [vmem:[#allocation30_spill] sm:$0xff] }
 0x3d0   : > { %v5269_v12 = vsel %vm584_vm2, %v5268_v14, %v23686_v17  ;;  %v23691_v34 = vrot.slane %v23690_v48, 4  ;;  %v5417_v24 = vsel %vm584_vm2, %v5416_v36, %v16283_v26  ;;  %v23695_v26 = vld [vmem:[#allocation183_spill] sm:$0xff] }
 0x3d1   : > { %v5419_v42 = vsel %vm584_vm2, %v5387_v51, %v23687_v47  ;;  %v5275_v61 = vperm.slane %v5269_v12, %v12457_v10  ;;  %v5319_v32 = vsel %vm584_vm2, %v5279_v54, %v23689_v8  ;;  %v23693_v47 = vld [vmem:[#allocation142_spill] sm:$0xff]  ;;  %v23696_v36 = vrot.slane %v23695_v26, 4 }
 0x3d2   : > { %v17290_v55 = vperm.slane %v5419_v42, %v12509_v3  ;;  %v17297_v14 = vsel %vm584_vm2, %v17277_v13, %v23691_v34  ;;  %v17300_v51 = vperm.slane %v5319_v32, %v12509_v3  ;;  %v23694_v42 = vrot.slane %v23693_v47, 4 }
 0x3d3   : > { %23692 = vst [vmem:[#allocation50_spill] sm:$0xff] %v17297_v14  ;;  %v17307_v54 = vperm.slane %v17297_v14, %v12457_v10  ;;  %v5304_v12 = vrot.slane %v5275_v61, 4  ;;  %v5317_v32 = vsel %vm584_vm2, %v5316_v57, %v23688_v18  ;;  %v23700_v14 = vld [vmem:[#allocation177_spill] sm:$0xff] }
 0x3d4   : > { %v5307_v8 = vsel %vm584_vm2, %v5275_v61, %v23694_v42  ;;  %v17322_v17 = vsel %vm584_vm2, %v17300_v51, %v23696_v36  ;;  %v17327_v28 = vperm.slane %v5317_v32, %v12509_v3  ;;  %v17330_v61 = vperm.slane %v5417_v24, %v12509_v3  ;;  %v23698_v42 = vld [vmem:[#allocation11_spill] sm:$0xff] }
 0x3d5   : > { %v17313_v34 = vperm.slane %v5307_v8, %v12509_v3  ;;  %23697 = vst [vmem:[#allocation126_spill] sm:$0xff] %v17322_v17  ;;  %v5305_v40 = vsel %vm584_vm2, %v5304_v12, %v23693_v47  ;;  %v5429_v57 = vsel %vm584_vm2, %v5428_v27, %v23698_v42  ;;  %v23699_v36 = vrot.slane %v23698_v42, 4 }
 0x3d6   : > { %v17335_v18 = vperm.slane %v5305_v40, %v12509_v3  ;;  %v17342_v12 = vperm.slane %v5429_v57, %v12509_v3  ;;  %v2295_v8 = vsel %vm584_vm2, %v2275_v35, %v2294_v20  ;;  %v3950_v42 = vrot.slane %v23700_v14, 4  ;;  %v23707_v35 = vld [vmem:[#allocation39_spill] sm:$0xff]  ;;  %v23709_v14 = vld [vmem:[#allocation17_spill] sm:$0xff] }
 0x3d7   : > { %v5431_v52 = vsel %vm584_vm2, %v5391_v50, %v23699_v36  ;;  %v23702_v50 = vrot.slane %v23701_v2, 4  ;;  %v23703_v36 = vld [vmem:[#allocation57_spill] sm:$0xff]  ;;  %11465 = vmatmul.msk.f32.gmra.mxu0 %vm6668_vm3, %v2295_v8  ;;  %v23708_v20 = vrot.slane %v23707_v35, 4 }
 0x3d8   : > { %v17346_v24 = vperm.slane %v5431_v52, %v12509_v3  ;;  %v23705_v52 = vrot.slane %v23704_v11, 4  ;;  %v23716_v35 = vld [vmem:[#allocation81_spill] sm:$0xff] }
 0x3d9   : > { %v1747_v57 = vsel %vm584_vm2, %v23703_v36, %v23702_v50  ;;  %v1759_v2 = vsel %vm584_vm2, %v23709_v14, %v23708_v20  ;;  %v23710_v36 = vld [vmem:[#allocation173_spill] sm:$0xff]  ;;  %v23717_v20 = vrot.slane %v23716_v35, 4  ;;  %v23718_v14 = vld [vmem:[#allocation95_spill] sm:$0xff] }
 0x3da   : > { %v17362_v32 = vsel %vm584_vm2, %v17346_v24, %v23705_v52  ;;  %v17366_v27 = vperm.slane %v1747_v57, %v12457_v10  ;;  %v3951_v47 = vsel %vm584_vm2, %v23710_v36, %v3950_v42  ;;  %v17376_v40 = vperm.slane %v1759_v2, %v12457_v10  ;;  %v23712_v52 = vld [vmem:[#allocation91_spill] sm:$0xff]  ;;  %v23720_v36 = vld [vmem:[#allocation32_spill] sm:$0xff] }
 0x3db   : > { %23706 = vst [vmem:[#allocation47_spill] sm:$0xff] %v17362_v32  ;;  %v23713_v15 = vrot.slane %v23712_v52, 4  ;;  %11492 = vmatpush.xpose.msk.msra.mxu2 %vm6668_vm3, %v3951_v47  ;;  %v1783_v50 = vsel %vm584_vm2, %v23718_v14, %v23717_v20  ;;  %v1954_v42 = vrot.slane %v23719_v63, 4  ;;  %v2354_v2 = vrot.slane %v23720_v36, 4  ;;  %v23724_v35 = vld [vmem:[#allocation123_spill] sm:$0xff]  ;;  %v23725_v63 = vld [vmem:[#allocation10_spill] sm:$0xff] }
 0x3dc   : > { %23711 = vst [vmem:[#allocation127_spill] sm:$0xff] %v17376_v40  ;;  %v17393_v1 = vperm.slane %v1783_v50, %v12457_v10  ;;  %v1804_v52 = vrot.slane %v17376_v40, 4  ;;  %v3838_v47 = vrot.slane %v16679_v56, 4  ;;  %v3726_v20 = vrot.slane %v16861_v43, 4  ;;  %v23727_v36 = vld [vmem:[#allocation3_spill] sm:$0xff] }
 0x3dd   : > { %v1771_v8 = vsel %vm584_vm2, %v23714_v44, %v23713_v15  ;;  %v23722_v44 = vld [vmem:[#allocation93_spill] sm:$0xff]  ;;  %v2355_v33 = vsel %vm584_vm2, %v23724_v35, %v2354_v2  ;;  %v23726_v14 = vrot.slane %v23725_v63, 4 }
 0x3de   : > { %v17384_v57 = vperm.slane %v1771_v8, %v12457_v10  ;;  %23721 = vst [vmem:[#allocation19_spill] sm:$0xff] %v17393_v1  ;;  %v2378_v15 = vrot.slane %v23722_v44, 4  ;;  %v23723_v8 = vld [vmem:[#allocation147_spill] sm:$0xff]  ;;  %v1805_v40 = vsel %vm584_vm2, %v1804_v52, %v17366_v27  ;;  %v1828_v44 = vrot.slane %v17393_v1, 4 }
 0x3df   : > { %v1955_v53 = vsel %vm584_vm2, %v23723_v8, %v1954_v42  ;;  %v1859_v50 = vsel %vm584_vm2, %v23727_v36, %v23726_v14  ;;  %v2363_v56 = vperm.slane %v2355_v33, %v12509_v3  ;;  %v23728_v42 = vld [vmem:[#allocation106_spill] sm:$0xff]  ;;  %v17415_v2 = vperm.slane %v1805_v40, %v12509_v3  ;;  %v23733_v14 = vld [vmem:[#allocation35_spill] sm:$0xff] }
 0x3e0   : > { %23715 = vst [vmem:[#allocation132_spill] sm:$0xff] %v17384_v57  ;;  %11426 = vmatmul.msk.f32.gmra.mxu2 %vm6668_vm3, %v1955_v53  ;;  %v2379_v8 = vsel %vm584_vm2, %v23728_v42, %v2378_v15  ;;  %v3839_v35 = vsel %vm584_vm2, %v16688_v4, %v3838_v47  ;;  %v3727_v52 = vsel %vm584_vm2, %v16872_v23, %v3726_v20  ;;  %v23731_v15 = vld [vmem:[#allocation33_spill] sm:$0xff]  ;;  %v23736_v47 = vld [vmem:[#allocation178_spill] sm:$0xff] }
 0x3e1   : > { %23729 = vst [vmem:[#allocation131_spill] sm:$0xff] %v17415_v2  ;;  %v2387_v43 = vperm.slane %v2379_v8, %v12509_v3  ;;  %v1829_v63 = vsel %vm584_vm2, %v1828_v44, %v17384_v57  ;;  %11493 = vmatpush.xpose.msk.msra.mxu2 %vm6668_vm3, %v3839_v35  ;;  %v2406_v33 = vrot.slane %v2363_v56, 4  ;;  %v17426_v53 = vperm.slane %v1859_v50, %v12457_v10  ;;  %v23738_v44 = vld [vmem:[#allocation179_spill] sm:$0xff] }
 0x3e2   : > { %v23732_v40 = vrot.slane %v23731_v15, 4  ;;  %v17433_v42 = vperm.slane %v1829_v63, %v12509_v3  ;;  %v23737_v20 = vrot.slane %v23736_v47, 4  ;;  %v23740_v15 = vld [vmem:[#allocation12_spill] sm:$0xff] }
 0x3e3   : > { %23730 = vst [vmem:[#allocation108_spill] sm:$0xff] %v17426_v53  ;;  %v2404_v4 = vrot.slane %v2387_v43, 4  ;;  %v2407_v50 = vsel %vm584_vm2, %v2387_v43, %v2406_v33  ;;  %v23741_v1 = vrot.slane %v23740_v15, 4  ;;  %v23744_v33 = vld [vmem:[#allocation176_spill] sm:$0xff]  ;;  %v6540_v15 = vrot.slane %v17023_v46, 4 }
 0x3e4   : > { %v1871_v36 = vsel %vm584_vm2, %v23733_v14, %v23732_v40  ;;  %23734 = vst [vmem:[#allocation116_spill] sm:$0xff] %v17433_v42  ;;  %v1883_v8 = vsel %vm584_vm2, %v23738_v44, %v23737_v20  ;;  %v23742_v40 = vld [vmem:[#allocation133_spill] sm:$0xff]  ;;  %v2066_v14 = vrot.slane %v16914_v25, 4  ;;  %11466 = vmatmul.msk.f32.gmra.mxu0 %vm6668_vm3, %v2407_v50  ;;  %v2438_v25 = vrot.slane %v23744_v33, 4 }
 0x3e5   : > { %v17436_v23 = vperm.slane %v1871_v36, %v12457_v10  ;;  %v17444_v35 = vperm.slane %v1883_v8, %v12457_v10  ;;  %v1895_v63 = vsel %vm584_vm2, %v23742_v40, %v23741_v1  ;;  %v1848_v36 = vrot.slane %v17433_v42, 4  ;;  %11494 = vmatpush.xpose.msk.msra.mxu2 %vm6668_vm3, %v3727_v52  ;;  %v23785_v42 = vld [vmem:[#allocation67_spill] sm:$0xff] }
 0x3e6   : > { %v2405_v57 = vsel %vm584_vm2, %v2404_v4, %v2363_v56  ;;  %v17455_v47 = vperm.slane %v1895_v63, %v12457_v10  ;;  %v2067_v1 = vsel %vm584_vm2, %v16921_v22, %v2066_v14  ;;  %v23745_v20 = vrot.slane %v17277_v13, 4  ;;  %v23747_v13 = vld [vmem:[#allocation36_spill] sm:$0xff] }
 0x3e7   : > { %23735 = vst [vmem:[#allocation42_spill] sm:$0xff] %v17436_v23  ;;  %v1916_v43 = vrot.slane %v17436_v23, 4  ;;  %11448 = vmatmul.msk.f32.gmra.mxu3 %vm6668_vm3, %v2405_v57  ;;  %v6636_v4 = vrot.slane %v17307_v54, 4  ;;  %v1849_v44 = vsel %vm584_vm2, %v1848_v36, %v17415_v2  ;;  %v23748_v14 = vrot.slane %v16876_v59, 4 }
 0x3e8   : > { %23739 = vst [vmem:[#allocation52_spill] sm:$0xff] %v17444_v35  ;;  %v17467_v56 = vsel %vm584_vm2, %v23745_v20, %v23690_v48  ;;  %v1940_v52 = vrot.slane %v17455_v47, 4  ;;  %11479 = vmatmul.msk.f32.gmra.mxu1 %vm6668_vm3, %v1849_v44  ;;  %11427 = vmatmul.msk.f32.gmra.mxu2 %vm6668_vm3, %v2067_v1  ;;  %v2439_v48 = vsel %vm584_vm2, %v23747_v13, %v2438_v25 }
 0x3e9   : > { %23743 = vst [vmem:[#allocation104_spill] sm:$0xff] %v17455_v47  ;;  %v1917_v57 = vsel %vm584_vm2, %v1916_v43, %v17426_v53  ;;  %v6621_v50 = vperm.slane %v17467_v56, %v12457_v10  ;;  %v2447_v63 = vperm.slane %v2439_v48, %v12509_v3  ;;  %v1971_v36 = vsel %vm584_vm2, %v16837_v6, %v23748_v14 }
 0x3ea   : > { %v17478_v8 = vperm.slane %v1917_v57, %v12509_v3  ;;  %v1941_v40 = vsel %vm584_vm2, %v1940_v52, %v17444_v35  ;;  %v23749_v43 = vrot.slane %v16858_v60, 4  ;;  %v17502_v20 = vperm.slane %v1971_v36, %v12457_v10 }
 0x3eb   : > { %v17498_v33 = vperm.slane %v1941_v40, %v12509_v3  ;;  %v6637_v25 = vsel %vm584_vm2, %v6636_v4, %v6621_v50  ;;  %v2462_v59 = vrot.slane %v2447_v63, 4  ;;  %v23753_v6 = vrot.slane %v16850_v5, 4 }
 0x3ec   : > { %23746 = vst [vmem:[#allocation174_spill] sm:$0xff] %v17478_v8  ;;  %v1983_v1 = vsel %vm584_vm2, %v16843_v9, %v23749_v43  ;;  %v6643_v57 = vperm.slane %v6637_v25, %v12509_v3  ;;  %v23754_v9 = vrot.slane %v16880_v38, 4  ;;  %v23758_v38 = vrot.slane %v16978_v45, 4  ;;  %v23760_v43 = vld [vmem:[#allocation169_spill] sm:$0xff] }
 0x3ed   : > { %23750 = vst [vmem:[#allocation165_spill] sm:$0xff] %v17498_v33  ;;  %v17505_v44 = vperm.slane %v1983_v1, %v12457_v10  ;;  %v1995_v60 = vsel %vm584_vm2, %v16868_v37, %v23753_v6  ;;  %v1960_v4 = vrot.slane %v17498_v33, 4  ;;  %v2463_v5 = vsel %vm584_vm2, 0.0, %v2462_v59  ;;  %v23757_v37 = vld [vmem:[#allocation98_spill] sm:$0xff] }
 0x3ee   : > { %23751 = vst [vmem:[#allocation159_spill] sm:$0xff] %v17502_v20  ;;  %v2007_v52 = vsel %vm584_vm2, %v23598_v19, %v23754_v9  ;;  %v17518_v13 = vperm.slane %v1995_v60, %v12457_v10  ;;  %11540 = vmatpush.msk.msra.mxu1 %vm299_vm0, %v6643_v57  ;;  %v17530_v14 = vsel %vm584_vm2, %v23758_v38, %v23757_v37  ;;  %v23759_v19 = vrot.slane %v23757_v37, 4  ;;  %v23764_v37 = vld [vmem:[#allocation196_spill] sm:$0xff] }
 0x3ef   : > { %23752 = vst [vmem:[#allocation168_spill] sm:$0xff] %v17505_v44  ;;  %v17521_v48 = vperm.slane %v2007_v52, %v12457_v10  ;;  %v2028_v40 = vrot.slane %v17505_v44, 4  ;;  %v23761_v1 = vrot.slane %v16992_v30, 4  ;;  %v1961_v59 = vsel %vm584_vm2, %v1960_v4, %v17478_v8  ;;  %11449 = vmatmul.msk.f32.gmra.mxu3 %vm6668_vm3, %v2447_v63  ;;  %11467 = vmatmul.msk.f32.gmra.mxu0 %vm6668_vm3, %v2463_v5 }
 0x3f0   : > { %23755 = vst [vmem:[#allocation167_spill] sm:$0xff] %v17518_v13  ;;  %v17536_v36 = vsel %vm584_vm2, %v16978_v45, %v23759_v19  ;;  %v23762_v45 = vrot.slane %v23760_v43, 4  ;;  %v23765_v4 = vrot.slane %v16997_v62, 4  ;;  %v23766_v5 = vrot.slane %v23764_v37, 4  ;;  %11480 = vmatmul.msk.f32.gmra.mxu1 %vm6668_vm3, %v1961_v59 }
 0x3f1   : > { %23756 = vst [vmem:[#allocation31_spill] sm:$0xff] %v17521_v48  ;;  %v17542_v25 = vsel %vm584_vm2, %v23761_v1, %v23760_v43  ;;  %v2029_v6 = vsel %vm584_vm2, %v2028_v40, %v17502_v20  ;;  %v2052_v60 = vrot.slane %v17521_v48, 4  ;;  %v23767_v38 = vrot.slane %v17011_v39, 4  ;;  %v23788_v48 = vld [vmem:[#allocation163_spill] sm:$0xff] }
 0x3f2   : > { %v17555_v9 = vsel %vm584_vm2, %v16992_v30, %v23762_v45  ;;  %v17558_v52 = vperm.slane %v2029_v6, %v12509_v3  ;;  %v17564_v63 = vsel %vm584_vm2, %v23765_v4, %v23764_v37  ;;  %v17570_v40 = vsel %vm584_vm2, %v16997_v62, %v23766_v5  ;;  %v23769_v45 = vld [vmem:[#allocation143_spill] sm:$0xff] }
 0x3f3   : > { %v17576_v30 = vsel %vm584_vm2, %v23767_v38, %v23618_v49  ;;  %v2053_v19 = vsel %vm584_vm2, %v2052_v60, %v17518_v13  ;;  %v6504_v43 = vrot.slane %v17542_v25, 4  ;;  %v6516_v6 = vrot.slane %v17555_v9, 4  ;;  %v23789_v13 = vld [vmem:[#allocation14_spill] sm:$0xff] }
 0x3f4   : > { %23763 = vst [vmem:[#allocation54_spill] sm:$0xff] %v17558_v52  ;;  %v17585_v62 = vperm.slane %v2053_v19, %v12509_v3  ;;  %v6528_v39 = vrot.slane %v17576_v30, 4  ;;  %v6541_v37 = vsel %vm584_vm2, %v6540_v15, %v17570_v40  ;;  %v6638_v15 = vrot.slane %v6621_v50, 4 }
 0x3f5   : > { %v6505_v59 = vsel %vm584_vm2, %v6504_v43, %v17530_v14  ;;  %v6517_v60 = vsel %vm584_vm2, %v6516_v6, %v17536_v36  ;;  %v17610_v6 = vperm.slane %v6541_v37, %v12457_v10  ;;  %v2178_v4 = vrot.slane %v23769_v45, 4 }
 0x3f6   : > { %23768 = vst [vmem:[#allocation180_spill] sm:$0xff] %v17585_v62  ;;  %v2072_v5 = vrot.slane %v17585_v62, 4  ;;  %v17599_v38 = vperm.slane %v6505_v59, %v12457_v10  ;;  %v17602_v19 = vperm.slane %v6517_v60, %v12457_v10  ;;  %v6529_v49 = vsel %vm584_vm2, %v6528_v39, %v17564_v63  ;;  %v23771_v62 = vld [vmem:[#allocation144_spill] sm:$0xff] }
 0x3f7   : > { %v17607_v43 = vperm.slane %v6529_v49, %v12457_v10  ;;  %v6660_v22 = vrot.slane %v6643_v57, 4  ;;  %v23770_v60 = vrot.slane %v17053_v41, 4  ;;  %v6576_v49 = vrot.slane %v17610_v6, 4 }
 0x3f8   : > { %v2073_v1 = vsel %vm584_vm2, %v2072_v5, %v17558_v52  ;;  %v6552_v59 = vrot.slane %v17602_v19, 4  ;;  %v6639_v37 = vsel %vm584_vm2, %v17307_v54, %v6638_v15  ;;  %v2179_v50 = vsel %vm584_vm2, %v23771_v62, %v2178_v4  ;;  %v23774_v52 = vld [vmem:[#allocation23_spill] sm:$0xff] }
 0x3f9   : > { %v1583_v39 = vsel %vm584_vm2, %v17074_v31, %v23770_v60  ;;  %v6647_v57 = vperm.slane %v6639_v37, %v12509_v3  ;;  %11428 = vmatmul.msk.f32.gmra.mxu2 %vm6668_vm3, %v2179_v50  ;;  %v6661_v41 = vsel %vm584_vm2, 0.0, %v6660_v22  ;;  %v23772_v31 = vld [vmem:[#allocation41_spill] sm:$0xff]  ;;  %11481 = vmatmul.msk.f32.gmra.mxu1 %vm6668_vm3, %v2073_v1  ;;  %v6577_v4 = vsel %vm584_vm2, %v6576_v49, %v17607_v43  ;;  %v23776_v37 = vld [vmem:[#allocation170_spill] sm:$0xff] }
 0x3fa   : > { %v17626_v45 = vperm.slane %v1583_v39, %v12509_v3  ;;  %v6553_v5 = vsel %vm584_vm2, %v6552_v59, %v17599_v38  ;;  %v23773_v60 = vrot.slane %v23772_v31, 4  ;;  %11550 = vmatpush.msk.msrb.mxu2 %vm299_vm0, %v6661_v41  ;;  %v23775_v59 = vld [vmem:[#allocation7_spill] sm:$0xff]  ;;  %v6583_v22 = vperm.slane %v6577_v4, %v12509_v3  ;;  %v23777_v50 = vld [vmem:[#allocation109_spill] sm:$0xff]  ;;  %v23781_v31 = vld [vmem:[#allocation166_spill] sm:$0xff] }
 0x3fb   : > { %v6559_v62 = vperm.slane %v6553_v5, %v12509_v3  ;;  %v6428_v39 = vrot.slane %v23775_v59, 4  ;;  %11560 = vmatpush.msk.msrb.mxu3 %vm299_vm0, %v6647_v57  ;;  %v23779_v5 = vrot.slane %v23776_v37, 4  ;;  %v23780_v41 = vld [vmem:[#allocation155_spill] sm:$0xff]  ;;  %v6554_v47 = vrot.slane %v17599_v38, 4 }
 0x3fc   : > { %v1607_v54 = vsel %vm584_vm2, %v23774_v52, %v23773_v60  ;;  %v23778_v52 = vrot.slane %v23777_v50, 4  ;;  %v23782_v60 = vrot.slane %v23781_v31, 4  ;;  %v23783_v33 = vrot.slane %v23780_v41, 4 }
 0x3fd   : > { %v1615_v15 = vperm.slane %v1607_v54, %v12509_v3  ;;  %v17656_v49 = vsel %vm584_vm2, %v23777_v50, %v23779_v5  ;;  %v1630_v23 = vrot.slane %v17626_v45, 4 }
 0x3fe   : > { %v17650_v1 = vsel %vm584_vm2, %v23778_v52, %v23776_v37  ;;  %v17662_v54 = vsel %vm584_vm2, %v23782_v60, %v23780_v41  ;;  %v17668_v8 = vsel %vm584_vm2, %v23781_v31, %v23783_v33  ;;  %v23784_v52 = vld [vmem:[#allocation164_spill] sm:$0xff]  ;;  %v23786_v37 = vrot.slane %v23785_v42, 4 }
 0x3ff   : > { %v1628_v4 = vrot.slane %v1615_v15, 4  ;;  %v23787_v50 = vrot.slane %v23784_v52, 4  ;;  %v6600_v60 = vrot.slane %v6583_v22, 4  ;;  %v23790_v41 = vrot.slane %v23789_v13, 4 }
 0x400   : > { %v17674_v2 = vsel %vm584_vm2, %v23786_v37, %v23784_v52  ;;  %v6392_v33 = vrot.slane %v17662_v54, 4  ;;  %v6404_v52 = vrot.slane %v17668_v8, 4 }
 0x401   : > { %v17680_v5 = vsel %vm584_vm2, %v23785_v42, %v23787_v50  ;;  %v17686_v44 = vsel %vm584_vm2, %v23790_v41, %v23788_v48  ;;  %v1629_v37 = vsel %vm584_vm2, %v1628_v4, %v17626_v45  ;;  %v6601_v50 = vsel %vm584_vm2, %v6600_v60, %v6559_v62 }
 0x402   : > { %v6416_v42 = vrot.slane %v17686_v44, 4  ;;  %11513 = vmatmul.msk.f32.vlgmr.msra.gmra.mxu3 %vm6668_vm3, %v1629_v37  ;;  %v6393_v13 = vsel %vm584_vm2, %v6392_v33, %v17650_v1  ;;  %v6429_v41 = vsel %vm584_vm2, %v6428_v39, %v17680_v5  ;;  %8285 = vmatpush.msra.mxu1 %v6601_v50  ;;  %v6405_v20 = vsel %vm584_vm2, %v6404_v52, %v17656_v49 }
 0x403   : > { %v6399_v4 = vperm.slane %v6393_v13, %v12457_v10  ;;  %v6411_v37 = vperm.slane %v6405_v20, %v12457_v10  ;;  %v6435_v48 = vperm.slane %v6429_v41, %v12457_v10  ;;  %v6578_v39 = vrot.slane %v17607_v43, 4 }
 0x404   : > { %v6417_v31 = vsel %vm584_vm2, %v6416_v42, %v17674_v2  ;;  %v6602_v50 = vrot.slane %v6559_v62, 4  ;;  %v6662_v13 = vrot.slane %v6647_v57, 4  ;;  %v6555_v42 = vsel %vm584_vm2, %v17602_v19, %v6554_v47 }
 0x405   : > { %v6423_v33 = vperm.slane %v6417_v31, %v12457_v10  ;;  %v6440_v52 = vrot.slane %v6411_v37, 4  ;;  %v6464_v35 = vrot.slane %v6435_v48, 4  ;;  %v5440_v60 = vrot.slane %v17330_v61, 4 }
 0x406   : > { %v6563_v20 = vperm.slane %v6555_v42, %v12509_v3  ;;  %v6579_v31 = vsel %vm584_vm2, %v17610_v6, %v6578_v39  ;;  %v6603_v38 = vsel %vm584_vm2, %v6583_v22, %v6602_v50  ;;  %v6663_v43 = vsel %vm584_vm2, 0.0, %v6662_v13  ;;  %v23791_v39 = vld [vmem:[#allocation184_spill] sm:$0xff] }
 0x407   : > { %v6441_v57 = vsel %vm584_vm2, %v6440_v52, %v6399_v4  ;;  %v6465_v45 = vsel %vm584_vm2, %v6464_v35, %v6423_v33  ;;  %v6587_v62 = vperm.slane %v6579_v31, %v12509_v3  ;;  %8359 = vmatpush.msrb.mxu2 %v6603_v38  ;;  %11570 = vmatpush.msk.msrb.mxu0 %vm299_vm0, %v6663_v43  ;;  %v6442_v47 = vrot.slane %v6399_v4, 4  ;;  %v23793_v4 = vld [vmem:[#allocation186_spill] sm:$0xff]  ;;  %v23796_v31 = vld [vmem:[#allocation187_spill] sm:$0xff] }
 0x408   : > { %v6447_v19 = vperm.slane %v6441_v57, %v12509_v3  ;;  %v6471_v41 = vperm.slane %v6465_v45, %v12509_v3  ;;  %v1631_v6 = vsel %vm584_vm2, %v1615_v15, %v1630_v23  ;;  %v17731_v22 = vsel %vm584_vm2, %v5440_v60, %v23791_v39 }
 0x409   : > { %v6604_v50 = vrot.slane %v6587_v62, 4  ;;  %11531 = vmatmul.msk.f32.vlgmr.msra.gmra.mxu0 %vm6668_vm3, %v1631_v6  ;;  %v23792_v35 = vrot.slane %v23791_v39, 4  ;;  %v23794_v52 = vrot.slane %v17290_v55, 4  ;;  %v23795_v23 = vrot.slane %v23793_v4, 4 }
 0x40a   : > { %v6488_v60 = vrot.slane %v6471_v41, 4  ;;  %v23797_v38 = vrot.slane %v17342_v12, 4  ;;  %v23800_v45 = vrot.slane %v17346_v24, 4  ;;  %v6466_v24 = vrot.slane %v6423_v33, 4 }
 0x40b   : > { %v17738_v13 = vsel %vm584_vm2, %v17330_v61, %v23792_v35  ;;  %v17744_v42 = vsel %vm584_vm2, %v23794_v52, %v23793_v4  ;;  %v17750_v15 = vsel %vm584_vm2, %v17290_v55, %v23795_v23  ;;  %v23798_v61 = vrot.slane %v23796_v31, 4 }
 0x40c   : > { %v17756_v43 = vsel %vm584_vm2, %v23797_v38, %v23796_v31  ;;  %v17768_v6 = vsel %vm584_vm2, %v23800_v45, %v23704_v11  ;;  %v6605_v55 = vsel %vm584_vm2, %v6604_v50, %v6563_v20  ;;  %v6280_v39 = vrot.slane %v17744_v42, 4 }
 0x40d   : > { %v17762_v57 = vsel %vm584_vm2, %v17342_v12, %v23798_v61  ;;  %v6292_v4 = vrot.slane %v17750_v15, 4  ;;  %v6489_v52 = vsel %vm584_vm2, %v6488_v60, %v6447_v19  ;;  %8433 = vmatpush.msrb.mxu3 %v6605_v55  ;;  %v6304_v23 = vrot.slane %v17768_v6, 4 }
 0x40e   : > { %23799 = vst [vmem:[#allocation6_spill] sm:$0xff] %v17762_v57  ;;  %8286 = vmatpush.msra.mxu1 %v6489_v52  ;;  %v6281_v11 = vsel %vm584_vm2, %v6280_v39, %v17731_v22  ;;  %v23801_v31 = vrot.slane %v17362_v32, 4  ;;  %v6490_v12 = vrot.slane %v6447_v19, 4  ;;  %v6606_v60 = vrot.slane %v6563_v20, 4 }
 0x40f   : > { %v6293_v50 = vsel %vm584_vm2, %v6292_v4, %v17738_v13  ;;  %v6287_v61 = vperm.slane %v6281_v11, %v12457_v10  ;;  %v6305_v55 = vsel %vm584_vm2, %v6304_v23, %v17756_v43  ;;  %v6443_v4 = vsel %vm584_vm2, %v6411_v37, %v6442_v47  ;;  %v23802_v23 = vld [vmem:[#allocation182_spill] sm:$0xff] }
 0x410   : > { %v6317_v38 = vsel %vm584_vm2, %v23801_v31, %v17762_v57  ;;  %v6299_v45 = vperm.slane %v6293_v50, %v12457_v10  ;;  %v6311_v39 = vperm.slane %v6305_v55, %v12457_v10  ;;  %v6451_v31 = vperm.slane %v6443_v4, %v12509_v3 }
 0x411   : > { %v6323_v52 = vperm.slane %v6317_v38, %v12457_v10  ;;  %v6467_v11 = vsel %vm584_vm2, %v6435_v48, %v6466_v24  ;;  %v6491_v50 = vsel %vm584_vm2, %v6471_v41, %v6490_v12  ;;  %v5328_v32 = vrot.slane %v17335_v18, 4  ;;  %v23807_v24 = vld [vmem:[#allocation181_spill] sm:$0xff] }
 0x412   : > { %v6328_v35 = vrot.slane %v6299_v45, 4  ;;  %v23803_v57 = vrot.slane %v23802_v23, 4  ;;  %v6475_v47 = vperm.slane %v6467_v11, %v12509_v3  ;;  %8360 = vmatpush.msrb.mxu2 %v6491_v50  ;;  %v6607_v20 = vsel %vm584_vm2, %v6587_v62, %v6606_v60 }
 0x413   : > { %v6352_v53 = vrot.slane %v6323_v52, 4  ;;  %8507 = vmatpush.msrb.mxu0 %v6607_v20  ;;  %v17812_v41 = vsel %vm584_vm2, %v5328_v32, %v23802_v23  ;;  %v23808_v60 = vrot.slane %v17327_v28, 4  ;;  %v23809_v32 = vrot.slane %v23807_v24, 4 }
 0x414   : > { %v17802_v38 = vsel %vm584_vm2, %v17335_v18, %v23803_v57  ;;  %v6329_v37 = vsel %vm584_vm2, %v6328_v35, %v6287_v61  ;;  %v23804_v18 = vld [vmem:[#allocation185_spill] sm:$0xff]  ;;  %v23805_v57 = vrot.slane %v17313_v34, 4  ;;  %v23810_v50 = vrot.slane %v17300_v51, 4 }
 0x415   : > { %v6353_v33 = vsel %vm584_vm2, %v6352_v53, %v6311_v39  ;;  %v6335_v48 = vperm.slane %v6329_v37, %v12509_v3  ;;  %v6492_v53 = vrot.slane %v6475_v47, 4  ;;  %v23806_v12 = vrot.slane %v23804_v18, 4  ;;  %v23814_v37 = vld [vmem:[#allocation20_spill] sm:$0xff] }
 0x416   : > { %v6359_v19 = vperm.slane %v6353_v33, %v12509_v3  ;;  %v17818_v35 = vsel %vm584_vm2, %v23805_v57, %v23804_v18  ;;  %v17830_v55 = vsel %vm584_vm2, %v23808_v60, %v23807_v24  ;;  %v17836_v4 = vsel %vm584_vm2, %v17327_v28, %v23809_v32  ;;  %v23812_v18 = vld [vmem:[#allocation59_spill] sm:$0xff] }
 0x417   : > { %v17824_v62 = vsel %vm584_vm2, %v17313_v34, %v23806_v12  ;;  %v17842_v23 = vsel %vm584_vm2, %v23810_v50, %v23695_v26  ;;  %v6168_v34 = vrot.slane %v17818_v35, 4  ;;  %v6493_v33 = vsel %vm584_vm2, %v6492_v53, %v6451_v31 }
 0x418   : > { %v6376_v11 = vrot.slane %v6359_v19, 4  ;;  %v6180_v20 = vrot.slane %v17824_v62, 4  ;;  %v6192_v28 = vrot.slane %v17842_v23, 4  ;;  %8434 = vmatpush.msrb.mxu3 %v6493_v33  ;;  %v23811_v12 = vrot.slane %v17322_v17, 4 }
 0x419   : > { %v6169_v51 = vsel %vm584_vm2, %v6168_v34, %v17812_v41  ;;  %v6494_v26 = vrot.slane %v6451_v31, 4 }
 0x41a   : > { %v6377_v57 = vsel %vm584_vm2, %v6376_v11, %v6335_v48  ;;  %v6205_v24 = vsel %vm584_vm2, %v23811_v12, %v17836_v4  ;;  %v17859_v53 = vperm.slane %v6169_v51, %v12457_v10  ;;  %v6181_v60 = vsel %vm584_vm2, %v6180_v20, %v17802_v38 }
 0x41b   : > { %8287 = vmatpush.msra.mxu1 %v6377_v57  ;;  %v6193_v32 = vsel %vm584_vm2, %v6192_v28, %v17830_v55  ;;  %v17867_v50 = vperm.slane %v6181_v60, %v12457_v10  ;;  %v17873_v33 = vperm.slane %v6205_v24, %v12457_v10  ;;  %v6330_v57 = vrot.slane %v6287_v61, 4 }
 0x41c   : > { %v17870_v34 = vperm.slane %v6193_v32, %v12457_v10  ;;  %v6354_v51 = vrot.slane %v6311_v39, 4  ;;  %v6378_v12 = vrot.slane %v6335_v48, 4  ;;  %v23813_v20 = vrot.slane %v23812_v18, 4 }
 0x41d   : > { %v6216_v11 = vrot.slane %v17867_v50, 4  ;;  %v6240_v60 = vrot.slane %v17873_v33, 4  ;;  %v6331_v17 = vsel %vm584_vm2, %v6299_v45, %v6330_v57  ;;  %v6495_v31 = vsel %vm584_vm2, %v6475_v47, %v6494_v26  ;;  %v23818_v26 = vld [vmem:[#allocation64_spill] sm:$0xff]  ;;  %v23819_v57 = vld [vmem:[#allocation27_spill] sm:$0xff] }
 0x41e   : > { %v2083_v28 = vsel %vm584_vm2, %v23814_v37, %v23813_v20  ;;  %v17886_v24 = vperm.slane %v6331_v17, %v12509_v3  ;;  %v6355_v61 = vsel %vm584_vm2, %v6323_v52, %v6354_v51  ;;  %v6379_v39 = vsel %vm584_vm2, %v6359_v19, %v6378_v12  ;;  %8508 = vmatpush.msrb.mxu0 %v6495_v31  ;;  %v23816_v19 = vld [vmem:[#allocation60_spill] sm:$0xff]  ;;  %v23821_v12 = vld [vmem:[#allocation61_spill] sm:$0xff] }
 0x41f   : > { %v17883_v32 = vperm.slane %v2083_v28, %v12457_v10  ;;  %v6217_v48 = vsel %vm584_vm2, %v6216_v11, %v17859_v53  ;;  %v6241_v37 = vsel %vm584_vm2, %v6240_v60, %v17870_v34  ;;  %v17896_v45 = vperm.slane %v6355_v61, %v12509_v3  ;;  %8361 = vmatpush.msrb.mxu2 %v6379_v39  ;;  %v23824_v39 = vld [vmem:[#allocation51_spill] sm:$0xff] }
 0x420   : > { %v5216_v17 = vrot.slane %v17148_v7, 4  ;;  %v17900_v18 = vperm.slane %v6217_v48, %v12509_v3  ;;  %v6247_v52 = vperm.slane %v6241_v37, %v12509_v3  ;;  %v23817_v47 = vrot.slane %v23816_v19, 4  ;;  %v23826_v48 = vld [vmem:[#allocation62_spill] sm:$0xff] }
 0x421   : > { %23815 = vst [vmem:[#allocation37_spill] sm:$0xff] %v17883_v32  ;;  %v23820_v51 = vrot.slane %v23819_v57, 4  ;;  %v6380_v28 = vrot.slane %v17896_v45, 4  ;;  %v23825_v31 = vrot.slane %v23824_v39, 4  ;;  %v23831_v39 = vld [vmem:[#allocation149_spill] sm:$0xff] }
 0x422   : > { %v2095_v11 = vsel %vm584_vm2, %v23818_v26, %v23817_v47  ;;  %v6264_v19 = vrot.slane %v6247_v52, 4  ;;  %v23828_v26 = vld [vmem:[#allocation110_spill] sm:$0xff] }
 0x423   : > { %v2107_v20 = vsel %vm584_vm2, %v23821_v12, %v23820_v51  ;;  %v17913_v60 = vperm.slane %v2095_v11, %v12457_v10  ;;  %v2119_v37 = vsel %vm584_vm2, %v23826_v48, %v23825_v31  ;;  %v17927_v57 = vsel %vm584_vm2, %v5216_v17, %v23828_v26 }
 0x424   : > { %v17916_v61 = vperm.slane %v2107_v20, %v12457_v10  ;;  %v17923_v47 = vperm.slane %v2119_v37, %v12457_v10  ;;  %v23829_v51 = vrot.slane %v23828_v26, 4  ;;  %v6381_v12 = vsel %vm584_vm2, %v6380_v28, %v17886_v24  ;;  %v23835_v26 = vld [vmem:[#allocation175_spill] sm:$0xff] }
 0x425   : > { %23822 = vst [vmem:[#allocation46_spill] sm:$0xff] %v17913_v60  ;;  %v2140_v20 = vrot.slane %v17913_v60, 4  ;;  %v23832_v31 = vrot.slane %v17151_v58, 4  ;;  %v23833_v17 = vrot.slane %v23831_v39, 4  ;;  %8435 = vmatpush.msrb.mxu3 %v6381_v12 }
 0x426   : > { %23823 = vst [vmem:[#allocation139_spill] sm:$0xff] %v17916_v61  ;;  %v17933_v11 = vsel %vm584_vm2, %v17148_v7, %v23829_v51  ;;  %v6265_v7 = vsel %vm584_vm2, %v6264_v19, %v17900_v18  ;;  %v2164_v28 = vrot.slane %v17923_v47, 4  ;;  %v23836_v51 = vrot.slane %v17172_v29, 4 }
 0x427   : > { %23827 = vst [vmem:[#allocation128_spill] sm:$0xff] %v17923_v47  ;;  %v17942_v48 = vsel %vm584_vm2, %v23832_v31, %v23831_v39  ;;  %v17948_v37 = vsel %vm584_vm2, %v17151_v58, %v23833_v17  ;;  %v23838_v31 = vrot.slane %v23835_v26, 4  ;;  %8288 = vmatpush.msra.mxu1 %v6265_v7  ;;  %v2141_v58 = vsel %vm584_vm2, %v2140_v20, %v17883_v32  ;;  %v23845_v32 = vld [vmem:[#allocation38_spill] sm:$0xff] }
 0x428   : > { %23830 = vst [vmem:[#allocation134_spill] sm:$0xff] %v17933_v11  ;;  %v17957_v60 = vsel %vm584_vm2, %v23836_v51, %v23835_v26  ;;  %v23840_v19 = vrot.slane %v17175_v16, 4  ;;  %v6056_v17 = vrot.slane %v17942_v48, 4  ;;  %v17976_v26 = vperm.slane %v2141_v58, %v12509_v3 }
 0x429   : > { %23834 = vst [vmem:[#allocation138_spill] sm:$0xff] %v17948_v37  ;;  %v17963_v39 = vsel %vm584_vm2, %v17172_v29, %v23838_v31  ;;  %v2165_v29 = vsel %vm584_vm2, %v2164_v28, %v17916_v61  ;;  %v6068_v7 = vrot.slane %v17948_v37, 4  ;;  %v23844_v51 = vrot.slane %v17193_v0, 4  ;;  %v23862_v37 = vld [vmem:[#allocation158_spill] sm:$0xff] }
 0x42a   : > { %23837 = vst [vmem:[#allocation129_spill] sm:$0xff] %v17957_v60  ;;  %v17971_v12 = vsel %vm584_vm2, %v23840_v19, %v23660_v21  ;;  %v17983_v31 = vperm.slane %v2165_v29, %v12509_v3  ;;  %v6057_v16 = vsel %vm584_vm2, %v6056_v17, %v17927_v57  ;;  %v6218_v61 = vrot.slane %v17859_v53, 4 }
 0x42b   : > { %23839 = vst [vmem:[#allocation130_spill] sm:$0xff] %v17963_v39  ;;  %v6080_v21 = vrot.slane %v17971_v12, 4  ;;  %v17990_v58 = vperm.slane %v6057_v16, %v12457_v10  ;;  %v6069_v28 = vsel %vm584_vm2, %v6068_v7, %v17933_v11  ;;  %v6093_v20 = vsel %vm584_vm2, %v23844_v51, %v17963_v39 }
 0x42c   : > { %23841 = vst [vmem:[#allocation48_spill] sm:$0xff] %v17971_v12  ;;  %v2184_v47 = vrot.slane %v17983_v31, 4  ;;  %v18001_v17 = vperm.slane %v6069_v28, %v12457_v10  ;;  %v18006_v16 = vperm.slane %v6093_v20, %v12457_v10  ;;  %v6242_v51 = vrot.slane %v17870_v34, 4  ;;  %v23846_v34 = vld [vmem:[#allocation97_spill] sm:$0xff] }
 0x42d   : > { %23842 = vst [vmem:[#allocation135_spill] sm:$0xff] %v17976_v26  ;;  %v6081_v19 = vsel %vm584_vm2, %v6080_v21, %v17957_v60  ;;  %v2290_v29 = vrot.slane %v23845_v32, 4  ;;  %v6266_v21 = vrot.slane %v17900_v18, 4  ;;  %v6219_v20 = vsel %vm584_vm2, %v17867_v50, %v6218_v61  ;;  %v23860_v60 = vld [vmem:[#allocation13_spill] sm:$0xff] }
 0x42e   : > { %23843 = vst [vmem:[#allocation152_spill] sm:$0xff] %v17983_v31  ;;  %v18009_v7 = vperm.slane %v6081_v19, %v12457_v10  ;;  %v2185_v31 = vsel %vm584_vm2, %v2184_v47, %v17976_v26  ;;  %v6104_v28 = vrot.slane %v18001_v17, 4  ;;  %v6128_v0 = vrot.slane %v18006_v16, 4 }
 0x42f   : > { %11482 = vmatmul.msk.f32.gmra.mxu1 %vm6668_vm3, %v2185_v31  ;;  %v6243_v53 = vsel %vm584_vm2, %v17873_v33, %v6242_v51  ;;  %v2291_v32 = vsel %vm584_vm2, %v23846_v34, %v2290_v29  ;;  %v6382_v19 = vrot.slane %v17886_v24, 4  ;;  %v6227_v18 = vperm.slane %v6219_v20, %v12509_v3  ;;  %v23847_v51 = vld [vmem:[#allocation16_spill] sm:$0xff]  ;;  %v23849_v34 = vld [vmem:[#allocation111_spill] sm:$0xff] }
 0x430   : > { %v6105_v47 = vsel %vm584_vm2, %v6104_v28, %v17990_v58  ;;  %v6129_v26 = vsel %vm584_vm2, %v6128_v0, %v18009_v7  ;;  %v6251_v31 = vperm.slane %v6243_v53, %v12509_v3  ;;  %11429 = vmatmul.msk.f32.gmra.mxu2 %vm6668_vm3, %v2291_v32  ;;  %v6267_v61 = vsel %vm584_vm2, %v6247_v52, %v6266_v21  ;;  %v23848_v28 = vld [vmem:[#allocation34_spill] sm:$0xff]  ;;  %v23850_v32 = vld [vmem:[#allocation197_spill] sm:$0xff]  ;;  %v23854_v21 = vld [vmem:[#allocation92_spill] sm:$0xff] }
 0x431   : > { %v6111_v50 = vperm.slane %v6105_v47, %v12509_v3  ;;  %v6135_v33 = vperm.slane %v6129_v26, %v12509_v3  ;;  %v6383_v24 = vsel %vm584_vm2, %v17896_v45, %v6382_v19  ;;  %8362 = vmatpush.msrb.mxu2 %v6267_v61  ;;  %v1694_v0 = vrot.slane %v23847_v51, 4  ;;  %v23853_v52 = vld [vmem:[#allocation58_spill] sm:$0xff] }
 0x432   : > { %v6268_v29 = vrot.slane %v6251_v31, 4  ;;  %8509 = vmatpush.msrb.mxu0 %v6383_v24  ;;  %v1718_v20 = vrot.slane %v23848_v28, 4  ;;  %v5104_v53 = vrot.slane %v23849_v34, 4  ;;  %v23851_v12 = vrot.slane %v23850_v32, 4  ;;  %v23859_v51 = vld [vmem:[#allocation66_spill] sm:$0xff] }
 0x433   : > { %v6152_v39 = vrot.slane %v6135_v33, 4  ;;  %v23855_v47 = vrot.slane %v23854_v21, 4  ;;  %v23857_v19 = vrot.slane %v23853_v52, 4  ;;  %v1695_v28 = vsel %vm584_vm2, %v23859_v51, %v1694_v0 }
 0x434   : > { %v18046_v26 = vsel %vm584_vm2, %v23849_v34, %v23851_v12  ;;  %v6269_v24 = vsel %vm584_vm2, %v6268_v29, %v6227_v18  ;;  %v1719_v12 = vsel %vm584_vm2, %v23860_v60, %v1718_v20  ;;  %v18067_v34 = vsel %vm584_vm2, %v5104_v53, %v23850_v32  ;;  %v23867_v20 = vld [vmem:[#allocation141_spill] sm:$0xff] }
 0x435   : > { %23852 = vst [vmem:[#allocation151_spill] sm:$0xff] %v18046_v26  ;;  %v18052_v45 = vsel %vm584_vm2, %v23855_v47, %v23853_v52  ;;  %v18058_v61 = vsel %vm584_vm2, %v23854_v21, %v23857_v19  ;;  %v6153_v47 = vsel %vm584_vm2, %v6152_v39, %v6111_v50  ;;  %8436 = vmatpush.msrb.mxu3 %v6269_v24  ;;  %v23861_v19 = vld [vmem:[#allocation150_spill] sm:$0xff]  ;;  %v23863_v29 = vrot.slane %v23862_v37, 4  ;;  %v23868_v39 = vld [vmem:[#allocation172_spill] sm:$0xff] }
 0x436   : > { %23856 = vst [vmem:[#allocation68_spill] sm:$0xff] %v18052_v45  ;;  %v1703_v52 = vperm.slane %v1695_v28, %v12509_v3  ;;  %v1727_v21 = vperm.slane %v1719_v12, %v12509_v3  ;;  %8289 = vmatpush.msra.mxu1 %v6153_v47  ;;  %v23865_v60 = vrot.slane %v23861_v19, 4  ;;  %v23869_v53 = vrot.slane %v23868_v39, 4 }
 0x437   : > { %23858 = vst [vmem:[#allocation9_spill] sm:$0xff] %v18058_v61  ;;  %v18076_v11 = vsel %vm584_vm2, %v23863_v29, %v23861_v19  ;;  %v5944_v24 = vrot.slane %v18052_v45, 4  ;;  %v5956_v12 = vrot.slane %v18058_v61, 4 }
 0x438   : > { %23864 = vst [vmem:[#allocation26_spill] sm:$0xff] %v18076_v11  ;;  %v18082_v0 = vsel %vm584_vm2, %v23862_v37, %v23865_v60  ;;  %v18088_v32 = vsel %vm584_vm2, %v23869_v53, %v23867_v20  ;;  %v1740_v28 = vrot.slane %v1727_v21, 4  ;;  %v23871_v60 = vld [vmem:[#allocation103_spill] sm:$0xff]  ;;  %v6154_v53 = vrot.slane %v6111_v50, 4 }
 0x439   : > { %23866 = vst [vmem:[#allocation195_spill] sm:$0xff] %v18082_v0  ;;  %v5968_v19 = vrot.slane %v18088_v32, 4  ;;  %v5945_v37 = vsel %vm584_vm2, %v5944_v24, %v18067_v34  ;;  %v23872_v20 = vrot.slane %v23871_v60, 4  ;;  %v5957_v47 = vsel %vm584_vm2, %v5956_v12, %v18046_v26 }
 0x43a   : > { %23870 = vst [vmem:[#allocation145_spill] sm:$0xff] %v18088_v32  ;;  %v1741_v51 = vsel %vm584_vm2, %v1740_v28, %v1703_v52  ;;  %v18105_v61 = vperm.slane %v5945_v37, %v12457_v10  ;;  %v5963_v29 = vperm.slane %v5957_v47, %v12457_v10  ;;  %v6106_v28 = vrot.slane %v17990_v58, 4 }
 0x43b   : > { %v5981_v39 = vsel %vm584_vm2, %v23872_v20, %v18082_v0  ;;  %v5969_v24 = vsel %vm584_vm2, %v5968_v19, %v18076_v11  ;;  %11514 = vmatmul.msk.f32.gmra.mxu3 %vm6668_vm3, %v1741_v51  ;;  %v6130_v37 = vrot.slane %v18009_v7, 4  ;;  %v6270_v0 = vrot.slane %v6227_v18, 4  ;;  %v23873_v51 = vld [vmem:[#allocation191_spill] sm:$0xff]  ;;  %v23874_v11 = vld [vmem:[#allocation112_spill] sm:$0xff] }
 0x43c   : > { %v18114_v60 = vperm.slane %v5969_v24, %v12457_v10  ;;  %v5987_v20 = vperm.slane %v5981_v39, %v12457_v10  ;;  %v1742_v32 = vrot.slane %v1703_v52, 4  ;;  %v5992_v12 = vrot.slane %v5963_v29, 4 }
 0x43d   : > { %v6107_v19 = vsel %vm584_vm2, %v18001_v17, %v6106_v28  ;;  %v23875_v47 = vrot.slane %v23874_v11, 4  ;;  %v6131_v58 = vsel %vm584_vm2, %v18006_v16, %v6130_v37  ;;  %v6155_v7 = vsel %vm584_vm2, %v6135_v33, %v6154_v53  ;;  %v23879_v37 = vld [vmem:[#allocation63_spill] sm:$0xff] }
 0x43e   : > { %v6016_v26 = vrot.slane %v5987_v20, 4  ;;  %v6115_v39 = vperm.slane %v6107_v19, %v12509_v3  ;;  %v6271_v18 = vsel %vm584_vm2, %v6251_v31, %v6270_v0  ;;  %v5993_v50 = vsel %vm584_vm2, %v5992_v12, %v18105_v61  ;;  %8363 = vmatpush.msrb.mxu2 %v6155_v7 }
 0x43f   : > { %v18125_v24 = vsel %vm584_vm2, %v23875_v47, %v23873_v51  ;;  %v6139_v52 = vperm.slane %v6131_v58, %v12509_v3  ;;  %8510 = vmatpush.msrb.mxu0 %v6271_v18  ;;  %v5999_v19 = vperm.slane %v5993_v50, %v12509_v3  ;;  %v1743_v33 = vsel %vm584_vm2, %v1727_v21, %v1742_v32  ;;  %v23884_v32 = vld [vmem:[#allocation194_spill] sm:$0xff] }
 0x440   : > { %v6017_v17 = vsel %vm584_vm2, %v6016_v26, %v18114_v60  ;;  %v23876_v31 = vrot.slane %v23873_v51, 4  ;;  %11532 = vmatmul.msk.f32.gmra.mxu0 %vm6668_vm3, %v1743_v33  ;;  %v23878_v26 = vld [vmem:[#allocation192_spill] sm:$0xff]  ;;  %v23880_v12 = vrot.slane %v23879_v37, 4  ;;  %v23885_v51 = vld [vmem:[#allocation119_spill] sm:$0xff]  ;;  %v23888_v50 = vrot.slane %v23884_v32, 4  ;;  %v23890_v33 = vld [vmem:[#allocation193_spill] sm:$0xff] }
 0x441   : > { %v6023_v16 = vperm.slane %v6017_v17, %v12509_v3  ;;  %v6156_v53 = vrot.slane %v6139_v52, 4  ;;  %v23882_v58 = vrot.slane %v23878_v26, 4  ;;  %v23886_v7 = vrot.slane %v23885_v51, 4 }
 0x442   : > { %v18145_v0 = vsel %vm584_vm2, %v23874_v11, %v23876_v31  ;;  %v18152_v47 = vsel %vm584_vm2, %v23880_v12, %v23878_v26  ;;  %v18170_v17 = vsel %vm584_vm2, %v23885_v51, %v23888_v50  ;;  %v23891_v31 = vld [vmem:[#allocation121_spill] sm:$0xff]  ;;  %v5994_v50 = vrot.slane %v18105_v61, 4 }
 0x443   : > { %23877 = vst [vmem:[#allocation28_spill] sm:$0xff] %v18145_v0  ;;  %v18158_v21 = vsel %vm584_vm2, %v23879_v37, %v23882_v58  ;;  %v18164_v11 = vsel %vm584_vm2, %v23886_v7, %v23884_v32  ;;  %v6040_v18 = vrot.slane %v6023_v16, 4  ;;  %v23892_v26 = vrot.slane %v23891_v31, 4 }
 0x444   : > { %23881 = vst [vmem:[#allocation89_spill] sm:$0xff] %v18152_v47  ;;  %v5832_v37 = vrot.slane %v18152_v47, 4  ;;  %v6157_v58 = vsel %vm584_vm2, %v6156_v53, %v6115_v39  ;;  %v5844_v7 = vrot.slane %v18158_v21, 4 }
 0x445   : > { %23883 = vst [vmem:[#allocation65_spill] sm:$0xff] %v18158_v21  ;;  %v18176_v12 = vsel %vm584_vm2, %v23892_v26, %v23890_v33  ;;  %v6041_v45 = vsel %vm584_vm2, %v6040_v18, %v5999_v19  ;;  %8437 = vmatpush.msrb.mxu3 %v6157_v58  ;;  %v23894_v33 = vld [vmem:[#allocation5_spill] sm:$0xff] }
 0x446   : > { %23887 = vst [vmem:[#allocation55_spill] sm:$0xff] %v18164_v11  ;;  %v5856_v32 = vrot.slane %v18176_v12, 4  ;;  %v5833_v51 = vsel %vm584_vm2, %v5832_v37, %v18125_v24  ;;  %v5868_v31 = vrot.slane %v23894_v33, 4  ;;  %8290 = vmatpush.msra.mxu1 %v6041_v45  ;;  %v5845_v53 = vsel %vm584_vm2, %v5844_v7, %v18145_v0 }
 0x447   : > { %23889 = vst [vmem:[#allocation146_spill] sm:$0xff] %v18170_v17  ;;  %v5839_v26 = vperm.slane %v5833_v51, %v12457_v10  ;;  %v5851_v18 = vperm.slane %v5845_v53, %v12457_v10  ;;  %v6018_v51 = vrot.slane %v18114_v60, 4  ;;  %v6042_v33 = vrot.slane %v5999_v19, 4 }
 0x448   : > { %23893 = vst [vmem:[#allocation70_spill] sm:$0xff] %v18176_v12  ;;  %v5857_v28 = vsel %vm584_vm2, %v5856_v32, %v18164_v11  ;;  %v5869_v37 = vsel %vm584_vm2, %v5868_v31, %v18170_v17  ;;  %v6158_v7 = vrot.slane %v6115_v39, 4  ;;  %v5995_v32 = vsel %vm584_vm2, %v5963_v29, %v5994_v50  ;;  %v23895_v11 = vld [vmem:[#allocation190_spill] sm:$0xff]  ;;  %v23896_v12 = vld [vmem:[#allocation24_spill] sm:$0xff] }
 0x449   : > { %v5863_v58 = vperm.slane %v5857_v28, %v12457_v10  ;;  %v5875_v45 = vperm.slane %v5869_v37, %v12457_v10  ;;  %v5880_v21 = vrot.slane %v5851_v18, 4  ;;  %v23897_v0 = vrot.slane %v23896_v12, 4  ;;  %v23901_v37 = vld [vmem:[#allocation84_spill] sm:$0xff] }
 0x44a   : > { %v23899_v28 = vrot.slane %v23895_v11, 4  ;;  %v6003_v60 = vperm.slane %v5995_v32, %v12509_v3  ;;  %v6019_v39 = vsel %vm584_vm2, %v5987_v20, %v6018_v51  ;;  %v6043_v19 = vsel %vm584_vm2, %v6023_v16, %v6042_v33  ;;  %v23908_v33 = vld [vmem:[#allocation96_spill] sm:$0xff] }
 0x44b   : > { %v18206_v53 = vsel %vm584_vm2, %v23897_v0, %v23895_v11  ;;  %v5904_v31 = vrot.slane %v5875_v45, 4  ;;  %v5881_v29 = vsel %vm584_vm2, %v5880_v21, %v5839_v26  ;;  %v6027_v50 = vperm.slane %v6019_v39, %v12509_v3  ;;  %8364 = vmatpush.msrb.mxu2 %v6043_v19  ;;  %v23902_v11 = vld [vmem:[#allocation107_spill] sm:$0xff]  ;;  %v23907_v21 = vld [vmem:[#allocation189_spill] sm:$0xff]  ;;  %v23913_v19 = vld [vmem:[#allocation148_spill] sm:$0xff] }
 0x44c   : > { %23898 = vst [vmem:[#allocation56_spill] sm:$0xff] %v18206_v53  ;;  %v18212_v61 = vsel %vm584_vm2, %v23896_v12, %v23899_v28  ;;  %v6159_v0 = vsel %vm584_vm2, %v6139_v52, %v6158_v7  ;;  %v23903_v17 = vrot.slane %v23902_v11, 4  ;;  %v5887_v28 = vperm.slane %v5881_v29, %v12509_v3  ;;  %v23914_v29 = vld [vmem:[#allocation25_spill] sm:$0xff] }
 0x44d   : > { %23900 = vst [vmem:[#allocation71_spill] sm:$0xff] %v18212_v61  ;;  %v5905_v32 = vsel %vm584_vm2, %v5904_v31, %v5863_v58  ;;  %8511 = vmatpush.msrb.mxu0 %v6159_v0  ;;  %v23905_v20 = vrot.slane %v23901_v37, 4  ;;  %v23909_v52 = vrot.slane %v23908_v33, 4  ;;  %v6044_v7 = vrot.slane %v6027_v50, 4 }
 0x44e   : > { %v18224_v12 = vsel %vm584_vm2, %v23903_v17, %v23901_v37  ;;  %v5911_v17 = vperm.slane %v5905_v32, %v12509_v3  ;;  %v23911_v39 = vrot.slane %v23907_v21, 4  ;;  %v23915_v0 = vrot.slane %v23914_v29, 4 }
 0x44f   : > { %23904 = vst [vmem:[#allocation87_spill] sm:$0xff] %v18224_v12  ;;  %v18232_v16 = vsel %vm584_vm2, %v23902_v11, %v23905_v20  ;;  %v18238_v51 = vsel %vm584_vm2, %v23909_v52, %v23907_v21  ;;  %v5720_v11 = vrot.slane %v18224_v12, 4  ;;  %v6045_v21 = vsel %vm584_vm2, %v6044_v7, %v6003_v60 }
 0x450   : > { %23906 = vst [vmem:[#allocation140_spill] sm:$0xff] %v18232_v16  ;;  %v18245_v31 = vsel %vm584_vm2, %v23908_v33, %v23911_v39  ;;  %v18251_v37 = vsel %vm584_vm2, %v23915_v0, %v23913_v19  ;;  %v5732_v52 = vrot.slane %v18232_v16, 4  ;;  %v5928_v47 = vrot.slane %v5911_v17, 4  ;;  %8438 = vmatpush.msrb.mxu3 %v6045_v21  ;;  %v23917_v0 = vld [vmem:[#allocation53_spill] sm:$0xff] }
 0x451   : > { %23910 = vst [vmem:[#allocation75_spill] sm:$0xff] %v18238_v51  ;;  %v5744_v33 = vrot.slane %v18251_v37, 4  ;;  %v5721_v19 = vsel %vm584_vm2, %v5720_v11, %v18206_v53  ;;  %v5756_v20 = vrot.slane %v23917_v0, 4  ;;  %v23918_v53 = vrot.slane %v17467_v56, 4 }
 0x452   : > { %23912 = vst [vmem:[#allocation136_spill] sm:$0xff] %v18245_v31  ;;  %v5733_v29 = vsel %vm584_vm2, %v5732_v52, %v18212_v61  ;;  %v5929_v32 = vsel %vm584_vm2, %v5928_v47, %v5887_v28  ;;  %v5727_v12 = vperm.slane %v5721_v19, %v12457_v10  ;;  %v5882_v52 = vrot.slane %v5839_v26, 4 }
 0x453   : > { %23916 = vst [vmem:[#allocation137_spill] sm:$0xff] %v18251_v37  ;;  %v5739_v7 = vperm.slane %v5733_v29, %v12457_v10  ;;  %v5745_v39 = vsel %vm584_vm2, %v5744_v33, %v18238_v51  ;;  %8291 = vmatpush.msra.mxu1 %v5929_v32  ;;  %v5757_v11 = vsel %vm584_vm2, %v5756_v20, %v18245_v31  ;;  %v5906_v37 = vrot.slane %v5863_v58, 4  ;;  %v23919_v33 = vld [vmem:[#allocation50_spill] sm:$0xff] }
 0x454   : > { %v5751_v21 = vperm.slane %v5745_v39, %v12457_v10  ;;  %v5763_v0 = vperm.slane %v5757_v11, %v12457_v10  ;;  %v5930_v61 = vrot.slane %v5887_v28, 4  ;;  %v6046_v47 = vrot.slane %v6003_v60, 4  ;;  %v23921_v11 = vld [vmem:[#allocation99_spill] sm:$0xff] }
 0x455   : > { %v5768_v16 = vrot.slane %v5739_v7, 4  ;;  %v5883_v19 = vsel %vm584_vm2, %v5851_v18, %v5882_v52  ;;  %v5907_v29 = vsel %vm584_vm2, %v5875_v45, %v5906_v37  ;;  %v6617_v32 = vsel %vm584_vm2, 0.0, %v23918_v53 }
 0x456   : > { %v23920_v39 = vrot.slane %v23919_v33, 4  ;;  %v5792_v58 = vrot.slane %v5763_v0, 4  ;;  %v5891_v20 = vperm.slane %v5883_v19, %v12509_v3  ;;  %v5915_v28 = vperm.slane %v5907_v29, %v12509_v3  ;;  %v23923_v19 = vld [vmem:[#allocation8_spill] sm:$0xff] }
 0x457   : > { %v5769_v26 = vsel %vm584_vm2, %v5768_v16, %v5727_v12  ;;  %v5931_v18 = vsel %vm584_vm2, %v5911_v17, %v5930_v61  ;;  %v6047_v45 = vsel %vm584_vm2, %v6027_v50, %v6046_v47  ;;  %v6625_v56 = vperm.slane %v6617_v32, %v12457_v10  ;;  %v23924_v50 = vld [vmem:[#allocation113_spill] sm:$0xff]  ;;  %v23926_v47 = vld [vmem:[#allocation120_spill] sm:$0xff] }
 0x458   : > { %v6627_v51 = vsel %vm584_vm2, 0.0, %v23920_v39  ;;  %v5775_v60 = vperm.slane %v5769_v26, %v12509_v3  ;;  %v5793_v53 = vsel %vm584_vm2, %v5792_v58, %v5751_v21  ;;  %v5932_v37 = vrot.slane %v5915_v28, 4  ;;  %8365 = vmatpush.msrb.mxu2 %v5931_v18  ;;  %8512 = vmatpush.msrb.mxu0 %v6047_v45  ;;  %v23927_v39 = vld [vmem:[#allocation102_spill] sm:$0xff]  ;;  %v23929_v58 = vld [vmem:[#allocation49_spill] sm:$0xff] }
 0x459   : > { %v6635_v16 = vperm.slane %v6627_v51, %v12457_v10  ;;  %v23922_v52 = vrot.slane %v23921_v11, 4  ;;  %v5799_v33 = vperm.slane %v5793_v53, %v12509_v3  ;;  %v23925_v17 = vrot.slane %v23924_v50, 4  ;;  %v23932_v50 = vld [vmem:[#allocation115_spill] sm:$0xff] }
 0x45a   : > { %v23928_v26 = vrot.slane %v23927_v39, 4  ;;  %v5933_v18 = vsel %vm584_vm2, %v5932_v37, %v5891_v20  ;;  %v5794_v39 = vrot.slane %v5751_v21, 4 }
 0x45b   : > { %v2195_v29 = vsel %vm584_vm2, %v23923_v19, %v23922_v52  ;;  %v2207_v32 = vsel %vm584_vm2, %v23926_v47, %v23925_v17  ;;  %v6648_v45 = vrot.slane %v6635_v16, 4  ;;  %v5816_v52 = vrot.slane %v5799_v33, 4  ;;  %8439 = vmatpush.msrb.mxu3 %v5933_v18  ;;  %v23930_v19 = vld [vmem:[#allocation86_spill] sm:$0xff] }
 0x45c   : > { %v18298_v61 = vperm.slane %v2195_v29, %v12457_v10  ;;  %v2219_v51 = vsel %vm584_vm2, %v23929_v58, %v23928_v26  ;;  %v18310_v11 = vperm.slane %v2207_v32, %v12457_v10  ;;  %v23931_v29 = vrot.slane %v23930_v19, 4  ;;  %v23933_v58 = vld [vmem:[#allocation117_spill] sm:$0xff] }
 0x45d   : > { %v18313_v53 = vperm.slane %v2219_v51, %v12457_v10  ;;  %v5770_v47 = vrot.slane %v5727_v12, 4  ;;  %v6649_v26 = vsel %vm584_vm2, %v6648_v45, %v6625_v56  ;;  %v2402_v31 = vrot.slane %v23933_v58, 4 }
 0x45e   : > { %v2231_v17 = vsel %vm584_vm2, %v23932_v50, %v23931_v29  ;;  %v2252_v32 = vrot.slane %v18310_v11, 4  ;;  %v5817_v51 = vsel %vm584_vm2, %v5816_v52, %v5775_v60  ;;  %v18327_v18 = vperm.slane %v6649_v26, %v12509_v3 }
 0x45f   : > { %v18321_v37 = vperm.slane %v2231_v17, %v12457_v10  ;;  %v5771_v19 = vsel %vm584_vm2, %v5739_v7, %v5770_v47  ;;  %v5795_v29 = vsel %vm584_vm2, %v5763_v0, %v5794_v39  ;;  %8292 = vmatpush.msra.mxu1 %v5817_v51  ;;  %v23934_v17 = vld [vmem:[#allocation105_spill] sm:$0xff]  ;;  %v5818_v0 = vrot.slane %v5775_v60, 4 }
 0x460   : > { %v2253_v12 = vsel %vm584_vm2, %v2252_v32, %v18298_v61  ;;  %v5779_v45 = vperm.slane %v5771_v19, %v12509_v3  ;;  %v5803_v50 = vperm.slane %v5795_v29, %v12509_v3  ;;  %v2403_v7 = vsel %vm584_vm2, %v23934_v17, %v2402_v31 }
 0x461   : > { %v2276_v21 = vrot.slane %v18321_v37, 4  ;;  %11580 = vmatpush.msk.msrb.mxu1 %vm299_vm0, %v18327_v18  ;;  %v18339_v52 = vperm.slane %v2253_v12, %v12509_v3  ;;  %v5934_v47 = vrot.slane %v5891_v20, 4  ;;  %11430 = vmatmul.msk.f32.gmra.mxu2 %vm6668_vm3, %v2403_v7  ;;  %v23935_v32 = vrot.slane %v17530_v14, 4 }
 0x462   : > { %v5820_v26 = vrot.slane %v5803_v50, 4  ;;  %v23936_v51 = vrot.slane %v17536_v36, 4  ;;  %v5819_v20 = vsel %vm584_vm2, %v5799_v33, %v5818_v0  ;;  %v23937_v36 = vrot.slane %v17564_v63, 4 }
 0x463   : > { %v2277_v39 = vsel %vm584_vm2, %v2276_v21, %v18313_v53  ;;  %v6507_v58 = vsel %vm584_vm2, %v17542_v25, %v23935_v32  ;;  %v5935_v60 = vsel %vm584_vm2, %v5915_v28, %v5934_v47  ;;  %8366 = vmatpush.msrb.mxu2 %v5819_v20  ;;  %v23938_v28 = vrot.slane %v17570_v40, 4  ;;  %v23940_v32 = vld [vmem:[#allocation127_spill] sm:$0xff] }
 0x464   : > { %v6519_v19 = vsel %vm584_vm2, %v17555_v9, %v23936_v51  ;;  %v18355_v31 = vperm.slane %v2277_v39, %v12509_v3  ;;  %v6515_v29 = vperm.slane %v6507_v58, %v12457_v10  ;;  %v5821_v12 = vsel %vm584_vm2, %v5820_v26, %v5779_v45  ;;  %8513 = vmatpush.msrb.mxu0 %v5935_v60  ;;  %v23939_v39 = vld [vmem:[#allocation132_spill] sm:$0xff] }
 0x465   : > { %v6527_v14 = vperm.slane %v6519_v19, %v12457_v10  ;;  %v6531_v25 = vsel %vm584_vm2, %v17576_v30, %v23937_v36  ;;  %v6650_v9 = vrot.slane %v6625_v56, 4  ;;  %8440 = vmatpush.msrb.mxu3 %v5821_v12  ;;  %v6543_v17 = vsel %vm584_vm2, %v17023_v46, %v23938_v28  ;;  %v23941_v19 = vld [vmem:[#allocation19_spill] sm:$0xff] }
 0x466   : > { %v2296_v21 = vrot.slane %v18355_v31, 4  ;;  %v6539_v33 = vperm.slane %v6531_v25, %v12457_v10  ;;  %v1806_v7 = vrot.slane %v17366_v27, 4  ;;  %v6551_v0 = vperm.slane %v6543_v17, %v12457_v10 }
 0x467   : > { %v6564_v47 = vrot.slane %v6527_v14, 4  ;;  %v6651_v63 = vsel %vm584_vm2, %v6635_v16, %v6650_v9  ;;  %v1830_v30 = vrot.slane %v23939_v39, 4  ;;  %v5822_v58 = vrot.slane %v5779_v45, 4 }
 0x468   : > { %v2297_v56 = vsel %vm584_vm2, %v2296_v21, %v18339_v52  ;;  %v6659_v26 = vperm.slane %v6651_v63, %v12509_v3  ;;  %v1807_v40 = vsel %vm584_vm2, %v23940_v32, %v1806_v7  ;;  %v6588_v27 = vrot.slane %v6551_v0, 4 }
 0x469   : > { %11483 = vmatmul.msk.f32.gmra.mxu1 %vm6668_vm3, %v2297_v56  ;;  %v6565_v46 = vsel %vm584_vm2, %v6564_v47, %v6515_v29  ;;  %v1815_v51 = vperm.slane %v1807_v40, %v12509_v3  ;;  %v1831_v16 = vsel %vm584_vm2, %v23941_v19, %v1830_v30  ;;  %v5823_v12 = vsel %vm584_vm2, %v5803_v50, %v5822_v58 }
 0x46a   : > { %v18387_v20 = vperm.slane %v6565_v46, %v12509_v3  ;;  %11600 = vmatpush.msk.msra.mxu3 %vm299_vm0, %v6659_v26  ;;  %v1839_v60 = vperm.slane %v1831_v16, %v12509_v3  ;;  %v23942_v45 = vrot.slane %v17650_v1, 4  ;;  %v6589_v25 = vsel %vm584_vm2, %v6588_v27, %v6539_v33  ;;  %8514 = vmatpush.msrb.mxu0 %v5823_v12 }
 0x46b   : > { %v23943_v21 = vrot.slane %v17656_v49, 4  ;;  %v23944_v17 = vrot.slane %v17674_v2, 4  ;;  %v18407_v1 = vperm.slane %v6589_v25, %v12509_v3  ;;  %v23945_v63 = vrot.slane %v17680_v5, 4 }
 0x46c   : > { %v6395_v36 = vsel %vm584_vm2, %v17662_v54, %v23942_v45  ;;  %v1852_v7 = vrot.slane %v1839_v60, 4  ;;  %v6566_v39 = vrot.slane %v6515_v29, 4  ;;  %v1854_v30 = vrot.slane %v1815_v51, 4 }
 0x46d   : > { %v6403_v9 = vperm.slane %v6395_v36, %v12457_v10  ;;  %v6407_v28 = vsel %vm584_vm2, %v17668_v8, %v23943_v21  ;;  %v6419_v50 = vsel %vm584_vm2, %v17686_v44, %v23944_v17  ;;  %v6431_v49 = vsel %vm584_vm2, %v23775_v59, %v23945_v63  ;;  %v23949_v17 = vld [vmem:[#allocation6_spill] sm:$0xff] }
 0x46e   : > { %v6415_v54 = vperm.slane %v6407_v28, %v12457_v10  ;;  %v6427_v47 = vperm.slane %v6419_v50, %v12457_v10  ;;  %v6590_v8 = vrot.slane %v6539_v33, 4  ;;  %v6608_v2 = vrot.slane %v18407_v1, 4 }
 0x46f   : > { %v1853_v44 = vsel %vm584_vm2, %v1852_v7, %v1815_v51  ;;  %v6439_v56 = vperm.slane %v6431_v49, %v12457_v10  ;;  %v6567_v40 = vsel %vm584_vm2, %v6527_v14, %v6566_v39  ;;  %v1855_v5 = vsel %vm584_vm2, %v1839_v60, %v1854_v30  ;;  %v23951_v7 = vld [vmem:[#allocation47_spill] sm:$0xff] }
 0x470   : > { %v6452_v32 = vrot.slane %v6415_v54, 4  ;;  %11515 = vmatmul.msk.f32.gmra.mxu3 %vm6668_vm3, %v1853_v44  ;;  %v6591_v58 = vsel %vm584_vm2, %v6551_v0, %v6590_v8  ;;  %v6666_v46 = vrot.slane %v6659_v26, 4  ;;  %v6609_v59 = vsel %vm584_vm2, %v6608_v2, %v18387_v20  ;;  %11533 = vmatmul.msk.f32.gmra.mxu0 %vm6668_vm3, %v1855_v5 }
 0x471   : > { %v6476_v33 = vrot.slane %v6439_v56, 4  ;;  %v6575_v27 = vperm.slane %v6567_v40, %v12509_v3  ;;  %8581 = vmatpush.msrb.mxu1 %v6609_v59  ;;  %v6599_v14 = vperm.slane %v6591_v58, %v12509_v3  ;;  %v23946_v26 = vrot.slane %v17731_v22, 4 }
 0x472   : > { %v6453_v29 = vsel %vm584_vm2, %v6452_v32, %v6403_v9  ;;  %v6667_v0 = vsel %vm584_vm2, 0.0, %v6666_v46  ;;  %v23947_v12 = vrot.slane %v17738_v13, 4  ;;  %v23948_v36 = vrot.slane %v17756_v43, 4 }
 0x473   : > { %v18428_v51 = vperm.slane %v6453_v29, %v12509_v3  ;;  %v6283_v19 = vsel %vm584_vm2, %v17744_v42, %v23946_v26  ;;  %v6477_v16 = vsel %vm584_vm2, %v6476_v33, %v6427_v47  ;;  %11610 = vmatpush.msk.msra.mxu0 %vm299_vm0, %v6667_v0  ;;  %v6612_v42 = vrot.slane %v6599_v14, 4  ;;  %v23956_v0 = vld [vmem:[#allocation126_spill] sm:$0xff] }
 0x474   : > { %v6291_v60 = vperm.slane %v6283_v19, %v12457_v10  ;;  %v6295_v45 = vsel %vm584_vm2, %v17750_v15, %v23947_v12  ;;  %v6307_v25 = vsel %vm584_vm2, %v17768_v6, %v23948_v36  ;;  %v18448_v22 = vperm.slane %v6477_v16, %v12509_v3 }
 0x475   : > { %v6303_v21 = vperm.slane %v6295_v45, %v12457_v10  ;;  %v6315_v28 = vperm.slane %v6307_v25, %v12457_v10  ;;  %v23950_v50 = vrot.slane %v23949_v17, 4  ;;  %v6454_v63 = vrot.slane %v6403_v9, 4 }
 0x476   : > { %v6478_v15 = vrot.slane %v6427_v47, 4  ;;  %v6614_v49 = vrot.slane %v6575_v27, 4  ;;  %v6496_v43 = vrot.slane %v18448_v22, 4  ;;  %v6613_v6 = vsel %vm584_vm2, %v6612_v42, %v6575_v27  ;;  %v23959_v42 = vld [vmem:[#allocation101_spill] sm:$0xff] }
 0x477   : > { %v6319_v13 = vsel %vm584_vm2, %v23951_v7, %v23950_v50  ;;  %v6340_v8 = vrot.slane %v6303_v21, 4  ;;  %8729 = vmatpush.msra.mxu3 %v6613_v6  ;;  %v6455_v30 = vsel %vm584_vm2, %v6415_v54, %v6454_v63  ;;  %v23952_v32 = vrot.slane %v17812_v41, 4  ;;  %v23960_v63 = vld [vmem:[#allocation90_spill] sm:$0xff] }
 0x478   : > { %v6327_v39 = vperm.slane %v6319_v13, %v12457_v10  ;;  %v6479_v2 = vsel %vm584_vm2, %v6439_v56, %v6478_v15  ;;  %v6615_v44 = vsel %vm584_vm2, %v6599_v14, %v6614_v49  ;;  %v6497_v47 = vsel %vm584_vm2, %v6496_v43, %v18428_v51  ;;  %v23962_v49 = vld [vmem:[#allocation44_spill] sm:$0xff] }
 0x479   : > { %v6171_v9 = vsel %vm584_vm2, %v17818_v35, %v23952_v32  ;;  %v6341_v40 = vsel %vm584_vm2, %v6340_v8, %v6291_v60  ;;  %v6463_v5 = vperm.slane %v6455_v30, %v12509_v3  ;;  %8803 = vmatpush.msra.mxu0 %v6615_v44  ;;  %8582 = vmatpush.msrb.mxu1 %v6497_v47  ;;  %v23953_v35 = vrot.slane %v17802_v38, 4  ;;  %v23963_v32 = vld [vmem:[#allocation21_spill] sm:$0xff] }
 0x47a   : > { %v6364_v58 = vrot.slane %v6327_v39, 4  ;;  %v18471_v54 = vperm.slane %v6341_v40, %v12509_v3  ;;  %v6487_v56 = vperm.slane %v6479_v2, %v12509_v3  ;;  %v18475_v41 = vperm.slane %v6171_v9, %v12457_v10  ;;  %v23965_v47 = vld [vmem:[#allocation85_spill] sm:$0xff] }
 0x47b   : > { %v6183_v46 = vsel %vm584_vm2, %v17824_v62, %v23953_v35  ;;  %v23954_v33 = vrot.slane %v17830_v55, 4  ;;  %v23955_v14 = vrot.slane %v17836_v4, 4  ;;  %v6342_v45 = vrot.slane %v6291_v60, 4  ;;  %v23957_v55 = vld [vmem:[#allocation22_spill] sm:$0xff]  ;;  %v23966_v35 = vld [vmem:[#allocation43_spill] sm:$0xff] }
 0x47c   : > { %v6365_v59 = vsel %vm584_vm2, %v6364_v58, %v6315_v28  ;;  %v6191_v29 = vperm.slane %v6183_v46, %v12457_v10  ;;  %v6500_v38 = vrot.slane %v6487_v56, 4  ;;  %v6366_v36 = vrot.slane %v6315_v28, 4 }
 0x47d   : > { %v6195_v27 = vsel %vm584_vm2, %v17842_v23, %v23954_v33  ;;  %v6207_v26 = vsel %vm584_vm2, %v23956_v0, %v23955_v14  ;;  %v18492_v19 = vperm.slane %v6365_v59, %v12509_v3  ;;  %v23958_v25 = vrot.slane %v23957_v55, 4  ;;  %v23968_v59 = vld [vmem:[#allocation124_spill] sm:$0xff]  ;;  %v23969_v14 = vld [vmem:[#allocation83_spill] sm:$0xff] }
 0x47e   : > { %v6203_v62 = vperm.slane %v6195_v27, %v12457_v10  ;;  %v6215_v16 = vperm.slane %v6207_v26, %v12457_v10  ;;  %v6228_v12 = vrot.slane %v6191_v29, 4  ;;  %v6501_v17 = vsel %vm584_vm2, %v6500_v38, %v6463_v5 }
 0x47f   : > { %v2307_v23 = vsel %vm584_vm2, %v23959_v42, %v23958_v25  ;;  %v6384_v4 = vrot.slane %v18492_v19, 4  ;;  %8730 = vmatpush.msra.mxu3 %v6501_v17  ;;  %v6343_v60 = vsel %vm584_vm2, %v6303_v21, %v6342_v45  ;;  %v6367_v28 = vsel %vm584_vm2, %v6327_v39, %v6366_v36  ;;  %v23971_v42 = vld [vmem:[#allocation134_spill] sm:$0xff] }
 0x480   : > { %v6252_v50 = vrot.slane %v6215_v16, 4  ;;  %v18503_v7 = vperm.slane %v2307_v23, %v12457_v10  ;;  %v6229_v13 = vsel %vm584_vm2, %v6228_v12, %v18475_v41  ;;  %v23961_v15 = vrot.slane %v23960_v63, 4 }
 0x481   : > { %v6385_v6 = vsel %vm584_vm2, %v6384_v4, %v18471_v54  ;;  %v18516_v8 = vperm.slane %v6229_v13, %v12509_v3  ;;  %v18520_v2 = vperm.slane %v6343_v60, %v12509_v3  ;;  %v18526_v39 = vperm.slane %v6367_v28, %v12509_v3  ;;  %v23973_v4 = vld [vmem:[#allocation138_spill] sm:$0xff] }
 0x482   : > { %v2319_v43 = vsel %vm584_vm2, %v23962_v49, %v23961_v15  ;;  %v6253_v30 = vsel %vm584_vm2, %v6252_v50, %v6203_v62  ;;  %8583 = vmatpush.msrb.mxu1 %v6385_v6  ;;  %v23964_v9 = vrot.slane %v23963_v32, 4  ;;  %v23967_v46 = vrot.slane %v23966_v35, 4  ;;  %v23974_v49 = vld [vmem:[#allocation129_spill] sm:$0xff]  ;;  %v23976_v6 = vld [vmem:[#allocation48_spill] sm:$0xff]  ;;  %v23977_v32 = vld [vmem:[#allocation130_spill] sm:$0xff] }
 0x483   : > { %v18523_v21 = vperm.slane %v6253_v30, %v12509_v3  ;;  %v18529_v44 = vperm.slane %v2319_v43, %v12457_v10  ;;  %v6502_v27 = vrot.slane %v6463_v5, 4  ;;  %v2460_v0 = vrot.slane %v23969_v14, 4 }
 0x484   : > { %v2331_v40 = vsel %vm584_vm2, %v23965_v47, %v23964_v9  ;;  %v2343_v33 = vsel %vm584_vm2, %v23968_v59, %v23967_v46  ;;  %v6388_v38 = vrot.slane %v18526_v39, 4  ;;  %v23970_v25 = vrot.slane %v17927_v57, 4  ;;  %v23979_v47 = vld [vmem:[#allocation80_spill] sm:$0xff] }
 0x485   : > { %v18536_v58 = vperm.slane %v2331_v40, %v12457_v10  ;;  %v6272_v26 = vrot.slane %v18523_v21, 4  ;;  %v18546_v12 = vperm.slane %v2343_v33, %v12457_v10  ;;  %v2364_v45 = vrot.slane %v18529_v44, 4 }
 0x486   : > { %v6503_v36 = vsel %vm584_vm2, %v6487_v56, %v6502_v27  ;;  %v2461_v55 = vsel %vm584_vm2, 0.0, %v2460_v0  ;;  %v6059_v5 = vsel %vm584_vm2, %v17942_v48, %v23970_v25  ;;  %v23972_v23 = vrot.slane %v23971_v42, 4  ;;  %v23980_v0 = vld [vmem:[#allocation108_spill] sm:$0xff] }
 0x487   : > { %v6273_v50 = vsel %vm584_vm2, %v6272_v26, %v18516_v8  ;;  %v6389_v13 = vsel %vm584_vm2, %v6388_v38, %v18520_v2  ;;  %v2365_v56 = vsel %vm584_vm2, %v2364_v45, %v18503_v7  ;;  %v2388_v60 = vrot.slane %v18546_v12, 4  ;;  %8804 = vmatpush.msra.mxu0 %v6503_v36  ;;  %11431 = vmatmul.msk.f32.gmra.mxu2 %vm6668_vm3, %v2461_v55  ;;  %v23981_v38 = vld [vmem:[#allocation52_spill] sm:$0xff] }
 0x488   : > { %v6071_v17 = vsel %vm584_vm2, %v23973_v4, %v23972_v23  ;;  %8584 = vmatpush.msrb.mxu1 %v6273_v50  ;;  %8731 = vmatpush.msra.mxu3 %v6389_v13  ;;  %v18568_v57 = vperm.slane %v2365_v56, %v12509_v3  ;;  %v6067_v48 = vperm.slane %v6059_v5, %v12457_v10  ;;  %v6230_v63 = vrot.slane %v18475_v41, 4  ;;  %v23982_v23 = vld [vmem:[#allocation42_spill] sm:$0xff] }
 0x489   : > { %v6079_v28 = vperm.slane %v6071_v17, %v12457_v10  ;;  %v2389_v15 = vsel %vm584_vm2, %v2388_v60, %v18536_v58  ;;  %v23975_v43 = vrot.slane %v23974_v49, 4  ;;  %v23978_v9 = vrot.slane %v23977_v32, 4 }
 0x48a   : > { %v6254_v35 = vrot.slane %v6203_v62, 4  ;;  %v18584_v46 = vperm.slane %v2389_v15, %v12509_v3  ;;  %v6231_v27 = vsel %vm584_vm2, %v6191_v29, %v6230_v63  ;;  %v1918_v26 = vrot.slane %v23980_v0, 4 }
 0x48b   : > { %v6083_v30 = vsel %vm584_vm2, %v23976_v6, %v23975_v43  ;;  %v6095_v40 = vsel %vm584_vm2, %v23979_v47, %v23978_v9  ;;  %v6116_v33 = vrot.slane %v6079_v28, 4  ;;  %v1942_v45 = vrot.slane %v23981_v38, 4  ;;  %v23985_v43 = vld [vmem:[#allocation68_spill] sm:$0xff]  ;;  %v23986_v9 = vld [vmem:[#allocation151_spill] sm:$0xff] }
 0x48c   : > { %v6091_v59 = vperm.slane %v6083_v30, %v12457_v10  ;;  %v6103_v41 = vperm.slane %v6095_v40, %v12457_v10  ;;  %v6255_v14 = vsel %vm584_vm2, %v6215_v16, %v6254_v35  ;;  %v2408_v36 = vrot.slane %v18584_v46, 4  ;;  %v23983_v16 = vld [vmem:[#allocation104_spill] sm:$0xff]  ;;  %v23988_v40 = vld [vmem:[#allocation9_spill] sm:$0xff] }
 0x48d   : > { %v6117_v62 = vsel %vm584_vm2, %v6116_v33, %v6067_v48  ;;  %v6239_v25 = vperm.slane %v6231_v27, %v12509_v3  ;;  %v6263_v42 = vperm.slane %v6255_v14, %v12509_v3  ;;  %v1919_v29 = vsel %vm584_vm2, %v23982_v23, %v1918_v26  ;;  %v23989_v33 = vld [vmem:[#allocation26_spill] sm:$0xff]  ;;  %v23991_v14 = vld [vmem:[#allocation145_spill] sm:$0xff]  ;;  %v23994_v23 = vld [vmem:[#allocation103_spill] sm:$0xff] }
 0x48e   : > { %v6140_v55 = vrot.slane %v6103_v41, 4  ;;  %v18596_v5 = vperm.slane %v6117_v62, %v12509_v3  ;;  %v1943_v4 = vsel %vm584_vm2, %v23983_v16, %v1942_v45  ;;  %v2409_v17 = vsel %vm584_vm2, %v2408_v36, %v18568_v57  ;;  %v23992_v62 = vld [vmem:[#allocation195_spill] sm:$0xff] }
 0x48f   : > { %v1927_v13 = vperm.slane %v1919_v29, %v12509_v3  ;;  %v1951_v56 = vperm.slane %v1943_v4, %v12509_v3  ;;  %11484 = vmatmul.msk.f32.gmra.mxu1 %vm6668_vm3, %v2409_v17  ;;  %v6276_v63 = vrot.slane %v6263_v42, 4  ;;  %v6390_v15 = vrot.slane %v18520_v2, 4 }
 0x490   : > { %v6141_v50 = vsel %vm584_vm2, %v6140_v55, %v6091_v59  ;;  %v23984_v49 = vrot.slane %v18067_v34, 4  ;;  %v23987_v47 = vrot.slane %v23986_v9, 4  ;;  %v23990_v27 = vrot.slane %v23989_v33, 4  ;;  %v23997_v33 = vld [vmem:[#allocation28_spill] sm:$0xff] }
 0x491   : > { %v18610_v60 = vperm.slane %v6141_v50, %v12509_v3  ;;  %v1964_v30 = vrot.slane %v1951_v56, 4  ;;  %v6277_v34 = vsel %vm584_vm2, %v6276_v63, %v6239_v25  ;;  %v6391_v26 = vsel %vm584_vm2, %v18526_v39, %v6390_v15 }
 0x492   : > { %v5947_v6 = vsel %vm584_vm2, %v23985_v43, %v23984_v49  ;;  %v5959_v35 = vsel %vm584_vm2, %v23988_v40, %v23987_v47  ;;  %v5971_v0 = vsel %vm584_vm2, %v23991_v14, %v23990_v27  ;;  %8732 = vmatpush.msra.mxu3 %v6277_v34  ;;  %8805 = vmatpush.msra.mxu0 %v6391_v26  ;;  %v23993_v55 = vrot.slane %v23992_v62, 4  ;;  %v23999_v14 = vld [vmem:[#allocation65_spill] sm:$0xff]  ;;  %v24002_v34 = vld [vmem:[#allocation70_spill] sm:$0xff] }
 0x493   : > { %v5955_v32 = vperm.slane %v5947_v6, %v12457_v10  ;;  %v6160_v2 = vrot.slane %v18610_v60, 4  ;;  %v5967_v38 = vperm.slane %v5959_v35, %v12457_v10  ;;  %v1965_v45 = vsel %vm584_vm2, %v1964_v30, %v1927_v13  ;;  %v23996_v6 = vld [vmem:[#allocation89_spill] sm:$0xff] }
 0x494   : > { %v5979_v36 = vperm.slane %v5971_v0, %v12457_v10  ;;  %v5983_v29 = vsel %vm584_vm2, %v23994_v23, %v23993_v55  ;;  %v6118_v16 = vrot.slane %v6067_v48, 4  ;;  %11516 = vmatmul.msk.f32.gmra.mxu3 %vm6668_vm3, %v1965_v45  ;;  %v6142_v50 = vrot.slane %v6091_v59, 4  ;;  %v24000_v0 = vld [vmem:[#allocation55_spill] sm:$0xff]  ;;  %v24003_v55 = vld [vmem:[#allocation146_spill] sm:$0xff] }
 0x495   : > { %v6161_v4 = vsel %vm584_vm2, %v6160_v2, %v18596_v5  ;;  %v5991_v39 = vperm.slane %v5983_v29, %v12457_v10  ;;  %v6004_v17 = vrot.slane %v5967_v38, 4  ;;  %v1966_v15 = vrot.slane %v1927_v13, 4  ;;  %v24005_v29 = vld [vmem:[#allocation5_spill] sm:$0xff] }
 0x496   : > { %8585 = vmatpush.msrb.mxu1 %v6161_v4  ;;  %v6119_v63 = vsel %vm584_vm2, %v6079_v28, %v6118_v16  ;;  %v6278_v49 = vrot.slane %v6239_v25, 4  ;;  %v23995_v43 = vrot.slane %v18125_v24, 4  ;;  %v6143_v40 = vsel %vm584_vm2, %v6103_v41, %v6142_v50 }
 0x497   : > { %v6005_v48 = vsel %vm584_vm2, %v6004_v17, %v5955_v32  ;;  %v6028_v9 = vrot.slane %v5991_v39, 4  ;;  %v6127_v47 = vperm.slane %v6119_v63, %v12509_v3  ;;  %v6151_v59 = vperm.slane %v6143_v40, %v12509_v3 }
 0x498   : > { %v5835_v30 = vsel %vm584_vm2, %v23996_v6, %v23995_v43  ;;  %v18650_v35 = vperm.slane %v6005_v48, %v12509_v3  ;;  %v1967_v28 = vsel %vm584_vm2, %v1951_v56, %v1966_v15  ;;  %v6279_v25 = vsel %vm584_vm2, %v6263_v42, %v6278_v49 }
 0x499   : > { %v6029_v24 = vsel %vm584_vm2, %v6028_v9, %v5979_v36  ;;  %11534 = vmatmul.msk.f32.gmra.mxu0 %vm6668_vm3, %v1967_v28  ;;  %v5843_v13 = vperm.slane %v5835_v30, %v12457_v10  ;;  %v23998_v27 = vrot.slane %v23997_v33, 4  ;;  %v24001_v2 = vrot.slane %v24000_v0, 4  ;;  %v24006_v9 = vld [vmem:[#allocation56_spill] sm:$0xff]  ;;  %v24008_v28 = vld [vmem:[#allocation87_spill] sm:$0xff] }
 0x49a   : > { %v18667_v56 = vperm.slane %v6029_v24, %v12509_v3  ;;  %v6164_v42 = vrot.slane %v6151_v59, 4  ;;  %8806 = vmatpush.msra.mxu0 %v6279_v25  ;;  %v24004_v23 = vrot.slane %v24003_v55, 4  ;;  %v6006_v4 = vrot.slane %v5955_v32, 4  ;;  %v24009_v33 = vld [vmem:[#allocation71_spill] sm:$0xff] }
 0x49b   : > { %v5847_v41 = vsel %vm584_vm2, %v23999_v14, %v23998_v27  ;;  %v5859_v26 = vsel %vm584_vm2, %v24002_v34, %v24001_v2  ;;  %v6030_v17 = vrot.slane %v5979_v36, 4  ;;  %v6166_v50 = vrot.slane %v6127_v47, 4  ;;  %v24011_v14 = vld [vmem:[#allocation140_spill] sm:$0xff]  ;;  %v24012_v34 = vld [vmem:[#allocation75_spill] sm:$0xff] }
 0x49c   : > { %v5855_v45 = vperm.slane %v5847_v41, %v12457_v10  ;;  %v5867_v62 = vperm.slane %v5859_v26, %v12457_v10  ;;  %v5871_v16 = vsel %vm584_vm2, %v24005_v29, %v24004_v23  ;;  %v6048_v63 = vrot.slane %v18667_v56, 4  ;;  %v24015_v23 = vld [vmem:[#allocation136_spill] sm:$0xff] }
 0x49d   : > { %v6165_v15 = vsel %vm584_vm2, %v6164_v42, %v6127_v47  ;;  %v5879_v49 = vperm.slane %v5871_v16, %v12457_v10  ;;  %v6007_v6 = vsel %vm584_vm2, %v5967_v38, %v6006_v4  ;;  %v6031_v30 = vsel %vm584_vm2, %v5991_v39, %v6030_v17  ;;  %v24014_v42 = vld [vmem:[#allocation137_spill] sm:$0xff] }
 0x49e   : > { %v5892_v43 = vrot.slane %v5855_v45, 4  ;;  %8733 = vmatpush.msra.mxu3 %v6165_v15  ;;  %v6167_v48 = vsel %vm584_vm2, %v6151_v59, %v6166_v50  ;;  %v24007_v40 = vrot.slane %v24006_v9, 4  ;;  %v6049_v36 = vsel %vm584_vm2, %v6048_v63, %v18650_v35  ;;  %v24017_v16 = vld [vmem:[#allocation53_spill] sm:$0xff] }
 0x49f   : > { %v5916_v25 = vrot.slane %v5879_v49, 4  ;;  %v6015_v24 = vperm.slane %v6007_v6, %v12509_v3  ;;  %8807 = vmatpush.msra.mxu0 %v6167_v48  ;;  %8586 = vmatpush.msrb.mxu1 %v6049_v36  ;;  %v6039_v39 = vperm.slane %v6031_v30, %v12509_v3  ;;  %v24010_v27 = vrot.slane %v24009_v33, 4  ;;  %v24018_v48 = vld [vmem:[#allocation72_spill] sm:$0xff]  ;;  %v18723_v33 = vpop.f32.mrf.mxu0 }
 0x4a0   : > { %v5723_v32 = vsel %vm584_vm2, %v24008_v28, %v24007_v40  ;;  %v5893_v47 = vsel %vm584_vm2, %v5892_v43, %v5843_v13  ;;  %v24013_v26 = vrot.slane %v24012_v34, 4  ;;  %v24016_v29 = vrot.slane %v24015_v23, 4  ;;  %7482 = vst.msk [vmem:[%s18828_s29 + $0xd8] sm:$0xff] %vm7453_vm4, %v18723_v33 }
 0x4a1   : > { %v18690_v38 = vperm.slane %v5893_v47, %v12509_v3  ;;  %v5731_v59 = vperm.slane %v5723_v32, %v12457_v10  ;;  %v5735_v41 = vsel %vm584_vm2, %v24011_v14, %v24010_v27  ;;  %v5917_v0 = vsel %vm584_vm2, %v5916_v25, %v5867_v62  ;;  %v18721_v25 = vpop.f32.mrf.mxu1  ;;  %v24020_v14 = vld [vmem:[#allocation74_spill] sm:$0xff] }
 0x4a2   : > { %v5743_v2 = vperm.slane %v5735_v41, %v12457_v10  ;;  %v5747_v55 = vsel %vm584_vm2, %v24014_v42, %v24013_v26  ;;  %v5759_v4 = vsel %vm584_vm2, %v24017_v16, %v24016_v29  ;;  %v18709_v17 = vperm.slane %v5917_v0, %v12509_v3  ;;  %v24022_v16 = vld [vmem:[#allocation161_spill] sm:$0xff]  ;;  %7454 = vst.msk [vmem:[%s18828_s29] sm:$0xff] %vm7453_vm4, %v18721_v25 }
 0x4a3   : > { %v6052_v50 = vrot.slane %v6039_v39, 4  ;;  %v5755_v63 = vperm.slane %v5747_v55, %v12457_v10  ;;  %v5767_v15 = vperm.slane %v5759_v4, %v12457_v10  ;;  %v5894_v6 = vrot.slane %v5843_v13, 4 }
 0x4a4   : > { %v5780_v43 = vrot.slane %v5743_v2, 4  ;;  %v5918_v30 = vrot.slane %v5867_v62, 4  ;;  %v24019_v9 = vrot.slane %v24018_v48, 4  ;;  %v5936_v28 = vrot.slane %v18709_v17, 4 }
 0x4a5   : > { %v6053_v32 = vsel %vm584_vm2, %v6052_v50, %v6015_v24  ;;  %v5804_v36 = vrot.slane %v5767_v15, 4  ;;  %v5895_v62 = vsel %vm584_vm2, %v5855_v45, %v5894_v6  ;;  %v24021_v41 = vrot.slane %v24020_v14, 4  ;;  %v24024_v50 = vld [vmem:[#allocation78_spill] sm:$0xff]  ;;  %v24026_v14 = vld [vmem:[#allocation168_spill] sm:$0xff] }
 0x4a6   : > { %v2417_v40 = vsel %vm584_vm2, 0.0, %v24019_v9  ;;  %8734 = vmatpush.msra.mxu3 %v6053_v32  ;;  %v5781_v13 = vsel %vm584_vm2, %v5780_v43, %v5731_v59  ;;  %v5919_v27 = vsel %vm584_vm2, %v5879_v49, %v5918_v30  ;;  %v5937_v34 = vsel %vm584_vm2, %v5936_v28, %v18690_v38 }
 0x4a7   : > { %v18719_v47 = vperm.slane %v2417_v40, %v12457_v10  ;;  %v2427_v0 = vsel %vm584_vm2, 0.0, %v24021_v41  ;;  %v18734_v26 = vperm.slane %v5781_v13, %v12509_v3  ;;  %v5805_v42 = vsel %vm584_vm2, %v5804_v36, %v5755_v63  ;;  %8587 = vmatpush.msrb.mxu1 %v5937_v34 }
 0x4a8   : > { %v5903_v55 = vperm.slane %v5895_v62, %v12509_v3  ;;  %v18739_v23 = vperm.slane %v5805_v42, %v12509_v3  ;;  %v5927_v45 = vperm.slane %v5919_v27, %v12509_v3  ;;  %v18743_v49 = vperm.slane %v2427_v0, %v12457_v10  ;;  %v24025_v62 = vld [vmem:[#allocation159_spill] sm:$0xff]  ;;  %v18772_v42 = vpop.f32.mrf.mxu2 }
 0x4a9   : > { %v6054_v29 = vrot.slane %v6015_v24, 4  ;;  %v24023_v4 = vrot.slane %v24022_v16, 4  ;;  %v6664_v6 = vrot.slane %v18327_v18, 4  ;;  %v5782_v30 = vrot.slane %v5731_v59, 4  ;;  %v24027_v0 = vld [vmem:[#allocation167_spill] sm:$0xff]  ;;  %7459 = vst.msk [vmem:[%s18828_s29 + $0x28] sm:$0xff] %vm7453_vm4, %v18772_v42 }
 0x4aa   : > { %v5806_v48 = vrot.slane %v5755_v63, 4  ;;  %v5824_v9 = vrot.slane %v18739_v23, 4  ;;  %v5940_v40 = vrot.slane %v5927_v45, 4  ;;  %v2448_v28 = vrot.slane %v18743_v49, 4 }
 0x4ab   : > { %v1627_v43 = vsel %vm584_vm2, %v24024_v50, %v24023_v4  ;;  %v6055_v32 = vsel %vm584_vm2, %v6039_v39, %v6054_v29  ;;  %v6665_v24 = vsel %vm584_vm2, 0.0, %v6664_v6  ;;  %v5783_v36 = vsel %vm584_vm2, %v5743_v2, %v5782_v30  ;;  %v18774_v29 = vpop.f32.mrf.mxu3  ;;  %v18778_v6 = vpop.f32.mrf.mxu1 }
 0x4ac   : > { %11495 = vmatmul.msk.f32.vlgmr.msra.gmra.mxu2 %vm6668_vm3, %v1627_v43  ;;  %8808 = vmatpush.msra.mxu0 %v6055_v32  ;;  %v5807_v13 = vsel %vm584_vm2, %v5767_v15, %v5806_v48  ;;  %v2030_v18 = vrot.slane %v24025_v62, 4  ;;  %v5825_v59 = vsel %vm584_vm2, %v5824_v9, %v18734_v26  ;;  %v5941_v63 = vsel %vm584_vm2, %v5940_v40, %v5903_v55  ;;  %v18780_v30 = vpop.f32.mrf.mxu0  ;;  %v24028_v9 = vld [vmem:[#allocation31_spill] sm:$0xff] }
 0x4ad   : > { %v2449_v27 = vsel %vm584_vm2, %v2448_v28, %v18719_v47  ;;  %11590 = vmatpush.msk.msra.mxu2 %vm299_vm0, %v6665_v24  ;;  %v5791_v39 = vperm.slane %v5783_v36, %v12509_v3  ;;  %8588 = vmatpush.msrb.mxu1 %v5825_v59  ;;  %v5815_v15 = vperm.slane %v5807_v13, %v12509_v3  ;;  %v2054_v34 = vrot.slane %v24027_v0, 4 }
 0x4ae   : > { %8735 = vmatpush.msra.mxu3 %v5941_v63  ;;  %v18766_v2 = vperm.slane %v2449_v27, %v12509_v3  ;;  %v2031_v41 = vsel %vm584_vm2, %v24026_v14, %v2030_v18  ;;  %v5942_v4 = vrot.slane %v5903_v55, 4  ;;  %v6610_v50 = vrot.slane %v18387_v20, 4  ;;  %v24030_v27 = vld [vmem:[#allocation125_spill] sm:$0xff]  ;;  %v24032_v14 = vld [vmem:[#allocation139_spill] sm:$0xff]  ;;  %7473 = vst.msk [vmem:[%s18828_s29 + $0x90] sm:$0xff] %vm7453_vm4, %v18774_v29 }
 0x4af   : > { %v2039_v16 = vperm.slane %v2031_v41, %v12509_v3  ;;  %v5830_v43 = vrot.slane %v5791_v39, 4  ;;  %v5828_v48 = vrot.slane %v5815_v15, 4  ;;  %v2055_v40 = vsel %vm584_vm2, %v24028_v9, %v2054_v34  ;;  %7455 = vst.msk [vmem:[%s18828_s29 + $0x8] sm:$0xff] %vm7453_vm4, %v18778_v6 }
 0x4b0   : > { %11485 = vmatmul.msk.f32.gmra.mxu1 %vm6668_vm3, %v18766_v2  ;;  %v6498_v28 = vrot.slane %v18428_v51, 4  ;;  %v6386_v32 = vrot.slane %v18471_v54, 4  ;;  %v2063_v55 = vperm.slane %v2055_v40, %v12509_v3  ;;  %v5943_v20 = vsel %vm584_vm2, %v5927_v45, %v5942_v4  ;;  %v24029_v51 = vld [vmem:[#allocation122_spill] sm:$0xff]  ;;  %v18821_v9 = vpop.f32.mrf.mxu2  ;;  %7483 = vst.msk [vmem:[%s18828_s29 + $0xe0] sm:$0xff] %vm7453_vm4, %v18780_v30 }
 0x4b1   : > { %v6611_v24 = vsel %vm584_vm2, %v18407_v1, %v6610_v50  ;;  %v2078_v36 = vrot.slane %v2039_v16, 4  ;;  %v5829_v13 = vsel %vm584_vm2, %v5828_v48, %v5791_v39  ;;  %8809 = vmatpush.msra.mxu0 %v5943_v20  ;;  %v5831_v62 = vsel %vm584_vm2, %v5815_v15, %v5830_v43  ;;  %v24031_v15 = vld [vmem:[#allocation37_spill] sm:$0xff]  ;;  %v24033_v50 = vld [vmem:[#allocation46_spill] sm:$0xff]  ;;  %v24034_v48 = vld [vmem:[#allocation128_spill] sm:$0xff]  ;;  %7460 = vst.msk [vmem:[%s18828_s29 + $0x30] sm:$0xff] %vm7453_vm4, %v18821_v9 }
 0x4b2   : > { %8655 = vmatpush.msra.mxu2 %v6611_v24  ;;  %v6499_v18 = vsel %vm584_vm2, %v18448_v22, %v6498_v28  ;;  %v1738_v59 = vrot.slane %v24029_v51, 4  ;;  %8736 = vmatpush.msra.mxu3 %v5829_v13  ;;  %v2076_v54 = vrot.slane %v2063_v55, 4  ;;  %v6387_v1 = vsel %vm584_vm2, %v18492_v19, %v6386_v32 }
 0x4b3   : > { %v2079_v45 = vsel %vm584_vm2, %v2063_v55, %v2078_v36  ;;  %v6274_v63 = vrot.slane %v18516_v8, 4  ;;  %v2142_v22 = vrot.slane %v24031_v15, 4  ;;  %v2166_v41 = vrot.slane %v24032_v14, 4  ;;  %8810 = vmatpush.msra.mxu0 %v5831_v62  ;;  %v18823_v40 = vpop.f32.mrf.mxu3  ;;  %v24035_v55 = vld [vmem:[#allocation131_spill] sm:$0xff] }
 0x4b4   : > { %11535 = vmatmul.msk.f32.gmra.mxu0 %vm6668_vm3, %v2079_v45  ;;  %8656 = vmatpush.msra.mxu2 %v6499_v18  ;;  %v1739_v39 = vsel %vm584_vm2, %v24030_v27, %v1738_v59  ;;  %v6162_v0 = vrot.slane %v18596_v5, 4  ;;  %v2077_v34 = vsel %vm584_vm2, %v2076_v54, %v2039_v16  ;;  %v6050_v8 = vrot.slane %v18650_v35, 4  ;;  %v18838_v32 = vpop.f32.mrf.mxu0  ;;  %7474 = vst.msk [vmem:[%s18828_s29 + $0x98] sm:$0xff] %vm7453_vm4, %v18823_v40 }
 0x4b5   : > { %11496 = vmatmul.msk.f32.gmra.mxu2 %vm6668_vm3, %v1739_v39  ;;  %v6275_v19 = vsel %vm584_vm2, %v18523_v21, %v6274_v63  ;;  %v5938_v4 = vrot.slane %v18690_v38, 4  ;;  %11517 = vmatmul.msk.f32.gmra.mxu3 %vm6668_vm3, %v2077_v34  ;;  %v2143_v43 = vsel %vm584_vm2, %v24033_v50, %v2142_v22  ;;  %v2167_v5 = vsel %vm584_vm2, %v24034_v48, %v2166_v41 }
 0x4b6   : > { %8657 = vmatpush.msra.mxu2 %v6387_v1  ;;  %v6163_v16 = vsel %vm584_vm2, %v18610_v60, %v6162_v0  ;;  %v2151_v21 = vperm.slane %v2143_v43, %v12509_v3  ;;  %v2175_v35 = vperm.slane %v2167_v5, %v12509_v3  ;;  %v6051_v38 = vsel %vm584_vm2, %v18667_v56, %v6050_v8  ;;  %v18836_v60 = vpop.f32.mrf.mxu1 }
 0x4b7   : > { %v5939_v28 = vsel %vm584_vm2, %v18709_v17, %v5938_v4  ;;  %v1850_v20 = vrot.slane %v24035_v55, 4  ;;  %v5826_v24 = vrot.slane %v18734_v26, 4  ;;  %v2254_v36 = vrot.slane %v18298_v61, 4  ;;  %7456 = vst.msk [vmem:[%s18828_s29 + $0x10] sm:$0xff] %vm7453_vm4, %v18836_v60 }
 0x4b8   : > { %8658 = vmatpush.msra.mxu2 %v6275_v19  ;;  %v2278_v13 = vrot.slane %v18313_v53, 4  ;;  %v2188_v62 = vrot.slane %v2175_v35, 4  ;;  %v2190_v56 = vrot.slane %v2151_v21, 4  ;;  %v18845_v17 = vmul.f32 0.5, %v18721_v25  ;;  %v18890_v27 = vpop.f32.mrf.mxu2  ;;  %7484 = vst.msk [vmem:[%s18828_s29 + $0xe8] sm:$0xff] %vm7453_vm4, %v18838_v32 }
 0x4b9   : > { %v5827_v18 = vsel %vm584_vm2, %v18739_v23, %v5826_v24  ;;  %v2255_v51 = vsel %vm584_vm2, %v18310_v11, %v2254_v36  ;;  %v18857_v61 = vmul.f32 0.5, %v18723_v33  ;;  %v24036_v11 = vld [vmem:[#allocation116_spill] sm:$0xff]  ;;  %v2366_v23 = vrot.slane %v18503_v7, 4  ;;  %7461 = vst.msk [vmem:[%s18828_s29 + $0x38] sm:$0xff] %vm7453_vm4, %v18890_v27  ;;  %v24039_v24 = vld [vmem:[#allocation54_spill] sm:$0xff] }
 0x4ba   : > { %8659 = vmatpush.msra.mxu2 %v6163_v16  ;;  %v2279_v26 = vsel %vm584_vm2, %v18321_v37, %v2278_v13  ;;  %v2191_v53 = vsel %vm584_vm2, %v2175_v35, %v2190_v56  ;;  %v2263_v59 = vperm.slane %v2255_v51, %v12509_v3  ;;  %v1851_v37 = vsel %vm584_vm2, %v24036_v11, %v1850_v20  ;;  %v24040_v51 = vld [vmem:[#allocation180_spill] sm:$0xff] }
 0x4bb   : > { %v7599_v25 = vsel %vm7453_vm4, %v18845_v17, -inf  ;;  %v2390_v54 = vrot.slane %v18536_v58, 4  ;;  %v2189_v45 = vsel %vm584_vm2, %v2188_v62, %v2151_v21  ;;  %v2287_v33 = vperm.slane %v2279_v26, %v12509_v3 }
 0x4bc   : > { %11536 = vmatmul.msk.f32.gmra.mxu0 %vm6668_vm3, %v2191_v53  ;;  %8660 = vmatpush.msra.mxu2 %v6051_v38  ;;  %v18878_v1 = vmul.f32 0.5, %v18772_v42  ;;  %v2367_v7 = vsel %vm584_vm2, %v18529_v44, %v2366_v23  ;;  %v7680_v63 = vsel %vm7453_vm4, %v18857_v61, -inf  ;;  %v18892_v42 = vpop.f32.mrf.mxu3  ;;  %v2302_v39 = vrot.slane %v2263_v59, 4  ;;  %v18898_v44 = vpop.f32.mrf.mxu0  ;;  %v24041_v23 = vld [vmem:[#allocation135_spill] sm:$0xff] }
 0x4bd   : > { %11497 = vmatmul.msk.f32.gmra.mxu2 %vm6668_vm3, %v1851_v37  ;;  %7600 = vmax.xlane.f32.xlu1 %v7599_v25  ;;  %v2391_v58 = vsel %vm584_vm2, %v18546_v12, %v2390_v54  ;;  %v2375_v15 = vperm.slane %v2367_v7, %v12509_v3  ;;  %v24037_v12 = vld [vmem:[#allocation174_spill] sm:$0xff]  ;;  %v18907_v34 = vmul.f32 0.5, %v18780_v30  ;;  %v2300_v19 = vrot.slane %v2287_v33, 4  ;;  %7475 = vst.msk [vmem:[%s18828_s29 + $0xa0] sm:$0xff] %vm7453_vm4, %v18892_v42 }
 0x4be   : > { %11518 = vmatmul.msk.f32.gmra.mxu3 %vm6668_vm3, %v2189_v45  ;;  %8661 = vmatpush.msra.mxu2 %v5939_v28  ;;  %v2399_v22 = vperm.slane %v2391_v58, %v12509_v3  ;;  %v18896_v14 = vpop.f32.mrf.mxu1  ;;  %v1962_v41 = vrot.slane %v24037_v12, 4  ;;  %v7614_v0 = vsel %vm7453_vm4, %v18878_v1, -inf  ;;  %v2450_v50 = vrot.slane %v18719_v47, 4  ;;  %7485 = vst.msk [vmem:[%s18828_s29 + $0xf0] sm:$0xff] %vm7453_vm4, %v18898_v44 }
 0x4bf   : > { %7681 = vmax.xlane.f32.xlu0 %v7680_v63  ;;  %v2414_v4 = vrot.slane %v2375_v15, 4  ;;  %7615 = vmax.xlane.f32.xlu2 %v7614_v0  ;;  %v18914_v43 = vmul.f32 0.5, %v18774_v29  ;;  %v7683_v48 = vsel %vm7453_vm4, %v18907_v34, -inf  ;;  %v2303_v5 = vsel %vm584_vm2, %v2287_v33, %v2302_v39  ;;  %v24038_v29 = vld [vmem:[#allocation165_spill] sm:$0xff]  ;;  %7457 = vst.msk [vmem:[%s18828_s29 + $0x18] sm:$0xff] %vm7453_vm4, %v18896_v14  ;;  %v24042_v63 = vld [vmem:[#allocation152_spill] sm:$0xff] }
 0x4c0   : > { %8662 = vmatpush.msra.mxu2 %v5827_v18  ;;  %v2412_v8 = vrot.slane %v2399_v22, 4  ;;  %v2451_v47 = vsel %vm584_vm2, %v18743_v49, %v2450_v50  ;;  %v1963_v30 = vsel %vm584_vm2, %v24038_v29, %v1962_v41  ;;  %v18933_v35 = vmul.f32 0.5, %v18778_v6  ;;  %v18949_v6 = vpop.f32.mrf.mxu2 }
 0x4c1   : > { %v2415_v21 = vsel %vm584_vm2, %v2399_v22, %v2414_v4  ;;  %v2301_v38 = vsel %vm584_vm2, %v2300_v19, %v2263_v59  ;;  %v7653_v49 = vsel %vm7453_vm4, %v18914_v43, -inf  ;;  %v2074_v36 = vrot.slane %v24039_v24, 4  ;;  %7463 = vst.msk [vmem:[%s18828_s29 + $0x40] sm:$0x3] %vm7462_vm5, %v18949_v6 }
 0x4c2   : > { %v2413_v16 = vsel %vm584_vm2, %v2412_v8, %v2375_v15  ;;  %v18960_v13 = vmul.f32 0.5, %v18823_v40  ;;  %v7602_v62 = vsel %vm7453_vm4, %v18933_v35, -inf  ;;  %v18971_v56 = vmul.f32 0.5, %v18821_v9 }
 0x4c3   : > { %v2410_v40 = vrot.slane %v18568_v57, 4  ;;  %v2459_v18 = vperm.slane %v2451_v47, %v12509_v3  ;;  %v2075_v26 = vsel %vm584_vm2, %v24040_v51, %v2074_v36  ;;  %v18985_v53 = vmul.f32 0.5, %v18838_v32 }
 0x4c4   : > { %11537 = vmatmul.msk.f32.gmra.mxu0 %vm6668_vm3, %v2303_v5  ;;  %v18951_v28 = vpop.f32.mrf.mxu3  ;;  %v18956_v20 = vpop.f32.mrf.mxu0  ;;  %v7656_v9 = vsel %vm7453_vm4, %v18960_v13, -inf  ;;  %v7617_v32 = vsel %vm7453_vm4, %v18971_v56, -inf  ;;  %v2186_v54 = vrot.slane %v24041_v23, 4  ;;  %v19015_v45 = vmul.f32 0.5, %v18890_v27 }
 0x4c5   : > { %11498 = vmatmul.msk.f32.gmra.mxu2 %vm6668_vm3, %v1963_v30  ;;  %7684 = vmax.xlane.f32.xlu1 %v7683_v48  ;;  %7476 = vst.msk [vmem:[%s18828_s29 + $0xa8] sm:$0xff] %vm7453_vm4, %v18951_v28  ;;  %v18993_v57 = vsel %vm584_vm2, %v18584_v46, %v2410_v40  ;;  %v2466_v46 = vrot.slane %v2459_v18, 4  ;;  %v7686_v33 = vsel %vm7453_vm4, %v18985_v53, -inf  ;;  %v19026_v7 = vmul.f32 0.5, %v18836_v60 }
 0x4c6   : > { %11519 = vmatmul.msk.f32.gmra.mxu3 %vm6668_vm3, %v2301_v38  ;;  %v6752_v55 = vpop.f32.mrf.mxu1  ;;  %7486 = vst.msk [vmem:[%s18828_s29 + $0xf8] sm:$0xff] %vm7453_vm4, %v18956_v20  ;;  %v2187_v27 = vsel %vm584_vm2, %v24042_v63, %v2186_v54  ;;  %v19036_v39 = vmul.f32 0.5, %v18892_v42  ;;  %v7620_v15 = vsel %vm7453_vm4, %v19015_v45, -inf  ;;  %v2298_v0 = vrot.slane %v18339_v52, 4 }
 0x4c7   : > { %7654 = vmax.xlane.f32.xlu0 %v7653_v49  ;;  %7603 = vmax.xlane.f32.xlu2 %v7602_v62  ;;  %7458 = vst.msk [vmem:[%s18828_s29 + $0x20] sm:$0xff] %vm7453_vm4, %v6752_v55  ;;  %v2467_v58 = vsel %vm584_vm2, 0.0, %v2466_v46  ;;  %v7605_v60 = vsel %vm7453_vm4, %v19026_v7, -inf  ;;  %v19056_v19 = vmul.f32 0.5, %v6752_v55  ;;  %v19067_v4 = vmul.f32 0.5, %v18898_v44 }
 0x4c8   : > { %v19002_v59 = vpop.f32.mrf.mxu2  ;;  %v7659_v8 = vsel %vm7453_vm4, %v19036_v39, -inf  ;;  %v19073_v52 = vmul.f32 0.5, %v18896_v14  ;;  %v2299_v50 = vsel %vm584_vm2, %v18355_v31, %v2298_v0  ;;  %v19105_v29 = vmul.f32 0.5, %v18951_v28 }
 0x4c9   : > { %7464 = vst.msk [vmem:[%s18828_s29 + $0x48] sm:$0xff] %vm7453_vm4, %v19002_v59  ;;  %v7611_v48 = vsel %vm7453_vm4, %v19056_v19, -inf  ;;  %v7689_v44 = vsel %vm7453_vm4, %v19067_v4, -inf  ;;  %v19111_v30 = vmul.f32 0.5, %v18949_v6  ;;  %v2464_v36 = vrot.slane %v18766_v2, 4 }
 0x4ca   : > { %v7608_v47 = vsel %vm7453_vm4, %v19073_v52, -inf  ;;  %v7662_v49 = vsel %vm7453_vm4, %v19105_v29, -inf  ;;  %v19143_v40 = vmul.f32 0.5, %v19002_v59 }
 0x4cb   : > { %v7623_v62 = vsel %vm7462_vm5, %v19111_v30, -inf }
 0x4cc   : > { %11538 = vmatmul.msk.f32.gmra.mxu0 %vm6668_vm3, %v2415_v21  ;;  %v19004_v11 = vpop.f32.mrf.mxu3  ;;  %v19011_v25 = vpop.f32.mrf.mxu0  ;;  %v19094_v21 = vmul.f32 0.5, %v18956_v20 }
 0x4cd   : > { %11499 = vmatmul.msk.f32.gmra.mxu2 %vm6668_vm3, %v2075_v26  ;;  %7657 = vmax.xlane.f32.xlu1 %v7656_v9  ;;  %7477 = vst.msk [vmem:[%s18828_s29 + $0xb0] sm:$0xff] %vm7453_vm4, %v19004_v11  ;;  %v19131_v24 = vmul.f32 0.5, %v19004_v11  ;;  %v19149_v2 = vmul.f32 0.5, %v19011_v25  ;;  %v7626_v26 = vsel %vm7453_vm4, %v19143_v40, -inf }
 0x4ce   : > { %11520 = vmatmul.msk.f32.gmra.mxu3 %vm6668_vm3, %v2413_v16  ;;  %v19009_v37 = vpop.f32.mrf.mxu1  ;;  %7487 = vst.msk [vmem:[%s18828_s29 + $0x100] sm:$0xff] %vm7453_vm4, %v19011_v25  ;;  %v7692_v38 = vsel %vm7453_vm4, %v19094_v21, -inf }
 0x4cf   : > { %7618 = vmax.xlane.f32.xlu0 %v7617_v32  ;;  %7687 = vmax.xlane.f32.xlu2 %v7686_v33  ;;  %7491 = vst.msk [vmem:[%s18828_s29 + $0x120] sm:$0xff] %vm7453_vm4, %v19009_v37  ;;  %v7665_v51 = vsel %vm7453_vm4, %v19131_v24, -inf  ;;  %v7695_v46 = vsel %vm7453_vm4, %v19149_v2, -inf  ;;  %v19180_v25 = vmul.f32 0.5, %v19009_v37 }
 0x4d0   : > { %v19044_v22 = vpop.f32.mrf.mxu2 }
 0x4d1   : > { %7465 = vst.msk [vmem:[%s18828_s29 + $0x50] sm:$0xff] %vm7453_vm4, %v19044_v22  ;;  %v19169_v11 = vmul.f32 0.5, %v19044_v22  ;;  %v7707_v33 = vsel %vm7453_vm4, %v19180_v25, -inf }
 0x4d3   : > { %v7629_v54 = vsel %vm7453_vm4, %v19169_v11, -inf }
 0x4d4   : > { %11539 = vmatmul.msk.f32.gmra.mxu0 %vm6668_vm3, %v2467_v58  ;;  %v19046_v12 = vpop.f32.mrf.mxu3  ;;  %v19053_v41 = vpop.f32.mrf.mxu0 }
 0x4d5   : > { %11500 = vmatmul.msk.f32.gmra.mxu2 %vm6668_vm3, %v2187_v27  ;;  %7621 = vmax.xlane.f32.xlu1 %v7620_v15  ;;  %7478 = vst.msk [vmem:[%s18828_s29 + $0xb8] sm:$0xff] %vm7453_vm4, %v19046_v12  ;;  %v19186_v23 = vmul.f32 0.5, %v19046_v12  ;;  %v19215_v22 = vmul.f32 0.5, %v19053_v41 }
 0x4d6   : > { %11521 = vmatmul.msk.f32.gmra.mxu3 %vm6668_vm3, %v2459_v18  ;;  %v19051_v42 = vpop.f32.mrf.mxu1  ;;  %7488 = vst.msk [vmem:[%s18828_s29 + $0x108] sm:$0xff] %vm7453_vm4, %v19053_v41  ;;  %v2465_v18 = vsel %vm584_vm2, 0.0, %v2464_v36 }
 0x4d7   : > { %7606 = vmax.xlane.f32.xlu0 %v7605_v60  ;;  %7660 = vmax.xlane.f32.xlu2 %v7659_v8  ;;  %7492 = vst.msk [vmem:[%s18828_s29 + $0x128] sm:$0xff] %vm7453_vm4, %v19051_v42  ;;  %v19204_v15 = vmul.f32 0.5, %v19051_v42  ;;  %v7668_v60 = vsel %vm7453_vm4, %v19186_v23, -inf  ;;  %v7698_v0 = vsel %vm7453_vm4, %v19215_v22, -inf }
 0x4d8   : > { %v19082_v5 = vpop.f32.mrf.mxu2 }
 0x4d9   : > { %7466 = vst.msk [vmem:[%s18828_s29 + $0x58] sm:$0xff] %vm7453_vm4, %v19082_v5  ;;  %v19221_v12 = vmul.f32 0.5, %v19082_v5  ;;  %v7710_v42 = vsel %vm7453_vm4, %v19204_v15, -inf }
 0x4db   : > { %v7632_v5 = vsel %vm7453_vm4, %v19221_v12, -inf }
 0x4dc   : > { %v19084_v16 = vpop.f32.mrf.mxu3  ;;  %v19091_v31 = vpop.f32.mrf.mxu0 }
 0x4dd   : > { %11501 = vmatmul.msk.f32.gmra.mxu2 %vm6668_vm3, %v2299_v50  ;;  %7612 = vmax.xlane.f32.xlu1 %v7611_v48  ;;  %7479 = vst.msk [vmem:[%s18828_s29 + $0xc0] sm:$0xff] %vm7453_vm4, %v19084_v16 }
 0x4de   : > { %v19089_v14 = vpop.f32.mrf.mxu1  ;;  %7489 = vst.msk [vmem:[%s18828_s29 + $0x110] sm:$0xff] %vm7453_vm4, %v19091_v31 }
 0x4df   : > { %7690 = vmax.xlane.f32.xlu0 %v7689_v44  ;;  %7609 = vmax.xlane.f32.xlu2 %v7608_v47  ;;  %7493 = vst.msk [vmem:[%s18828_s29 + $0x130] sm:$0xff] %vm7453_vm4, %v19089_v14  ;;  %v19237_v44 = vmul.f32 0.5, %v19091_v31  ;;  %v19247_v47 = vmul.f32 0.5, %v19084_v16 }
 0x4e0   : > { %v19119_v28 = vpop.f32.mrf.mxu2 }
 0x4e1   : > { %7467 = vst.msk [vmem:[%s18828_s29 + $0x60] sm:$0xff] %vm7453_vm4, %v19119_v28  ;;  %v7701_v31 = vsel %vm7453_vm4, %v19237_v44, -inf }
 0x4e4   : > { %v19121_v55 = vpop.f32.mrf.mxu3  ;;  %v19128_v20 = vpop.f32.mrf.mxu0 }
 0x4e5   : > { %11502 = vmatmul.msk.f32.gmra.mxu2 %vm6668_vm3, %v18993_v57  ;;  %7693 = vmax.xlane.f32.xlu1 %v7692_v38  ;;  %7480 = vst.msk [vmem:[%s18828_s29 + $0xc8] sm:$0xff] %vm7453_vm4, %v19121_v55  ;;  %v19253_v38 = vmul.f32 0.5, %v19089_v14  ;;  %v19264_v16 = vmul.f32 0.5, %v19121_v55 }
 0x4e6   : > { %v19126_v6 = vpop.f32.mrf.mxu1  ;;  %7490 = vst.msk [vmem:[%s18828_s29 + $0x118] sm:$0x3] %vm7462_vm5, %v19128_v20 }
 0x4e7   : > { %7663 = vmax.xlane.f32.xlu0 %v7662_v49  ;;  %7624 = vmax.xlane.f32.xlu2 %v7623_v62  ;;  %7494 = vst.msk [vmem:[%s18828_s29 + $0x138] sm:$0xff] %vm7453_vm4, %v19126_v6  ;;  %v7671_v49 = vsel %vm7453_vm4, %v19247_v47, -inf  ;;  %v7713_v14 = vsel %vm7453_vm4, %v19253_v38, -inf }
 0x4e8   : > { %v19157_v9 = vpop.f32.mrf.mxu2 }
 0x4e9   : > { %7468 = vst.msk [vmem:[%s18828_s29 + $0x68] sm:$0xff] %vm7453_vm4, %v19157_v9 }
 0x4ec   : > { %v19159_v57 = vpop.f32.mrf.mxu3  ;;  %v19166_v59 = vpop.f32.mrf.mxu0 }
 0x4ed   : > { %11503 = vmatmul.msk.f32.gmra.mxu2 %vm6668_vm3, %v2465_v18  ;;  %7666 = vmax.xlane.f32.xlu1 %v7665_v51  ;;  %7481 = vst.msk [vmem:[%s18828_s29 + $0xd0] sm:$0x3] %vm7462_vm5, %v19159_v57  ;;  %v19272_v18 = vmul.f32 0.5, %v19119_v28  ;;  %v19275_v51 = vmul.f32 0.5, %v19128_v20 }
 0x4ee   : > { %v19164_v32 = vpop.f32.mrf.mxu1  ;;  %7518 = vst.msk [vmem:[%s18828_s29 + $0x1f8] sm:$0xff] %vm7453_vm4, %v19166_v59 }
 0x4ef   : > { %7627 = vmax.xlane.f32.xlu0 %v7626_v26  ;;  %7696 = vmax.xlane.f32.xlu2 %v7695_v46  ;;  %7495 = vst.msk [vmem:[%s18828_s29 + $0x140] sm:$0xff] %vm7453_vm4, %v19164_v32  ;;  %v7674_v26 = vsel %vm7453_vm4, %v19264_v16, -inf  ;;  %v7635_v55 = vsel %vm7453_vm4, %v19272_v18, -inf  ;;  %v7704_v28 = vsel %vm7462_vm5, %v19275_v51, -inf }
 0x4f0   : > { %v19192_v58 = vpop.f32.mrf.mxu2 }
 0x4f1   : > { %7469 = vst.msk [vmem:[%s18828_s29 + $0x70] sm:$0xff] %vm7453_vm4, %v19192_v58 }
 0x4f4   : > { %v19194_v63 = vpop.f32.mrf.mxu3  ;;  %v19201_v27 = vpop.f32.mrf.mxu0 }
 0x4f5   : > { %7630 = vmax.xlane.f32.xlu1 %v7629_v54  ;;  %7509 = vst.msk [vmem:[%s18828_s29 + $0x1b0] sm:$0xff] %vm7453_vm4, %v19194_v63  ;;  %v19284_v54 = vmul.f32 0.5, %v19157_v9 }
 0x4f6   : > { %v19199_v37 = vpop.f32.mrf.mxu1  ;;  %7519 = vst.msk [vmem:[%s18828_s29 + $0x200] sm:$0xff] %vm7453_vm4, %v19201_v27 }
 0x4f7   : > { %7708 = vmax.xlane.f32.xlu0 %v7707_v33  ;;  %7669 = vmax.xlane.f32.xlu2 %v7668_v60  ;;  %7496 = vst.msk [vmem:[%s18828_s29 + $0x148] sm:$0xff] %vm7453_vm4, %v19199_v37  ;;  %v19292_v33 = vmul.f32 0.5, %v19126_v6  ;;  %v19297_v60 = vmul.f32 0.5, %v19159_v57  ;;  %v7638_v9 = vsel %vm7453_vm4, %v19284_v54, -inf  ;;  %v19311_v57 = vmul.f32 0.5, %v19166_v59 }
 0x4f8   : > { %v19227_v8 = vpop.f32.mrf.mxu2 }
 0x4f9   : > { %7470 = vst.msk [vmem:[%s18828_s29 + $0x78] sm:$0xff] %vm7453_vm4, %v19227_v8  ;;  %v7677_v6 = vsel %vm7462_vm5, %v19297_v60, -inf }
 0x4fc   : > { %v7331_v50 = vpop.f32.mrf.mxu3  ;;  %v19234_v48 = vpop.f32.mrf.mxu0 }
 0x4fd   : > { %7711 = vmax.xlane.f32.xlu1 %v7710_v42  ;;  %7510 = vst.msk [vmem:[%s18828_s29 + $0x1b8] sm:$0xff] %vm7453_vm4, %v7331_v50  ;;  %v7716_v42 = vsel %vm7453_vm4, %v19292_v33, -inf  ;;  %v19328_v59 = vmul.f32 0.5, %v7331_v50 }
 0x4fe   : > { %v19232_v41 = vpop.f32.mrf.mxu1  ;;  %7520 = vst.msk [vmem:[%s18828_s29 + $0x208] sm:$0xff] %vm7453_vm4, %v19234_v48 }
 0x4ff   : > { %7699 = vmax.xlane.f32.xlu0 %v7698_v0  ;;  %7633 = vmax.xlane.f32.xlu2 %v7632_v5  ;;  %7497 = vst.msk [vmem:[%s18828_s29 + $0x150] sm:$0xff] %vm7453_vm4, %v19232_v41  ;;  %v19304_v0 = vmul.f32 0.5, %v19164_v32 }
 0x500   : > { %v6859_v36 = vpop.f32.mrf.mxu2 }
 0x501   : > { %7471 = vst.msk [vmem:[%s18828_s29 + $0x80] sm:$0xff] %vm7453_vm4, %v6859_v36  ;;  %v7719_v32 = vsel %vm7453_vm4, %v19304_v0, -inf }
 0x504   : > { %v19259_v62 = vpop.f32.mrf.mxu3 }
 0x505   : > { %7702 = vmax.xlane.f32.xlu1 %v7701_v31  ;;  %7511 = vst.msk [vmem:[%s18828_s29 + $0x1c0] sm:$0xff] %vm7453_vm4, %v19259_v62 }
 0x507   : > { %7672 = vmax.xlane.f32.xlu0 %v7671_v49  ;;  %7714 = vmax.xlane.f32.xlu2 %v7713_v14  ;;  %v19319_v49 = vmul.f32 0.5, %v19192_v58  ;;  %v7788_v14 = vsel %vm7453_vm4, %v19311_v57, -inf  ;;  %v19333_v58 = vmul.f32 0.5, %v19194_v63  ;;  %v19347_v63 = vmul.f32 0.5, %v19201_v27 }
 0x509   : > { %v7761_v50 = vsel %vm7453_vm4, %v19333_v58, -inf }
 0x50a   : > { %v19281_v46 = vpop.f32.mrf.mxu2 }
 0x50b   : > { %7472 = vst.msk [vmem:[%s18828_s29 + $0x88] sm:$0x3] %vm7462_vm5, %v19281_v46 }
 0x50c   : > { %v7153_v20 = vpop.f32.mrf.mxu1 }
 0x50d   : > { %7675 = vmax.xlane.f32.xlu1 %v7674_v26  ;;  %7498 = vst.msk [vmem:[%s18828_s29 + $0x158] sm:$0xff] %vm7453_vm4, %v7153_v20  ;;  %v7641_v26 = vsel %vm7453_vm4, %v19319_v49, -inf  ;;  %v19366_v27 = vmul.f32 0.5, %v7153_v20  ;;  %v19378_v20 = vmul.f32 0.5, %v19259_v62 }
 0x50f   : > { %7636 = vmax.xlane.f32.xlu0 %v7635_v55  ;;  %7705 = vmax.xlane.f32.xlu2 %v7704_v28  ;;  %v19336_v55 = vmul.f32 0.5, %v19199_v37  ;;  %v7764_v28 = vsel %vm7453_vm4, %v19328_v59, -inf  ;;  %v19350_v37 = vmul.f32 0.5, %v19234_v48  ;;  %24046 = vst [vmem:[#allocation4_spill] sm:$0xff] %v19366_v27  ;;  %v7767_v62 = vsel %vm7453_vm4, %v19378_v20, -inf }
 0x510   : > { %24048 = vst [vmem:[#allocation153_spill] sm:$0xff] %v19378_v20 }
 0x511   : > { %24043 = vst [vmem:[#allocation154_spill] sm:$0xff] %v19336_v55 }
 0x512   : > { %24045 = vst [vmem:[#allocation162_spill] sm:$0xff] %v19350_v37 }
 0x515   : > { %7639 = vmax.xlane.f32.xlu1 %v7638_v9  ;;  %v19342_v9 = vmul.f32 0.5, %v6859_v36 }
 0x516   : > { %v19308_v5 = vpop.f32.mrf.mxu0 }
 0x517   : > { %7717 = vmax.xlane.f32.xlu0 %v7716_v42  ;;  %7678 = vmax.xlane.f32.xlu2 %v7677_v6  ;;  %7521 = vst.msk [vmem:[%s18828_s29 + $0x210] sm:$0xff] %vm7453_vm4, %v19308_v5  ;;  %v19316_v31 = vpop.f32.mrf.mxu3  ;;  %v7722_v42 = vsel %vm7453_vm4, %v19336_v55, -inf  ;;  %v7647_v6 = vsel %vm7453_vm4, %v19342_v9, -inf }
 0x518   : > { %7512 = vst.msk [vmem:[%s18828_s29 + $0x1c8] sm:$0xff] %vm7453_vm4, %v19316_v31 }
 0x519   : > { %24044 = vst [vmem:[#allocation82_spill] sm:$0xff] %v19342_v9  ;;  %v7728_v9 = vsel %vm7453_vm4, %v19366_v27, -inf  ;;  %v19407_v27 = vmul.f32 0.5, %v19281_v46 }
 0x51b   : > { %24051 = vst [vmem:[#allocation2_spill] sm:$0xff] %v19407_v27 }
 0x51d   : > { %7720 = vmax.xlane.f32.xlu1 %v7719_v32 }
 0x51f   : > { %7789 = vmax.xlane.f32.xlu0 %v7788_v14  ;;  %7642 = vmax.xlane.f32.xlu2 %v7641_v26  ;;  %v7791_v14 = vsel %vm7453_vm4, %v19347_v63, -inf  ;;  %v7794_v26 = vsel %vm7453_vm4, %v19350_v37, -inf }
 0x525   : > { %7765 = vmax.xlane.f32.xlu1 %v7764_v28 }
 0x527   : > { %7762 = vmax.xlane.f32.xlu0 %v7761_v50  ;;  %7723 = vmax.xlane.f32.xlu2 %v7722_v42  ;;  %v19372_v42 = vmul.f32 0.5, %v19227_v8 }
 0x529   : > { %24047 = vst [vmem:[#allocation157_spill] sm:$0xff] %v19372_v42  ;;  %v7644_v8 = vsel %vm7453_vm4, %v19372_v42, -inf }
 0x52d   : > { %v19354_v32 = vpop.f32.mrf.mxu1  ;;  %7648 = vmax.xlane.f32.xlu1 %v7647_v6 }
 0x52e   : > { %7499 = vst.msk [vmem:[%s18828_s29 + $0x160] sm:$0x3] %vm7462_vm5, %v19354_v32 }
 0x52f   : > { %v19359_v36 = vpop.f32.mrf.mxu2  ;;  %7792 = vmax.xlane.f32.xlu0 %v7791_v14  ;;  %7795 = vmax.xlane.f32.xlu2 %v7794_v26 }
 0x530   : > { %7500 = vst.msk [vmem:[%s18828_s29 + $0x168] sm:$0xff] %vm7453_vm4, %v19359_v36  ;;  %v7601_v48 = vpop.xlane.xlu1 %7600 }
 0x531   : > { %v7438_v28 = vpop.f32.mrf.mxu0  ;;  %v7815_v50 = vsub.f32 %v18845_v17, %v7601_v48 }
 0x532   : > { %7522 = vst.msk [vmem:[%s18828_s29 + $0x218] sm:$0xff] %vm7453_vm4, %v7438_v28  ;;  %v7682_v6 = vpop.xlane.xlu0 %7681  ;;  %v19380_v14 = vpop.xlane.xlu2 %7615 }
 0x533   : > { %v7887_v3 = vmul.f32 1.442695, %v7815_v50  ;;  %v7842_v10 = vsub.f32 %v18857_v61, %v7682_v6  ;;  %v19386_v61 = vmul.f32 0.5, %v7438_v28 }
 0x535   : > { %11838 = vpow2.f32 %v7887_v3  ;;  %v7941_v17 = vmul.f32 1.442695, %v7842_v10  ;;  %7729 = vmax.xlane.f32.xlu1 %v7728_v9  ;;  %24049 = vst [vmem:[#allocation79_spill] sm:$0xff] %v19386_v61  ;;  %v19396_v3 = vmul.f32 0.5, %v19232_v41  ;;  %v7800_v41 = vsel %vm7453_vm4, %v19386_v61, -inf }
 0x536   : > { %v19448_v61 = vmul.f32 0.5, %v19354_v32 }
 0x537   : > { %11840 = vpow2.f32 %v7941_v17  ;;  %7645 = vmax.xlane.f32.xlu0 %v7644_v8  ;;  %7768 = vmax.xlane.f32.xlu2 %v7767_v62  ;;  %24050 = vst [vmem:[#allocation77_spill] sm:$0xff] %v19396_v3 }
 0x538   : > { %v7233_v48 = vpop.f32.mrf.mxu2  ;;  %v7685_v26 = vpop.xlane.xlu1 %7684  ;;  %24054 = vst [vmem:[#allocation76_spill] sm:$0xff] %v19448_v61 }
 0x539   : > { %v7340_v50 = vpop.f32.mrf.mxu3  ;;  %v19390_v6 = vpop.f32.mrf.mxu0  ;;  %7501 = vst.msk [vmem:[%s18828_s29 + $0x170] sm:$0xff] %vm7453_vm4, %v7233_v48  ;;  %v7843_v10 = vsub.f32 %v18907_v34, %v7685_v26 }
 0x53a   : > { %7513 = vst.msk [vmem:[%s18828_s29 + $0x1d0] sm:$0xff] %vm7453_vm4, %v7340_v50  ;;  %v7655_v9 = vpop.xlane.xlu0 %7654  ;;  %v7604_v34 = vpop.xlane.xlu2 %7603 }
 0x53b   : > { %v19400_v28 = vpop.eup %11838  ;;  %7523 = vst.msk [vmem:[%s18828_s29 + $0x220] sm:$0xff] %vm7453_vm4, %v19390_v6  ;;  %v7833_v17 = vsub.f32 %v18914_v43, %v7655_v9  ;;  %v7943_v8 = vmul.f32 1.442695, %v7843_v10  ;;  %v7816_v20 = vsub.f32 %v18933_v35, %v7604_v34  ;;  %v7725_v43 = vsel %vm7453_vm4, %v19396_v3, -inf }
 0x53c   : > { %11541 = vmatmul.msk.f32.vlgmr.msra.gmra.mxu1 %vm7453_vm4, %v19400_v28  ;;  %v19420_v10 = vmul.f32 0.5, %v7340_v50  ;;  %v19435_v50 = vmul.f32 0.5, %v19308_v5 }
 0x53d   : > { %v19413_v62 = vpop.eup %11840  ;;  %v7923_v26 = vmul.f32 1.442695, %v7833_v17  ;;  %11842 = vpow2.f32 %v7943_v8  ;;  %7801 = vmax.xlane.f32.xlu1 %v7800_v41  ;;  %v7889_v46 = vmul.f32 1.442695, %v7816_v20  ;;  %v7650_v17 = vsel %vm7462_vm5, %v19407_v27, -inf }
 0x53e   : > { %11571 = vmatmul.msk.f32.vlgmr.msrb.gmra.mxu0 %vm7453_vm4, %v19413_v62  ;;  %24052 = vst [vmem:[#allocation160_spill] sm:$0xff] %v19420_v10  ;;  %v7797_v32 = vsel %vm7453_vm4, %v19435_v50, -inf }
 0x53f   : > { %11844 = vpow2.f32 %v7923_v26  ;;  %7726 = vmax.xlane.f32.xlu0 %v7725_v43  ;;  %7651 = vmax.xlane.f32.xlu2 %v7650_v17  ;;  %24053 = vst [vmem:[#allocation73_spill] sm:$0xff] %v19435_v50  ;;  %v19487_v50 = vmul.f32 0.5, %v19390_v6 }
 0x540   : > { %v19422_v9 = vpop.f32.mrf.mxu2  ;;  %v7658_v35 = vpop.xlane.xlu1 %7657  ;;  %11846 = vpow2.f32 %v7889_v46 }
 0x541   : > { %v19426_v8 = vpop.f32.mrf.mxu3  ;;  %v19428_v34 = vpop.f32.mrf.mxu0  ;;  %7502 = vst.msk [vmem:[%s18828_s29 + $0x178] sm:$0xff] %vm7453_vm4, %v19422_v9  ;;  %v7834_v20 = vsub.f32 %v18960_v13, %v7658_v35  ;;  %v7773_v13 = vsel %vm7453_vm4, %v19420_v10, -inf }
 0x542   : > { %7514 = vst.msk [vmem:[%s18828_s29 + $0x1d8] sm:$0xff] %vm7453_vm4, %v19426_v8  ;;  %v19440_v41 = vpop.xlane.xlu0 %7618  ;;  %v7688_v46 = vpop.xlane.xlu2 %7687 }
 0x543   : > { %v19442_v26 = vpop.eup %11842  ;;  %7524 = vst.msk [vmem:[%s18828_s29 + $0x228] sm:$0xff] %vm7453_vm4, %v19428_v34  ;;  %v7925_v43 = vmul.f32 1.442695, %v7834_v20  ;;  %v7844_v17 = vsub.f32 %v18985_v53, %v7688_v46  ;;  %v7731_v53 = vsel %vm7462_vm5, %v19448_v61, -inf }
 0x544   : > { %24057 = vst [vmem:[#allocation15_spill] sm:$0xff] %v19487_v50 }
 0x545   : > { %v19452_v5 = vpop.eup %11844  ;;  %11848 = vpow2.f32 %v7925_v43  ;;  %7774 = vmax.xlane.f32.xlu1 %v7773_v13  ;;  %v7945_v20 = vmul.f32 1.442695, %v7844_v17  ;;  %v19463_v43 = vmul.f32 0.5, %v7233_v48  ;;  %v19477_v48 = vmul.f32 0.5, %v19316_v31 }
 0x546   : > { %11561 = vmatmul.msk.f32.vlgmr.msrb.gmra.mxu3 %vm7453_vm4, %v19452_v5  ;;  %11572 = vmatmul.msk.f32.gmra.mxu0 %vm7453_vm4, %v19442_v26  ;;  %v19461_v35 = vpop.eup %11846 }
 0x547   : > { %7798 = vmax.xlane.f32.xlu0 %v7797_v32  ;;  %24055 = vst [vmem:[#allocation118_spill] sm:$0xff] %v19463_v43  ;;  %11542 = vmatmul.msk.f32.gmra.mxu1 %vm7453_vm4, %v19461_v35  ;;  %11850 = vpow2.f32 %v7945_v20  ;;  %v7737_v20 = vsel %vm7453_vm4, %v19463_v43, -inf  ;;  %v7770_v42 = vsel %vm7453_vm4, %v19477_v48, -inf }
 0x548   : > { %v19465_v10 = vpop.f32.mrf.mxu2  ;;  %v19471_v46 = vpop.xlane.xlu1 %7621  ;;  %7732 = vmax.xlane.f32.xlu2 %v7731_v53  ;;  %24056 = vst [vmem:[#allocation100_spill] sm:$0xff] %v19477_v48 }
 0x549   : > { %v7346_v13 = vpop.f32.mrf.mxu3  ;;  %v7447_v27 = vpop.f32.mrf.mxu0  ;;  %7503 = vst.msk [vmem:[%s18828_s29 + $0x180] sm:$0xff] %vm7453_vm4, %v19465_v10 }
 0x54a   : > { %7515 = vst.msk [vmem:[%s18828_s29 + $0x1e0] sm:$0xff] %vm7453_vm4, %v7346_v13  ;;  %v7607_v17 = vpop.xlane.xlu0 %7606  ;;  %v7661_v3 = vpop.xlane.xlu2 %7660 }
 0x54b   : > { %v19481_v32 = vpop.eup %11848  ;;  %7525 = vst.msk [vmem:[%s18828_s29 + $0x230] sm:$0xff] %vm7453_vm4, %v7447_v27  ;;  %v7817_v61 = vsub.f32 %v19026_v7, %v7607_v17  ;;  %v7835_v31 = vsub.f32 %v19036_v39, %v7661_v3  ;;  %v19498_v17 = vmul.f32 0.5, %v7346_v13  ;;  %v7803_v39 = vsel %vm7453_vm4, %v19487_v50, -inf }
 0x54d   : > { %v7891_v53 = vmul.f32 1.442695, %v7817_v61  ;;  %7738 = vmax.xlane.f32.xlu1 %v7737_v20  ;;  %v19496_v7 = vpop.eup %11850  ;;  %v7927_v6 = vmul.f32 1.442695, %v7835_v31  ;;  %24058 = vst [vmem:[#allocation29_spill] sm:$0xff] %v19498_v17  ;;  %v19524_v31 = vmul.f32 0.5, %v19426_v8 }
 0x54e   : > { %11562 = vmatmul.msk.f32.gmra.mxu3 %vm7453_vm4, %v19481_v32  ;;  %11573 = vmatmul.msk.f32.gmra.mxu0 %vm7453_vm4, %v19496_v7 }
 0x54f   : > { %11852 = vpow2.f32 %v7891_v53  ;;  %7771 = vmax.xlane.f32.xlu0 %v7770_v42  ;;  %v19514_v42 = vmul.f32 0.5, %v19359_v36  ;;  %24060 = vst [vmem:[#allocation114_spill] sm:$0xff] %v19524_v31 }
 0x550   : > { %v19500_v61 = vpop.f32.mrf.mxu2  ;;  %v7613_v3 = vpop.xlane.xlu1 %7612  ;;  %11854 = vpow2.f32 %v7927_v6  ;;  %7804 = vmax.xlane.f32.xlu2 %v7803_v39  ;;  %v7779_v6 = vsel %vm7453_vm4, %v19498_v17, -inf  ;;  %v19537_v17 = vmul.f32 0.5, %v7447_v27 }
 0x551   : > { %v19506_v20 = vpop.f32.mrf.mxu3  ;;  %v19508_v43 = vpop.f32.mrf.mxu0  ;;  %7504 = vst.msk [vmem:[%s18828_s29 + $0x188] sm:$0xff] %vm7453_vm4, %v19500_v61 }
 0x552   : > { %24059 = vst [vmem:[#allocation94_spill] sm:$0xff] %v19514_v42  ;;  %v7691_v13 = vpop.xlane.xlu0 %7690  ;;  %v7610_v50 = vpop.xlane.xlu2 %7609 }
 0x553   : > { %7516 = vst.msk [vmem:[%s18828_s29 + $0x1e8] sm:$0xff] %vm7453_vm4, %v19506_v20  ;;  %v7845_v53 = vsub.f32 %v19067_v4, %v7691_v13  ;;  %v7818_v48 = vsub.f32 %v19073_v52, %v7610_v50  ;;  %v7734_v4 = vsel %vm7453_vm4, %v19514_v42, -inf  ;;  %v7776_v52 = vsel %vm7453_vm4, %v19524_v31, -inf }
 0x554   : > { %7526 = vst.msk [vmem:[%s18828_s29 + $0x238] sm:$0x3] %vm7462_vm5, %v19508_v43  ;;  %v19560_v42 = vmul.f32 0.5, %v19422_v9 }
 0x555   : > { %v19528_v39 = vpop.eup %11852  ;;  %v7947_v36 = vmul.f32 1.442695, %v7845_v53  ;;  %7780 = vmax.xlane.f32.xlu1 %v7779_v6  ;;  %v7893_v8 = vmul.f32 1.442695, %v7818_v48  ;;  %24061 = vst [vmem:[#allocation69_spill] sm:$0xff] %v19537_v17  ;;  %v7819_v6 = vsub.f32 %v19056_v19, %v7613_v3  ;;  %v19553_v48 = vmul.f32 0.5, %v19428_v34 }
 0x556   : > { %11543 = vmatmul.msk.f32.gmra.mxu1 %vm7453_vm4, %v19528_v39  ;;  %v19535_v13 = vpop.eup %11854  ;;  %v7809_v19 = vsel %vm7453_vm4, %v19537_v17, -inf }
 0x557   : > { %11856 = vpow2.f32 %v7947_v36  ;;  %7735 = vmax.xlane.f32.xlu0 %v7734_v4  ;;  %11563 = vmatmul.msk.f32.gmra.mxu3 %vm7453_vm4, %v19535_v13 }
 0x558   : > { %v19539_v55 = vpop.f32.mrf.mxu2  ;;  %v7694_v50 = vpop.xlane.xlu1 %7693  ;;  %11858 = vpow2.f32 %v7893_v8  ;;  %7777 = vmax.xlane.f32.xlu2 %v7776_v52  ;;  %v7820_v8 = vsub.f32 %v18878_v1, %v19380_v14 }
 0x559   : > { %v19545_v53 = vpop.f32.mrf.mxu3  ;;  %7505 = vst.msk [vmem:[%s18828_s29 + $0x190] sm:$0xff] %vm7453_vm4, %v19539_v55  ;;  %v7846_v27 = vsub.f32 %v19094_v21, %v7694_v50  ;;  %v7895_v21 = vmul.f32 1.442695, %v7819_v6 }
 0x55a   : > { %7517 = vst.msk [vmem:[%s18828_s29 + $0x1f0] sm:$0x3] %vm7462_vm5, %v19545_v53  ;;  %v7664_v36 = vpop.xlane.xlu0 %7663  ;;  %v19562_v37 = vpop.xlane.xlu2 %7624  ;;  %v7897_v14 = vmul.f32 1.442695, %v7820_v8  ;;  %v7821_v8 = vsub.f32 %v18971_v56, %v19440_v41 }
 0x55b   : > { %v7836_v4 = vsub.f32 %v19105_v29, %v7664_v36  ;;  %v7949_v31 = vmul.f32 1.442695, %v7846_v27  ;;  %v7806_v29 = vsel %vm7453_vm4, %v19553_v48, -inf }
 0x55d   : > { %v19566_v3 = vpop.eup %11856  ;;  %v7929_v34 = vmul.f32 1.442695, %v7836_v4  ;;  %11860 = vpow2.f32 %v7949_v31  ;;  %7810 = vmax.xlane.f32.xlu1 %v7809_v19  ;;  %v7740_v31 = vsel %vm7453_vm4, %v19560_v42, -inf  ;;  %v19590_v19 = vmul.f32 0.5, %v19506_v20 }
 0x55e   : > { %11574 = vmatmul.msk.f32.gmra.mxu0 %vm7453_vm4, %v19566_v3  ;;  %v19574_v9 = vpop.eup %11858 }
 0x55f   : > { %11862 = vpow2.f32 %v7929_v34  ;;  %7807 = vmax.xlane.f32.xlu0 %v7806_v29  ;;  %11544 = vmatmul.msk.f32.gmra.mxu1 %vm7453_vm4, %v19574_v9 }
 0x560   : > { %v19576_v52 = vpop.f32.mrf.mxu2  ;;  %v7667_v50 = vpop.xlane.xlu1 %7666  ;;  %11864 = vpow2.f32 %v7895_v21  ;;  %7741 = vmax.xlane.f32.xlu2 %v7740_v31  ;;  %v8034_v21 = vsel %vm7453_vm4, %v19461_v35, 0.0  ;;  %v7782_v31 = vsel %vm7453_vm4, %v19590_v19, -inf }
 0x561   : > { %7506 = vst.msk [vmem:[%s18828_s29 + $0x198] sm:$0xff] %vm7453_vm4, %v19576_v52  ;;  %v7837_v1 = vsub.f32 %v19131_v24, %v7667_v50 }
 0x562   : > { %v7628_v6 = vpop.xlane.xlu0 %7627  ;;  %v7697_v34 = vpop.xlane.xlu2 %7696 }
 0x563   : > { %v19586_v27 = vpop.eup %11860  ;;  %v7824_v36 = vsub.f32 %v19143_v40, %v7628_v6  ;;  %v7931_v4 = vmul.f32 1.442695, %v7837_v1  ;;  %v7847_v24 = vsub.f32 %v19149_v2, %v7697_v34  ;;  %v8031_v40 = vsel %vm7453_vm4, %v19400_v28, 0.0 }
 0x565   : > { %v19594_v29 = vpop.eup %11862  ;;  %v7905_v17 = vmul.f32 1.442695, %v7824_v36  ;;  %11866 = vpow2.f32 %v7931_v4  ;;  %8035 = vadd.xlane.f32.xlu1 %v8034_v21  ;;  %v7951_v35 = vmul.f32 1.442695, %v7847_v24  ;;  %v8115_v36 = vsel %vm7453_vm4, %v19442_v26, 0.0 }
 0x566   : > { %11868 = vpow2.f32 %v7897_v14  ;;  %11564 = vmatmul.msk.f32.gmra.mxu3 %vm7453_vm4, %v19594_v29  ;;  %11575 = vmatmul.msk.f32.gmra.mxu0 %vm7453_vm4, %v19586_v27  ;;  %v19603_v20 = vpop.eup %11864  ;;  %v7899_v14 = vmul.f32 1.442695, %v7821_v8  ;;  %v19635_v26 = vmul.f32 0.5, %v19500_v61  ;;  %v19651_v61 = vmul.f32 0.5, %v19465_v10 }
 0x567   : > { %11870 = vpow2.f32 %v7905_v17  ;;  %8032 = vadd.xlane.f32.xlu0 %v8031_v40  ;;  %11545 = vmatmul.msk.f32.gmra.mxu1 %vm7453_vm4, %v19603_v20 }
 0x568   : > { %v19607_v2 = vpop.f32.mrf.mxu2  ;;  %v7631_v50 = vpop.xlane.xlu1 %7630  ;;  %11872 = vpow2.f32 %v7951_v35  ;;  %7783 = vmax.xlane.f32.xlu2 %v7782_v31  ;;  %v19657_v31 = vmul.f32 0.5, %v19508_v43  ;;  %v7743_v10 = vsel %vm7453_vm4, %v19651_v61, -inf }
 0x569   : > { %7507 = vst.msk [vmem:[%s18828_s29 + $0x1a0] sm:$0xff] %vm7453_vm4, %v19607_v2  ;;  %v7825_v28 = vsub.f32 %v19169_v11, %v7631_v50  ;;  %v8112_v11 = vsel %vm7453_vm4, %v19413_v62, 0.0 }
 0x56a   : > { %v19617_v17 = vpop.xlane.xlu0 %7708  ;;  %v7670_v6 = vpop.xlane.xlu2 %7669 }
 0x56b   : > { %v19619_v1 = vpop.eup %11866  ;;  %v7907_v56 = vmul.f32 1.442695, %v7825_v28  ;;  %v7838_v34 = vsub.f32 %v19186_v23, %v7670_v6  ;;  %v7822_v23 = vsub.f32 %v19015_v45, %v19471_v46 }
 0x56c   : > { %v11869_v41 = vpop.eup %11868 }
 0x56d   : > { %v19623_v4 = vpop.eup %11870  ;;  %11874 = vpow2.f32 %v7907_v56  ;;  %8116 = vadd.xlane.f32.xlu1 %v8115_v36  ;;  %v7933_v24 = vmul.f32 1.442695, %v7838_v34  ;;  %v8046_v62 = vsel %vm7453_vm4, %v11869_v41, 0.0  ;;  %v7901_v50 = vmul.f32 1.442695, %v7822_v23 }
 0x56e   : > { %11551 = vmatmul.msk.f32.vlgmr.msrb.gmra.mxu2 %vm7453_vm4, %v19623_v4  ;;  %11565 = vmatmul.msk.f32.gmra.mxu3 %vm7453_vm4, %v19619_v1  ;;  %v19632_v21 = vpop.eup %11872  ;;  %11876 = vpow2.f32 %v7899_v14  ;;  %v7746_v56 = vsel %vm7453_vm4, %v19635_v26, -inf  ;;  %v19669_v36 = vmul.f32 0.5, %v19545_v53 }
 0x56f   : > { %8113 = vadd.xlane.f32.xlu0 %v8112_v11  ;;  %11546 = vmatmul.msk.f32.gmra.mxu1 %vm7453_vm4, %v11869_v41  ;;  %11878 = vpow2.f32 %v7933_v24  ;;  %v7823_v11 = vsub.f32 %v19111_v30, %v19562_v37  ;;  %v7851_v37 = vsub.f32 %v19180_v25, %v19617_v17 }
 0x570   : > { %v19639_v40 = vpop.f32.mrf.mxu2  ;;  %11576 = vmatmul.msk.f32.gmra.mxu0 %vm7453_vm4, %v19632_v21  ;;  %v19645_v35 = vpop.xlane.xlu1 %7711  ;;  %8047 = vadd.xlane.f32.xlu2 %v8046_v62 }
 0x571   : > { %7508 = vst.msk [vmem:[%s18828_s29 + $0x1a8] sm:$0x3] %vm7462_vm5, %v19639_v40  ;;  %v7959_v25 = vmul.f32 1.442695, %v7851_v37 }
 0x572   : > { %v7700_v45 = vpop.xlane.xlu0 %7699  ;;  %v7634_v28 = vpop.xlane.xlu2 %7633 }
 0x573   : > { %v19653_v46 = vpop.eup %11874  ;;  %v7848_v8 = vsub.f32 %v19215_v22, %v7700_v45  ;;  %v7826_v14 = vsub.f32 %v19221_v12, %v7634_v28  ;;  %v7812_v12 = vsel %vm7462_vm5, %v19657_v31, -inf  ;;  %v7903_v28 = vmul.f32 1.442695, %v7823_v11 }
 0x574   : > { %v11877_v6 = vpop.eup %11876  ;;  %v8088_v11 = vsel %vm7453_vm4, %v19481_v32, 0.0  ;;  %v7852_v32 = vsub.f32 %v19204_v15, %v19645_v35 }
 0x575   : > { %v7953_v41 = vmul.f32 1.442695, %v7848_v8  ;;  %7747 = vmax.xlane.f32.xlu1 %v7746_v56  ;;  %v19666_v22 = vpop.eup %11878  ;;  %v7909_v43 = vmul.f32 1.442695, %v7826_v14  ;;  %v7785_v8 = vsel %vm7462_vm5, %v19669_v36, -inf }
 0x576   : > { %11552 = vmatmul.msk.f32.gmra.mxu2 %vm7453_vm4, %v19653_v46  ;;  %11566 = vmatmul.msk.f32.gmra.mxu3 %vm7453_vm4, %v19666_v22  ;;  %v7961_v37 = vmul.f32 1.442695, %v7852_v32 }
 0x577   : > { %11880 = vpow2.f32 %v7953_v41  ;;  %7744 = vmax.xlane.f32.xlu0 %v7743_v10  ;;  %11547 = vmatmul.msk.f32.gmra.mxu1 %vm7453_vm4, %v11877_v6  ;;  %v8037_v41 = vsel %vm7453_vm4, %v19528_v39, 0.0 }
 0x578   : > { %11882 = vpow2.f32 %v7901_v50  ;;  %v7703_v34 = vpop.xlane.xlu1 %7702  ;;  %7813 = vmax.xlane.f32.xlu2 %v7812_v12 }
 0x579   : > { %11884 = vpow2.f32 %v7909_v43  ;;  %v7849_v24 = vsub.f32 %v19237_v44, %v7703_v34  ;;  %v8085_v44 = vsel %vm7453_vm4, %v19452_v5, 0.0 }
 0x57a   : > { %v7673_v23 = vpop.xlane.xlu0 %7672  ;;  %v19680_v45 = vpop.xlane.xlu2 %7714 }
 0x57b   : > { %v7839_v53 = vsub.f32 %v19247_v47, %v7673_v23  ;;  %v7955_v62 = vmul.f32 1.442695, %v7849_v24 }
 0x57d   : > { %v19684_v50 = vpop.eup %11880  ;;  %v7935_v56 = vmul.f32 1.442695, %v7839_v53  ;;  %11886 = vpow2.f32 %v7955_v62  ;;  %7786 = vmax.xlane.f32.xlu1 %v7785_v8 }
 0x57e   : > { %v11883_v30 = vpop.eup %11882  ;;  %11577 = vmatmul.msk.f32.gmra.mxu0 %vm7453_vm4, %v19684_v50 }
 0x57f   : > { %v19690_v47 = vpop.eup %11884  ;;  %11888 = vpow2.f32 %v7935_v56  ;;  %8086 = vadd.xlane.f32.xlu0 %v8085_v44  ;;  %11548 = vmatmul.msk.f32.gmra.mxu1 %vm7453_vm4, %v11883_v30  ;;  %v19725_v44 = vmul.f32 0.5, %v19539_v55  ;;  %v8052_v35 = vsel %vm7453_vm4, %v11883_v30, 0.0 }
 0x580   : > { %11553 = vmatmul.msk.f32.gmra.mxu2 %vm7453_vm4, %v19690_v47  ;;  %v7676_v14 = vpop.xlane.xlu1 %7675  ;;  %11890 = vpow2.f32 %v7903_v28  ;;  %8038 = vadd.xlane.f32.xlu2 %v8037_v41 }
 0x581   : > { %v7840_v5 = vsub.f32 %v19264_v16, %v7676_v14  ;;  %v8049_v16 = vsel %vm7453_vm4, %v11877_v6, 0.0 }
 0x582   : > { %v7637_v10 = vpop.xlane.xlu0 %7636  ;;  %v7706_v17 = vpop.xlane.xlu2 %7705 }
 0x583   : > { %v19700_v43 = vpop.eup %11886  ;;  %v7827_v12 = vsub.f32 %v19272_v18, %v7637_v10  ;;  %v7937_v34 = vmul.f32 1.442695, %v7840_v5  ;;  %v7850_v39 = vsub.f32 %v19275_v51, %v7706_v17  ;;  %v8118_v51 = vsel %vm7453_vm4, %v19496_v7, 0.0 }
 0x584   : > { %v7749_v5 = vsel %vm7453_vm4, %v19725_v44, -inf }
 0x585   : > { %v19705_v24 = vpop.eup %11888  ;;  %v7911_v23 = vmul.f32 1.442695, %v7827_v12  ;;  %11892 = vpow2.f32 %v7937_v34  ;;  %8089 = vadd.xlane.f32.xlu1 %v8088_v11  ;;  %v7957_v53 = vmul.f32 1.442695, %v7850_v39  ;;  %v8121_v39 = vsel %vm7453_vm4, %v19566_v3, 0.0 }
 0x586   : > { %11567 = vmatmul.msk.f32.gmra.mxu3 %vm7453_vm4, %v19705_v24  ;;  %11578 = vmatmul.msk.f32.gmra.mxu0 %vm7453_vm4, %v19700_v43  ;;  %v19713_v18 = vpop.eup %11890  ;;  %v19771_v3 = vmul.f32 0.5, %v19576_v52 }
 0x587   : > { %11894 = vpow2.f32 %v7911_v23  ;;  %8050 = vadd.xlane.f32.xlu0 %v8049_v16  ;;  %11549 = vmatmul.msk.f32.gmra.mxu1 %vm7453_vm4, %v19713_v18 }
 0x588   : > { %11896 = vpow2.f32 %v7959_v25  ;;  %v7640_v62 = vpop.xlane.xlu1 %7639  ;;  %8119 = vadd.xlane.f32.xlu2 %v8118_v51  ;;  %v7752_v52 = vsel %vm7453_vm4, %v19771_v3, -inf }
 0x589   : > { %11898 = vpow2.f32 %v7957_v53  ;;  %v7828_v6 = vsub.f32 %v19284_v54, %v7640_v62  ;;  %v8040_v54 = vsel %vm7453_vm4, %v19574_v9, 0.0 }
 0x58a   : > { %v7718_v8 = vpop.xlane.xlu0 %7717  ;;  %v7679_v15 = vpop.xlane.xlu2 %7678 }
 0x58b   : > { %v19722_v28 = vpop.eup %11892  ;;  %v7913_v56 = vmul.f32 1.442695, %v7828_v6  ;;  %v7841_v7 = vsub.f32 %v19297_v60, %v7679_v15  ;;  %v7853_v60 = vsub.f32 %v19253_v38, %v19680_v45  ;;  %v8043_v38 = vsel %vm7453_vm4, %v19603_v20, 0.0 }
 0x58c   : > { %v7854_v53 = vsub.f32 %v19292_v33, %v7718_v8  ;;  %v8124_v6 = vsel %vm7453_vm4, %v19586_v27, 0.0  ;;  %v19788_v27 = vmul.f32 0.5, %v19607_v2 }
 0x58d   : > { %v19728_v41 = vpop.eup %11894  ;;  %11900 = vpow2.f32 %v7913_v56  ;;  %8053 = vadd.xlane.f32.xlu1 %v8052_v35  ;;  %v7939_v30 = vmul.f32 1.442695, %v7841_v7  ;;  %v7963_v25 = vmul.f32 1.442695, %v7853_v60 }
 0x58e   : > { %v19731_v14 = vpop.eup %11896  ;;  %11554 = vmatmul.msk.f32.gmra.mxu2 %vm7453_vm4, %v19728_v41  ;;  %11568 = vmatmul.msk.f32.gmra.mxu3 %vm7453_vm4, %v19722_v28  ;;  %11902 = vpow2.f32 %v7961_v37  ;;  %v7965_v37 = vmul.f32 1.442695, %v7854_v53  ;;  %v7755_v60 = vsel %vm7453_vm4, %v19788_v27, -inf }
 0x58f   : > { %v19739_v55 = vpop.eup %11898  ;;  %8041 = vadd.xlane.f32.xlu0 %v8040_v54  ;;  %11581 = vmatmul.msk.f32.vlgmr.msrb.gmra.mxu1 %vm7453_vm4, %v19731_v14  ;;  %11904 = vpow2.f32 %v7939_v30 }
 0x590   : > { %11579 = vmatmul.msk.f32.gmra.mxu0 %vm7453_vm4, %v19739_v55  ;;  %v7721_v10 = vpop.xlane.xlu1 %7720  ;;  %7750 = vmax.xlane.f32.xlu2 %v7749_v5 }
 0x591   : > { %v7855_v35 = vsub.f32 %v19304_v0, %v7721_v10  ;;  %v8094_v0 = vsel %vm7453_vm4, %v19594_v29, 0.0 }
 0x592   : > { %v7790_v9 = vpop.xlane.xlu0 %7789  ;;  %v7643_v17 = vpop.xlane.xlu2 %7642 }
 0x593   : > { %v19749_v12 = vpop.eup %11900  ;;  %v7878_v34 = vsub.f32 %v19311_v57, %v7790_v9  ;;  %v7829_v11 = vsub.f32 %v19319_v49, %v7643_v17  ;;  %v8091_v49 = vsel %vm7453_vm4, %v19535_v13, 0.0  ;;  %v7967_v9 = vmul.f32 1.442695, %v7855_v35 }
 0x594   : > { %v19755_v23 = vpop.eup %11902 }
 0x595   : > { %v8013_v45 = vmul.f32 1.442695, %v7878_v34  ;;  %8044 = vadd.xlane.f32.xlu1 %v8043_v38  ;;  %v19761_v16 = vpop.eup %11904  ;;  %v7915_v57 = vmul.f32 1.442695, %v7829_v11  ;;  %v8127_v38 = vsel %vm7453_vm4, %v19632_v21, 0.0 }
 0x596   : > { %11555 = vmatmul.msk.f32.gmra.mxu2 %vm7453_vm4, %v19749_v12  ;;  %11569 = vmatmul.msk.f32.gmra.mxu3 %vm7453_vm4, %v19761_v16 }
 0x597   : > { %11906 = vpow2.f32 %v8013_v45  ;;  %8122 = vadd.xlane.f32.xlu0 %v8121_v39  ;;  %11582 = vmatmul.msk.f32.gmra.mxu1 %vm7453_vm4, %v19755_v23 }
 0x598   : > { %11908 = vpow2.f32 %v7963_v25  ;;  %v7766_v20 = vpop.xlane.xlu1 %7765  ;;  %8092 = vadd.xlane.f32.xlu2 %v8091_v49 }
 0x599   : > { %11910 = vpow2.f32 %v7915_v57  ;;  %v7870_v33 = vsub.f32 %v19328_v59, %v7766_v20  ;;  %v8055_v59 = vsel %vm7462_vm5, %v19713_v18, 0.0  ;;  %v24062_v18 = vld [vmem:[#allocation162_spill] sm:$0xff]  ;;  %v24064_v57 = vld [vmem:[#allocation157_spill] sm:$0xff]  ;;  %v19818_v20 = vmul.f32 0.5, %v19639_v40 }
 0x59a   : > { %v7763_v32 = vpop.xlane.xlu0 %7762  ;;  %v7724_v62 = vpop.xlane.xlu2 %7723  ;;  %v8058_v40 = vsel %vm7453_vm4, %v19623_v4, 0.0  ;;  %v24067_v4 = vld [vmem:[#allocation77_spill] sm:$0xff] }
 0x59b   : > { %v7869_v51 = vsub.f32 %v19333_v58, %v7763_v32  ;;  %v7997_v7 = vmul.f32 1.442695, %v7870_v33  ;;  %v24066_v33 = vld [vmem:[#allocation82_spill] sm:$0xff] }
 0x59d   : > { %v19776_v56 = vpop.eup %11906  ;;  %v7995_v15 = vmul.f32 1.442695, %v7869_v51  ;;  %8125 = vadd.xlane.f32.xlu1 %v8124_v6  ;;  %v8097_v51 = vsel %vm7453_vm4, %v19619_v1, 0.0  ;;  %v24065_v6 = vld [vmem:[#allocation153_spill] sm:$0xff] }
 0x59e   : > { %v19778_v13 = vpop.eup %11908  ;;  %11611 = vmatmul.msk.f32.vlgmr.msra.gmra.mxu0 %vm7453_vm4, %v19776_v56 }
 0x59f   : > { %v19785_v58 = vpop.eup %11910  ;;  %11912 = vpow2.f32 %v7995_v15  ;;  %7753 = vmax.xlane.f32.xlu0 %v7752_v52  ;;  %11583 = vmatmul.msk.f32.gmra.mxu1 %vm7453_vm4, %v19778_v13 }
 0x5a0   : > { %11556 = vmatmul.msk.f32.gmra.mxu2 %vm7453_vm4, %v19785_v58  ;;  %v7649_v8 = vpop.xlane.xlu1 %7648  ;;  %11914 = vpow2.f32 %v7965_v37  ;;  %8056 = vadd.xlane.f32.xlu2 %v8055_v59  ;;  %v7758_v59 = vsel %vm7462_vm5, %v19818_v20, -inf }
 0x5a1   : > { %11916 = vpow2.f32 %v7997_v7  ;;  %v7831_v1 = vsub.f32 %v24066_v33, %v7649_v8 }
 0x5a2   : > { %v7793_v54 = vpop.xlane.xlu0 %7792  ;;  %v7796_v2 = vpop.xlane.xlu2 %7795 }
 0x5a3   : > { %v7879_v30 = vsub.f32 %v19347_v63, %v7793_v54  ;;  %v7880_v25 = vsub.f32 %v24062_v18, %v7796_v2  ;;  %v24063_v63 = vld [vmem:[#allocation154_spill] sm:$0xff]  ;;  %v7919_v54 = vmul.f32 1.442695, %v7831_v1 }
 0x5a4   : > { %v7856_v17 = vsub.f32 %v24063_v63, %v7724_v62  ;;  %v8130_v63 = vsel %vm7453_vm4, %v19684_v50, 0.0 }
 0x5a5   : > { %v19800_v5 = vpop.eup %11912  ;;  %v8015_v34 = vmul.f32 1.442695, %v7879_v30  ;;  %7756 = vmax.xlane.f32.xlu1 %v7755_v60  ;;  %v8017_v11 = vmul.f32 1.442695, %v7880_v25  ;;  %v8061_v60 = vsel %vm7453_vm4, %v19653_v46, 0.0  ;;  %v24068_v25 = vld [vmem:[#allocation2_spill] sm:$0xff] }
 0x5a6   : > { %11601 = vmatmul.msk.f32.vlgmr.msra.gmra.mxu3 %vm7453_vm4, %v19800_v5  ;;  %v19807_v10 = vpop.eup %11914  ;;  %v7969_v53 = vmul.f32 1.442695, %v7856_v17  ;;  %v8100_v46 = vsel %vm7453_vm4, %v19666_v22, 0.0 }
 0x5a7   : > { %11918 = vpow2.f32 %v8015_v34  ;;  %8095 = vadd.xlane.f32.xlu0 %v8094_v0  ;;  %11584 = vmatmul.msk.f32.gmra.mxu1 %vm7453_vm4, %v19807_v10  ;;  %v19815_v29 = vpop.eup %11916 }
 0x5a8   : > { %v7730_v45 = vpop.xlane.xlu1 %7729  ;;  %11920 = vpow2.f32 %v7967_v9  ;;  %8128 = vadd.xlane.f32.xlu2 %v8127_v38 }
 0x5a9   : > { %11922 = vpow2.f32 %v8017_v11  ;;  %v24069_v11 = vld [vmem:[#allocation4_spill] sm:$0xff] }
 0x5aa   : > { %v7646_v39 = vpop.xlane.xlu0 %7645  ;;  %v7769_v32 = vpop.xlane.xlu2 %7768 }
 0x5ab   : > { %v7830_v49 = vsub.f32 %v24064_v57, %v7646_v39  ;;  %v7871_v37 = vsub.f32 %v24065_v6, %v7769_v32  ;;  %v7858_v39 = vsub.f32 %v24069_v11, %v7730_v45  ;;  %v8103_v45 = vsel %vm7453_vm4, %v19705_v24, 0.0  ;;  %v24075_v11 = vld [vmem:[#allocation15_spill] sm:$0xff] }
 0x5ad   : > { %v19822_v62 = vpop.eup %11918  ;;  %v7917_v21 = vmul.f32 1.442695, %v7830_v49  ;;  %8098 = vadd.xlane.f32.xlu1 %v8097_v51  ;;  %v7999_v52 = vmul.f32 1.442695, %v7871_v37  ;;  %v24070_v49 = vld [vmem:[#allocation73_spill] sm:$0xff]  ;;  %v8133_v51 = vsel %vm7453_vm4, %v19700_v43, 0.0 }
 0x5ae   : > { %11602 = vmatmul.msk.f32.gmra.mxu3 %vm7453_vm4, %v19815_v29  ;;  %11612 = vmatmul.msk.f32.gmra.mxu0 %vm7453_vm4, %v19822_v62  ;;  %v19831_v15 = vpop.eup %11920  ;;  %v7973_v6 = vmul.f32 1.442695, %v7858_v39  ;;  %v8064_v43 = vsel %vm7453_vm4, %v19690_v47, 0.0 }
 0x5af   : > { %11924 = vpow2.f32 %v7917_v21  ;;  %8059 = vadd.xlane.f32.xlu0 %v8058_v40  ;;  %11585 = vmatmul.msk.f32.gmra.mxu1 %vm7453_vm4, %v19831_v15  ;;  %v19839_v2 = vpop.eup %11922  ;;  %v24071_v40 = vld [vmem:[#allocation79_spill] sm:$0xff] }
 0x5b0   : > { %11926 = vpow2.f32 %v7969_v53  ;;  %v7802_v35 = vpop.xlane.xlu1 %7801  ;;  %7759 = vmax.xlane.f32.xlu2 %v7758_v59 }
 0x5b1   : > { %11928 = vpow2.f32 %v7999_v52  ;;  %v7882_v22 = vsub.f32 %v24071_v40, %v7802_v35  ;;  %v24072_v52 = vld [vmem:[#allocation76_spill] sm:$0xff] }
 0x5b2   : > { %v7727_v7 = vpop.xlane.xlu0 %7726  ;;  %v7652_v8 = vpop.xlane.xlu2 %7651  ;;  %11930 = vpow2.f32 %v7919_v54  ;;  %v24073_v54 = vld [vmem:[#allocation100_spill] sm:$0xff] }
 0x5b3   : > { %v7857_v30 = vsub.f32 %v24067_v4, %v7727_v7  ;;  %v7832_v0 = vsub.f32 %v24068_v25, %v7652_v8  ;;  %v8021_v35 = vmul.f32 1.442695, %v7882_v22  ;;  %v8142_v8 = vsel %vm7453_vm4, %v19755_v23, 0.0  ;;  %v24077_v22 = vld [vmem:[#allocation118_spill] sm:$0xff] }
 0x5b5   : > { %v19843_v9 = vpop.eup %11924  ;;  %v7971_v34 = vmul.f32 1.442695, %v7857_v30  ;;  %8062 = vadd.xlane.f32.xlu1 %v8061_v60  ;;  %v7921_v57 = vmul.f32 1.442695, %v7832_v0  ;;  %v24074_v0 = vld [vmem:[#allocation160_spill] sm:$0xff] }
 0x5b6   : > { %v19845_v18 = vpop.eup %11926  ;;  %11557 = vmatmul.msk.f32.gmra.mxu2 %vm7453_vm4, %v19843_v9  ;;  %11613 = vmatmul.msk.f32.gmra.mxu0 %vm7453_vm4, %v19839_v2 }
 0x5b7   : > { %v19854_v17 = vpop.eup %11928  ;;  %8131 = vadd.xlane.f32.xlu0 %v8130_v63  ;;  %11586 = vmatmul.msk.f32.gmra.mxu1 %vm7453_vm4, %v19845_v18  ;;  %11932 = vpow2.f32 %v7971_v34 }
 0x5b8   : > { %11603 = vmatmul.msk.f32.gmra.mxu3 %vm7453_vm4, %v19854_v17  ;;  %v7775_v38 = vpop.xlane.xlu1 %7774  ;;  %8101 = vadd.xlane.f32.xlu2 %v8100_v46  ;;  %v19866_v21 = vpop.eup %11930  ;;  %11934 = vpow2.f32 %v7921_v57  ;;  %v8067_v46 = vsel %vm7453_vm4, %v19728_v41, 0.0 }
 0x5b9   : > { %v19887_v34 = vpop.f32.mrf.mxu1  ;;  %v7873_v63 = vsub.f32 %v24074_v0, %v7775_v38  ;;  %v8136_v38 = vsel %vm7462_vm5, %v19739_v55, 0.0 }
 0x5ba   : > { %v7799_v50 = vpop.xlane.xlu0 %7798 }
 0x5bb   : > { %v7881_v53 = vsub.f32 %v24070_v49, %v7799_v50  ;;  %v7733_v32 = vpop.xlane.xlu2 %7732  ;;  %v8003_v50 = vmul.f32 1.442695, %v7873_v63 }
 0x5bc   : > { %v7859_v59 = vsub.f32 %v24072_v52, %v7733_v32  ;;  %v24078_v52 = vld [vmem:[#allocation114_spill] sm:$0xff] }
 0x5bd   : > { %v8019_v37 = vmul.f32 1.442695, %v7881_v53  ;;  %8134 = vadd.xlane.f32.xlu1 %v8133_v51  ;;  %v19873_v33 = vpop.eup %11932  ;;  %v24076_v53 = vld [vmem:[#allocation94_spill] sm:$0xff] }
 0x5be   : > { %11558 = vmatmul.msk.f32.gmra.mxu2 %vm7453_vm4, %v19866_v21  ;;  %v19881_v24 = vpop.eup %11934  ;;  %v7975_v47 = vmul.f32 1.442695, %v7859_v59 }
 0x5bf   : > { %11936 = vpow2.f32 %v8019_v37  ;;  %8104 = vadd.xlane.f32.xlu0 %v8103_v45  ;;  %11587 = vmatmul.msk.f32.gmra.mxu1 %vm7453_vm4, %v19873_v33  ;;  %v8106_v37 = vsel %vm7453_vm4, %v19722_v28, 0.0  ;;  %v8139_v28 = vsel %vm7453_vm4, %v19731_v14, 0.0 }
 0x5c0   : > { %v7739_v1 = vpop.xlane.xlu1 %7738  ;;  %11938 = vpow2.f32 %v7973_v6  ;;  %8065 = vadd.xlane.f32.xlu2 %v8064_v43 }
 0x5c1   : > { %11940 = vpow2.f32 %v8021_v35  ;;  %v7861_v45 = vsub.f32 %v24077_v22, %v7739_v1  ;;  %v8109_v1 = vsel %vm7462_vm5, %v19761_v16, 0.0  ;;  %v8220_v22 = vsel %vm7453_vm4, %v19776_v56, 0.0 }
 0x5c2   : > { %v7772_v7 = vpop.xlane.xlu0 %7771 }
 0x5c3   : > { %v7872_v4 = vsub.f32 %v24073_v54, %v7772_v7  ;;  %v7805_v30 = vpop.xlane.xlu2 %7804  ;;  %v7979_v54 = vmul.f32 1.442695, %v7861_v45 }
 0x5c4   : > { %v7883_v39 = vsub.f32 %v24075_v11, %v7805_v30  ;;  %v19911_v43 = vpop.f32.mrf.mxu1  ;;  %v24079_v11 = vld [vmem:[#allocation29_spill] sm:$0xff] }
 0x5c5   : > { %v19885_v60 = vpop.eup %11936  ;;  %v8001_v25 = vmul.f32 1.442695, %v7872_v4  ;;  %8143 = vadd.xlane.f32.xlu1 %v8142_v8 }
 0x5c6   : > { %11559 = vmatmul.msk.f32.gmra.mxu2 %vm7453_vm4, %v19881_v24  ;;  %11614 = vmatmul.msk.f32.gmra.mxu0 %vm7453_vm4, %v19885_v60  ;;  %v19896_v23 = vpop.eup %11938  ;;  %v8023_v51 = vmul.f32 1.442695, %v7883_v39 }
 0x5c7   : > { %11942 = vpow2.f32 %v8001_v25  ;;  %8068 = vadd.xlane.f32.xlu0 %v8067_v46  ;;  %11588 = vmatmul.msk.f32.gmra.mxu1 %vm7453_vm4, %v19896_v23  ;;  %v19904_v41 = vpop.eup %11940  ;;  %v8070_v25 = vsel %vm7453_vm4, %v19749_v12, 0.0 }
 0x5c8   : > { %v7781_v57 = vpop.xlane.xlu1 %7780  ;;  %11944 = vpow2.f32 %v7975_v47  ;;  %8137 = vadd.xlane.f32.xlu2 %v8136_v38  ;;  %v24080_v38 = vld [vmem:[#allocation69_spill] sm:$0xff] }
 0x5c9   : > { %11946 = vpow2.f32 %v8003_v50  ;;  %v7875_v39 = vsub.f32 %v24079_v11, %v7781_v57  ;;  %v8073_v57 = vsel %vm7453_vm4, %v19785_v58, 0.0  ;;  %v8516_v58 = vpop.f32.mrf.mxu0 }
 0x5ca   : > { %v7736_v49 = vpop.xlane.xlu0 %7735 }
 0x5cb   : > { %v7860_v32 = vsub.f32 %v24076_v53, %v7736_v49  ;;  %v7778_v6 = vpop.xlane.xlu2 %7777  ;;  %v8007_v53 = vmul.f32 1.442695, %v7875_v39 }
 0x5cc   : > { %v7874_v59 = vsub.f32 %v24078_v52, %v7778_v6 }
 0x5cd   : > { %v19908_v40 = vpop.eup %11942  ;;  %v7977_v55 = vmul.f32 1.442695, %v7860_v32  ;;  %8107 = vadd.xlane.f32.xlu1 %v8106_v37 }
 0x5ce   : > { %11604 = vmatmul.msk.f32.gmra.mxu3 %vm7453_vm4, %v19908_v40  ;;  %11615 = vmatmul.msk.f32.gmra.mxu0 %vm7453_vm4, %v19904_v41  ;;  %v19920_v35 = vpop.eup %11944  ;;  %v8005_v4 = vmul.f32 1.442695, %v7874_v59  ;;  %v8199_v59 = vsel %vm7453_vm4, %v19854_v17, 0.0 }
 0x5cf   : > { %11948 = vpow2.f32 %v7977_v55  ;;  %8140 = vadd.xlane.f32.xlu0 %v8139_v28  ;;  %11589 = vmatmul.msk.f32.gmra.mxu1 %vm7453_vm4, %v19920_v35  ;;  %v19927_v47 = vpop.eup %11946  ;;  %v8193_v28 = vsel %vm7453_vm4, %v19800_v5, 0.0 }
 0x5d0   : > { %11950 = vpow2.f32 %v8023_v51  ;;  %v7811_v7 = vpop.xlane.xlu1 %7810  ;;  %8110 = vadd.xlane.f32.xlu2 %v8109_v1 }
 0x5d1   : > { %11952 = vpow2.f32 %v7979_v54  ;;  %v7885_v50 = vsub.f32 %v24080_v38, %v7811_v7 }
 0x5d2   : > { %v7808_v30 = vpop.xlane.xlu0 %7807  ;;  %11954 = vpow2.f32 %v8005_v4 }
 0x5d3   : > { %v7884_v8 = vsub.f32 %v19553_v48, %v7808_v30  ;;  %v7742_v14 = vpop.xlane.xlu2 %7741  ;;  %v19933_v46 = vpop.f32.mrf.mxu1  ;;  %v8076_v48 = vsel %vm7453_vm4, %v19843_v9, 0.0  ;;  %v8223_v30 = vsel %vm7453_vm4, %v19822_v62, 0.0 }
 0x5d4   : > { %v7862_v12 = vsub.f32 %v19560_v42, %v7742_v14  ;;  %v8027_v42 = vmul.f32 1.442695, %v7885_v50 }
 0x5d5   : > { %v19931_v0 = vpop.eup %11948  ;;  %v8025_v63 = vmul.f32 1.442695, %v7884_v8  ;;  %8071 = vadd.xlane.f32.xlu1 %v8070_v25  ;;  %v8519_v25 = vpop.f32.mrf.mxu0 }
 0x5d6   : > { %v19935_v16 = vpop.eup %11950  ;;  %11591 = vmatmul.msk.f32.vlgmr.msra.gmra.mxu2 %vm7453_vm4, %v19931_v0  ;;  %11605 = vmatmul.msk.f32.gmra.mxu3 %vm7453_vm4, %v19927_v47  ;;  %v7981_v9 = vmul.f32 1.442695, %v7862_v12 }
 0x5d7   : > { %11956 = vpow2.f32 %v8025_v63  ;;  %11616 = vmatmul.msk.f32.gmra.mxu0 %vm7453_vm4, %v19935_v16  ;;  %8077 = vadd.xlane.f32.xlu0 %v8076_v48  ;;  %v19950_v51 = vpop.eup %11952  ;;  %v8196_v63 = vsel %vm7453_vm4, %v19815_v29, 0.0 }
 0x5d8   : > { %v8036_v49 = vpop.xlane.xlu1 %8035  ;;  %8074 = vadd.xlane.f32.xlu2 %v8073_v57  ;;  %v19952_v6 = vpop.eup %11954 }
 0x5d9   : > { %11958 = vrcp.f32 %v8036_v49  ;;  %v8079_v49 = vsel %vm7453_vm4, %v19866_v21, 0.0  ;;  %v8145_v21 = vsel %vm7453_vm4, %v19778_v13, 0.0 }
 0x5da   : > { %v8033_v32 = vpop.xlane.xlu0 %8032  ;;  %11960 = vpow2.f32 %v8007_v53 }
 0x5db   : > { %v7784_v37 = vpop.xlane.xlu2 %7783  ;;  %11962 = vpow2.f32 %v7981_v9 }
 0x5dc   : > { %v19958_v55 = vpop.f32.mrf.mxu1  ;;  %v7876_v52 = vsub.f32 %v19590_v19, %v7784_v37  ;;  %11964 = vpow2.f32 %v8027_v42 }
 0x5dd   : > { %v19956_v45 = vpop.eup %11956  ;;  %8221 = vadd.xlane.f32.xlu1 %v8220_v22 }
 0x5de   : > { %11592 = vmatmul.msk.f32.gmra.mxu2 %vm7453_vm4, %v19950_v51  ;;  %11606 = vmatmul.msk.f32.gmra.mxu3 %vm7453_vm4, %v19952_v6  ;;  %v8009_v7 = vmul.f32 1.442695, %v7876_v52 }
 0x5df   : > { %11617 = vmatmul.msk.f32.gmra.mxu0 %vm7453_vm4, %v19956_v45  ;;  %8200 = vadd.xlane.f32.xlu0 %v8199_v59  ;;  %v11959_v56 = vpop.eup %11958 }
 0x5e0   : > { %v8117_v19 = vpop.xlane.xlu1 %8116  ;;  %v19972_v1 = vmul.f32 %v11959_v56, %v19911_v43  ;;  %8194 = vadd.xlane.f32.xlu2 %v8193_v28  ;;  %v19974_v17 = vpop.eup %11960  ;;  %v8148_v43 = vsel %vm7453_vm4, %v19807_v10, 0.0 }
 0x5e1   : > { %11966 = vrcp.f32 %v8117_v19  ;;  %v19978_v8 = vpop.eup %11962 }
 0x5e2   : > { %v8114_v54 = vpop.xlane.xlu0 %8113  ;;  %v19982_v5 = vpop.eup %11964 }
 0x5e3   : > { %11968 = vrcp.f32 %v8114_v54  ;;  %v8048_v4 = vpop.xlane.xlu2 %8047 }
 0x5e4   : > { %v19980_v14 = vpop.f32.mrf.mxu1  ;;  %11970 = vpow2.f32 %v8009_v7  ;;  %v8442_v7 = vpop.f32.mrf.mxu3 }
 0x5e5   : > { %8224 = vadd.xlane.f32.xlu1 %v8223_v30  ;;  %11972 = vrcp.f32 %v8048_v4 }
 0x5e6   : > { %11593 = vmatmul.msk.f32.gmra.mxu2 %vm7453_vm4, %v19978_v8  ;;  %11607 = vmatmul.msk.f32.gmra.mxu3 %vm7453_vm4, %v19974_v17  ;;  %11974 = vrcp.f32 %v8033_v32 }
 0x5e7   : > { %11618 = vmatmul.msk.f32.gmra.mxu0 %vm7453_vm4, %v19982_v5  ;;  %8149 = vadd.xlane.f32.xlu0 %v8148_v43  ;;  %v11967_v62 = vpop.eup %11966 }
 0x5e8   : > { %v7748_v11 = vpop.xlane.xlu1 %7747  ;;  %v19994_v48 = vmul.f32 %v11967_v62, %v8519_v25  ;;  %8197 = vadd.xlane.f32.xlu2 %v8196_v63 }
 0x5e9   : > { %v11969_v39 = vpop.eup %11968  ;;  %v7864_v22 = vsub.f32 %v19635_v26, %v7748_v11 }
 0x5ea   : > { %v19996_v12 = vmul.f32 %v11969_v39, %v8516_v58  ;;  %v7745_v38 = vpop.xlane.xlu0 %7744  ;;  %v19999_v50 = vpop.eup %11970 }
 0x5eb   : > { %v7863_v10 = vsub.f32 %v19651_v61, %v7745_v38  ;;  %v7814_v57 = vpop.xlane.xlu2 %7813  ;;  %v11973_v53 = vpop.eup %11972  ;;  %v8229_v61 = vsel %vm7453_vm4, %v19885_v60, 0.0  ;;  %v7985_v56 = vmul.f32 1.442695, %v7864_v22  ;;  %v8202_v60 = vsel %vm7453_vm4, %v19908_v40, 0.0 }
 0x5ec   : > { %v7886_v29 = vsub.f32 %v19657_v31, %v7814_v57  ;;  %v8309_v42 = vpop.f32.mrf.mxu1  ;;  %v11975_v59 = vpop.eup %11974  ;;  %v8082_v40 = vsel %vm7462_vm5, %v19881_v24, 0.0  ;;  %v8151_v24 = vsel %vm7453_vm4, %v19831_v15, 0.0  ;;  %v9097_v15 = vrot.slane %v19972_v1, 4 }
 0x5ed   : > { %v7983_v9 = vmul.f32 1.442695, %v7863_v10  ;;  %8080 = vadd.xlane.f32.xlu1 %v8079_v49  ;;  %v20004_v37 = vmul.f32 %v11973_v53, %v8309_v42  ;;  %v8911_v13 = vmul.f32 %v11975_v59, %v19887_v34  ;;  %v8169_v53 = vsel %vm7453_vm4, %v19950_v51, 0.0 }
 0x5ee   : > { %11608 = vmatmul.msk.f32.gmra.mxu3 %vm7453_vm4, %v19999_v50  ;;  %v8029_v58 = vmul.f32 1.442695, %v7886_v29  ;;  %v8445_v29 = vpop.f32.mrf.mxu3 }
 0x5ef   : > { %11976 = vpow2.f32 %v7983_v9  ;;  %8230 = vadd.xlane.f32.xlu0 %v8229_v61  ;;  %v8985_v34 = vrot.slane %v8911_v13, 4 }
 0x5f0   : > { %v7787_v32 = vpop.xlane.xlu1 %7786  ;;  %11978 = vpow2.f32 %v8029_v58  ;;  %8146 = vadd.xlane.f32.xlu2 %v8145_v21 }
 0x5f1   : > { %v7877_v31 = vsub.f32 %v19669_v36, %v7787_v32  ;;  %v8166_v36 = vsel %vm7453_vm4, %v19931_v0, 0.0 }
 0x5f2   : > { %v8087_v52 = vpop.xlane.xlu0 %8086 }
 0x5f3   : > { %11980 = vrcp.f32 %v8087_v52  ;;  %v8011_v28 = vmul.f32 1.442695, %v7877_v31  ;;  %v8039_v19 = vpop.xlane.xlu2 %8038  ;;  %v8522_v52 = vpop.f32.mrf.mxu0 }
 0x5f4   : > { %v8312_v57 = vpop.f32.mrf.mxu1 }
 0x5f5   : > { %v20016_v26 = vpop.eup %11976  ;;  %11982 = vpow2.f32 %v8011_v28  ;;  %8203 = vadd.xlane.f32.xlu1 %v8202_v60  ;;  %v8172_v28 = vsel %vm7453_vm4, %v19978_v8, 0.0  ;;  %v8160_v60 = vsel %vm7453_vm4, %v19896_v23, 0.0 }
 0x5f6   : > { %11984 = vrcp.f32 %v8039_v19  ;;  %11594 = vmatmul.msk.f32.gmra.mxu2 %vm7453_vm4, %v20016_v26  ;;  %v20023_v54 = vpop.eup %11978 }
 0x5f7   : > { %11986 = vpow2.f32 %v7985_v56  ;;  %8167 = vadd.xlane.f32.xlu0 %v8166_v36  ;;  %11619 = vmatmul.msk.f32.gmra.mxu0 %vm7453_vm4, %v20023_v54 }
 0x5f8   : > { %v8090_v4 = vpop.xlane.xlu1 %8089  ;;  %8083 = vadd.xlane.f32.xlu2 %v8082_v40 }
 0x5f9   : > { %v11981_v30 = vpop.eup %11980  ;;  %11988 = vrcp.f32 %v8090_v4 }
 0x5fa   : > { %v8929_v43 = vmul.f32 %v11981_v30, %v8442_v7  ;;  %v8051_v62 = vpop.xlane.xlu0 %8050 }
 0x5fb   : > { %v20029_v25 = vpop.eup %11982  ;;  %11990 = vrcp.f32 %v8051_v62  ;;  %v8120_v39 = vpop.xlane.xlu2 %8119 }
 0x5fc   : > { %v11985_v0 = vpop.eup %11984  ;;  %v8983_v63 = vrot.slane %v8929_v43, 4  ;;  %v20032_v11 = vsel %vm584_vm2, %v8929_v43, %v8985_v34  ;;  %11609 = vmatmul.msk.f32.gmra.mxu3 %vm7453_vm4, %v20029_v25  ;;  %11992 = vrcp.f32 %v8120_v39  ;;  %v8208_v34 = vsel %vm7453_vm4, %v19952_v6, 0.0  ;;  %v8525_v43 = vpop.f32.mrf.mxu0 }
 0x5fd   : > { %v20038_v38 = vpop.eup %11986  ;;  %v20041_v10 = vmul.f32 %v11985_v0, %v19933_v46  ;;  %8152 = vadd.xlane.f32.xlu1 %v8151_v24  ;;  %v8226_v46 = vsel %vm7453_vm4, %v19839_v2, 0.0 }
 0x5fe   : > { %v20044_v49 = vsel %vm584_vm2, %v8983_v63, %v8911_v13  ;;  %11595 = vmatmul.msk.f32.gmra.mxu2 %vm7453_vm4, %v20038_v38  ;;  %v8315_v13 = vpop.f32.mrf.mxu1 }
 0x5ff   : > { %v11989_v9 = vpop.eup %11988  ;;  %8170 = vadd.xlane.f32.xlu0 %v8169_v53  ;;  %v8448_v53 = vpop.f32.mrf.mxu3 }
 0x600   : > { %v8930_v42 = vmul.f32 %v11989_v9, %v8445_v29  ;;  %v8054_v61 = vpop.xlane.xlu1 %8053  ;;  %8227 = vadd.xlane.f32.xlu2 %v8226_v46  ;;  %v9209_v29 = vrot.slane %v20041_v10, 4 }
 0x601   : > { %v11991_v22 = vpop.eup %11990  ;;  %11994 = vrcp.f32 %v8054_v61 }
 0x602   : > { %v20053_v58 = vmul.f32 %v11991_v22, %v8312_v57  ;;  %v9095_v21 = vrot.slane %v8930_v42, 4  ;;  %v20056_v32 = vsel %vm584_vm2, %v8930_v42, %v9097_v15  ;;  %v8042_v51 = vpop.xlane.xlu0 %8041  ;;  %v11993_v31 = vpop.eup %11992  ;;  %v8154_v22 = vsel %vm7453_vm4, %v19845_v18, 0.0 }
 0x603   : > { %11996 = vrcp.f32 %v8042_v51  ;;  %v20062_v56 = vmul.f32 %v11993_v31, %v8522_v52  ;;  %v7751_v2 = vpop.xlane.xlu2 %7750 }
 0x604   : > { %v20060_v59 = vsel %vm584_vm2, %v9095_v21, %v19972_v1  ;;  %v7865_v19 = vsub.f32 %v19725_v44, %v7751_v2  ;;  %v8205_v1 = vsel %vm7453_vm4, %v19927_v47, 0.0  ;;  %v8232_v47 = vsel %vm7453_vm4, %v19904_v41, 0.0  ;;  %v8528_v51 = vpop.f32.mrf.mxu0 }
 0x605   : > { %8173 = vadd.xlane.f32.xlu1 %v8172_v28 }
 0x606   : > { %v7987_v36 = vmul.f32 1.442695, %v7865_v19  ;;  %v8318_v18 = vpop.f32.mrf.mxu1 }
 0x607   : > { %v11995_v7 = vpop.eup %11994  ;;  %8161 = vadd.xlane.f32.xlu0 %v8160_v60 }
 0x608   : > { %v20069_v40 = vmul.f32 %v11995_v7, %v8315_v13  ;;  %v8045_v4 = vpop.xlane.xlu1 %8044  ;;  %11998 = vpow2.f32 %v7987_v36  ;;  %8206 = vadd.xlane.f32.xlu2 %v8205_v1  ;;  %v8451_v1 = vpop.f32.mrf.mxu3 }
 0x609   : > { %v11997_v30 = vpop.eup %11996  ;;  %12000 = vrcp.f32 %v8045_v4  ;;  %v8241_v4 = vsel %vm7453_vm4, %v19982_v5, 0.0  ;;  %v8217_v5 = vsel %vm7462_vm5, %v20029_v25, 0.0 }
 0x60a   : > { %v20074_v8 = vmul.f32 %v11997_v30, %v19958_v55  ;;  %v8123_v44 = vpop.xlane.xlu0 %8122  ;;  %v8175_v55 = vsel %vm7453_vm4, %v20016_v26, 0.0  ;;  %v8244_v26 = vsel %vm7462_vm5, %v20023_v54, 0.0  ;;  %v8214_v54 = vsel %vm7453_vm4, %v19999_v50, 0.0  ;;  %v8368_v50 = vpop.f32.mrf.mxu2 }
 0x60b   : > { %12002 = vrcp.f32 %v8123_v44  ;;  %v8093_v23 = vpop.xlane.xlu2 %8092 }
 0x60c   : > { %12004 = vrcp.f32 %v8093_v23 }
 0x60d   : > { %8209 = vadd.xlane.f32.xlu1 %v8208_v34 }
 0x60e   : > { %v20080_v62 = vpop.eup %11998 }
 0x60f   : > { %8233 = vadd.xlane.f32.xlu0 %v8232_v47  ;;  %v12001_v0 = vpop.eup %12000  ;;  %11596 = vmatmul.msk.f32.gmra.mxu2 %vm7453_vm4, %v20080_v62 }
 0x610   : > { %v8126_v63 = vpop.xlane.xlu1 %8125  ;;  %v20087_v6 = vmul.f32 %v12001_v0, %v19980_v14  ;;  %8176 = vadd.xlane.f32.xlu2 %v8175_v55  ;;  %v8531_v0 = vpop.f32.mrf.mxu0 }
 0x611   : > { %v12003_v39 = vpop.eup %12002  ;;  %12006 = vrcp.f32 %v8126_v63 }
 0x612   : > { %v20089_v24 = vmul.f32 %v12003_v39, %v8525_v43  ;;  %v7754_v41 = vpop.xlane.xlu0 %7753  ;;  %v12005_v57 = vpop.eup %12004  ;;  %v9433_v25 = vrot.slane %v20087_v6, 4 }
 0x613   : > { %v7866_v9 = vsub.f32 %v19771_v3, %v7754_v41  ;;  %v8931_v15 = vmul.f32 %v12005_v57, %v8448_v53  ;;  %v8057_v42 = vpop.xlane.xlu2 %8056  ;;  %v8163_v53 = vsel %vm7462_vm5, %v19920_v35, 0.0  ;;  %v8371_v35 = vpop.f32.mrf.mxu2 }
 0x614   : > { %12008 = vrcp.f32 %v8057_v42 }
 0x615   : > { %v7989_v46 = vmul.f32 1.442695, %v7866_v9  ;;  %8245 = vadd.xlane.f32.xlu1 %v8244_v26  ;;  %v9207_v14 = vrot.slane %v8931_v15, 4  ;;  %v20096_v61 = vsel %vm584_vm2, %v8931_v15, %v9209_v29  ;;  %v8454_v29 = vpop.f32.mrf.mxu3 }
 0x617   : > { %v12007_v21 = vpop.eup %12006  ;;  %12010 = vpow2.f32 %v7989_v46  ;;  %8155 = vadd.xlane.f32.xlu0 %v8154_v22  ;;  %v20102_v3 = vsel %vm584_vm2, %v9207_v14, %v20041_v10  ;;  %v8178_v10 = vsel %vm7453_vm4, %v20038_v38, 0.0  ;;  %v9321_v38 = vrot.slane %v20074_v8, 4  ;;  %v24081_v14 = vld [vmem:[#allocation40_spill] sm:$0xff] }
 0x618   : > { %v20104_v31 = vmul.f32 %v12007_v21, %v8528_v51  ;;  %v7757_v52 = vpop.xlane.xlu1 %7756  ;;  %8215 = vadd.xlane.f32.xlu2 %v8214_v54  ;;  %v8990_v22 = vperm.slane %v20044_v49, %v24081_v14 }
 0x619   : > { %v7867_v2 = vsub.f32 %v19788_v27, %v7757_v52  ;;  %v8235_v27 = vsel %vm7453_vm4, %v19935_v16, 0.0 }
 0x61a   : > { %v8096_v28 = vpop.xlane.xlu0 %8095  ;;  %v12009_v19 = vpop.eup %12008 }
 0x61b   : > { %12012 = vrcp.f32 %v8096_v28  ;;  %v7991_v60 = vmul.f32 1.442695, %v7867_v2  ;;  %v20109_v7 = vmul.f32 %v12009_v19, %v8318_v18  ;;  %v8129_v13 = vpop.xlane.xlu2 %8128 }
 0x61d   : > { %v12011_v36 = vpop.eup %12010  ;;  %12014 = vpow2.f32 %v7991_v60  ;;  %8179 = vadd.xlane.f32.xlu1 %v8178_v10  ;;  %v9033_v60 = vrot.slane %v8990_v22, 4  ;;  %v9107_v10 = vrot.slane %v19994_v48, 4 }
 0x61e   : > { %12016 = vrcp.f32 %v8129_v13  ;;  %11597 = vmatmul.msk.f32.gmra.mxu2 %vm7453_vm4, %v12011_v36  ;;  %v8184_v18 = vsel %vm7453_vm4, %v12011_v36, 0.0  ;;  %v9102_v36 = vperm.slane %v20060_v59, %v24081_v14 }
 0x61f   : > { %8236 = vadd.xlane.f32.xlu0 %v8235_v27 }
 0x620   : > { %v8099_v30 = vpop.xlane.xlu1 %8098  ;;  %8242 = vadd.xlane.f32.xlu2 %v8241_v4 }
 0x621   : > { %v12013_v44 = vpop.eup %12012  ;;  %12018 = vrcp.f32 %v8099_v30 }
 0x622   : > { %v8932_v23 = vmul.f32 %v12013_v44, %v8451_v1  ;;  %v8060_v34 = vpop.xlane.xlu0 %8059  ;;  %v9106_v44 = vperm.slane %v20056_v32, %v24081_v14  ;;  %v8374_v32 = vpop.f32.mrf.mxu2 }
 0x623   : > { %v20119_v43 = vpop.eup %12014  ;;  %12020 = vrcp.f32 %v8060_v34  ;;  %v7760_v63 = vpop.xlane.xlu2 %7759 }
 0x624   : > { %v12017_v47 = vpop.eup %12016  ;;  %v9319_v55 = vrot.slane %v8932_v23, 4  ;;  %v20122_v16 = vsel %vm584_vm2, %v8932_v23, %v9321_v38  ;;  %v7868_v41 = vsub.f32 %v19818_v20, %v7760_v63  ;;  %v8181_v20 = vsel %vm7453_vm4, %v20080_v62, 0.0 }
 0x625   : > { %v20126_v39 = vmul.f32 %v12017_v47, %v8531_v0  ;;  %8218 = vadd.xlane.f32.xlu1 %v8217_v5  ;;  %v8994_v62 = vperm.slane %v20032_v11, %v24081_v14  ;;  %v8457_v47 = vpop.f32.mrf.mxu3  ;;  %v8534_v0 = vpop.f32.mrf.mxu0 }
 0x626   : > { %v20131_v57 = vsel %vm584_vm2, %v9319_v55, %v20074_v8  ;;  %11598 = vmatmul.msk.f32.gmra.mxu2 %vm7453_vm4, %v20119_v43  ;;  %v7993_v15 = vmul.f32 1.442695, %v7868_v41  ;;  %v8995_v8 = vrot.slane %v19996_v12, 4 }
 0x627   : > { %v12019_v9 = vpop.eup %12018  ;;  %8164 = vadd.xlane.f32.xlu0 %v8163_v53  ;;  %v9045_v27 = vrot.slane %v8994_v62, 4 }
 0x628   : > { %v8933_v42 = vmul.f32 %v12019_v9, %v8454_v29  ;;  %v8063_v26 = vpop.xlane.xlu1 %8062  ;;  %12022 = vpow2.f32 %v7993_v15  ;;  %8182 = vadd.xlane.f32.xlu2 %v8181_v20 }
 0x629   : > { %v12021_v46 = vpop.eup %12020  ;;  %12024 = vrcp.f32 %v8063_v26 }
 0x62a   : > { %v8920_v21 = vmul.f32 %v12021_v46, %v8368_v50  ;;  %v9431_v51 = vrot.slane %v8933_v42, 4  ;;  %v20144_v54 = vsel %vm584_vm2, %v8933_v42, %v9433_v25  ;;  %v8132_v52 = vpop.xlane.xlu0 %8131  ;;  %v9545_v25 = vrot.slane %v20004_v37, 4 }
 0x62b   : > { %12026 = vrcp.f32 %v8132_v52  ;;  %v8102_v19 = vpop.xlane.xlu2 %8101  ;;  %v9145_v42 = vrot.slane %v9102_v36, 4  ;;  %v8187_v46 = vsel %vm7453_vm4, %v20119_v43, 0.0 }
 0x62c   : > { %v8996_v2 = vsel %vm584_vm2, %v8995_v8, %v8920_v21  ;;  %v8997_v28 = vrot.slane %v8920_v21, 4  ;;  %v20151_v49 = vsel %vm584_vm2, %v9431_v51, %v20087_v6  ;;  %12028 = vrcp.f32 %v8102_v19 }
 0x62d   : > { %v9002_v13 = vperm.slane %v8996_v2, %v24081_v14  ;;  %8185 = vadd.xlane.f32.xlu1 %v8184_v18  ;;  %v9157_v8 = vrot.slane %v9106_v44, 4  ;;  %v8211_v19 = vsel %vm7453_vm4, %v19974_v17, 0.0 }
 0x62e   : > { %v8998_v11 = vsel %vm584_vm2, %v19996_v12, %v8997_v28  ;;  %v12023_v1 = vpop.eup %12022  ;;  %v8157_v12 = vsel %vm7453_vm4, %v19873_v33, 0.0 }
 0x62f   : > { %v9006_v50 = vperm.slane %v8998_v11, %v24081_v14  ;;  %v9031_v4 = vrot.slane %v9002_v13, 4  ;;  %v20160_v6 = vsel %vm584_vm2, %v9002_v13, %v9033_v60  ;;  %v12025_v30 = vpop.eup %12024  ;;  %11599 = vmatmul.msk.f32.gmra.mxu2 %vm7453_vm4, %v12023_v1  ;;  %v8190_v38 = vsel %vm7462_vm5, %v12023_v1, 0.0  ;;  %v8460_v13 = vpop.f32.mrf.mxu3 }
 0x630   : > { %v8135_v23 = vpop.xlane.xlu1 %8134  ;;  %v8921_v5 = vmul.f32 %v12025_v30, %v8371_v35  ;;  %8158 = vadd.xlane.f32.xlu2 %v8157_v12  ;;  %8191 = vadd.xlane.f32.xlu0 %v8190_v38  ;;  %v9657_v11 = vrot.slane %v20053_v58, 4  ;;  %v8377_v1 = vpop.f32.mrf.mxu2  ;;  %v9214_v12 = vperm.slane %v20102_v3, %v24081_v14 }
 0x631   : > { %v12027_v34 = vpop.eup %12026  ;;  %v20171_v55 = vsel %vm584_vm2, %v9031_v4, %v8990_v22  ;;  %v9043_v63 = vrot.slane %v9006_v50, 4  ;;  %v20174_v59 = vsel %vm584_vm2, %v9006_v50, %v9045_v27 }
 0x632   : > { %v20176_v41 = vmul.f32 %v12027_v34, %v8534_v0  ;;  %v8105_v33 = vpop.xlane.xlu0 %8104  ;;  %v12029_v53 = vpop.eup %12028  ;;  %v9108_v29 = vsel %vm584_vm2, %v9107_v10, %v8921_v5  ;;  %v9109_v15 = vrot.slane %v8921_v5, 4 }
 0x633   : > { %v20179_v9 = vsel %vm584_vm2, %v9043_v63, %v8994_v62  ;;  %12030 = vrcp.f32 %v8105_v33  ;;  %v9114_v20 = vperm.slane %v9108_v29, %v24081_v14  ;;  %v8066_v26 = vpop.xlane.xlu2 %8065  ;;  %v8934_v35 = vmul.f32 %v12029_v53, %v8457_v47 }
 0x634   : > { %v9110_v22 = vsel %vm584_vm2, %v19994_v48, %v9109_v15  ;;  %12032 = vrcp.f32 %v8135_v23  ;;  %v9219_v47 = vrot.slane %v20062_v56, 4  ;;  %v9331_v33 = vrot.slane %v20089_v24, 4 }
 0x635   : > { %8188 = vadd.xlane.f32.xlu1 %v8187_v46  ;;  %v9118_v21 = vperm.slane %v9110_v22, %v24081_v14  ;;  %v9143_v51 = vrot.slane %v9114_v20, 4  ;;  %v20190_v52 = vsel %vm584_vm2, %v9114_v20, %v9145_v42  ;;  %12034 = vrcp.f32 %v8066_v26 }
 0x636   : > { %v9543_v62 = vrot.slane %v8934_v35, 4  ;;  %v20193_v2 = vsel %vm584_vm2, %v8934_v35, %v9545_v25  ;;  %v9257_v53 = vrot.slane %v9214_v12, 4  ;;  %v8238_v15 = vsel %vm7453_vm4, %v19956_v45, 0.0 }
 0x637   : > { %v20196_v43 = vsel %vm584_vm2, %v9143_v51, %v9102_v36  ;;  %v9155_v28 = vrot.slane %v9118_v21, 4  ;;  %v20199_v48 = vsel %vm584_vm2, %v9118_v21, %v9157_v8  ;;  %v8537_v36 = vpop.f32.mrf.mxu0  ;;  %v9330_v45 = vperm.slane %v20122_v16, %v24081_v14 }
 0x638   : > { %v20203_v18 = vpop.xlane.xlu1 %8143  ;;  %v20207_v10 = vsel %vm584_vm2, %v9543_v62, %v20004_v37  ;;  %8212 = vadd.xlane.f32.xlu2 %v8211_v19  ;;  %v20244_v21 = vpop.f32.mrf.mxu2 }
 0x639   : > { %v12031_v60 = vpop.eup %12030  ;;  %v20211_v27 = vsel %vm584_vm2, %v9155_v28, %v9106_v44  ;;  %v9218_v44 = vperm.slane %v20096_v61, %v24081_v14 }
 0x63a   : > { %v8935_v50 = vmul.f32 %v12031_v60, %v8460_v13  ;;  %v8069_v4 = vpop.xlane.xlu0 %8068  ;;  %v12033_v30 = vpop.eup %12032 }
 0x63b   : > { %12036 = vrcp.f32 %v8069_v4  ;;  %v12035_v17 = vpop.eup %12034  ;;  %v20218_v23 = vmul.f32 %v12033_v30, %v8537_v36  ;;  %v8138_v34 = vpop.xlane.xlu2 %8137  ;;  %v9269_v61 = vrot.slane %v9218_v44, 4  ;;  %v9381_v36 = vrot.slane %v9330_v45, 4 }
 0x63c   : > { %v9655_v38 = vrot.slane %v8935_v50, 4  ;;  %v20216_v37 = vsel %vm584_vm2, %v8935_v50, %v9657_v11  ;;  %v8922_v0 = vmul.f32 %v12035_v17, %v8374_v32  ;;  %12038 = vrcp.f32 %v8138_v34  ;;  %v8463_v4 = vpop.f32.mrf.mxu3 }
 0x63d   : > { %v9326_v32 = vperm.slane %v20131_v57, %v24081_v14 }
 0x63e   : > { %v20225_v63 = vsel %vm584_vm2, %v9655_v38, %v20053_v58  ;;  %v9220_v3 = vsel %vm584_vm2, %v9219_v47, %v8922_v0  ;;  %v9221_v5 = vrot.slane %v8922_v0, 4  ;;  %v20265_v47 = vpop.f32.mrf.mxu1  ;;  %v9769_v0 = vrot.slane %v20069_v40, 4 }
 0x63f   : > { %v9226_v29 = vperm.slane %v9220_v3, %v24081_v14  ;;  %v8540_v19 = vpop.f32.mrf.mxu0  ;;  %v9369_v13 = vrot.slane %v9326_v32, 4 }
 0x640   : > { %v8108_v25 = vpop.xlane.xlu1 %8107  ;;  %v9222_v58 = vsel %vm584_vm2, %v20062_v56, %v9221_v5  ;;  %8239 = vadd.xlane.f32.xlu2 %v8238_v15 }
 0x641   : > { %v12037_v42 = vpop.eup %12036  ;;  %12040 = vrcp.f32 %v8108_v25  ;;  %v9230_v20 = vperm.slane %v9222_v58, %v24081_v14  ;;  %v9255_v26 = vrot.slane %v9226_v29, 4  ;;  %v20238_v46 = vsel %vm584_vm2, %v9226_v29, %v9257_v53  ;;  %v8383_v29 = vpop.f32.mrf.mxu2  ;;  %v24082_v58 = vld [vmem:[#allocation45_spill] sm:$0xff] }
 0x642   : > { %v8923_v8 = vmul.f32 %v12037_v42, %v8377_v1  ;;  %v20240_v22 = vpop.xlane.xlu0 %8140  ;;  %v12039_v35 = vpop.eup %12038 }
 0x643   : > { %v20247_v57 = vsel %vm584_vm2, %v9255_v26, %v9214_v12  ;;  %v9267_v56 = vrot.slane %v9230_v20, 4  ;;  %v20250_v51 = vsel %vm584_vm2, %v9230_v20, %v9269_v61  ;;  %v8111_v28 = vpop.xlane.xlu2 %8110  ;;  %v20257_v1 = vmul.f32 %v12039_v35, %v8540_v19 }
 0x644   : > { %v9332_v62 = vsel %vm584_vm2, %v9331_v33, %v8923_v8  ;;  %v9333_v60 = vrot.slane %v8923_v8, 4  ;;  %12042 = vrcp.f32 %v8111_v28  ;;  %v20282_v61 = vperm.slane %v20144_v54, %v24081_v14  ;;  %v8466_v8 = vpop.f32.mrf.mxu3 }
 0x645   : > { %v20254_v11 = vsel %vm584_vm2, %v9267_v56, %v9218_v44  ;;  %v9338_v16 = vperm.slane %v9332_v62, %v24081_v14  ;;  %v20290_v20 = vperm.slane %v20160_v6, %v24082_v58  ;;  %v20294_v26 = vperm.slane %v20151_v49, %v24081_v14 }
 0x646   : > { %v9334_v30 = vsel %vm584_vm2, %v20089_v24, %v9333_v60  ;;  %v20302_v54 = vperm.slane %v20174_v59, %v24082_v58  ;;  %v9443_v49 = vrot.slane %v20104_v31, 4  ;;  %v9555_v35 = vrot.slane %v20126_v39, 4 }
 0x647   : > { %v12041_v50 = vpop.eup %12040  ;;  %v9342_v17 = vperm.slane %v9334_v30, %v24081_v14  ;;  %v9367_v12 = vrot.slane %v9338_v16, 4  ;;  %v20263_v38 = vsel %vm584_vm2, %v9338_v16, %v9369_v13  ;;  %v9493_v56 = vrot.slane %v20282_v61, 4  ;;  %v20325_v13 = vpop.f32.mrf.mxu1 }
 0x648   : > { %v8072_v34 = vpop.xlane.xlu1 %8071  ;;  %v8936_v44 = vmul.f32 %v12041_v50, %v8463_v4  ;;  %v9481_v28 = vrot.slane %v20294_v26, 4  ;;  %v9666_v19 = vperm.slane %v20216_v37, %v24081_v14  ;;  %v9667_v50 = vrot.slane %v20176_v41, 4 }
 0x649   : > { %v20269_v3 = vsel %vm584_vm2, %v9367_v12, %v9326_v32  ;;  %v9379_v5 = vrot.slane %v9342_v17, 4  ;;  %v20272_v33 = vsel %vm584_vm2, %v9342_v17, %v9381_v36  ;;  %v20332_v36 = vperm.slane %v20196_v43, %v24082_v58  ;;  %v8386_v12 = vpop.f32.mrf.mxu2 }
 0x64a   : > { %v8078_v24 = vpop.xlane.xlu0 %8077  ;;  %v9767_v53 = vrot.slane %v8936_v44, 4  ;;  %v20278_v25 = vsel %vm584_vm2, %v8936_v44, %v9769_v0  ;;  %v12043_v59 = vpop.eup %12042  ;;  %v20341_v17 = vperm.slane %v20207_v10, %v24081_v14  ;;  %v20345_v0 = vperm.slane %v20211_v27, %v24082_v58 }
 0x64b   : > { %v20275_v15 = vsel %vm584_vm2, %v9379_v5, %v9330_v45  ;;  %v8075_v42 = vpop.xlane.xlu2 %8074  ;;  %12044 = vrcp.f32 %v8078_v24  ;;  %v20298_v45 = vperm.slane %v20171_v55, %v24082_v58  ;;  %v20315_v55 = vperm.slane %v20193_v2, %v24081_v14 }
 0x64c   : > { %v20286_v32 = vsel %vm584_vm2, %v9767_v53, %v20069_v40  ;;  %12046 = vrcp.f32 %v8072_v34  ;;  %v20306_v40 = vperm.slane %v20190_v52, %v24082_v58  ;;  %v9662_v52 = vperm.slane %v20225_v63, %v24081_v14  ;;  %v20350_v10 = vpop.f32.mrf.mxu3 }
 0x64d   : > { %12048 = vrcp.f32 %v8075_v42  ;;  %v8937_v4 = vmul.f32 %v12043_v59, %v8466_v8  ;;  %v20336_v63 = vperm.slane %v20199_v48, %v24082_v58  ;;  %v9605_v43 = vrot.slane %v20315_v55, 4 }
 0x64e   : > { %v9705_v48 = vrot.slane %v9662_v52, 4  ;;  %v9717_v42 = vrot.slane %v9666_v19, 4  ;;  %12050 = vrcp.f32 %v20203_v18 }
 0x64f   : > { %v9879_v5 = vrot.slane %v8937_v4, 4  ;;  %12052 = vrcp.f32 %v20240_v22 }
 0x650   : > { %v20308_v6 = vpop.xlane.xlu1 %8221 }
 0x651   : > { %v12045_v30 = vpop.eup %12044  ;;  %v20354_v59 = vsel %vm584_vm2, %v9879_v5, %v20109_v7 }
 0x652   : > { %v20323_v60 = vpop.xlane.xlu0 %8200  ;;  %v12047_v44 = vpop.eup %12046  ;;  %v8926_v24 = vmul.f32 %v12045_v30, %v8386_v12 }
 0x653   : > { %v8195_v34 = vpop.xlane.xlu2 %8194  ;;  %v12049_v53 = vpop.eup %12048  ;;  %v8924_v8 = vmul.f32 %v12047_v44, %v20244_v21  ;;  %v20366_v44 = vperm.slane %v20238_v46, %v24082_v58 }
 0x654   : > { %v9668_v27 = vsel %vm584_vm2, %v9667_v50, %v8926_v24  ;;  %v9669_v37 = vrot.slane %v8926_v24, 4  ;;  %v8925_v2 = vmul.f32 %v12049_v53, %v8383_v29  ;;  %v20362_v21 = vpop.f32.mrf.mxu0  ;;  %12054 = vrcp.f32 %v8195_v34 }
 0x655   : > { %v9674_v4 = vperm.slane %v9668_v27, %v24081_v14  ;;  %v9444_v30 = vsel %vm584_vm2, %v9443_v49, %v8924_v8  ;;  %v9445_v12 = vrot.slane %v8924_v8, 4  ;;  %12056 = vrcp.f32 %v20323_v60 }
 0x656   : > { %v9670_v7 = vsel %vm584_vm2, %v20176_v41, %v9669_v37  ;;  %v9450_v29 = vperm.slane %v9444_v30, %v24081_v14  ;;  %v9556_v22 = vsel %vm584_vm2, %v9555_v35, %v8925_v2  ;;  %v12051_v41 = vpop.eup %12050  ;;  %12058 = vrcp.f32 %v20308_v6 }
 0x657   : > { %v9678_v50 = vperm.slane %v9670_v7, %v24081_v14  ;;  %v9703_v5 = vrot.slane %v9674_v4, 4  ;;  %v20374_v49 = vsel %vm584_vm2, %v9674_v4, %v9705_v48  ;;  %v9446_v24 = vsel %vm584_vm2, %v20104_v31, %v9445_v12  ;;  %v20388_v7 = vpop.f32.mrf.mxu1 }
 0x658   : > { %v20360_v18 = vpop.xlane.xlu1 %8224  ;;  %v9454_v46 = vperm.slane %v9446_v24, %v24081_v14  ;;  %v9479_v8 = vrot.slane %v9450_v29, 4  ;;  %v20380_v27 = vsel %vm584_vm2, %v9450_v29, %v9481_v28  ;;  %v9557_v48 = vrot.slane %v8925_v2, 4  ;;  %v12053_v29 = vpop.eup %12052 }
 0x659   : > { %v20383_v35 = vsel %vm584_vm2, %v9703_v5, %v9662_v52  ;;  %v9715_v37 = vrot.slane %v9678_v50, 4  ;;  %v20386_v30 = vsel %vm584_vm2, %v9678_v50, %v9717_v42  ;;  %v9593_v28 = vrot.slane %v20341_v17, 4 }
 0x65a   : > { %v8150_v53 = vpop.xlane.xlu0 %8149  ;;  %v9480_v34 = vsel %vm584_vm2, %v9479_v8, %v20294_v26  ;;  %v9491_v42 = vrot.slane %v9454_v46, 4  ;;  %v9494_v2 = vsel %vm584_vm2, %v9454_v46, %v9493_v56  ;;  %v20404_v50 = vperm.slane %v20247_v57, %v24082_v58  ;;  %v12055_v26 = vpop.eup %12054 }
 0x65b   : > { %v8198_v4 = vpop.xlane.xlu2 %8197  ;;  %v20397_v5 = vsel %vm584_vm2, %v9715_v37, %v9666_v19  ;;  %v20408_v24 = vperm.slane %v20250_v51, %v24082_v58  ;;  %v20412_v8 = vmul.f32 %v12051_v41, %v20325_v13  ;;  %v20414_v19 = vpop.f32.mrf.mxu2  ;;  %v20418_v37 = vperm.slane %v20254_v11, %v24082_v58 }
 0x65c   : > { %v20422_v56 = vsel %vm584_vm2, %v9491_v42, %v20282_v61  ;;  %v9558_v57 = vsel %vm584_vm2, %v20126_v39, %v9557_v48  ;;  %v9562_v51 = vperm.slane %v9556_v22, %v24081_v14  ;;  %v20427_v12 = vpop.f32.mrf.mxu0  ;;  %v20429_v13 = vpop.f32.mrf.mxu3  ;;  %v20433_v41 = vperm.slane %v20263_v38, %v24082_v58 }
 0x65d   : > { %24083 = vst [vmem:[#allocation171_spill] sm:$0xff] %v20422_v56  ;;  %v20436_v11 = vmul.f32 %v12053_v29, %v20265_v47  ;;  %v9566_v61 = vperm.slane %v9558_v57, %v24081_v14  ;;  %v20442_v39 = vperm.slane %v20269_v3, %v24082_v58  ;;  %v20448_v38 = vperm.slane %v20272_v33, %v24082_v58  ;;  %v12057_v60 = vpop.eup %12056 }
 0x65e   : > { %v9591_v22 = vrot.slane %v9562_v51, 4  ;;  %v9594_v48 = vsel %vm584_vm2, %v9562_v51, %v9593_v28  ;;  %v20452_v47 = vperm.slane %v20278_v25, %v24081_v14  ;;  %v20461_v6 = vperm.slane %v20286_v32, %v24081_v14 }
 0x65f   : > { %24084 = vst [vmem:[#allocation30_spill] sm:$0xff] %v20448_v38  ;;  %v9603_v29 = vrot.slane %v9566_v61, 4  ;;  %v9606_v3 = vsel %vm584_vm2, %v9566_v61, %v9605_v43  ;;  %v8965_v43 = vmul.f32 %v12055_v26, %v20350_v10  ;;  %v9009_v32 = vrot.slane %v20436_v11, 4  ;;  %v8599_v16 = vpop.f32.mrf.mxu1 }
 0x660   : > { %v8081_v46 = vpop.xlane.xlu1 %8080  ;;  %v9592_v33 = vsel %vm584_vm2, %v9591_v22, %v20341_v17  ;;  %12060 = vrcp.f32 %v8150_v53  ;;  %v20488_v22 = vperm.slane %v20380_v27, %v24082_v58  ;;  %v20492_v62 = vperm.slane %v9480_v34, %v24082_v58 }
 0x661   : > { %v9604_v31 = vsel %vm584_vm2, %v9603_v29, %v20315_v55  ;;  %12062 = vrcp.f32 %v20360_v18  ;;  %v12059_v55 = vpop.eup %12058  ;;  %v20482_v29 = vperm.slane %v20374_v49, %v24082_v58  ;;  %v9007_v17 = vrot.slane %v8965_v43, 4 }
 0x662   : > { %v8231_v42 = vpop.xlane.xlu0 %8230  ;;  %12064 = vrcp.f32 %v8198_v4  ;;  %v9010_v18 = vsel %vm584_vm2, %v8965_v43, %v9009_v32  ;;  %24086 = vst [vmem:[#allocation183_spill] sm:$0xff] %v20492_v62  ;;  %v20495_v26 = vperm.slane %v9494_v2, %v24082_v58  ;;  %v20503_v27 = vperm.slane %v20383_v35, %v24082_v58 }
 0x663   : > { %v8147_v57 = vpop.xlane.xlu2 %8146  ;;  %24085 = vst [vmem:[#allocation142_spill] sm:$0xff] %v20482_v29  ;;  %v20484_v61 = vpop.f32.mrf.mxu2  ;;  %12066 = vrcp.f32 %v8231_v42  ;;  %v20506_v43 = vperm.slane %v9594_v48, %v24082_v58  ;;  %v20509_v34 = vmul.f32 %v12059_v55, %v20362_v21  ;;  %v20512_v42 = vperm.slane %v9592_v33, %v24082_v58 }
 0x664   : > { %v8744_v53 = vpop.f32.mrf.mxu3  ;;  %24087 = vst [vmem:[#allocation11_spill] sm:$0xff] %v20495_v26  ;;  %12068 = vrcp.f32 %v8081_v46  ;;  %v20499_v25 = vpop.f32.mrf.mxu0  ;;  %v20515_v46 = vperm.slane %v9606_v3, %v24082_v58  ;;  %v20522_v48 = vperm.slane %v20397_v5, %v24082_v58  ;;  %v20526_v21 = vperm.slane %v20386_v30, %v24082_v58 }
 0x665   : > { %v20497_v49 = vmul.f32 %v12057_v60, %v8744_v53  ;;  %24088 = vst [vmem:[#allocation177_spill] sm:$0xff] %v20503_v27  ;;  %12070 = vrcp.f32 %v8147_v57  ;;  %v20518_v60 = vperm.slane %v9010_v18, %v24081_v14  ;;  %v9008_v3 = vsel %vm584_vm2, %v9007_v17, %v20436_v11 }
 0x666   : > { %24089 = vst [vmem:[#allocation88_spill] sm:$0xff] %v20506_v43  ;;  %v12061_v2 = vpop.eup %12060  ;;  %v20536_v10 = vperm.slane %v9604_v31, %v24082_v58  ;;  %v9019_v33 = vrot.slane %v20509_v34, 4  ;;  %v20544_v53 = vperm.slane %v9008_v3, %v24081_v14  ;;  %v24095_v55 = vrot.slane %v20412_v8, 4 }
 0x667   : > { %24090 = vst [vmem:[#allocation57_spill] sm:$0xff] %v20512_v42  ;;  %v12063_v32 = vpop.eup %12062  ;;  %v9069_v18 = vrot.slane %v20518_v60, 4  ;;  %v20549_v31 = vmul.f32 %v12061_v2, %v8599_v16 }
 0x668   : > { %v8204_v28 = vpop.xlane.xlu1 %8203  ;;  %24091 = vst [vmem:[#allocation188_spill] sm:$0xff] %v20515_v46  ;;  %v12065_v57 = vpop.eup %12064  ;;  %v20553_v17 = vmul.f32 %v12063_v32, %v20427_v12  ;;  %v9057_v32 = vrot.slane %v20544_v53, 4 }
 0x669   : > { %24092 = vst [vmem:[#allocation39_spill] sm:$0xff] %v20522_v48  ;;  %v12067_v5 = vpop.eup %12066  ;;  %v8966_v52 = vmul.f32 %v12065_v57, %v20429_v13  ;;  %v20547_v48 = vpop.f32.mrf.mxu1 }
 0x66a   : > { %v8168_v4 = vpop.xlane.xlu0 %8167  ;;  %24093 = vst [vmem:[#allocation17_spill] sm:$0xff] %v20526_v21  ;;  %v12069_v11 = vpop.eup %12068 }
 0x66b   : > { %12072 = vrcp.f32 %v8168_v4  ;;  %v8084_v35 = vpop.xlane.xlu2 %8083  ;;  %v9231_v4 = vrot.slane %v20497_v49, 4  ;;  %24094 = vst [vmem:[#allocation173_spill] sm:$0xff] %v20536_v10  ;;  %v12071_v51 = vpop.eup %12070  ;;  %v9119_v30 = vrot.slane %v8966_v52, 4  ;;  %v8927_v29 = vmul.f32 %v12069_v11, %v20414_v19 }
 0x66c   : > { %12074 = vrcp.f32 %v8204_v28  ;;  %v8664_v57 = vpop.f32.mrf.mxu2  ;;  %v9122_v3 = vsel %vm584_vm2, %v8966_v52, %v24095_v55  ;;  %v8949_v27 = vmul.f32 %v12071_v51, %v20388_v7  ;;  %v8821_v16 = vpop.f32.mrf.mxu0  ;;  %v24096_v19 = vrot.slane %v20218_v23, 4 }
 0x66d   : > { %12076 = vrcp.f32 %v8084_v35  ;;  %v9120_v2 = vsel %vm584_vm2, %v9119_v30, %v20412_v8  ;;  %v9781_v11 = vrot.slane %v8927_v29, 4  ;;  %v20567_v46 = vmul.f32 %v12067_v5, %v8821_v16 }
 0x66e   : > { %v9780_v28 = vsel %vm584_vm2, %v24096_v19, %v8927_v29  ;;  %v9232_v7 = vsel %vm584_vm2, %v9231_v4, %v8949_v27  ;;  %v20574_v35 = vperm.slane %v9120_v2, %v24081_v14  ;;  %v20577_v8 = vperm.slane %v9122_v3, %v24081_v14 }
 0x66f   : > { %v9786_v52 = vperm.slane %v9780_v28, %v24081_v14  ;;  %v9782_v29 = vsel %vm584_vm2, %v20218_v23, %v9781_v11  ;;  %v9233_v55 = vrot.slane %v8949_v27, 4  ;;  %v9345_v5 = vrot.slane %v20549_v31, 4 }
 0x670   : > { %v20571_v51 = vpop.xlane.xlu1 %8152  ;;  %v24097_v4 = vrot.slane %v20461_v6, 4  ;;  %v20590_v3 = vperm.slane %v9232_v7, %v24081_v14 }
 0x671   : > { %v12073_v13 = vpop.eup %12072 }
 0x672   : > { %v20559_v21 = vpop.xlane.xlu0 %8170  ;;  %v8956_v12 = vmul.f32 %v12073_v13, %v8664_v57  ;;  %v9790_v13 = vperm.slane %v9782_v29, %v24081_v14  ;;  %v9815_v57 = vrot.slane %v9786_v52, 4  ;;  %v9818_v16 = vsel %vm584_vm2, %v9786_v52, %v24097_v4  ;;  %v12075_v2 = vpop.eup %12074 }
 0x673   : > { %v20581_v30 = vpop.xlane.xlu2 %8227  ;;  %v12077_v28 = vpop.eup %12076  ;;  %v24098_v29 = vrot.slane %v20452_v47, 4  ;;  %v9234_v52 = vsel %vm584_vm2, %v20497_v49, %v9233_v55  ;;  %12078 = vrcp.f32 %v20559_v21  ;;  %v9050_v21 = vperm.slane %v20179_v9, %v24082_v58 }
 0x674   : > { %v9020_v23 = vsel %vm584_vm2, %v9019_v33, %v8956_v12  ;;  %v9021_v27 = vrot.slane %v8956_v12, 4  ;;  %v9816_v11 = vsel %vm584_vm2, %v9815_v57, %v20461_v6  ;;  %v9827_v10 = vrot.slane %v9790_v13, 4  ;;  %v8747_v12 = vpop.f32.mrf.mxu3  ;;  %v20614_v55 = vpop.f32.mrf.mxu1 }
 0x675   : > { %v9830_v43 = vsel %vm584_vm2, %v9790_v13, %v24098_v29  ;;  %v20606_v6 = vperm.slane %v9818_v16, %v24082_v58  ;;  %v9026_v13 = vperm.slane %v9020_v23, %v24081_v14  ;;  %v20617_v29 = vperm.slane %v9234_v52, %v24081_v14 }
 0x676   : > { %v9022_v33 = vsel %vm584_vm2, %v20509_v34, %v9021_v27  ;;  %v20610_v57 = vsel %vm584_vm2, %v9827_v10, %v20452_v47  ;;  %v8968_v34 = vmul.f32 %v12075_v2, %v8747_v12  ;;  %v8928_v27 = vmul.f32 %v12077_v28, %v20484_v61 }
 0x677   : > { %24099 = vst [vmem:[#allocation91_spill] sm:$0xff] %v20606_v6  ;;  %v9030_v49 = vperm.slane %v9022_v33, %v24081_v14  ;;  %v9055_v16 = vrot.slane %v9026_v13, 4  ;;  %v9058_v7 = vsel %vm584_vm2, %v9026_v13, %v9057_v32  ;;  %v20624_v23 = vperm.slane %v9816_v11, %v24082_v58  ;;  %v20638_v11 = vpop.f32.mrf.mxu0 }
 0x678   : > { %24100 = vst [vmem:[#allocation18_spill] sm:$0xff] %v20610_v57  ;;  %v9066_v33 = vperm.slane %v9058_v7, %v24082_v58  ;;  %v9343_v57 = vrot.slane %v8968_v34, 4  ;;  %v20629_v19 = vperm.slane %v9830_v43, %v24082_v58  ;;  %v8174_v28 = vpop.xlane.xlu1 %8173  ;;  %v9346_v43 = vsel %vm584_vm2, %v8968_v34, %v9345_v5 }
 0x679   : > { %v9067_v4 = vrot.slane %v9030_v49, 4  ;;  %v9070_v47 = vsel %vm584_vm2, %v9030_v49, %v9069_v18  ;;  %24101 = vst [vmem:[#allocation81_spill] sm:$0xff] %v20624_v23  ;;  %v9056_v61 = vsel %vm584_vm2, %v9055_v16, %v20544_v53  ;;  %v24103_v18 = vrot.slane %v20257_v1, 4 }
 0x67a   : > { %v8162_v10 = vpop.xlane.xlu0 %8161  ;;  %v9078_v52 = vperm.slane %v9070_v47, %v24082_v58  ;;  %24102 = vst [vmem:[#allocation95_spill] sm:$0xff] %v20629_v19  ;;  %v9062_v7 = vperm.slane %v9056_v61, %v24082_v58  ;;  %v9083_v13 = vrot.slane %v9066_v33, 4  ;;  %v9344_v61 = vsel %vm584_vm2, %v9343_v57, %v20549_v31 }
 0x67b   : > { %v9068_v32 = vsel %vm584_vm2, %v9067_v4, %v20518_v60  ;;  %v9886_v2 = vsel %vm584_vm2, %v24103_v18, %v8928_v27  ;;  %v8207_v49 = vpop.xlane.xlu2 %8206  ;;  %v8667_v4 = vpop.f32.mrf.mxu2  ;;  %12080 = vrcp.f32 %v20571_v51  ;;  %v24104_v18 = vrot.slane %v20290_v20, 4 }
 0x67c   : > { %v9074_v12 = vperm.slane %v9068_v32, %v24082_v58  ;;  %v9091_v60 = vrot.slane %v9078_v52, 4  ;;  %v9890_v1 = vperm.slane %v9886_v2, %v24081_v14  ;;  %v9079_v47 = vrot.slane %v9062_v7, 4 }
 0x67d   : > { %v20651_v32 = vperm.slane %v9346_v43, %v24081_v14  ;;  %v20656_v34 = vsel %vm584_vm2, %v9083_v13, %v20290_v20  ;;  %v20661_v2 = vsel %vm584_vm2, %v9066_v33, %v24104_v18  ;;  %12082 = vrcp.f32 %v20581_v30  ;;  %v20683_v33 = vpop.f32.mrf.mxu1  ;;  %v12079_v18 = vpop.eup %12078 }
 0x67e   : > { %v9903_v5 = vrot.slane %v9890_v1, 4  ;;  %v9087_v31 = vrot.slane %v9074_v12, 4  ;;  %v20667_v57 = vperm.slane %v9344_v61, %v24081_v14  ;;  %v24105_v51 = vperm.slane %v20354_v59, %v24081_v14 }
 0x67f   : > { %v20677_v20 = vsel %vm584_vm2, %v9079_v47, %v20298_v45  ;;  %v20681_v30 = vsel %vm584_vm2, %v9091_v60, %v20302_v54  ;;  %12084 = vrcp.f32 %v8174_v28  ;;  %v24107_v43 = vrot.slane %v20298_v45, 4 }
 0x680   : > { %v20673_v13 = vsel %vm584_vm2, %v9903_v5, %v24105_v51  ;;  %v9919_v1 = vrot.slane %v20656_v34, 4  ;;  %12086 = vrcp.f32 %v8207_v49  ;;  %v20694_v5 = vsel %vm584_vm2, %v9087_v31, %v9050_v21  ;;  %v8210_v27 = vpop.xlane.xlu1 %8209 }
 0x681   : > { %24106 = vst [vmem:[#allocation156_spill] sm:$0xff] %v20673_v13  ;;  %v20689_v59 = vsel %vm584_vm2, %v9062_v7, %v24107_v43  ;;  %v9931_v60 = vrot.slane %v20661_v2, 4  ;;  %12088 = vrcp.f32 %v8162_v10  ;;  %v9089_v51 = vrot.slane %v9050_v21, 4  ;;  %v12081_v7 = vpop.eup %12080  ;;  %v20708_v21 = vpop.f32.mrf.mxu0 }
 0x682   : > { %v8234_v47 = vpop.xlane.xlu0 %8233  ;;  %v9920_v45 = vsel %vm584_vm2, %v9919_v1, %v20677_v20  ;;  %v9943_v28 = vrot.slane %v20681_v30, 4  ;;  %v8957_v9 = vmul.f32 %v12079_v18, %v8667_v4  ;;  %v24108_v49 = vrot.slane %v20302_v54, 4 }
 0x683   : > { %v9932_v53 = vsel %vm584_vm2, %v9931_v60, %v20689_v59  ;;  %v12083_v10 = vpop.eup %12082  ;;  %12090 = vrcp.f32 %v8234_v47  ;;  %v8177_v1 = vpop.xlane.xlu2 %8176  ;;  %v20711_v61 = vsel %vm584_vm2, %v9074_v12, %v9089_v51  ;;  %v24109_v54 = vrot.slane %v20553_v17, 4 }
 0x684   : > { %v20704_v31 = vsel %vm584_vm2, %v9078_v52, %v24108_v49  ;;  %v9944_v4 = vsel %vm584_vm2, %v9943_v28, %v20694_v5  ;;  %v9133_v18 = vrot.slane %v8957_v9, 4  ;;  %v8976_v60 = vmul.f32 %v12083_v10, %v20499_v25  ;;  %v8670_v47 = vpop.f32.mrf.mxu2  ;;  %v8750_v10 = vpop.f32.mrf.mxu3 }
 0x685   : > { %v9132_v52 = vsel %vm584_vm2, %v24109_v54, %v8957_v9  ;;  %v12085_v16 = vpop.eup %12084  ;;  %v8951_v12 = vmul.f32 %v12081_v7, %v20547_v48  ;;  %12092 = vrcp.f32 %v8210_v27  ;;  %v20724_v51 = vperm.slane %v9920_v45, %v24081_v14 }
 0x686   : > { %v9138_v13 = vperm.slane %v9132_v52, %v24081_v14  ;;  %v12087_v28 = vpop.eup %12086  ;;  %v9134_v43 = vsel %vm584_vm2, %v20553_v17, %v9133_v18  ;;  %v9243_v54 = vrot.slane %v8976_v60, 4  ;;  %v8958_v9 = vmul.f32 %v12085_v16, %v8670_v47 }
 0x687   : > { %12094 = vrcp.f32 %v8177_v1  ;;  %v12089_v25 = vpop.eup %12088  ;;  %v9142_v49 = vperm.slane %v9134_v43, %v24081_v14  ;;  %v24110_v52 = vrot.slane %v20574_v35, 4  ;;  %v20733_v27 = vperm.slane %v9932_v53, %v24081_v14  ;;  %v8611_v1 = vpop.f32.mrf.mxu1 }
 0x688   : > { %v9167_v19 = vrot.slane %v9138_v13, 4  ;;  %v9244_v45 = vsel %vm584_vm2, %v9243_v54, %v8958_v9  ;;  %v9245_v7 = vrot.slane %v8958_v9, 4  ;;  %v8969_v23 = vmul.f32 %v12087_v28, %v8750_v10 }
 0x689   : > { %v9170_v48 = vsel %vm584_vm2, %v9138_v13, %v24110_v52  ;;  %v12091_v16 = vpop.eup %12090  ;;  %v24111_v43 = vrot.slane %v20577_v8, 4  ;;  %v9457_v42 = vrot.slane %v8951_v12, 4  ;;  %v9250_v13 = vperm.slane %v9244_v45, %v24081_v14 }
 0x68a   : > { %v9168_v18 = vsel %vm584_vm2, %v9167_v19, %v20574_v35  ;;  %v20744_v53 = vperm.slane %v9170_v48, %v24082_v58  ;;  %v9179_v54 = vrot.slane %v9142_v49, 4  ;;  %v20746_v9 = vmul.f32 %v12089_v25, %v8611_v1 }
 0x68b   : > { %v9182_v47 = vsel %vm584_vm2, %v9142_v49, %v24111_v43  ;;  %v9246_v28 = vsel %vm584_vm2, %v8976_v60, %v9245_v7  ;;  %v12093_v10 = vpop.eup %12092  ;;  %v20750_v52 = vperm.slane %v9168_v18, %v24082_v58  ;;  %v9279_v19 = vrot.slane %v9250_v13, 4  ;;  %v20765_v7 = vpop.f32.mrf.mxu0 }
 0x68c   : > { %v9254_v35 = vperm.slane %v9246_v28, %v24081_v14  ;;  %v24112_v43 = vrot.slane %v20590_v3, 4  ;;  %v20757_v48 = vperm.slane %v9182_v47, %v24082_v58  ;;  %v9455_v25 = vrot.slane %v8969_v23, 4 }
 0x68d   : > { %v12095_v45 = vpop.eup %12094  ;;  %v20763_v60 = vperm.slane %v9944_v4, %v24081_v14  ;;  %v9280_v1 = vsel %vm584_vm2, %v9279_v19, %v20590_v3  ;;  %v24113_v28 = vrot.slane %v20617_v29, 4  ;;  %v9955_v47 = vrot.slane %v20704_v31, 4 }
 0x68e   : > { %v9282_v17 = vsel %vm584_vm2, %v9250_v13, %v24112_v43  ;;  %v9291_v18 = vrot.slane %v9254_v35, 4  ;;  %v9456_v4 = vsel %vm584_vm2, %v9455_v25, %v8951_v12  ;;  %v9458_v26 = vsel %vm584_vm2, %v8969_v23, %v9457_v42  ;;  %v8246_v43 = vpop.xlane.xlu1 %8245  ;;  %v8156_v12 = vpop.xlane.xlu0 %8155 }
 0x68f   : > { %v20760_v49 = vperm.slane %v9282_v17, %v24082_v58  ;;  %v9294_v13 = vsel %vm584_vm2, %v9254_v35, %v24113_v28  ;;  %v20775_v17 = vperm.slane %v9280_v1, %v24082_v58  ;;  %v20781_v62 = vsel %vm584_vm2, %v9179_v54, %v20577_v8  ;;  %v8673_v35 = vpop.f32.mrf.mxu2 }
 0x690   : > { %v9292_v28 = vsel %vm584_vm2, %v9291_v18, %v20617_v29  ;;  %v20789_v56 = vperm.slane %v9294_v13, %v24082_v58  ;;  %v8959_v23 = vmul.f32 %v12095_v45, %v8673_v35  ;;  %v20793_v8 = vperm.slane %v9456_v4, %v24081_v14  ;;  %v8753_v18 = vpop.f32.mrf.mxu3 }
 0x691   : > { %v20796_v54 = vperm.slane %v9458_v26, %v24081_v14  ;;  %v20799_v25 = vmul.f32 %v12091_v16, %v20638_v11  ;;  %v9956_v29 = vsel %vm584_vm2, %v9955_v47, %v20711_v61  ;;  %v20804_v13 = vperm.slane %v9292_v28, %v24082_v58 }
 0x692   : > { %v24114_v45 = vrot.slane %v20567_v46, 4  ;;  %v9357_v35 = vrot.slane %v8959_v23, 4  ;;  %v9962_v1 = vperm.slane %v9956_v29, %v24081_v14  ;;  %v9967_v11 = vrot.slane %v20733_v27, 4 }
 0x693   : > { %12096 = vrcp.f32 %v8156_v12  ;;  %v8970_v16 = vmul.f32 %v12093_v10, %v8753_v18  ;;  %v24115_v28 = vrot.slane %v20677_v20, 4  ;;  %v24116_v19 = vrot.slane %v20689_v59, 4 }
 0x694   : > { %v9356_v4 = vsel %vm584_vm2, %v24114_v45, %v8959_v23  ;;  %v9358_v47 = vsel %vm584_vm2, %v20567_v46, %v9357_v35  ;;  %v9968_v46 = vsel %vm584_vm2, %v9967_v11, %v20724_v51  ;;  %v9991_v12 = vrot.slane %v9962_v1, 4 }
 0x695   : > { %v9362_v26 = vperm.slane %v9356_v4, %v24081_v14  ;;  %v9922_v42 = vsel %vm584_vm2, %v20656_v34, %v24115_v28  ;;  %v9934_v23 = vsel %vm584_vm2, %v20661_v2, %v24116_v19  ;;  %v9366_v45 = vperm.slane %v9358_v47, %v24081_v14  ;;  %v20836_v2 = vpop.f32.mrf.mxu0 }
 0x696   : > { %v24117_v4 = vrot.slane %v20667_v57, 4  ;;  %v9957_v34 = vrot.slane %v20711_v61, 4  ;;  %v20834_v59 = vperm.slane %v9968_v46, %v24082_v58  ;;  %v24119_v35 = vrot.slane %v20651_v32, 4  ;;  %v8180_v47 = vpop.xlane.xlu1 %8179 }
 0x697   : > { %v9391_v29 = vrot.slane %v9362_v26, 4  ;;  %v9403_v18 = vrot.slane %v9366_v45, 4  ;;  %12098 = vrcp.f32 %v8246_v43  ;;  %v24120_v61 = vrot.slane %v20433_v41, 4 }
 0x698   : > { %v9394_v10 = vsel %vm584_vm2, %v9362_v26, %v24117_v4  ;;  %24118 = vst [vmem:[#allocation32_spill] sm:$0xff] %v20834_v59  ;;  %v9406_v26 = vsel %vm584_vm2, %v9366_v45, %v24119_v35  ;;  %v9942_v4 = vperm.slane %v9934_v23, %v24081_v14  ;;  %v9992_v43 = vsel %vm584_vm2, %v9991_v12, %v20763_v60 }
 0x699   : > { %v20830_v20 = vperm.slane %v9394_v10, %v24082_v58  ;;  %v9392_v19 = vsel %vm584_vm2, %v9391_v29, %v20667_v57  ;;  %v8216_v10 = vpop.xlane.xlu2 %8215  ;;  %v12097_v57 = vpop.eup %12096  ;;  %v9404_v29 = vsel %vm584_vm2, %v9403_v18, %v20651_v32  ;;  %v10017_v45 = vrot.slane %v20834_v59, 4 }
 0x69a   : > { %v24122_v46 = vrot.slane %v20694_v5, 4  ;;  %v9567_v11 = vrot.slane %v8970_v16, 4  ;;  %v20863_v23 = vperm.slane %v9992_v43, %v24082_v58  ;;  %v9930_v3 = vperm.slane %v9922_v42, %v24081_v14 }
 0x69b   : > { %v20849_v28 = vsel %vm584_vm2, %v20830_v20, %v24120_v61  ;;  %v20867_v32 = vperm.slane %v9392_v19, %v24082_v58  ;;  %v8952_v12 = vmul.f32 %v12097_v57, %v20614_v55  ;;  %v9958_v5 = vsel %vm584_vm2, %v20704_v31, %v9957_v34 }
 0x69c   : > { %24121 = vst [vmem:[#allocation93_spill] sm:$0xff] %v20849_v28  ;;  %v9946_v35 = vsel %vm584_vm2, %v20681_v30, %v24122_v46  ;;  %v8237_v30 = vpop.xlane.xlu0 %8236  ;;  %v20873_v46 = vpop.f32.mrf.mxu3  ;;  %v10018_v61 = vsel %vm584_vm2, %v20863_v23, %v10017_v45  ;;  %v9966_v43 = vperm.slane %v9958_v5, %v24081_v14  ;;  %v9979_v59 = vrot.slane %v9942_v4, 4 }
 0x69d   : > { %24123 = vst [vmem:[#allocation147_spill] sm:$0xff] %v20863_v23  ;;  %v9954_v18 = vperm.slane %v9946_v35, %v24081_v14  ;;  %v9969_v42 = vrot.slane %v20724_v51, 4  ;;  %v12099_v19 = vpop.eup %12098  ;;  %v20880_v28 = vperm.slane %v9406_v26, %v24082_v58  ;;  %10876 = vrot.lane.b32.xlu0 %v10018_v61, %s12145_s30  ;;  %v9569_v31 = vrot.slane %v8952_v12, 4  ;;  %v8836_v5 = vpop.f32.mrf.mxu0 }
 0x69e   : > { %v9993_v34 = vrot.slane %v20763_v60, 4  ;;  %v20886_v57 = vperm.slane %v9404_v29, %v24082_v58  ;;  %v9980_v45 = vsel %vm584_vm2, %v9979_v59, %v9930_v3  ;;  %v10003_v35 = vrot.slane %v9966_v43, 4 }
 0x69f   : > { %v9970_v51 = vsel %vm584_vm2, %v20733_v27, %v9969_v42  ;;  %v9568_v26 = vsel %vm584_vm2, %v9567_v11, %v8952_v12  ;;  %v9986_v55 = vperm.slane %v9980_v45, %v24082_v58  ;;  %v9570_v60 = vsel %vm584_vm2, %v8970_v16, %v9569_v31 }
 0x6a0   : > { %v9978_v23 = vperm.slane %v9970_v51, %v24082_v58  ;;  %v9994_v61 = vsel %vm584_vm2, %v9962_v1, %v9993_v34  ;;  %v20896_v6 = vmul.f32 %v12099_v19, %v8836_v5  ;;  %v10004_v29 = vsel %vm584_vm2, %v10003_v35, %v9954_v18  ;;  %v8219_v34 = vpop.xlane.xlu1 %8218 }
 0x6a1   : > { %v10002_v59 = vperm.slane %v9994_v61, %v24082_v58  ;;  %v10010_v38 = vperm.slane %v10004_v29, %v24082_v58  ;;  %v10025_v27 = vrot.slane %v9986_v55, 4  ;;  %12100 = vrcp.f32 %v8216_v10  ;;  %v8243_v1 = vpop.xlane.xlu2 %8242 }
 0x6a2   : > { %v10021_v42 = vrot.slane %v9978_v23, 4  ;;  %v20902_v11 = vperm.slane %v9568_v26, %v24081_v14  ;;  %12102 = vrcp.f32 %v8237_v30  ;;  %v9981_v12 = vrot.slane %v9930_v3, 4 }
 0x6a3   : > { %v10005_v45 = vrot.slane %v9954_v18, 4  ;;  %v10026_v16 = vsel %vm584_vm2, %v10010_v38, %v10025_v27  ;;  %v10023_v31 = vrot.slane %v10010_v38, 4  ;;  %12104 = vrcp.f32 %v8180_v47 }
 0x6a4   : > { %v10022_v19 = vsel %vm584_vm2, %v10002_v59, %v10021_v42  ;;  %v20907_v35 = vperm.slane %v9570_v60, %v24081_v14  ;;  %11020 = vrot.lane.b32.xlu1 %v10026_v16, %s12146_s7  ;;  %v9982_v3 = vsel %vm584_vm2, %v9942_v4, %v9981_v12  ;;  %v10019_v18 = vrot.slane %v10002_v59, 4  ;;  %v8165_v51 = vpop.xlane.xlu0 %8164  ;;  %v8759_v5 = vpop.f32.mrf.mxu3 }
 0x6a5   : > { %10948 = vrot.lane.b32.xlu2 %v10022_v19, %s12147_s8  ;;  %v10006_v10 = vsel %vm584_vm2, %v9966_v43, %v10005_v45  ;;  %v10024_v30 = vsel %vm584_vm2, %v10023_v31, %v9986_v55  ;;  %v9990_v38 = vperm.slane %v9982_v3, %v24082_v58  ;;  %12106 = vrcp.f32 %v8243_v1 }
 0x6a6   : > { %v10014_v47 = vperm.slane %v10006_v10, %v24082_v58  ;;  %10984 = vrot.lane.b32.xlu0 %v10024_v30, %s12148_s9  ;;  %v10020_v61 = vsel %vm584_vm2, %v10019_v18, %v9978_v23  ;;  %12108 = vrcp.f32 %v8219_v34  ;;  %v9186_v4 = vperm.slane %v20781_v62, %v24082_v58  ;;  %v8676_v23 = vpop.f32.mrf.mxu2 }
 0x6a7   : > { %v12101_v43 = vpop.eup %12100  ;;  %v10029_v29 = vrot.slane %v9990_v38, 4  ;;  %v9617_v42 = vrot.slane %v20902_v11, 4  ;;  %v9629_v12 = vrot.slane %v20907_v35, 4  ;;  %12110 = vrcp.f32 %v8165_v51 }
 0x6a8   : > { %v10027_v59 = vrot.slane %v10014_v47, 4  ;;  %v12103_v27 = vpop.eup %12102  ;;  %v8972_v45 = vmul.f32 %v12101_v43, %v8759_v5  ;;  %v9199_v31 = vrot.slane %v9186_v4, 4  ;;  %v24124_v3 = vrot.slane %v20746_v9, 4 }
 0x6a9   : > { %v12105_v1 = vpop.eup %12104  ;;  %v20926_v16 = vmul.f32 %v12103_v27, %v20708_v21  ;;  %v10030_v62 = vsel %vm584_vm2, %v10014_v47, %v10029_v29  ;;  %v24125_v30 = vrot.slane %v20750_v52, 4  ;;  %v24126_v21 = vrot.slane %v20332_v36, 4 }
 0x6aa   : > { %v10028_v19 = vsel %vm584_vm2, %v10027_v59, %v9990_v38  ;;  %v9791_v34 = vrot.slane %v8972_v45, 4  ;;  %v9794_v10 = vsel %vm584_vm2, %v8972_v45, %v24124_v3  ;;  %v8960_v18 = vmul.f32 %v12105_v1, %v8676_v23 }
 0x6ab   : > { %v20937_v51 = vsel %vm584_vm2, %v24125_v30, %v20332_v36  ;;  %v12107_v5 = vpop.eup %12106  ;;  %v9194_v47 = vsel %vm584_vm2, %v20750_v52, %v24126_v21  ;;  %v24127_v38 = vrot.slane %v20744_v53, 4  ;;  %v24128_v29 = vrot.slane %v20306_v40, 4 }
 0x6ac   : > { %v9201_v27 = vrot.slane %v20345_v0, 4  ;;  %v12109_v45 = vpop.eup %12108  ;;  %v9792_v36 = vsel %vm584_vm2, %v9791_v34, %v20746_v9  ;;  %v24129_v1 = vrot.slane %v20799_v25, 4  ;;  %v9469_v23 = vrot.slane %v8960_v18, 4  ;;  %10912 = vrot.lane.b32.xlu1 %v10020_v61, %s12150_s11  ;;  %v8762_v30 = vpop.f32.mrf.mxu3 }
 0x6ad   : > { %v20947_v43 = vsel %vm584_vm2, %v24127_v38, %v20306_v40  ;;  %v9198_v59 = vsel %vm584_vm2, %v20744_v53, %v24128_v29  ;;  %11092 = vrot.lane.b32.xlu2 %v10030_v62, %s12149_s10  ;;  %v24130_v40 = vrot.slane %v20757_v48, 4  ;;  %v20968_v3 = vperm.slane %v9794_v10, %v24081_v14  ;;  %v12111_v62 = vpop.eup %12110 }
 0x6ae   : > { %v9468_v52 = vsel %vm584_vm2, %v24129_v1, %v8960_v18  ;;  %v9579_v9 = vrot.slane %v20926_v16, 4  ;;  %v9200_v18 = vsel %vm584_vm2, %v9199_v31, %v20345_v0  ;;  %v20975_v61 = vperm.slane %v9792_v36, %v24081_v14  ;;  %11056 = vrot.lane.b32.xlu0 %v10028_v19, %s12151_s12 }
 0x6af   : > { %v20965_v53 = vsel %vm584_vm2, %v24130_v40, %v20336_v63  ;;  %v9474_v34 = vperm.slane %v9468_v52, %v24081_v14  ;;  %v9470_v21 = vsel %vm584_vm2, %v20799_v25, %v9469_v23  ;;  %v20980_v38 = vmul.f32 %v12107_v5, %v20836_v2  ;;  %v8614_v52 = vpop.f32.mrf.mxu1 }
 0x6b0   : > { %v10031_v10 = vrot.slane %v20947_v43, 4  ;;  %v20985_v29 = vperm.slane %v9470_v21, %v24081_v14  ;;  %v24131_v31 = vrot.slane %v20793_v8, 4  ;;  %v20990_v1 = vmul.f32 %v12109_v45, %v8762_v30 }
 0x6b1   : > { %v9503_v0 = vrot.slane %v9474_v34, 4  ;;  %v9202_v2 = vsel %vm584_vm2, %v9186_v4, %v9201_v27  ;;  %v10043_v5 = vrot.slane %v9198_v59, 4  ;;  %v24132_v21 = vrot.slane %v20796_v54, 4 }
 0x6b2   : > { %v9506_v36 = vsel %vm584_vm2, %v9474_v34, %v24131_v31  ;;  %v10032_v19 = vsel %vm584_vm2, %v10031_v10, %v20937_v51  ;;  %v21005_v34 = vmul.f32 %v12111_v62, %v8614_v52  ;;  %v24133_v27 = vrot.slane %v20336_v63, 4  ;;  %v8183_v62 = vpop.xlane.xlu2 %8182 }
 0x6b3   : > { %v20993_v25 = vperm.slane %v9506_v36, %v24082_v58  ;;  %v9504_v40 = vsel %vm584_vm2, %v9503_v0, %v20793_v8  ;;  %v9518_v45 = vsel %vm584_vm2, %v20985_v29, %v24132_v21  ;;  %v10038_v31 = vperm.slane %v10032_v19, %v24081_v14 }
 0x6b4   : > { %v9206_v10 = vsel %vm584_vm2, %v20757_v48, %v24133_v27  ;;  %v9515_v8 = vrot.slane %v20985_v29, 4  ;;  %v9891_v0 = vrot.slane %v20990_v1, 4  ;;  %v10044_v36 = vsel %vm584_vm2, %v10043_v5, %v9194_v47 }
 0x6b5   : > { %v10045_v21 = vrot.slane %v9194_v47, 4  ;;  %v21018_v52 = vperm.slane %v9504_v40, %v24082_v58  ;;  %v21021_v55 = vperm.slane %v9518_v45, %v24082_v58  ;;  %v24134_v48 = vrot.slane %v20488_v22, 4 }
 0x6b6   : > { %v10050_v29 = vperm.slane %v10044_v36, %v24081_v14  ;;  %v10055_v1 = vrot.slane %v20965_v53, 4  ;;  %v10067_v47 = vrot.slane %v9206_v10, 4  ;;  %v10069_v5 = vrot.slane %v9202_v2, 4 }
 0x6b7   : > { %v21028_v19 = vsel %vm584_vm2, %v20993_v25, %v24134_v48  ;;  %v10081_v27 = vrot.slane %v10038_v31, 4  ;;  %12112 = vrcp.f32 %v8183_v62  ;;  %v10033_v40 = vrot.slane %v20937_v51, 4 }
 0x6b8   : > { %v10046_v45 = vsel %vm584_vm2, %v9198_v59, %v10045_v21  ;;  %v10056_v63 = vsel %vm584_vm2, %v10055_v1, %v9200_v18  ;;  %v10068_v26 = vsel %vm584_vm2, %v10067_v47, %v9202_v2  ;;  %v10079_v60 = vrot.slane %v10050_v29, 4 }
 0x6b9   : > { %v10054_v48 = vperm.slane %v10046_v45, %v24081_v14  ;;  %v10062_v23 = vperm.slane %v10056_v63, %v24081_v14  ;;  %v10074_v36 = vperm.slane %v10068_v26, %v24081_v14  ;;  %v10082_v30 = vsel %vm584_vm2, %v10050_v29, %v10081_v27 }
 0x6ba   : > { %v10034_v62 = vsel %vm584_vm2, %v20947_v43, %v10033_v40  ;;  %v21043_v51 = vperm.slane %v10082_v30, %v24082_v58  ;;  %v10080_v59 = vsel %vm584_vm2, %v10079_v60, %v10038_v31  ;;  %v10057_v2 = vrot.slane %v9200_v18, 4  ;;  %v8186_v40 = vpop.xlane.xlu1 %8185  ;;  %v8679_v31 = vpop.f32.mrf.mxu2 }
 0x6bb   : > { %v10042_v21 = vperm.slane %v10034_v62, %v24081_v14  ;;  %v10105_v1 = vrot.slane %v10062_v23, 4  ;;  %v21048_v47 = vperm.slane %v10080_v59, %v24082_v58  ;;  %v10103_v63 = vrot.slane %v10074_v36, 4 }
 0x6bc   : > { %v10070_v26 = vsel %vm584_vm2, %v9206_v10, %v10069_v5  ;;  %v10133_v29 = vrot.slane %v21043_v51, 4  ;;  %v10058_v43 = vsel %vm584_vm2, %v20965_v53, %v10057_v2  ;;  %v10091_v27 = vrot.slane %v10054_v48, 4 }
 0x6bd   : > { %v10078_v30 = vperm.slane %v10070_v26, %v24081_v14  ;;  %v12113_v60 = vpop.eup %12112  ;;  %v10106_v18 = vsel %vm584_vm2, %v10074_v36, %v10105_v1  ;;  %v10104_v45 = vsel %vm584_vm2, %v10103_v63, %v10062_v23  ;;  %v10129_v62 = vrot.slane %v21048_v47, 4 }
 0x6be   : > { %v10066_v59 = vperm.slane %v10058_v43, %v24081_v14  ;;  %v10114_v10 = vperm.slane %v10106_v18, %v24082_v58  ;;  %v21061_v5 = vperm.slane %v10104_v45, %v24082_v58  ;;  %v8961_v53 = vmul.f32 %v12113_v60, %v8679_v31  ;;  %v8159_v45 = vpop.xlane.xlu2 %8158 }
 0x6bf   : > { %v10092_v2 = vsel %vm584_vm2, %v10091_v27, %v10042_v21  ;;  %v9516_v26 = vsel %vm584_vm2, %v9515_v8, %v20796_v54  ;;  %v10115_v36 = vrot.slane %v10078_v30, 4  ;;  %v10093_v1 = vrot.slane %v10042_v21, 4 }
 0x6c0   : > { %v10098_v4 = vperm.slane %v10092_v2, %v24082_v58  ;;  %v10134_v23 = vsel %vm584_vm2, %v10114_v10, %v10133_v29  ;;  %v10130_v63 = vsel %vm584_vm2, %v21061_v5, %v10129_v62  ;;  %v9580_v43 = vsel %vm584_vm2, %v9579_v9, %v8961_v53 }
 0x6c1   : > { %v9581_v18 = vrot.slane %v8961_v53, 4  ;;  %10950 = vrot.lane.b32.xlu2 %v10134_v23, %s12147_s8  ;;  %10878 = vrot.lane.b32.xlu1 %v10130_v63, %s12145_s30  ;;  %v9586_v54 = vperm.slane %v9580_v43, %v24081_v14  ;;  %v10116_v8 = vsel %vm584_vm2, %v10115_v36, %v10066_v59  ;;  %v10094_v21 = vsel %vm584_vm2, %v10054_v48, %v10093_v1  ;;  %v8192_v48 = vpop.xlane.xlu0 %8191 }
 0x6c2   : > { %v10137_v27 = vrot.slane %v10098_v4, 4  ;;  %v21080_v29 = vsel %vm584_vm2, %v9891_v0, %v21005_v34  ;;  %v10122_v9 = vperm.slane %v10116_v8, %v24082_v58  ;;  %v10117_v31 = vrot.slane %v10066_v59, 4  ;;  %v8189_v63 = vpop.xlane.xlu1 %8188 }
 0x6c3   : > { %v9582_v60 = vsel %vm584_vm2, %v20926_v16, %v9581_v18  ;;  %v21086_v62 = vperm.slane %v9516_v26, %v24082_v58  ;;  %v9615_v2 = vrot.slane %v9586_v54, 4  ;;  %12114 = vrcp.f32 %v8186_v40  ;;  %v21103_v40 = vpop.f32.mrf.mxu2 }
 0x6c4   : > { %v21089_v53 = vperm.slane %v9582_v60, %v24081_v14  ;;  %v9618_v34 = vsel %vm584_vm2, %v9586_v54, %v9617_v42  ;;  %v10138_v0 = vsel %vm584_vm2, %v10122_v9, %v10137_v27  ;;  %v10118_v16 = vsel %vm584_vm2, %v10078_v30, %v10117_v31 }
 0x6c5   : > { %v10135_v36 = vrot.slane %v10122_v9, 4  ;;  %v9616_v59 = vsel %vm584_vm2, %v9615_v2, %v20902_v11  ;;  %11022 = vrot.lane.b32.xlu0 %v10138_v0, %s12146_s7  ;;  %v10102_v1 = vperm.slane %v10094_v21, %v24082_v58  ;;  %v10126_v42 = vperm.slane %v10118_v16, %v24082_v58 }
 0x6c6   : > { %v9630_v26 = vsel %vm584_vm2, %v21089_v53, %v9629_v12  ;;  %v9527_v23 = vrot.slane %v21018_v52, 4  ;;  %v9896_v11 = vperm.slane %v21080_v29, %v24081_v14  ;;  %12116 = vrcp.f32 %v8192_v48 }
 0x6c7   : > { %v21112_v43 = vperm.slane %v9618_v34, %v24082_v58  ;;  %v10139_v12 = vrot.slane %v10126_v42, 4  ;;  %v10136_v18 = vsel %vm584_vm2, %v10135_v36, %v10098_v4  ;;  %12118 = vrcp.f32 %v8159_v45 }
 0x6c8   : > { %v21116_v54 = vperm.slane %v9616_v59, %v24082_v58  ;;  %v9627_v8 = vrot.slane %v21089_v53, 4  ;;  %v21120_v27 = vperm.slane %v9630_v26, %v24082_v58  ;;  %v10131_v21 = vrot.slane %v10114_v10, 4 }
 0x6c9   : > { %v12115_v60 = vpop.eup %12114  ;;  %v10140_v9 = vsel %vm584_vm2, %v10139_v12, %v10102_v1  ;;  %10986 = vrot.lane.b32.xlu1 %v10136_v18, %s12148_s9  ;;  %12120 = vrcp.f32 %v8189_v63  ;;  %v10141_v31 = vrot.slane %v10102_v1, 4  ;;  %v24135_v4 = vrot.slane %v20775_v17, 4  ;;  %v8213_v12 = vpop.xlane.xlu2 %8212 }
 0x6ca   : > { %11058 = vrot.lane.b32.xlu2 %v10140_v9, %s12151_s12  ;;  %v10132_v53 = vsel %vm584_vm2, %v10131_v21, %v21043_v51  ;;  %v24136_v2 = vrot.slane %v20404_v50, 4  ;;  %v24137_v48 = vrot.slane %v20760_v49, 4  ;;  %v24138_v0 = vrot.slane %v20366_v44, 4 }
 0x6cb   : > { %v9304_v45 = vsel %vm584_vm2, %v24135_v4, %v20404_v50  ;;  %v10142_v36 = vsel %vm584_vm2, %v10126_v42, %v10141_v31  ;;  %v9311_v59 = vrot.slane %v20804_v13, 4  ;;  %v24139_v51 = vrot.slane %v20418_v37, 4 }
 0x6cc   : > { %v9306_v10 = vsel %vm584_vm2, %v20775_v17, %v24136_v2  ;;  %v9308_v34 = vsel %vm584_vm2, %v24137_v48, %v20366_v44  ;;  %v9310_v16 = vsel %vm584_vm2, %v20760_v49, %v24138_v0  ;;  %v9315_v17 = vrot.slane %v20789_v56, 4  ;;  %v21150_v26 = vpop.eup %12116 }
 0x6cd   : > { %v9314_v50 = vsel %vm584_vm2, %v20804_v13, %v24139_v51  ;;  %v24140_v44 = vrot.slane %v20408_v24, 4  ;;  %v10143_v63 = vrot.slane %v9308_v34, 4  ;;  %v10145_v42 = vrot.slane %v9304_v45, 4  ;;  %v12119_v18 = vpop.eup %12118  ;;  %10914 = vrot.lane.b32.xlu0 %v10132_v53, %s12150_s11  ;;  %v8685_v51 = vpop.f32.mrf.mxu2 }
 0x6ce   : > { %v9312_v13 = vsel %vm584_vm2, %v9311_v59, %v20418_v37  ;;  %v9316_v21 = vsel %vm584_vm2, %v9315_v17, %v20408_v24  ;;  %v10155_v9 = vrot.slane %v9310_v16, 4  ;;  %v10157_v31 = vrot.slane %v9306_v10, 4 }
 0x6cf   : > { %v9318_v49 = vsel %vm584_vm2, %v20789_v56, %v24140_v44  ;;  %v8953_v4 = vmul.f32 %v12119_v18, %v20683_v33  ;;  %v10146_v2 = vsel %vm584_vm2, %v9308_v34, %v10145_v42  ;;  %v10169_v48 = vrot.slane %v9312_v13, 4  ;;  %v12121_v0 = vpop.eup %12120 }
 0x6d0   : > { %v10179_v56 = vrot.slane %v9318_v49, 4  ;;  %v10158_v44 = vsel %vm584_vm2, %v9310_v16, %v10157_v31  ;;  %v10167_v1 = vrot.slane %v9316_v21, 4  ;;  %v10181_v53 = vrot.slane %v9314_v50, 4 }
 0x6d1   : > { %12122 = vrcp.f32 %v8213_v12  ;;  %v8963_v30 = vmul.f32 %v12121_v0, %v8685_v51  ;;  %v21166_v37 = vperm.slane %v10146_v2, %v24081_v14  ;;  %v21169_v24 = vperm.slane %v10158_v44, %v24081_v14  ;;  %11094 = vrot.lane.b32.xlu1 %v10142_v36, %s12149_s10 }
 0x6d2   : > { %v10170_v33 = vsel %vm584_vm2, %v9316_v21, %v10169_v48  ;;  %v10182_v59 = vsel %vm584_vm2, %v9318_v49, %v10181_v53  ;;  %v10144_v16 = vsel %vm584_vm2, %v10143_v63, %v9304_v45  ;;  %v10156_v17 = vsel %vm584_vm2, %v10155_v9, %v9306_v10 }
 0x6d3   : > { %v21174_v34 = vperm.slane %v10170_v33, %v24081_v14  ;;  %v24141_v42 = vrot.slane %v20980_v38, 4  ;;  %v9805_v18 = vrot.slane %v8963_v30, 4  ;;  %v21183_v31 = vperm.slane %v10182_v59, %v24081_v14 }
 0x6d4   : > { %v10203_v21 = vrot.slane %v21169_v24, 4  ;;  %v21188_v36 = vsel %vm584_vm2, %v9627_v8, %v20907_v35  ;;  %v21191_v49 = vmul.f32 %v12115_v60, %v21103_v40  ;;  %v10168_v10 = vsel %vm584_vm2, %v10167_v1, %v9312_v13 }
 0x6d5   : > { %v9804_v12 = vsel %vm584_vm2, %v24141_v42, %v8963_v30  ;;  %v9681_v63 = vrot.slane %v8953_v4, 4  ;;  %v9806_v30 = vsel %vm584_vm2, %v20980_v38, %v9805_v18  ;;  %v10227_v2 = vrot.slane %v21183_v31, 4 }
 0x6d6   : > { %v9810_v45 = vperm.slane %v9804_v12, %v24081_v14  ;;  %v10204_v9 = vsel %vm584_vm2, %v10203_v21, %v21166_v37  ;;  %v9814_v35 = vperm.slane %v9806_v30, %v24081_v14  ;;  %v24142_v40 = vrot.slane %v20975_v61, 4 }
 0x6d7   : > { %v12123_v48 = vpop.eup %12122  ;;  %v10210_v0 = vperm.slane %v10204_v9, %v24082_v58  ;;  %v10228_v38 = vsel %vm584_vm2, %v10227_v2, %v21174_v34  ;;  %v10180_v51 = vsel %vm584_vm2, %v10179_v56, %v9314_v50  ;;  %v24143_v53 = vrot.slane %v20968_v3, 4 }
 0x6d8   : > { %v9839_v8 = vrot.slane %v9810_v45, 4  ;;  %v9842_v60 = vsel %vm584_vm2, %v9810_v45, %v24142_v40  ;;  %v8971_v13 = vmul.f32 %v12123_v48, %v20873_v46  ;;  %v10234_v59 = vperm.slane %v10228_v38, %v24082_v58  ;;  %v8688_v48 = vpop.f32.mrf.mxu2 }
 0x6d9   : > { %v21206_v1 = vperm.slane %v9842_v60, %v24082_v58  ;;  %v9854_v33 = vsel %vm584_vm2, %v9814_v35, %v24143_v53  ;;  %v10162_v42 = vperm.slane %v10156_v17, %v24081_v14  ;;  %v9639_v12 = vrot.slane %v21116_v54, 4 }
 0x6da   : > { %v9840_v44 = vsel %vm584_vm2, %v9839_v8, %v20975_v61  ;;  %v9851_v18 = vrot.slane %v9814_v35, 4  ;;  %v10150_v21 = vperm.slane %v10144_v16, %v24081_v14  ;;  %v10174_v46 = vperm.slane %v10168_v10, %v24081_v14  ;;  %v8240_v16 = vpop.xlane.xlu2 %8239 }
 0x6db   : > { %v9651_v50 = vrot.slane %v21120_v27, 4  ;;  %v10249_v56 = vrot.slane %v10210_v0, 4  ;;  %v9679_v45 = vrot.slane %v8971_v13, 4  ;;  %v9682_v61 = vsel %vm584_vm2, %v8971_v13, %v9681_v63 }
 0x6dc   : > { %v9693_v30 = vrot.slane %v21191_v49, 4  ;;  %v21226_v9 = vperm.slane %v9840_v44, %v24082_v58  ;;  %v21229_v17 = vperm.slane %v9854_v33, %v24082_v58  ;;  %v9867_v2 = vrot.slane %v21206_v1, 4 }
 0x6dd   : > { %v10250_v10 = vsel %vm584_vm2, %v10234_v59, %v10249_v56  ;;  %v9680_v35 = vsel %vm584_vm2, %v9679_v45, %v8953_v4  ;;  %v10186_v8 = vperm.slane %v10180_v51, %v24081_v14  ;;  %v10191_v40 = vrot.slane %v10162_v42, 4 }
 0x6de   : > { %v9852_v63 = vsel %vm584_vm2, %v9851_v18, %v20968_v3  ;;  %11024 = vrot.lane.b32.xlu2 %v10250_v10, %s12146_s7  ;;  %v21239_v60 = vperm.slane %v9682_v61, %v24081_v14  ;;  %v10193_v38 = vrot.slane %v10150_v21, 4  ;;  %v10217_v13 = vrot.slane %v10174_v46, 4 }
 0x6df   : > { %v10192_v44 = vsel %vm584_vm2, %v10191_v40, %v10150_v21  ;;  %v10215_v53 = vrot.slane %v10186_v8, 4  ;;  %v8964_v33 = vmul.f32 %v21150_v26, %v8688_v48  ;;  %12124 = vrcp.f32 %v8240_v16 }
 0x6e0   : > { %v21244_v4 = vperm.slane %v9680_v35, %v24081_v14  ;;  %v21247_v51 = vperm.slane %v10192_v44, %v24082_v58  ;;  %v10194_v3 = vsel %vm584_vm2, %v10162_v42, %v10193_v38  ;;  %v10218_v18 = vsel %vm584_vm2, %v10186_v8, %v10217_v13 }
 0x6e1   : > { %v10216_v56 = vsel %vm584_vm2, %v10215_v53, %v10174_v46  ;;  %v10202_v45 = vperm.slane %v10194_v3, %v24082_v58  ;;  %v10226_v21 = vperm.slane %v10218_v18, %v24082_v58  ;;  %v24144_v61 = vrot.slane %v20896_v6, 4 }
 0x6e2   : > { %v21258_v48 = vperm.slane %v10216_v56, %v24082_v58  ;;  %v10241_v16 = vrot.slane %v21247_v51, 4  ;;  %v10247_v42 = vrot.slane %v10234_v59, 4  ;;  %v10205_v46 = vrot.slane %v21166_v37, 4 }
 0x6e3   : > { %v9898_v26 = vsel %vm584_vm2, %v24144_v61, %v8964_v33  ;;  %v10245_v35 = vrot.slane %v10202_v45, 4  ;;  %v10243_v8 = vrot.slane %v10226_v21, 4  ;;  %v10229_v40 = vrot.slane %v21174_v34, 4 }
 0x6e4   : > { %v9902_v10 = vperm.slane %v9898_v26, %v24081_v14  ;;  %v10242_v38 = vsel %vm584_vm2, %v21258_v48, %v10241_v16  ;;  %v10248_v13 = vsel %vm584_vm2, %v10247_v42, %v10210_v0  ;;  %v9386_v44 = vperm.slane %v20275_v15, %v24082_v58 }
 0x6e5   : > { %v12125_v53 = vpop.eup %12124  ;;  %10880 = vrot.lane.b32.xlu0 %v10242_v38, %s12145_s30  ;;  %v10246_v59 = vsel %vm584_vm2, %v10226_v21, %v10245_v35  ;;  %v10244_v33 = vsel %vm584_vm2, %v10243_v8, %v10202_v45  ;;  %v10206_v37 = vsel %vm584_vm2, %v21169_v24, %v10205_v46  ;;  %v10230_v34 = vsel %vm584_vm2, %v21183_v31, %v10229_v40  ;;  %v24148_v8 = vld [vmem:[#allocation30_spill] sm:$0xff] }
 0x6e6   : > { %v9909_v6 = vrot.slane %v9902_v10, 4  ;;  %v9741_v3 = vrot.slane %v21239_v60, 4  ;;  %10952 = vrot.lane.b32.xlu1 %v10246_v59, %s12147_s8  ;;  %10916 = vrot.lane.b32.xlu2 %v10244_v33, %s12150_s11  ;;  %v8980_v0 = vmul.f32 %v12125_v53, %v20765_v7  ;;  %v9423_v18 = vrot.slane %v20886_v57, 4  ;;  %v24151_v59 = vld [vmem:[#allocation91_spill] sm:$0xff] }
 0x6e7   : > { %v10214_v24 = vperm.slane %v10206_v37, %v24082_v58  ;;  %v10238_v56 = vperm.slane %v10230_v34, %v24082_v58  ;;  %v24145_v31 = vrot.slane %v20867_v32, 4  ;;  %v24146_v21 = vrot.slane %v20442_v39, 4 }
 0x6e8   : > { %v9910_v15 = vsel %vm584_vm2, %v9909_v6, %v9896_v11  ;;  %v9691_v61 = vrot.slane %v8980_v0, 4  ;;  %v9694_v11 = vsel %vm584_vm2, %v8980_v0, %v9693_v30  ;;  %v24147_v7 = vrot.slane %v20830_v20, 4 }
 0x6e9   : > { %v9416_v45 = vsel %vm584_vm2, %v24145_v31, %v20442_v39  ;;  %v9418_v29 = vsel %vm584_vm2, %v20867_v32, %v24146_v21  ;;  %v9424_v16 = vsel %vm584_vm2, %v9423_v18, %v9386_v44  ;;  %v21302_v10 = vperm.slane %v9910_v15, %v24082_v58  ;;  %v24153_v21 = vld [vmem:[#allocation93_spill] sm:$0xff] }
 0x6ea   : > { %v9420_v26 = vsel %vm584_vm2, %v24147_v7, %v20433_v41  ;;  %v9702_v42 = vperm.slane %v9694_v11, %v24081_v14  ;;  %v10251_v35 = vrot.slane %v10238_v56, 4  ;;  %v9425_v39 = vrot.slane %v9386_v44, 4 }
 0x6eb   : > { %v9692_v32 = vsel %vm584_vm2, %v9691_v61, %v21191_v49  ;;  %v24149_v30 = vrot.slane %v20880_v28, 4  ;;  %v24150_v20 = vrot.slane %v24148_v8, 4  ;;  %v10255_v40 = vrot.slane %v9420_v26, 4 }
 0x6ec   : > { %v21316_v38 = vperm.slane %v9692_v32, %v24081_v14  ;;  %v9739_v6 = vrot.slane %v9702_v42, 4  ;;  %v9742_v44 = vsel %vm584_vm2, %v9702_v42, %v9741_v3  ;;  %v10252_v53 = vsel %vm584_vm2, %v10251_v35, %v10214_v24 }
 0x6ed   : > { %v9428_v46 = vsel %vm584_vm2, %v24149_v30, %v24148_v8  ;;  %v9430_v41 = vsel %vm584_vm2, %v20880_v28, %v24150_v20  ;;  %v21321_v49 = vperm.slane %v9852_v63, %v24082_v58  ;;  %v24152_v33 = vrot.slane %v24151_v59, 4  ;;  %10988 = vrot.lane.b32.xlu0 %v10248_v13, %s12148_s9 }
 0x6ee   : > { %v9426_v28 = vsel %vm584_vm2, %v20886_v57, %v9425_v39  ;;  %v10256_v34 = vsel %vm584_vm2, %v10255_v40, %v9416_v45  ;;  %v9863_v15 = vrot.slane %v21226_v9, 4  ;;  %v9875_v3 = vrot.slane %v21229_v17, 4  ;;  %11060 = vrot.lane.b32.xlu1 %v10252_v53, %s12151_s12 }
 0x6ef   : > { %v21327_v37 = vsel %vm584_vm2, %v21206_v1, %v24152_v33  ;;  %v9729_v0 = vrot.slane %v21244_v4, 4  ;;  %v9915_v63 = vrot.slane %v21302_v10, 4  ;;  %v9727_v18 = vrot.slane %v21316_v38, 4 }
 0x6f0   : > { %v21339_v31 = vperm.slane %v9742_v44, %v24082_v58  ;;  %v10257_v57 = vrot.slane %v9416_v45, 4  ;;  %v10267_v61 = vrot.slane %v24153_v21, 4  ;;  %v21349_v7 = vsel %vm584_vm2, %v9739_v6, %v21239_v60 }
 0x6f1   : > { %v21345_v11 = vsel %vm584_vm2, %v21316_v38, %v9729_v0  ;;  %v10269_v42 = vrot.slane %v9418_v29, 4  ;;  %v10279_v13 = vrot.slane %v9428_v46, 4  ;;  %v10262_v35 = vperm.slane %v10256_v34, %v24081_v14 }
 0x6f2   : > { %v10268_v39 = vsel %vm584_vm2, %v10267_v61, %v9418_v29  ;;  %v10281_v32 = vrot.slane %v9424_v16, 4  ;;  %v10291_v8 = vrot.slane %v9430_v41, 4  ;;  %v10293_v20 = vrot.slane %v9426_v28, 4 }
 0x6f3   : > { %v10274_v45 = vperm.slane %v10268_v39, %v24081_v14  ;;  %v10280_v30 = vsel %vm584_vm2, %v10279_v13, %v9424_v16  ;;  %v10253_v40 = vrot.slane %v10214_v24, 4  ;;  %v10258_v60 = vsel %vm584_vm2, %v9420_v26, %v10257_v57 }
 0x6f4   : > { %v10286_v44 = vperm.slane %v10280_v30, %v24081_v14  ;;  %v10292_v53 = vsel %vm584_vm2, %v10291_v8, %v9426_v28  ;;  %v10270_v6 = vsel %vm584_vm2, %v24153_v21, %v10269_v42  ;;  %v10266_v0 = vperm.slane %v10258_v60, %v24081_v14 }
 0x6f5   : > { %v10298_v33 = vperm.slane %v10292_v53, %v24081_v14  ;;  %v10303_v29 = vrot.slane %v10274_v45, 4  ;;  %v10254_v34 = vsel %vm584_vm2, %v10238_v56, %v10253_v40  ;;  %v10278_v16 = vperm.slane %v10270_v6, %v24081_v14 }
 0x6f6   : > { %v10282_v24 = vsel %vm584_vm2, %v9428_v46, %v10281_v32  ;;  %v10294_v61 = vsel %vm584_vm2, %v9430_v41, %v10293_v20  ;;  %v10305_v13 = vrot.slane %v10262_v35, 4  ;;  %11096 = vrot.lane.b32.xlu0 %v10254_v34, %s12149_s10  ;;  %v10329_v8 = vrot.slane %v10286_v44, 4 }
 0x6f7   : > { %v10304_v28 = vsel %vm584_vm2, %v10303_v29, %v10262_v35  ;;  %v10327_v26 = vrot.slane %v10298_v33, 4  ;;  %v10290_v57 = vperm.slane %v10282_v24, %v24081_v14  ;;  %v10302_v21 = vperm.slane %v10294_v61, %v24081_v14 }
 0x6f8   : > { %v21371_v56 = vperm.slane %v10304_v28, %v24082_v58  ;;  %v10315_v42 = vrot.slane %v10278_v16, 4  ;;  %v10306_v39 = vsel %vm584_vm2, %v10274_v45, %v10305_v13  ;;  %v10317_v35 = vrot.slane %v10266_v0, 4 }
 0x6f9   : > { %v10328_v46 = vsel %vm584_vm2, %v10327_v26, %v10286_v44  ;;  %v10339_v41 = vrot.slane %v10302_v21, 4  ;;  %v10314_v32 = vperm.slane %v10306_v39, %v24082_v58  ;;  %v10330_v53 = vsel %vm584_vm2, %v10298_v33, %v10329_v8  ;;  %v24154_v39 = vld [vmem:[#allocation171_spill] sm:$0xff] }
 0x6fa   : > { %v21377_v30 = vperm.slane %v10328_v46, %v24082_v58  ;;  %v10353_v20 = vrot.slane %v21371_v56, 4  ;;  %v10316_v40 = vsel %vm584_vm2, %v10315_v42, %v10266_v0  ;;  %v10338_v6 = vperm.slane %v10330_v53, %v24082_v58  ;;  %v24155_v46 = vld [vmem:[#allocation183_spill] sm:$0xff] }
 0x6fb   : > { %v10322_v60 = vperm.slane %v10316_v40, %v24082_v58  ;;  %v10340_v45 = vsel %vm584_vm2, %v10339_v41, %v10290_v57  ;;  %v10357_v44 = vrot.slane %v10314_v32, 4  ;;  %v10318_v24 = vsel %vm584_vm2, %v10278_v16, %v10317_v35 }
 0x6fc   : > { %v10354_v29 = vsel %vm584_vm2, %v21377_v30, %v10353_v20  ;;  %v10346_v34 = vperm.slane %v10340_v45, %v24082_v58  ;;  %v10341_v61 = vrot.slane %v10290_v57, 4  ;;  %v10355_v13 = vrot.slane %v10338_v6, 4 }
 0x6fd   : > { %10882 = vrot.lane.b32.xlu2 %v10354_v29, %s12145_s30  ;;  %v10361_v0 = vrot.slane %v10322_v60, 4  ;;  %v10358_v33 = vsel %vm584_vm2, %v10338_v6, %v10357_v44  ;;  %v10326_v28 = vperm.slane %v10318_v24, %v24082_v58  ;;  %v9498_v8 = vperm.slane %v24154_v39, %v24082_v58 }
 0x6fe   : > { %v10359_v26 = vrot.slane %v10346_v34, 4  ;;  %v10342_v42 = vsel %vm584_vm2, %v10302_v21, %v10341_v61  ;;  %v9528_v16 = vsel %vm584_vm2, %v9527_v23, %v24155_v46  ;;  %10954 = vrot.lane.b32.xlu0 %v10358_v33, %s12147_s8  ;;  %v10356_v41 = vsel %vm584_vm2, %v10355_v13, %v10314_v32 }
 0x6ff   : > { %v10362_v57 = vsel %vm584_vm2, %v10346_v34, %v10361_v0  ;;  %v10350_v35 = vperm.slane %v10342_v42, %v24082_v58  ;;  %v10365_v20 = vrot.slane %v10326_v28, 4  ;;  %v24156_v40 = vrot.slane %v24155_v46, 4  ;;  %v24158_v34 = vld [vmem:[#allocation11_spill] sm:$0xff] }
 0x700   : > { %11026 = vrot.lane.b32.xlu1 %v10362_v57, %s12146_s7  ;;  %v10360_v21 = vsel %vm584_vm2, %v10359_v26, %v10322_v60  ;;  %v24157_v23 = vrot.slane %v20993_v25, 4  ;;  %v9535_v6 = vrot.slane %v21086_v62, 4  ;;  %v9537_v29 = vrot.slane %v9498_v8, 4 }
 0x701   : > { %v9530_v53 = vsel %vm584_vm2, %v21018_v52, %v24156_v40  ;;  %v10366_v32 = vsel %vm584_vm2, %v10350_v35, %v10365_v20  ;;  %v10363_v44 = vrot.slane %v10350_v35, 4  ;;  %v24159_v24 = vrot.slane %v21021_v55, 4 }
 0x702   : > { %v9532_v45 = vsel %vm584_vm2, %v24157_v23, %v20488_v22  ;;  %v9536_v61 = vsel %vm584_vm2, %v9535_v6, %v9498_v8  ;;  %v24160_v52 = vrot.slane %v24158_v34, 4  ;;  %v10379_v22 = vrot.slane %v21028_v19, 4 }
 0x703   : > { %v9540_v60 = vsel %vm584_vm2, %v24159_v24, %v24158_v34  ;;  %v10367_v0 = vrot.slane %v9532_v45, 4  ;;  %v10364_v33 = vsel %vm584_vm2, %v10363_v44, %v10326_v28  ;;  %v9538_v13 = vsel %vm584_vm2, %v21086_v62, %v9537_v29 }
 0x704   : > { %v9542_v25 = vsel %vm584_vm2, %v21021_v55, %v24160_v52  ;;  %v10391_v26 = vrot.slane %v9540_v60, 4  ;;  %v10393_v42 = vrot.slane %v9536_v61, 4  ;;  %v10380_v46 = vsel %vm584_vm2, %v10379_v22, %v9530_v53 }
 0x705   : > { %v10368_v39 = vsel %vm584_vm2, %v10367_v0, %v9528_v16  ;;  %v10403_v8 = vrot.slane %v9542_v25, 4  ;;  %v10405_v57 = vrot.slane %v9538_v13, 4  ;;  %10990 = vrot.lane.b32.xlu2 %v10360_v21, %s12148_s9  ;;  %v10386_v35 = vperm.slane %v10380_v46, %v24081_v14 }
 0x706   : > { %v10374_v55 = vperm.slane %v10368_v39, %v24081_v14  ;;  %v10392_v20 = vsel %vm584_vm2, %v10391_v26, %v9536_v61  ;;  %v10369_v28 = vrot.slane %v9528_v16, 4  ;;  %v10381_v23 = vrot.slane %v9530_v53, 4  ;;  %11062 = vrot.lane.b32.xlu0 %v10364_v33, %s12151_s12 }
 0x707   : > { %v10398_v40 = vperm.slane %v10392_v20, %v24081_v14  ;;  %v10404_v62 = vsel %vm584_vm2, %v10403_v8, %v9538_v13  ;;  %v10394_v6 = vsel %vm584_vm2, %v9540_v60, %v10393_v42  ;;  %v10415_v29 = vrot.slane %v10386_v35, 4 }
 0x708   : > { %v10410_v44 = vperm.slane %v10404_v62, %v24081_v14  ;;  %v10370_v21 = vsel %vm584_vm2, %v9532_v45, %v10369_v28  ;;  %v10402_v34 = vperm.slane %v10394_v6, %v24081_v14  ;;  %10918 = vrot.lane.b32.xlu1 %v10356_v41, %s12150_s11  ;;  %v10382_v24 = vsel %vm584_vm2, %v21028_v19, %v10381_v23 }
 0x709   : > { %v10378_v16 = vperm.slane %v10370_v21, %v24081_v14  ;;  %v10406_v53 = vsel %vm584_vm2, %v9542_v25, %v10405_v57  ;;  %v10417_v61 = vrot.slane %v10374_v55, 4  ;;  %v10416_v60 = vsel %vm584_vm2, %v10415_v29, %v10374_v55 }
 0x70a   : > { %v10439_v52 = vrot.slane %v10410_v44, 4  ;;  %v10390_v0 = vperm.slane %v10382_v24, %v24081_v14  ;;  %v10414_v22 = vperm.slane %v10406_v53, %v24081_v14  ;;  %v21450_v45 = vperm.slane %v10416_v60, %v24082_v58 }
 0x70b   : > { %v10418_v41 = vsel %vm584_vm2, %v10386_v35, %v10417_v61  ;;  %v10441_v33 = vrot.slane %v10398_v40, 4  ;;  %v10429_v13 = vrot.slane %v10378_v16, 4  ;;  %v10453_v29 = vrot.slane %v10402_v34, 4  ;;  %v24161_v61 = vld [vmem:[#allocation57_spill] sm:$0xff] }
 0x70c   : > { %v10440_v26 = vsel %vm584_vm2, %v10439_v52, %v10398_v40  ;;  %v10427_v19 = vrot.slane %v10390_v0, 4  ;;  %v10451_v42 = vrot.slane %v10414_v22, 4  ;;  %v10426_v25 = vperm.slane %v10418_v41, %v24082_v58 }
 0x70d   : > { %v21456_v39 = vperm.slane %v10440_v26, %v24082_v58  ;;  %v10465_v46 = vrot.slane %v21450_v45, 4  ;;  %v10442_v8 = vsel %vm584_vm2, %v10410_v44, %v10441_v33  ;;  %v10430_v57 = vsel %vm584_vm2, %v10390_v0, %v10429_v13  ;;  %11098 = vrot.lane.b32.xlu2 %v10366_v32, %s12149_s10 }
 0x70e   : > { %v10428_v55 = vsel %vm584_vm2, %v10427_v19, %v10378_v16  ;;  %v10452_v35 = vsel %vm584_vm2, %v10451_v42, %v10402_v34  ;;  %v10450_v20 = vperm.slane %v10442_v8, %v24082_v58  ;;  %v10469_v28 = vrot.slane %v10426_v25, 4  ;;  %v24167_v8 = vld [vmem:[#allocation188_spill] sm:$0xff] }
 0x70f   : > { %v10466_v40 = vsel %vm584_vm2, %v21456_v39, %v10465_v46  ;;  %v10434_v62 = vperm.slane %v10428_v55, %v24082_v58  ;;  %v10458_v23 = vperm.slane %v10452_v35, %v24082_v58  ;;  %v10438_v6 = vperm.slane %v10430_v57, %v24082_v58 }
 0x710   : > { %v10470_v44 = vsel %vm584_vm2, %v10450_v20, %v10469_v28  ;;  %v10467_v32 = vrot.slane %v10450_v20, 4  ;;  %v9634_v21 = vperm.slane %v21188_v36, %v24082_v58  ;;  %10884 = vrot.lane.b32.xlu1 %v10466_v40, %s12145_s30  ;;  %v9640_v60 = vsel %vm584_vm2, %v9639_v12, %v24161_v61  ;;  %v24163_v36 = vld [vmem:[#allocation88_spill] sm:$0xff] }
 0x711   : > { %v10471_v16 = vrot.slane %v10458_v23, 4  ;;  %v10473_v24 = vrot.slane %v10434_v62, 4  ;;  %v10477_v53 = vrot.slane %v10438_v6, 4  ;;  %v10454_v52 = vsel %vm584_vm2, %v10414_v22, %v10453_v29 }
 0x712   : > { %v10468_v0 = vsel %vm584_vm2, %v10467_v32, %v10426_v25  ;;  %v24162_v34 = vrot.slane %v24161_v61, 4  ;;  %v24164_v33 = vrot.slane %v21112_v43, 4  ;;  %v10462_v12 = vperm.slane %v10454_v52, %v24082_v58 }
 0x713   : > { %v10472_v26 = vsel %vm584_vm2, %v10471_v16, %v10434_v62  ;;  %v10474_v19 = vsel %vm584_vm2, %v10458_v23, %v10473_v24  ;;  %v24165_v22 = vrot.slane %v24163_v36, 4  ;;  %v9647_v25 = vrot.slane %v9634_v21, 4 }
 0x714   : > { %v9642_v41 = vsel %vm584_vm2, %v21116_v54, %v24162_v34  ;;  %v9644_v13 = vsel %vm584_vm2, %v24164_v33, %v24163_v36  ;;  %11028 = vrot.lane.b32.xlu0 %v10474_v19, %s12146_s7  ;;  %v24166_v54 = vld [vmem:[#allocation173_spill] sm:$0xff]  ;;  %v9652_v57 = vsel %vm584_vm2, %v9651_v50, %v24167_v8  ;;  %v24168_v55 = vrot.slane %v24167_v8, 4 }
 0x715   : > { %v9646_v42 = vsel %vm584_vm2, %v21112_v43, %v24165_v22  ;;  %v9649_v46 = vrot.slane %v24166_v54, 4  ;;  %v10478_v20 = vsel %vm584_vm2, %v10462_v12, %v10477_v53  ;;  %v10475_v28 = vrot.slane %v10462_v12, 4  ;;  %10992 = vrot.lane.b32.xlu2 %v10472_v26, %s12148_s9 }
 0x716   : > { %v9654_v35 = vsel %vm584_vm2, %v21120_v27, %v24168_v55  ;;  %v10479_v40 = vrot.slane %v9644_v13, 4  ;;  %v10491_v43 = vrot.slane %v9646_v42, 4  ;;  %v9648_v62 = vsel %vm584_vm2, %v9647_v25, %v24166_v54 }
 0x717   : > { %v9650_v23 = vsel %vm584_vm2, %v9634_v21, %v9649_v46  ;;  %v10493_v29 = vrot.slane %v9642_v41, 4  ;;  %v10503_v32 = vrot.slane %v9652_v57, 4  ;;  %v10476_v50 = vsel %vm584_vm2, %v10475_v28, %v10438_v6 }
 0x718   : > { %v10480_v16 = vsel %vm584_vm2, %v10479_v40, %v9640_v60  ;;  %v10492_v27 = vsel %vm584_vm2, %v10491_v43, %v9642_v41  ;;  %v10515_v24 = vrot.slane %v9654_v35, 4  ;;  %v10517_v34 = vrot.slane %v9650_v23, 4  ;;  %10956 = vrot.lane.b32.xlu1 %v10470_v44, %s12147_s8 }
 0x719   : > { %v10486_v53 = vperm.slane %v10480_v16, %v24081_v14  ;;  %v10498_v61 = vperm.slane %v10492_v27, %v24081_v14  ;;  %v10504_v52 = vsel %vm584_vm2, %v10503_v32, %v9648_v62  ;;  %v10481_v33 = vrot.slane %v9640_v60, 4  ;;  %v21546_v32 = vpop.permute.xlu2 %10948 }
 0x71a   : > { %v10510_v21 = vperm.slane %v10504_v52, %v24081_v14  ;;  %v10516_v36 = vsel %vm584_vm2, %v10515_v24, %v9650_v23  ;;  %v10494_v6 = vsel %vm584_vm2, %v9646_v42, %v10493_v29  ;;  %v10505_v54 = vrot.slane %v9648_v62, 4  ;;  %v21543_v23 = vpop.permute.xlu0 %10876 }
 0x71b   : > { %v10522_v26 = vperm.slane %v10516_v36, %v24081_v14  ;;  %v10529_v41 = vrot.slane %v10486_v53, 4  ;;  %v10527_v19 = vrot.slane %v10498_v61, 4  ;;  %v10502_v12 = vperm.slane %v10494_v6, %v24081_v14 }
 0x71c   : > { %v10553_v22 = vrot.slane %v10510_v21, 4  ;;  %v10482_v25 = vsel %vm584_vm2, %v9644_v13, %v10481_v33  ;;  %v10518_v46 = vsel %vm584_vm2, %v9654_v35, %v10517_v34  ;;  %10920 = vrot.lane.b32.xlu0 %v10468_v0, %s12150_s11  ;;  %v10506_v13 = vsel %vm584_vm2, %v9652_v57, %v10505_v54  ;;  %v24170_v33 = vld [vmem:[#allocation81_spill] sm:$0xff] }
 0x71d   : > { %v10530_v44 = vsel %vm584_vm2, %v10498_v61, %v10529_v41  ;;  %v10528_v60 = vsel %vm584_vm2, %v10527_v19, %v10486_v53  ;;  %v10551_v8 = vrot.slane %v10522_v26, 4  ;;  %v10490_v42 = vperm.slane %v10482_v25, %v24081_v14  ;;  %11100 = vrot.lane.b32.xlu2 %v10478_v20, %s12149_s10  ;;  %v24169_v61 = vld [vmem:[#allocation18_spill] sm:$0xff] }
 0x71e   : > { %v21529_v55 = vperm.slane %v10530_v44, %v24082_v58  ;;  %v10554_v28 = vsel %vm584_vm2, %v10522_v26, %v10553_v22  ;;  %v21533_v40 = vperm.slane %v10528_v60, %v24082_v58  ;;  %v10514_v43 = vperm.slane %v10506_v13, %v24081_v14 }
 0x71f   : > { %v21538_v0 = vperm.slane %v10554_v28, %v24082_v58  ;;  %v10552_v35 = vsel %vm584_vm2, %v10551_v8, %v10510_v21  ;;  %v10526_v62 = vperm.slane %v10518_v46, %v24081_v14  ;;  %v10539_v20 = vrot.slane %v10502_v12, 4 }
 0x720   : > { %v10581_v29 = vrot.slane %v21529_v55, 4  ;;  %v21549_v16 = vperm.slane %v10552_v35, %v24082_v58  ;;  %v10577_v57 = vrot.slane %v21533_v40, 4  ;;  %v10541_v24 = vrot.slane %v10490_v42, 4  ;;  %11064 = vrot.lane.b32.xlu1 %v10476_v50, %s12151_s12  ;;  %v24172_v35 = vld [vmem:[#allocation95_spill] sm:$0xff] }
 0x721   : > { %v10563_v27 = vrot.slane %v10526_v62, 4  ;;  %v10565_v53 = vrot.slane %v10514_v43, 4  ;;  %v9834_v52 = vperm.slane %v24169_v61, %v24082_v58  ;;  %v10540_v36 = vsel %vm584_vm2, %v10539_v20, %v10490_v42  ;;  %v21585_v42 = vpop.permute.xlu1 %11020 }
 0x722   : > { %v10582_v34 = vsel %vm584_vm2, %v21538_v0, %v10581_v29  ;;  %v10578_v21 = vsel %vm584_vm2, %v21549_v16, %v10577_v57  ;;  %v9864_v6 = vsel %vm584_vm2, %v9863_v15, %v24170_v33  ;;  %v10546_v26 = vperm.slane %v10540_v36, %v24082_v58  ;;  %v11191_v57 = vld [vmem:[%s21968_s3 + $0x18] sm:$0xff]  ;;  %v21618_v36 = vpop.permute.xlu2 %11092 }
 0x723   : > { %v10564_v41 = vsel %vm584_vm2, %v10563_v27, %v10514_v43  ;;  %v10542_v19 = vsel %vm584_vm2, %v10502_v12, %v10541_v24  ;;  %v10566_v50 = vsel %vm584_vm2, %v10526_v62, %v10565_v53  ;;  %v24171_v46 = vrot.slane %v24170_v33, 4  ;;  %11235 = vmatpush.msra.mxu1 %v11191_v57  ;;  %11645 = vmatpush.msrb.mxu3 %v11191_v57 }
 0x724   : > { %v10570_v22 = vperm.slane %v10564_v41, %v24082_v58  ;;  %v21570_v25 = vperm.slane %v10542_v19, %v24082_v58  ;;  %v21573_v54 = vperm.slane %v10566_v50, %v24082_v58  ;;  %10886 = vrot.lane.b32.xlu0 %v10578_v21, %s12145_s30  ;;  %v10585_v44 = vrot.slane %v10546_v26, 4  ;;  %v11189_v21 = vld [vmem:[%s21968_s3 + $0x8] sm:$0xff] }
 0x725   : > { %v9866_v15 = vsel %vm584_vm2, %v21226_v9, %v24171_v46  ;;  %v9868_v12 = vsel %vm584_vm2, %v9867_v2, %v24151_v59  ;;  %v9871_v60 = vrot.slane %v21321_v49, 4  ;;  %v9873_v8 = vrot.slane %v9834_v52, 4  ;;  %10958 = vrot.lane.b32.xlu2 %v10582_v34, %s12147_s8  ;;  %v21612_v34 = vpop.permute.xlu0 %10984 }
 0x726   : > { %v10587_v28 = vrot.slane %v21573_v54, 4  ;;  %v10583_v13 = vrot.slane %v10570_v22, 4  ;;  %v9876_v9 = vsel %vm584_vm2, %v9875_v3, %v24172_v35  ;;  %v24173_v43 = vrot.slane %v24172_v35, 4  ;;  %v11190_v3 = vld [vmem:[%s21968_s3 + $0x10] sm:$0xff] }
 0x727   : > { %v10586_v2 = vsel %vm584_vm2, %v10570_v22, %v10585_v44  ;;  %v9872_v59 = vsel %vm584_vm2, %v9871_v60, %v9834_v52  ;;  %v9874_v62 = vsel %vm584_vm2, %v21321_v49, %v9873_v8  ;;  %v10703_v29 = vrot.slane %v9868_v12, 4  ;;  %11236 = vmatpush.msra.mxu1 %v11190_v3  ;;  %11646 = vmatpush.msrb.mxu3 %v11190_v3 }
 0x728   : > { %v9878_v1 = vsel %vm584_vm2, %v21229_v17, %v24173_v43  ;;  %v10588_v17 = vsel %vm584_vm2, %v10587_v28, %v21570_v25  ;;  %v10584_v20 = vsel %vm584_vm2, %v10583_v13, %v10546_v26  ;;  %v10705_v27 = vrot.slane %v9864_v6, 4  ;;  %11030 = vrot.lane.b32.xlu1 %v10586_v2, %s12146_s7  ;;  %v24174_v2 = vld [vmem:[#allocation147_spill] sm:$0xff] }
 0x729   : > { %v10715_v24 = vrot.slane %v21327_v37, 4  ;;  %v10704_v49 = vsel %vm584_vm2, %v10703_v29, %v9864_v6  ;;  %v10717_v53 = vrot.slane %v9866_v15, 4  ;;  %v10727_v61 = vrot.slane %v9876_v9, 4  ;;  %11237 = vmatpush.msra.mxu1 %v11189_v21  ;;  %11647 = vmatpush.msrb.mxu3 %v11189_v21 }
 0x72a   : > { %v10729_v52 = vrot.slane %v9872_v59, 4  ;;  %v10710_v33 = vperm.slane %v10704_v49, %v24081_v14  ;;  %v10739_v41 = vrot.slane %v9878_v1, 4  ;;  %v10741_v19 = vrot.slane %v9874_v62, 4 }
 0x72b   : > { %v10716_v26 = vsel %vm584_vm2, %v10715_v24, %v9866_v15  ;;  %v10728_v50 = vsel %vm584_vm2, %v10727_v61, %v9872_v59  ;;  %v10579_v22 = vrot.slane %v21538_v0, 4  ;;  %v10706_v46 = vsel %vm584_vm2, %v9868_v12, %v10705_v27  ;;  %v24175_v27 = vld [vmem:[#allocation32_spill] sm:$0xff] }
 0x72c   : > { %v10722_v6 = vperm.slane %v10716_v26, %v24081_v14  ;;  %v10734_v44 = vperm.slane %v10728_v50, %v24081_v14  ;;  %v10740_v60 = vsel %vm584_vm2, %v10739_v41, %v9874_v62  ;;  %v10714_v8 = vperm.slane %v10706_v46, %v24081_v14  ;;  %10994 = vrot.lane.b32.xlu0 %v10584_v20, %s12148_s9  ;;  %v11188_v20 = vld [vmem:[%s21968_s3] sm:$0xff] }
 0x72d   : > { %v10718_v15 = vsel %vm584_vm2, %v21327_v37, %v10717_v53  ;;  %v10746_v28 = vperm.slane %v10740_v60, %v24081_v14  ;;  %v10580_v0 = vsel %vm584_vm2, %v10579_v22, %v21529_v55  ;;  %v10730_v35 = vsel %vm584_vm2, %v9876_v9, %v10729_v52  ;;  %11066 = vrot.lane.b32.xlu2 %v10588_v17, %s12151_s12  ;;  %v10913_v55 = vpop.permute.xlu1 %10912  ;;  %v11057_v46 = vpop.permute.xlu0 %11056 }
 0x72e   : > { %v10751_v13 = vrot.slane %v10722_v6, 4  ;;  %v10726_v12 = vperm.slane %v10718_v15, %v24081_v14  ;;  %v10742_v43 = vsel %vm584_vm2, %v9878_v1, %v10741_v19  ;;  %v10015_v59 = vrot.slane %v24174_v2, 4  ;;  %11238 = vmatpush.msra.mxu1 %v11188_v20  ;;  %11648 = vmatpush.msrb.mxu3 %v11188_v20  ;;  %v21666_v60 = vpop.permute.xlu2 %10950 }
 0x72f   : > { %v10753_v62 = vrot.slane %v10710_v33, 4  ;;  %v10775_v29 = vrot.slane %v10746_v28, 4  ;;  %v10738_v57 = vperm.slane %v10730_v35, %v24081_v14  ;;  %v10750_v3 = vperm.slane %v10742_v43, %v24081_v14 }
 0x730   : > { %v10752_v37 = vsel %vm584_vm2, %v10751_v13, %v10710_v33  ;;  %v10763_v1 = vrot.slane %v10726_v12, 4  ;;  %v10016_v24 = vsel %vm584_vm2, %v10015_v59, %v24175_v27  ;;  %10922 = vrot.lane.b32.xlu1 %v10580_v0, %s12150_s11  ;;  %v10777_v41 = vrot.slane %v10734_v44, 4 }
 0x731   : > { %v21647_v9 = vperm.slane %v10752_v37, %v24082_v58  ;;  %v10754_v17 = vsel %vm584_vm2, %v10722_v6, %v10753_v62  ;;  %v10776_v49 = vsel %vm584_vm2, %v10775_v29, %v10734_v44  ;;  %v10787_v53 = vrot.slane %v10750_v3, 4 }
 0x732   : > { %v11119_v61 = vsel %vm6668_vm3, %v10016_v24, %v21543_v23  ;;  %v10762_v52 = vperm.slane %v10754_v17, %v24082_v58  ;;  %v21657_v21 = vperm.slane %v10776_v49, %v24082_v58  ;;  %v10764_v26 = vsel %vm584_vm2, %v10763_v1, %v10714_v8  ;;  %v24176_v1 = vld [vmem:[#allocation156_spill] sm:$0xff] }
 0x733   : > { %v10801_v33 = vrot.slane %v21647_v9, 4  ;;  %v10770_v19 = vperm.slane %v10764_v26, %v24082_v58  ;;  %v10788_v6 = vsel %vm584_vm2, %v10787_v53, %v10738_v57  ;;  %v10765_v22 = vrot.slane %v10714_v8, 4 }
 0x734   : > { %v10805_v50 = vrot.slane %v10762_v52, 4  ;;  %v10794_v15 = vperm.slane %v10788_v6, %v24082_v58  ;;  %v10778_v13 = vsel %vm584_vm2, %v10746_v28, %v10777_v41  ;;  %v10789_v0 = vrot.slane %v10738_v57, 4 }
 0x735   : > { %v10802_v23 = vsel %vm584_vm2, %v21657_v21, %v10801_v33  ;;  %v10809_v35 = vrot.slane %v10770_v19, 4  ;;  %v10786_v44 = vperm.slane %v10778_v13, %v24082_v58  ;;  %v10766_v43 = vsel %vm584_vm2, %v10726_v12, %v10765_v22  ;;  %v10879_v49 = vpop.permute.xlu1 %10878 }
 0x736   : > { %v10807_v2 = vrot.slane %v10794_v15, 4  ;;  %v10774_v8 = vperm.slane %v10766_v43, %v24082_v58  ;;  %v10790_v59 = vsel %vm584_vm2, %v10750_v3, %v10789_v0  ;;  %10890 = vrot.lane.b32.xlu2 %v10802_v23, %s12145_s30  ;;  %v11129_v20 = vsel %vm11128_vm6, %v11119_v61, %v10913_v55 }
 0x737   : > { %v10810_v62 = vsel %vm584_vm2, %v10794_v15, %v10809_v35  ;;  %v10806_v37 = vsel %vm584_vm2, %v10786_v44, %v10805_v50  ;;  %v10803_v28 = vrot.slane %v10786_v44, 4  ;;  %v10798_v29 = vperm.slane %v10790_v59, %v24082_v58  ;;  %v21702_v23 = vpop.permute.xlu0 %11022  ;;  %v21710_v15 = vpop.permute.xlu2 %11058 }
 0x738   : > { %11034 = vrot.lane.b32.xlu0 %v10810_v62, %s12146_s7  ;;  %v10808_v12 = vsel %vm584_vm2, %v10807_v2, %v10770_v19  ;;  %v10813_v57 = vrot.slane %v10774_v8, 4  ;;  %v9908_v3 = vperm.slane %v24176_v1, %v24082_v58  ;;  %v11139_v17 = vsel %vm11138_vm7, %v11129_v20, %v21546_v32  ;;  %10962 = vrot.lane.b32.xlu1 %v10806_v37, %s12147_s8  ;;  %v24177_v2 = vld [vmem:[#allocation17_spill] sm:$0xff] }
 0x739   : > { %v10804_v27 = vsel %vm584_vm2, %v10803_v28, %v10762_v52  ;;  %v10811_v24 = vrot.slane %v10798_v29, 4  ;;  %v9738_v32 = vperm.slane %v21345_v11, %v24082_v58  ;;  %v11149_v19 = vsel %vm11148_vm8, %v11139_v17, %v21612_v34 }
 0x73a   : > { %v10814_v53 = vsel %vm584_vm2, %v10798_v29, %v10813_v57  ;;  %v9916_v33 = vsel %vm584_vm2, %v9915_v63, %v9908_v3  ;;  %v9917_v55 = vrot.slane %v9908_v3, 4  ;;  %v11159_v50 = vsel %vm11158_vm9, %v11149_v19, %v21585_v42 }
 0x73b   : > { %v10812_v61 = vsel %vm584_vm2, %v10811_v24, %v10774_v8  ;;  %v10815_v26 = vrot.slane %v9916_v33, 4  ;;  %v10820_v52 = vperm.slane %v9916_v33, %v24081_v14  ;;  %v9728_v11 = vsel %vm584_vm2, %v9727_v18, %v21244_v4  ;;  %v24178_v33 = vld [vmem:[#allocation177_spill] sm:$0xff] }
 0x73c   : > { %v9918_v41 = vsel %vm584_vm2, %v21302_v10, %v9917_v55  ;;  %v9746_v10 = vperm.slane %v21349_v7, %v24082_v58  ;;  %v11169_v34 = vsel %vm11168_vm10, %v11159_v50, %v11057_v46  ;;  %v10127_v38 = vrot.slane %v21061_v5, 4 }
 0x73d   : > { %v10825_v6 = vrot.slane %v9918_v41, 4  ;;  %v10830_v63 = vperm.slane %v9918_v41, %v24081_v14  ;;  %v10837_v22 = vrot.slane %v10820_v52, 4  ;;  %v10816_v13 = vsel %vm584_vm2, 0.0, %v10815_v26  ;;  %v10987_v28 = vpop.permute.xlu1 %10986 }
 0x73e   : > { %10998 = vrot.lane.b32.xlu2 %v10808_v12, %s12148_s9  ;;  %v11179_v0 = vsel %vm11178_vm11, %v11169_v34, %v21618_v36  ;;  %v9755_v4 = vrot.slane %v9738_v32, 4  ;;  %v21723_v7 = vperm.slane %v10816_v13, %v24081_v14  ;;  %v10589_v43 = vrot.slane %v21570_v25, 4 }
 0x73f   : > { %v10835_v42 = vrot.slane %v10830_v63, 4  ;;  %v10838_v35 = vsel %vm584_vm2, %v10830_v63, %v10837_v22  ;;  %11620 = vmatmul.msk.f32.vlgmr.msra.gmra.mxu1 %vm321_vm1, %v11179_v0  ;;  %v10826_v46 = vsel %vm584_vm2, 0.0, %v10825_v6  ;;  %v9734_v5 = vperm.slane %v9728_v11, %v24082_v58  ;;  %v10915_v17 = vpop.permute.xlu0 %10914  ;;  %v24181_v63 = vld [vmem:[#allocation39_spill] sm:$0xff]  ;;  %v21769_v34 = vpop.permute.xlu2 %11024 }
 0x740   : > { %10926 = vrot.lane.b32.xlu0 %v10804_v27, %s12150_s11  ;;  %v10846_v18 = vperm.slane %v10838_v35, %v24082_v58  ;;  %v21728_v36 = vperm.slane %v10826_v46, %v24081_v14  ;;  %v9765_v8 = vrot.slane %v24177_v2, 4  ;;  %v9759_v59 = vrot.slane %v9746_v10, 4  ;;  %11070 = vrot.lane.b32.xlu1 %v10812_v61, %s12151_s12  ;;  %v24179_v61 = vld [vmem:[#allocation142_spill] sm:$0xff] }
 0x741   : > { %v10836_v44 = vsel %vm584_vm2, %v10835_v42, %v10820_v52  ;;  %v9763_v62 = vrot.slane %v21339_v31, 4  ;;  %v10128_v29 = vsel %vm584_vm2, %v10127_v38, %v21048_v47  ;;  %v21743_v25 = vsel %vm584_vm2, %v21573_v54, %v10589_v43 }
 0x742   : > { %v21736_v37 = vperm.slane %v10836_v44, %v24082_v58  ;;  %v10847_v12 = vrot.slane %v21728_v36, 4  ;;  %v9751_v57 = vrot.slane %v9734_v5, 4  ;;  %v10861_v1 = vrot.slane %v10846_v18, 4 }
 0x743   : > { %v11120_v3 = vsel %vm6668_vm3, %v10128_v29, %v10879_v49  ;;  %v10849_v27 = vrot.slane %v21723_v7, 4  ;;  %v9753_v55 = vrot.slane %v24178_v33, 4  ;;  %v9756_v54 = vsel %vm584_vm2, %v9755_v4, %v24179_v61 }
 0x744   : > { %v10859_v20 = vrot.slane %v21736_v37, 4  ;;  %v10848_v24 = vsel %vm584_vm2, %v10847_v12, %v21723_v7  ;;  %v9752_v47 = vsel %vm584_vm2, %v9751_v57, %v24178_v33  ;;  %v11130_v49 = vsel %vm11128_vm6, %v11120_v3, %v10915_v17 }
 0x745   : > { %v10854_v52 = vperm.slane %v10848_v24, %v24082_v58  ;;  %v24180_v41 = vrot.slane %v24179_v61, 4  ;;  %v11140_v6 = vsel %vm11138_vm7, %v11130_v49, %v21666_v60  ;;  %v9761_v50 = vrot.slane %v24181_v63, 4 }
 0x746   : > { %v10860_v26 = vsel %vm584_vm2, 0.0, %v10859_v20  ;;  %11106 = vrot.lane.b32.xlu2 %v10814_v53, %s12149_s10  ;;  %v9764_v22 = vsel %vm584_vm2, %v9763_v62, %v24177_v2  ;;  %v9766_v11 = vsel %vm584_vm2, %v21339_v31, %v9765_v8  ;;  %v11150_v13 = vsel %vm11148_vm8, %v11140_v6, %v10987_v28 }
 0x747   : > { %v9758_v19 = vsel %vm584_vm2, %v9738_v32, %v24180_v41  ;;  %v9754_v32 = vsel %vm584_vm2, %v9734_v5, %v9753_v55  ;;  %v9760_v53 = vsel %vm584_vm2, %v9759_v59, %v24181_v63  ;;  %v10591_v60 = vrot.slane %v9756_v54, 4  ;;  %v11095_v59 = vpop.permute.xlu1 %11094  ;;  %v10917_v41 = vpop.permute.xlu2 %10916 }
 0x748   : > { %10892 = vrot.lane.b32.xlu0 %v10860_v26, %s12145_s30  ;;  %v10862_v42 = vsel %vm584_vm2, 0.0, %v10861_v1  ;;  %v9762_v0 = vsel %vm584_vm2, %v9746_v10, %v9761_v50  ;;  %v10603_v35 = vrot.slane %v9758_v19, 4  ;;  %v10615_v38 = vrot.slane %v9764_v22, 4  ;;  %10928 = vrot.lane.b32.xlu1 %v10846_v18, %s12150_s11 }
 0x749   : > { %v10863_v31 = vrot.slane %v10854_v52, 4  ;;  %v10592_v4 = vsel %vm584_vm2, %v10591_v60, %v9752_v47  ;;  %v10593_v7 = vrot.slane %v9752_v47, 4  ;;  %v10627_v46 = vrot.slane %v9766_v11, 4 }
 0x74a   : > { %v10598_v44 = vperm.slane %v10592_v4, %v24081_v14  ;;  %v10604_v43 = vsel %vm584_vm2, %v10603_v35, %v9754_v32  ;;  %v10616_v5 = vsel %vm584_vm2, %v10615_v38, %v9760_v53  ;;  %v11160_v2 = vsel %vm11158_vm9, %v11150_v13, %v21702_v23 }
 0x74b   : > { %v10610_v10 = vperm.slane %v10604_v43, %v24081_v14  ;;  %v10622_v8 = vperm.slane %v10616_v5, %v24081_v14  ;;  %v10628_v18 = vsel %vm584_vm2, %v10627_v46, %v9762_v0  ;;  %v11170_v62 = vsel %vm11168_vm10, %v11160_v2, %v21710_v15 }
 0x74c   : > { %v10605_v28 = vrot.slane %v9754_v32, 4  ;;  %v10634_v29 = vperm.slane %v10628_v18, %v24081_v14  ;;  %v10641_v12 = vrot.slane %v10598_v44, 4  ;;  %v11180_v57 = vsel %vm11178_vm11, %v11170_v62, %v11095_v59 }
 0x74d   : > { %v10629_v20 = vrot.slane %v9762_v0, 4  ;;  %v10665_v1 = vrot.slane %v10622_v8, 4  ;;  %v10639_v3 = vrot.slane %v10610_v10, 4  ;;  %11621 = vmatmul.msk.f32.gmra.mxu1 %vm321_vm1, %v11180_v57  ;;  %v10594_v23 = vsel %vm584_vm2, %v9756_v54, %v10593_v7 }
 0x74e   : > { %10964 = vrot.lane.b32.xlu2 %v10862_v42, %s12147_s8  ;;  %v10850_v24 = vsel %vm584_vm2, %v21728_v36, %v10849_v27  ;;  %v10864_v15 = vsel %vm584_vm2, 0.0, %v10863_v31  ;;  %v10642_v17 = vsel %vm584_vm2, %v10610_v10, %v10641_v12  ;;  %v10663_v33 = vrot.slane %v10634_v29, 4 }
 0x74f   : > { %v10650_v47 = vperm.slane %v10642_v17, %v24082_v58  ;;  %v10666_v55 = vsel %vm584_vm2, %v10634_v29, %v10665_v1  ;;  %v10640_v61 = vsel %vm584_vm2, %v10639_v3, %v10598_v44  ;;  %v10602_v54 = vperm.slane %v10594_v23, %v24081_v14 }
 0x750   : > { %11000 = vrot.lane.b32.xlu0 %v10854_v52, %s12148_s9  ;;  %v10674_v26 = vperm.slane %v10666_v55, %v24082_v58  ;;  %v21806_v49 = vperm.slane %v10640_v61, %v24082_v58  ;;  %v10664_v36 = vsel %vm584_vm2, %v10663_v33, %v10622_v8  ;;  %v10606_v27 = vsel %vm584_vm2, %v9758_v19, %v10605_v28 }
 0x751   : > { %11036 = vrot.lane.b32.xlu1 %v10864_v15, %s12146_s7  ;;  %v10614_v52 = vperm.slane %v10606_v27, %v24081_v14  ;;  %v10617_v6 = vrot.slane %v9760_v53, 4  ;;  %v10630_v63 = vsel %vm584_vm2, %v9766_v11, %v10629_v20  ;;  %v10693_v32 = vrot.slane %v10650_v47, 4 }
 0x752   : > { %v10691_v50 = vrot.slane %v10674_v26, 4  ;;  %v10638_v13 = vperm.slane %v10630_v63, %v24081_v14  ;;  %v10858_v60 = vperm.slane %v10850_v24, %v24082_v58  ;;  %v10653_v35 = vrot.slane %v10602_v54, 4 }
 0x753   : > { %v10618_v42 = vsel %vm584_vm2, %v9764_v22, %v10617_v6  ;;  %v10651_v0 = vrot.slane %v10614_v52, 4  ;;  %v10689_v38 = vrot.slane %v21806_v49, 4  ;;  %v21820_v53 = vperm.slane %v10664_v36, %v24082_v58 }
 0x754   : > { %v10692_v19 = vsel %vm584_vm2, %v10691_v50, %v10650_v47  ;;  %v10626_v31 = vperm.slane %v10618_v42, %v24081_v14  ;;  %v10675_v4 = vrot.slane %v10638_v13, 4  ;;  %v10694_v7 = vsel %vm584_vm2, %v10674_v26, %v10693_v32 }
 0x755   : > { %v10652_v11 = vsel %vm584_vm2, %v10651_v0, %v10602_v54  ;;  %v10654_v46 = vsel %vm584_vm2, %v10614_v52, %v10653_v35  ;;  %v10239_v14 = vrot.slane %v21258_v48, 4  ;;  %v10690_v10 = vsel %vm584_vm2, %v21820_v53, %v10689_v38 }
 0x756   : > { %11072 = vrot.lane.b32.xlu2 %v10858_v60, %s12151_s12  ;;  %v10658_v22 = vperm.slane %v10652_v11, %v24082_v58  ;;  %v10676_v44 = vsel %vm584_vm2, %v10675_v4, %v10626_v31  ;;  %v10662_v43 = vperm.slane %v10654_v46, %v24082_v58  ;;  %v10677_v5 = vrot.slane %v10626_v31, 4 }
 0x757   : > { %v10682_v2 = vperm.slane %v10676_v44, %v24082_v58  ;;  %v10865_v29 = vrot.slane %v10858_v60, 4  ;;  %v10881_v12 = vpop.permute.xlu0 %10880  ;;  %v10883_v57 = vpop.permute.xlu2 %10882  ;;  %v10240_v3 = vsel %vm584_vm2, %v10239_v14, %v21247_v51  ;;  %v10463_v11 = vrot.slane %v21456_v39, 4 }
 0x758   : > { %11102 = vrot.lane.b32.xlu0 %v21743_v25, %s12149_s10  ;;  %v10697_v8 = vrot.slane %v10658_v22, 4  ;;  %v10678_v18 = vsel %vm584_vm2, %v10638_v13, %v10677_v5  ;;  %v10701_v59 = vrot.slane %v10662_v43, 4  ;;  %v11121_v23 = vsel %vm6668_vm3, %v10240_v3, %v10881_v12  ;;  %v10953_v24 = vpop.permute.xlu1 %10952 }
 0x759   : > { %10888 = vrot.lane.b32.xlu1 %v10690_v10, %s12145_s30  ;;  %v10695_v62 = vrot.slane %v10682_v2, 4  ;;  %v10686_v28 = vperm.slane %v10678_v18, %v24082_v58  ;;  %v10866_v58 = vsel %vm584_vm2, 0.0, %v10865_v29  ;;  %v11131_v17 = vsel %vm11128_vm6, %v11121_v23, %v10917_v41 }
 0x75a   : > { %v10698_v25 = vsel %vm584_vm2, %v10682_v2, %v10697_v8  ;;  %v11141_v47 = vsel %vm11138_vm7, %v11131_v17, %v10953_v24  ;;  %v10799_v41 = vrot.slane %v21657_v21, 4 }
 0x75b   : > { %v10696_v48 = vsel %vm584_vm2, %v10695_v62, %v10658_v22  ;;  %v10699_v20 = vrot.slane %v10686_v28, 4  ;;  %v10702_v1 = vsel %vm584_vm2, %v10686_v28, %v10701_v59  ;;  %v10464_v22 = vsel %vm584_vm2, %v10463_v11, %v21450_v45 }
 0x75c   : > { %v10800_v52 = vsel %vm584_vm2, %v10799_v41, %v21647_v9 }
 0x75d   : > { %v10700_v15 = vsel %vm584_vm2, %v10699_v20, %v10662_v43 }
 0x75e   : > { %10924 = vrot.lane.b32.xlu2 %v10692_v19, %s12150_s11 }
 0x75f   : > { %v10989_v33 = vpop.permute.xlu0 %10988  ;;  %v10991_v55 = vpop.permute.xlu2 %10990 }
 0x760   : > { %11108 = vrot.lane.b32.xlu0 %v10866_v58, %s12149_s10  ;;  %v11151_v51 = vsel %vm11148_vm8, %v11141_v47, %v10989_v33  ;;  %v11061_v61 = vpop.permute.xlu1 %11060  ;;  %v10575_v47 = vrot.slane %v21549_v16, 4 }
 0x761   : > { %10960 = vrot.lane.b32.xlu1 %v10694_v7, %s12147_s8  ;;  %v11161_v54 = vsel %vm11158_vm9, %v11151_v51, %v21769_v34  ;;  %v10351_v34 = vrot.slane %v21377_v30, 4 }
 0x762   : > { %v11171_v26 = vsel %vm11168_vm10, %v11161_v54, %v11061_v61  ;;  %v21899_v61 = vld [vmem:[%s21969_s4] ss:$0 sm:$0xff]  ;;  %v10576_v54 = vsel %vm584_vm2, %v10575_v47, %v21533_v40 }
 0x763   : > { %v10352_v32 = vsel %vm584_vm2, %v10351_v34, %v21371_v56 }
 0x764   : > { %v11122_v60 = vsel %vm6668_vm3, %v10352_v32, %v10883_v57 }
 0x766   : > { %11032 = vrot.lane.b32.xlu2 %v10698_v25, %s12146_s7 }
 0x767   : > { %v11099_v6 = vpop.permute.xlu2 %11098 }
 0x768   : > { %10996 = vrot.lane.b32.xlu0 %v10696_v48, %s12148_s9  ;;  %v11097_v36 = vpop.permute.xlu0 %11096 }
 0x769   : > { %11068 = vrot.lane.b32.xlu1 %v10700_v15, %s12151_s12  ;;  %v11181_v27 = vsel %vm11178_vm11, %v11171_v26, %v11097_v36 }
 0x76a   : > { %11622 = vmatmul.msk.f32.gmra.mxu1 %vm321_vm1, %v11181_v27 }
 0x76f   : > { %v10993_v13 = vpop.permute.xlu2 %10992 }
 0x770   : > { %11104 = vrot.lane.b32.xlu0 %v10702_v1, %s12149_s10  ;;  %v10955_v63 = vpop.permute.xlu0 %10954 }
 0x772   : > { %v11027_v50 = vpop.permute.xlu1 %11026 }
 0x777   : > { %v11101_v31 = vpop.permute.xlu2 %11100 }
 0x778   : > { %v11063_v0 = vpop.permute.xlu0 %11062 }
 0x77a   : > { %v10919_v42 = vpop.permute.xlu1 %10918 }
 0x77b   : > { %v11132_v21 = vsel %vm11128_vm6, %v11122_v60, %v10919_v42 }
 0x77c   : > { %v11142_v35 = vsel %vm11138_vm7, %v11132_v21, %v10955_v63 }
 0x77d   : > { %v11152_v9 = vsel %vm11148_vm8, %v11142_v35, %v10991_v55 }
 0x77e   : > { %v11162_v19 = vsel %vm11158_vm9, %v11152_v9, %v11027_v50 }
 0x77f   : > { %v11172_v38 = vsel %vm11168_vm10, %v11162_v19, %v11063_v0  ;;  %v10959_v46 = vpop.permute.xlu2 %10958 }
 0x780   : > { %v11182_v30 = vsel %vm11178_vm11, %v11172_v38, %v11099_v6 }
 0x781   : > { %11623 = vmatmul.msk.f32.gmra.mxu1 %vm321_vm1, %v11182_v30 }
 0x782   : > { %v10885_v56 = vpop.permute.xlu1 %10884 }
 0x783   : > { %v11123_v44 = vsel %vm6668_vm3, %v10464_v22, %v10885_v56 }
 0x786   : > { %v11029_v4 = vpop.permute.xlu0 %11028 }
 0x787   : > { %v11067_v45 = vpop.permute.xlu2 %11066 }
 0x78a   : > { %v10957_v7 = vpop.permute.xlu1 %10956 }
 0x78e   : > { %v10921_v43 = vpop.permute.xlu0 %10920 }
 0x78f   : > { %v11133_v5 = vsel %vm11128_vm6, %v11123_v44, %v10921_v43 }
 0x790   : > { %v11143_v14 = vsel %vm11138_vm7, %v11133_v5, %v10957_v7  ;;  %v10891_v29 = vpop.permute.xlu2 %10890 }
 0x791   : > { %v11153_v2 = vsel %vm11148_vm8, %v11143_v14, %v10993_v13  ;;  %v11126_v20 = vsel %vm6668_vm3, %v10800_v52, %v10891_v29 }
 0x792   : > { %v11163_v10 = vsel %vm11158_vm9, %v11153_v2, %v11029_v4  ;;  %v11065_v8 = vpop.permute.xlu1 %11064 }
 0x793   : > { %v11173_v18 = vsel %vm11168_vm10, %v11163_v10, %v11065_v8 }
 0x794   : > { %v11183_v39 = vsel %vm11178_vm11, %v11173_v18, %v11101_v31  ;;  %v10687_v31 = vrot.slane %v21820_v53, 4 }
 0x795   : > { %11624 = vmatmul.msk.f32.gmra.mxu1 %vm321_vm1, %v11183_v39 }
 0x796   : > { %v10887_v59 = vpop.permute.xlu0 %10886  ;;  %v10688_v22 = vsel %vm584_vm2, %v10687_v31, %v21806_v49 }
 0x797   : > { %v11124_v16 = vsel %vm6668_vm3, %v10576_v54, %v10887_v59 }
 0x798   : > { %v10999_v57 = vpop.permute.xlu2 %10998 }
 0x79a   : > { %v11031_v62 = vpop.permute.xlu1 %11030 }
 0x79e   : > { %v10995_v28 = vpop.permute.xlu0 %10994 }
 0x7a0   : > { %v11107_v58 = vpop.permute.xlu2 %11106 }
 0x7a2   : > { %v10923_v12 = vpop.permute.xlu1 %10922 }
 0x7a3   : > { %v11134_v27 = vsel %vm11128_vm6, %v11124_v16, %v10923_v12 }
 0x7a4   : > { %v11144_v6 = vsel %vm11138_vm7, %v11134_v27, %v10959_v46 }
 0x7a5   : > { %v11154_v63 = vsel %vm11148_vm8, %v11144_v6, %v10995_v28 }
 0x7a6   : > { %v11164_v13 = vsel %vm11158_vm9, %v11154_v63, %v11031_v62 }
 0x7a7   : > { %v11174_v21 = vsel %vm11168_vm10, %v11164_v13, %v11067_v45 }
 0x7a8   : > { %v10965_v52 = vpop.permute.xlu2 %10964 }
 0x7aa   : > { %v11035_v25 = vpop.permute.xlu0 %11034  ;;  %v10963_v48 = vpop.permute.xlu1 %10962 }
 0x7b0   : > { %v11073_v60 = vpop.permute.xlu2 %11072 }
 0x7b2   : > { %v10927_v1 = vpop.permute.xlu0 %10926  ;;  %v11071_v24 = vpop.permute.xlu1 %11070 }
 0x7b3   : > { %v11136_v3 = vsel %vm11128_vm6, %v11126_v20, %v10927_v1 }
 0x7b4   : > { %v11146_v23 = vsel %vm11138_vm7, %v11136_v3, %v10963_v48 }
 0x7b5   : > { %v11156_v15 = vsel %vm11148_vm8, %v11146_v23, %v10999_v57 }
 0x7b6   : > { %v11166_v17 = vsel %vm11158_vm9, %v11156_v15, %v11035_v25 }
 0x7b7   : > { %v11176_v33 = vsel %vm11168_vm10, %v11166_v17, %v11071_v24 }
 0x7b8   : > { %v11186_v51 = vsel %vm11178_vm11, %v11176_v33, %v11107_v58  ;;  %v10925_v7 = vpop.permute.xlu2 %10924 }
 0x7b9   : > { %11627 = vmatmul.msk.f32.vlgmr.msrb.gmra.mxu3 %vm321_vm1, %v11186_v51 }
 0x7ba   : > { %v10893_v55 = vpop.permute.xlu0 %10892  ;;  %v10929_v26 = vpop.permute.xlu1 %10928 }
 0x7bb   : > { %v11127_v34 = vsel %vm6668_vm3, %v21736_v37, %v10893_v55 }
 0x7bc   : > { %v11240_v36 = vpop.f32.mrf.mxu1  ;;  %v11137_v32 = vsel %vm11128_vm6, %v11127_v34, %v10929_v26 }
 0x7bd   : > { %v11241_v41 = vadd.f32 %v21899_v61, %v11240_v36  ;;  %v11147_v0 = vsel %vm11138_vm7, %v11137_v32, %v10965_v52 }
 0x7bf   : > { %11267 = vst.msk [vmem:[%s21906_s28] sm:$0xff] %vm321_vm1, %v11241_v41 }
 0x7c0   : > { %v11033_v2 = vpop.permute.xlu2 %11032 }
 0x7c2   : > { %v11001_v40 = vpop.permute.xlu0 %11000 }
 0x7c3   : > { %v11037_v50 = vpop.permute.xlu1 %11036  ;;  %v11157_v19 = vsel %vm11148_vm8, %v11147_v0, %v11001_v40 }
 0x7c4   : > { %v11167_v30 = vsel %vm11158_vm9, %v11157_v19, %v11037_v50 }
 0x7c5   : > { %v11177_v4 = vsel %vm11168_vm10, %v11167_v30, %v11073_v60 }
 0x7ca   : > { %v11103_v42 = vpop.permute.xlu0 %11102  ;;  %v11243_v9 = vpop.f32.mrf.mxu1 }
 0x7cb   : > { %v11184_v35 = vsel %vm11178_vm11, %v11174_v21, %v11103_v42  ;;  %v10889_v38 = vpop.permute.xlu1 %10888  ;;  %v11244_v37 = vadd.f32 %v21899_v61, %v11243_v9 }
 0x7cc   : > { %11625 = vmatmul.msk.f32.gmra.mxu1 %vm321_vm1, %v11184_v35  ;;  %v11125_v44 = vsel %vm6668_vm3, %v10688_v22, %v10889_v38 }
 0x7cd   : > { %11268 = vst.msk [vmem:[%s21906_s28 + $0x8] sm:$0xff] %vm321_vm1, %v11244_v37  ;;  %v11135_v43 = vsel %vm11128_vm6, %v11125_v44, %v10925_v7 }
 0x7d2   : > { %v11109_v56 = vpop.permute.xlu0 %11108 }
 0x7d3   : > { %v11187_v11 = vsel %vm11178_vm11, %v11177_v4, %v11109_v56  ;;  %v10961_v46 = vpop.permute.xlu1 %10960 }
 0x7d4   : > { %11628 = vmatmul.msk.f32.gmra.mxu3 %vm321_vm1, %v11187_v11  ;;  %v11145_v53 = vsel %vm11138_vm7, %v11135_v43, %v10961_v46 }
 0x7da   : > { %v10997_v5 = vpop.permute.xlu0 %10996 }
 0x7db   : > { %v11155_v14 = vsel %vm11148_vm8, %v11145_v53, %v10997_v5  ;;  %v11069_v10 = vpop.permute.xlu1 %11068 }
 0x7dc   : > { %v11165_v8 = vsel %vm11158_vm9, %v11155_v14, %v11033_v2 }
 0x7dd   : > { %v11175_v18 = vsel %vm11168_vm10, %v11165_v8, %v11069_v10 }
 0x7e2   : > { %v11105_v39 = vpop.permute.xlu0 %11104 }
 0x7e3   : > { %v11185_v49 = vsel %vm11178_vm11, %v11175_v18, %v11105_v39 }
 0x7e4   : > { %11626 = vmatmul.msk.f32.gmra.mxu1 %vm321_vm1, %v11185_v49 }
 0x7e7   : > { %v11246_v59 = vpop.f32.mrf.mxu1 }
 0x7e8   : > { %v11247_v45 = vadd.f32 %v21899_v61, %v11246_v59 }
 0x7ea   : > { %11269 = vst.msk [vmem:[%s21906_s28 + $0x10] sm:$0xff] %vm321_vm1, %v11247_v45 }
 0x7fe   : > { %v11249_v62 = vpop.f32.mrf.mxu1 }
 0x7ff   : > { %v11250_v28 = vadd.f32 %v21899_v61, %v11249_v62 }
 0x801   : > { %11270 = vst.msk [vmem:[%s21906_s28 + $0x18] sm:$0xff] %vm321_vm1, %v11250_v28 }
 0x812   : > { %v11252_v29 = vpop.f32.mrf.mxu1 }
 0x813   : > { %v11253_v12 = vadd.f32 %v21899_v61, %v11252_v29 }
 0x815   : > { %11271 = vst.msk [vmem:[%s21906_s28 + $0x20] sm:$0xff] %vm321_vm1, %v11253_v12 }
 0x83c   : > { %v11261_v25 = vpop.f32.mrf.mxu3 }
 0x83d   : > { %v11262_v57 = vadd.f32 %v21899_v61, %v11261_v25 }
 0x83f   : > { %11274 = vst.msk [vmem:[%s21906_s28 + $0x38] sm:$0xff] %vm321_vm1, %v11262_v57 }
 0x849   : > { %v11255_v48 = vpop.f32.mrf.mxu1 }
 0x84a   : > { %v11256_v20 = vadd.f32 %v21899_v61, %v11255_v48 }
 0x84c   : > { %11272 = vst.msk [vmem:[%s21906_s28 + $0x28] sm:$0xff] %vm321_vm1, %v11256_v20 }
 0x857   : > { %v11264_v1 = vpop.f32.mrf.mxu3 }
 0x858   : > { %v11265_v3 = vadd.f32 %v21899_v61, %v11264_v1 }
 0x85a   : > { %11276 = vst.msk [vmem:[%s21906_s28 + $0x40] sm:$0x3] %vm11275_vm12, %v11265_v3 }
 0x861   : > { %v11258_v23 = vpop.f32.mrf.mxu1 }
 0x862   : > { %v11259_v24 = vadd.f32 %v21899_v61, %v11258_v23 }
 0x864   : > { %11273 = vst.msk [vmem:[%s21906_s28 + $0x30] sm:$0xff] %vm321_vm1, %v11259_v24 }
 0x865 PF: > { %s17_s21 = sadd.s32 1, %s12132_s21  }
 0x866   : > { %p14_p4 = scmp.ge.s32.totalorder %s17_s21, 4  }
 0x868   :  { %16 = sbr.rel (!%p14_p4) target bundleno = 1 (0x1), region = 85 }

</bundles_post_ra>
